<compile_context>
chip_gen: v6e
topology: v6e:2x2x1
jax: 0.10.0
libtpu: 0.0.40
codegen_flags: <defaults>
</compile_context>

<pallas_src>
import jax
import jax.numpy as jnp
import numpy as np
from jax.experimental import pallas as pl
from jax.experimental.pallas import tpu as pltpu

T = 8               # sequence length
H = 32              # LSTM hidden size per direction
G = 4 * H           # 128 gate lanes (PyTorch order i, f, g, o)
E = 16              # embedding dim (dead path, multiplied by 0 in the reference)
FEAT = 2 * H + E    # 80 = fc0 in/out features
NCLS = 8            # fc2 classes
LANES = 128         # lane-dense padding width
B_TILE = 128        # batch rows per grid step (fills MXU rows / vreg sublanes)

# Row offsets inside the single packed weight buffer (248 x 128, f32).
R_WHH = 0                   # rows  0..31 : W_hh forward (transposed, g rows pre-scaled)
R_WXB_F = H                 # rows 32..33 : [W_ih ; b_ih+b_hh] forward
R_WXB_B = H + 2             # rows 34..35 : [W_ih ; b_ih+b_hh] reverse
R_FC0A = 40                 # rows 40..71 : fc0 weight, h_fwd half (lanes padded 80->128)
R_FC0B = R_FC0A + H         # rows 72..103: fc0 weight, h_bwd half
R_B0 = R_FC0A + 2 * H       # row  104    : fc0 bias
R_HEAD = 112                # rows 112..239: fused fc1|fc2 head weight (128x128, zero-padded)
R_BHEAD = R_HEAD + LANES    # row  240    : fused head bias
W_ROWS = 248


def lstm_fc_kernel(x_ref, w_ref, out_ref):
    xp = x_ref[...]                                   # (B_TILE, 2T): interleaved [x_t, 1]

    whh_f = w_ref[R_WHH:R_WHH + H, :]                 # (H, 4H)   h->gates, fwd dir
    wxb_f = w_ref[R_WXB_F:R_WXB_F + 2, :]             # (2, 4H)   [W_ih ; bias], fwd dir
    wxb_b = w_ref[R_WXB_B:R_WXB_B + 2, :]             # (2, 4H)   [W_ih ; bias], rev dir
    w0a = w_ref[R_FC0A:R_FC0A + H, :]                 # (H, 128)  fc0, h_fwd half
    w0b = w_ref[R_FC0B:R_FC0B + H, :]                 # (H, 128)  fc0, h_bwd half
    b0 = w_ref[R_B0:R_B0 + 1, :]                      # (1, 128)
    w_hd = w_ref[R_HEAD:R_HEAD + LANES, :]            # (128, 128) fused fc1|fc2
    b_hd = w_ref[R_BHEAD:R_BHEAD + 1, :]              # (1, 128)

    def gin(t, wxb):
        # x_t * W_ih + (b_ih + b_hh) as one tiny MXU outer product (bias via ones lane);
        # no h dependence -> scheduled off the serial recurrence.
        return jnp.dot(xp[:, 2 * t:2 * t + 2], wxb, preferred_element_type=jnp.float32)

    def gates_split(gates):
        # Single EUP pass over all 128 gate lanes; g rows were pre-scaled by 2 in glue
        # so tanh(z_g) == 2 * sigmoid(2 * z_g) - 1.
        s = jax.nn.sigmoid(gates)                     # (B_TILE, 4H)
        i = s[:, 0 * H:1 * H]
        f = s[:, 1 * H:2 * H]
        g = 2.0 * s[:, 2 * H:3 * H] - 1.0
        o = s[:, 3 * H:4 * H]
        return i, f, g, o

    # Forward direction.  t = 0 has zero state: no recurrent matmul, c = i*g directly.
    i0, _, g0, o0 = gates_split(gin(0, wxb_f))
    c = i0 * g0
    h = o0 * jnp.tanh(c)
    for t in range(1, T):
        gates = jnp.dot(h, whh_f, preferred_element_type=jnp.float32) + gin(t, wxb_f)
        i, f, g, o = gates_split(gates)
        c = f * c + i * g
        h = o * jnp.tanh(c)
    h_fwd = h                                          # bidirectional output[:, -1, :H]

    # Reverse direction at output index T-1 == its first step with zero state:
    # h0 @ W_hh_rev == 0 exactly, so the recurrent weight / matmul is eliminated.
    ib, _, gb, ob = gates_split(gin(T - 1, wxb_b))
    h_bwd = ob * jnp.tanh(ib * gb)                     # bidirectional output[:, -1, H:]

    # TODO(synk): nn.Dropout(p=0.2) is identity in eval mode; train-mode RNG mask not implemented.

    # fc0 + ReLU.  Dead 16 embedding input rows dropped in glue; weight split into
    # fwd/bwd halves so no lane-concat of h_fwd/h_bwd is needed; lanes padded to 128.
    hidden = jnp.maximum(
        jnp.dot(h_fwd, w0a, preferred_element_type=jnp.float32)
        + jnp.dot(h_bwd, w0b, preferred_element_type=jnp.float32)
        + b0, 0.0)                                     # (B_TILE, 128), lanes 80.. are 0

    # Fused fc1|fc2 head: one matmul, one sigmoid, one unmasked full-lane store.
    out_ref[...] = jax.nn.sigmoid(
        jnp.dot(hidden, w_hd, preferred_element_type=jnp.float32) + b_hd)


def init_params(key):
    # Mirrors LSTMModel.init_parameters(): every parameter ~ U(-0.05, 0.05).
    def u(k, shape):
        return jax.random.uniform(k, shape, jnp.float32, -0.05, 0.05)
    ks = jax.random.split(key, 15)
    return dict(
        emb_table=u(ks[0], (8, E)),          # nn.Embedding(8, 16)   (output * 0 -> dead)
        w_ih_f=u(ks[1], (G, 1)),             # LSTM forward direction (PyTorch layout)
        w_hh_f=u(ks[2], (G, H)),
        b_ih_f=u(ks[3], (G,)),
        b_hh_f=u(ks[4], (G,)),
        w_ih_b=u(ks[5], (G, 1)),             # LSTM reverse direction
        w_hh_b=u(ks[6], (G, H)),
        b_ih_b=u(ks[7], (G,)),
        b_hh_b=u(ks[8], (G,)),
        w0=u(ks[9], (FEAT, FEAT)),           # fc0
        b0=u(ks[10], (FEAT,)),
        w1=u(ks[11], (1, FEAT)),             # fc1
        b1=u(ks[12], (1,)),
        w2=u(ks[13], (NCLS, FEAT)),          # fc2
        b2=u(ks[14], (NCLS,)),
    )


def pack_params(params):
    """One-time layout plumbing in JAX: transpose weights, pre-scale g-gate rows by 2,
    combine LSTM biases, drop the dead embedding rows of fc0, fuse fc1|fc2, pad every
    section to 128 lanes and pack everything into ONE lane-dense (248, 128) buffer."""
    f32 = jnp.float32
    # PyTorch gate order along the 4H axis is (i, f, g, o); scale the g block by 2.
    g_scale = jnp.concatenate([jnp.ones((2 * H,), f32),
                               jnp.full((H,), 2.0, f32),
                               jnp.ones((H,), f32)])
    whh_f = (params["w_hh_f"] * g_scale[:, None]).T                    # (H, 4H)
    wih_f = (params["w_ih_f"] * g_scale[:, None]).T                    # (1, 4H)
    b_f = ((params["b_ih_f"] + params["b_hh_f"]) * g_scale)[None, :]   # (1, 4H)
    wih_b = (params["w_ih_b"] * g_scale[:, None]).T                    # (1, 4H)
    b_b = ((params["b_ih_b"] + params["b_hh_b"]) * g_scale)[None, :]   # (1, 4H)
    sec_lstm = jnp.concatenate(
        [whh_f, wih_f, b_f, wih_b, b_b, jnp.zeros((4, G), f32)], axis=0)       # (40, 128)

    # fc0: keep only the 64 live input rows (embedding rows contribute exactly 0),
    # pad output lanes 80 -> 128 with zeros.
    w0t = jnp.pad(params["w0"].T[:2 * H, :], ((0, 0), (0, LANES - FEAT)))      # (64, 128)
    b0 = jnp.pad(params["b0"][None, :], ((0, 0), (0, LANES - FEAT)))           # (1, 128)
    sec_fc0 = jnp.concatenate([w0t, b0, jnp.zeros((7, LANES), f32)], axis=0)   # (72, 128)

    # Fused fc1|fc2 head, zero-padded to 128 input rows and 128 output lanes.
    w_head = jnp.concatenate([params["w1"].T, params["w2"].T], axis=1)         # (80, 9)
    w_head = jnp.pad(w_head, ((0, LANES - FEAT), (0, LANES - 1 - NCLS)))       # (128, 128)
    b_head = jnp.pad(jnp.concatenate([params["b1"], params["b2"]])[None, :],
                     ((0, 0), (0, LANES - 1 - NCLS)))                          # (1, 128)
    sec_head = jnp.concatenate(
        [w_head, b_head, jnp.zeros((7, LANES), f32)], axis=0)                  # (136, 128)

    w_pack = jnp.concatenate([sec_lstm, sec_fc0, sec_head], axis=0)            # (248, 128)
    assert w_pack.shape == (W_ROWS, LANES)
    return w_pack


def lstm_model_forward(w_pack, x, x2):
    # x2 (embedding indices) is unused: the reference multiplies the embedding by 0.
    del x2
    bn = x.shape[0]
    xf = x.astype(jnp.float32)
    # Interleave each x_t with a ones lane: gate-input + bias become one 2-wide MXU dot.
    x_pairs = jnp.stack([xf, jnp.ones_like(xf)], axis=2).reshape(bn, 2 * T)    # (bn, 16)
    bp = pl.cdiv(bn, B_TILE) * B_TILE
    if bp != bn:
        x_pairs = jnp.pad(x_pairs, ((0, bp - bn), (0, 0)))
    out = pl.pallas_call(
        lstm_fc_kernel,
        out_shape=jax.ShapeDtypeStruct((bp, LANES), jnp.float32),
        grid=(bp // B_TILE,),
        in_specs=[pl.BlockSpec((B_TILE, 2 * T), lambda i: (i, 0)),
                  pl.BlockSpec((W_ROWS, LANES), lambda i: (0, 0))],   # weights: resident
        out_specs=pl.BlockSpec((B_TILE, LANES), lambda i: (i, 0)),
        compiler_params=pltpu.CompilerParams(dimension_semantics=("parallel",)),
    )(x_pairs, w_pack)
    return out[:bn, 0:1], out[:bn, 1:1 + NCLS]


def reference_forward(params, x, x2):
    # Plain-JAX mirror of the PyTorch forward (eval mode) for validation.
    bn = x.shape[0]

    def cell(x_t, h, c, w_ih, w_hh, b_ih, b_hh):
        gates = x_t @ w_ih.T + h @ w_hh.T + b_ih + b_hh
        i = jax.nn.sigmoid(gates[:, 0:H])
        f = jax.nn.sigmoid(gates[:, H:2 * H])
        g = jnp.tanh(gates[:, 2 * H:3 * H])
        o = jax.nn.sigmoid(gates[:, 3 * H:4 * H])
        c = f * c + i * g
        return o * jnp.tanh(c), c

    h = jnp.zeros((bn, H), jnp.float32)
    c = jnp.zeros((bn, H), jnp.float32)
    for t in range(T):
        h, c = cell(x[:, t:t + 1], h, c, params["w_ih_f"], params["w_hh_f"],
                    params["b_ih_f"], params["b_hh_f"])
    h_fwd = h

    h = jnp.zeros((bn, H), jnp.float32)
    c = jnp.zeros((bn, H), jnp.float32)
    h_bwd_at = {}
    for t in range(T - 1, -1, -1):
        h, c = cell(x[:, t:t + 1], h, c, params["w_ih_b"], params["w_hh_b"],
                    params["b_ih_b"], params["b_hh_b"])
        h_bwd_at[t] = h
    h_bwd = h_bwd_at[T - 1]                 # backward part of output[:, -1, :]

    emb = params["emb_table"][x2[:, 0]] * 0.0
    feat = jnp.concatenate([h_fwd, h_bwd, emb], axis=1)
    hidden = jax.nn.relu(feat @ params["w0"].T + params["b0"])
    out1 = jax.nn.sigmoid(hidden @ params["w1"].T + params["b1"])
    out2 = jax.nn.sigmoid(hidden @ params["w2"].T + params["b2"])
    return out1, out2


if __name__ == "__main__":
    BATCH = 256  # two 128-row tiles -> exercises the parallel grid / weight residency
    key = jax.random.PRNGKey(0)
    pkey, xkey, x2key = jax.random.split(key, 3)
    params = init_params(pkey)
    x = jax.random.normal(xkey, (BATCH, T), jnp.float32)          # sequence input
    x2 = jax.random.randint(x2key, (BATCH, 1), 0, 8, jnp.int32)   # embedding indices (dead)

    w_pack = pack_params(params)
    fwd = jax.jit(lstm_model_forward)
    out1, out2 = fwd(w_pack, x, x2)
    jax.block_until_ready((out1, out2))
    assert out1.shape == (BATCH, 1) and out2.shape == (BATCH, NCLS)

    ref1, ref2 = reference_forward(params, x, x2)
    np.testing.assert_allclose(np.asarray(out1), np.asarray(ref1), rtol=1e-4, atol=1e-4)
    np.testing.assert_allclose(np.asarray(out2), np.asarray(ref2), rtol=1e-4, atol=1e-4)
    print("KERNEL_OK")
</pallas_src>

<mosaic_0001>
module attributes {stable_mosaic.version = 11 : i64} {
  func.func @lstm_fc_kernel(%arg0: i32, %arg1: memref<128x16xf32, #tpu.memory_space<vmem>>, %arg2: memref<248x128xf32, #tpu.memory_space<vmem>>, %arg3: memref<128x128xf32, #tpu.memory_space<vmem>>) attributes {dimension_semantics = [#tpu.dimension_semantics<parallel>], iteration_bounds = array<i64: 2>, scalar_prefetch = 0 : i64, scratch_operands = 0 : i64, tpu.core_type = #tpu.core_type<tc>, window_params = [{transform_indices = @transform_0, window_bounds = array<i64: 128, 16>}, {pipeline_mode = #tpu.pipeline_mode<synchronous>, transform_indices = @transform_1, window_bounds = array<i64: 248, 128>}, {transform_indices = @transform_2, window_bounds = array<i64: 128, 128>}]} {
    %c0 = arith.constant 0 : index
    %c0_0 = arith.constant 0 : index
    %0 = vector.load %arg1[%c0, %c0_0] : memref<128x16xf32, #tpu.memory_space<vmem>>, vector<128x16xf32>
    %c0_1 = arith.constant 0 : index
    %c0_2 = arith.constant 0 : index
    %1 = vector.load %arg2[%c0_1, %c0_2] : memref<248x128xf32, #tpu.memory_space<vmem>>, vector<32x128xf32>
    %c32 = arith.constant 32 : index
    %c0_3 = arith.constant 0 : index
    %2 = vector.load %arg2[%c32, %c0_3] : memref<248x128xf32, #tpu.memory_space<vmem>>, vector<2x128xf32>
    %c34 = arith.constant 34 : index
    %c0_4 = arith.constant 0 : index
    %3 = vector.load %arg2[%c34, %c0_4] : memref<248x128xf32, #tpu.memory_space<vmem>>, vector<2x128xf32>
    %c40 = arith.constant 40 : index
    %c0_5 = arith.constant 0 : index
    %4 = vector.load %arg2[%c40, %c0_5] : memref<248x128xf32, #tpu.memory_space<vmem>>, vector<32x128xf32>
    %c72 = arith.constant 72 : index
    %c0_6 = arith.constant 0 : index
    %5 = vector.load %arg2[%c72, %c0_6] : memref<248x128xf32, #tpu.memory_space<vmem>>, vector<32x128xf32>
    %c104 = arith.constant 104 : index
    %c0_7 = arith.constant 0 : index
    %6 = vector.load %arg2[%c104, %c0_7] : memref<248x128xf32, #tpu.memory_space<vmem>>, vector<1x128xf32>
    %c112 = arith.constant 112 : index
    %c0_8 = arith.constant 0 : index
    %7 = vector.load %arg2[%c112, %c0_8] : memref<248x128xf32, #tpu.memory_space<vmem>>, vector<128x128xf32>
    %c240 = arith.constant 240 : index
    %c0_9 = arith.constant 0 : index
    %8 = vector.load %arg2[%c240, %c0_9] : memref<248x128xf32, #tpu.memory_space<vmem>>, vector<1x128xf32>
    %9 = vector.extract_strided_slice %0 {offsets = [0, 0], sizes = [128, 2], strides = [1, 1]} : vector<128x16xf32> to vector<128x2xf32>
    %cst = arith.constant dense<0.000000e+00> : vector<128x128xf32>
    %10 = tpu.matmul %9, %2, %cst {dimension_numbers = #tpu.dot_dimension_numbers<[1], [0], [0], [1], [0, 0, 1, 1], [], []>} : vector<128x2xf32>, vector<2x128xf32>, vector<128x128xf32> -> vector<128x128xf32>
    %11 = arith.negf %10 : vector<128x128xf32>
    %12 = math.exp %11 : vector<128x128xf32>
    %cst_10 = arith.constant 1.000000e+00 : f32
    %13 = vector.broadcast %cst_10 : f32 to vector<128x128xf32>
    %14 = arith.addf %13, %12 : vector<128x128xf32>
    %15 = arith.divf %13, %14 : vector<128x128xf32>
    %16 = vector.extract_strided_slice %15 {offsets = [0, 0], sizes = [128, 32], strides = [1, 1]} : vector<128x128xf32> to vector<128x32xf32>
    %17 = vector.extract_strided_slice %15 {offsets = [0, 64], sizes = [128, 32], strides = [1, 1]} : vector<128x128xf32> to vector<128x32xf32>
    %cst_11 = arith.constant 2.000000e+00 : f32
    %18 = vector.broadcast %cst_11 : f32 to vector<128x32xf32>
    %19 = arith.mulf %18, %17 : vector<128x32xf32>
    %cst_12 = arith.constant 1.000000e+00 : f32
    %20 = vector.broadcast %cst_12 : f32 to vector<128x32xf32>
    %21 = arith.subf %19, %20 : vector<128x32xf32>
    %22 = vector.extract_strided_slice %15 {offsets = [0, 96], sizes = [128, 32], strides = [1, 1]} : vector<128x128xf32> to vector<128x32xf32>
    %23 = arith.mulf %16, %21 : vector<128x32xf32>
    %24 = math.tanh %23 : vector<128x32xf32>
    %25 = arith.mulf %22, %24 : vector<128x32xf32>
    %cst_13 = arith.constant dense<0.000000e+00> : vector<128x128xf32>
    %26 = tpu.matmul %25, %1, %cst_13 {dimension_numbers = #tpu.dot_dimension_numbers<[1], [0], [0], [1], [0, 0, 1, 1], [], []>} : vector<128x32xf32>, vector<32x128xf32>, vector<128x128xf32> -> vector<128x128xf32>
    %27 = vector.extract_strided_slice %0 {offsets = [0, 2], sizes = [128, 2], strides = [1, 1]} : vector<128x16xf32> to vector<128x2xf32>
    %cst_14 = arith.constant dense<0.000000e+00> : vector<128x128xf32>
    %28 = tpu.matmul %27, %2, %cst_14 {dimension_numbers = #tpu.dot_dimension_numbers<[1], [0], [0], [1], [0, 0, 1, 1], [], []>} : vector<128x2xf32>, vector<2x128xf32>, vector<128x128xf32> -> vector<128x128xf32>
    %29 = arith.addf %26, %28 : vector<128x128xf32>
    %30 = arith.negf %29 : vector<128x128xf32>
    %31 = math.exp %30 : vector<128x128xf32>
    %cst_15 = arith.constant 1.000000e+00 : f32
    %32 = vector.broadcast %cst_15 : f32 to vector<128x128xf32>
    %33 = arith.addf %32, %31 : vector<128x128xf32>
    %34 = arith.divf %32, %33 : vector<128x128xf32>
    %35 = vector.extract_strided_slice %34 {offsets = [0, 0], sizes = [128, 32], strides = [1, 1]} : vector<128x128xf32> to vector<128x32xf32>
    %36 = vector.extract_strided_slice %34 {offsets = [0, 32], sizes = [128, 32], strides = [1, 1]} : vector<128x128xf32> to vector<128x32xf32>
    %37 = vector.extract_strided_slice %34 {offsets = [0, 64], sizes = [128, 32], strides = [1, 1]} : vector<128x128xf32> to vector<128x32xf32>
    %cst_16 = arith.constant 2.000000e+00 : f32
    %38 = vector.broadcast %cst_16 : f32 to vector<128x32xf32>
    %39 = arith.mulf %38, %37 : vector<128x32xf32>
    %cst_17 = arith.constant 1.000000e+00 : f32
    %40 = vector.broadcast %cst_17 : f32 to vector<128x32xf32>
    %41 = arith.subf %39, %40 : vector<128x32xf32>
    %42 = vector.extract_strided_slice %34 {offsets = [0, 96], sizes = [128, 32], strides = [1, 1]} : vector<128x128xf32> to vector<128x32xf32>
    %43 = arith.mulf %36, %23 : vector<128x32xf32>
    %44 = arith.mulf %35, %41 : vector<128x32xf32>
    %45 = arith.addf %43, %44 : vector<128x32xf32>
    %46 = math.tanh %45 : vector<128x32xf32>
    %47 = arith.mulf %42, %46 : vector<128x32xf32>
    %cst_18 = arith.constant dense<0.000000e+00> : vector<128x128xf32>
    %48 = tpu.matmul %47, %1, %cst_18 {dimension_numbers = #tpu.dot_dimension_numbers<[1], [0], [0], [1], [0, 0, 1, 1], [], []>} : vector<128x32xf32>, vector<32x128xf32>, vector<128x128xf32> -> vector<128x128xf32>
    %49 = vector.extract_strided_slice %0 {offsets = [0, 4], sizes = [128, 2], strides = [1, 1]} : vector<128x16xf32> to vector<128x2xf32>
    %cst_19 = arith.constant dense<0.000000e+00> : vector<128x128xf32>
    %50 = tpu.matmul %49, %2, %cst_19 {dimension_numbers = #tpu.dot_dimension_numbers<[1], [0], [0], [1], [0, 0, 1, 1], [], []>} : vector<128x2xf32>, vector<2x128xf32>, vector<128x128xf32> -> vector<128x128xf32>
    %51 = arith.addf %48, %50 : vector<128x128xf32>
    %52 = arith.negf %51 : vector<128x128xf32>
    %53 = math.exp %52 : vector<128x128xf32>
    %cst_20 = arith.constant 1.000000e+00 : f32
    %54 = vector.broadcast %cst_20 : f32 to vector<128x128xf32>
    %55 = arith.addf %54, %53 : vector<128x128xf32>
    %56 = arith.divf %54, %55 : vector<128x128xf32>
    %57 = vector.extract_strided_slice %56 {offsets = [0, 0], sizes = [128, 32], strides = [1, 1]} : vector<128x128xf32> to vector<128x32xf32>
    %58 = vector.extract_strided_slice %56 {offsets = [0, 32], sizes = [128, 32], strides = [1, 1]} : vector<128x128xf32> to vector<128x32xf32>
    %59 = vector.extract_strided_slice %56 {offsets = [0, 64], sizes = [128, 32], strides = [1, 1]} : vector<128x128xf32> to vector<128x32xf32>
    %cst_21 = arith.constant 2.000000e+00 : f32
    %60 = vector.broadcast %cst_21 : f32 to vector<128x32xf32>
    %61 = arith.mulf %60, %59 : vector<128x32xf32>
    %cst_22 = arith.constant 1.000000e+00 : f32
    %62 = vector.broadcast %cst_22 : f32 to vector<128x32xf32>
    %63 = arith.subf %61, %62 : vector<128x32xf32>
    %64 = vector.extract_strided_slice %56 {offsets = [0, 96], sizes = [128, 32], strides = [1, 1]} : vector<128x128xf32> to vector<128x32xf32>
    %65 = arith.mulf %58, %45 : vector<128x32xf32>
    %66 = arith.mulf %57, %63 : vector<128x32xf32>
    %67 = arith.addf %65, %66 : vector<128x32xf32>
    %68 = math.tanh %67 : vector<128x32xf32>
    %69 = arith.mulf %64, %68 : vector<128x32xf32>
    %cst_23 = arith.constant dense<0.000000e+00> : vector<128x128xf32>
    %70 = tpu.matmul %69, %1, %cst_23 {dimension_numbers = #tpu.dot_dimension_numbers<[1], [0], [0], [1], [0, 0, 1, 1], [], []>} : vector<128x32xf32>, vector<32x128xf32>, vector<128x128xf32> -> vector<128x128xf32>
    %71 = vector.extract_strided_slice %0 {offsets = [0, 6], sizes = [128, 2], strides = [1, 1]} : vector<128x16xf32> to vector<128x2xf32>
    %cst_24 = arith.constant dense<0.000000e+00> : vector<128x128xf32>
    %72 = tpu.matmul %71, %2, %cst_24 {dimension_numbers = #tpu.dot_dimension_numbers<[1], [0], [0], [1], [0, 0, 1, 1], [], []>} : vector<128x2xf32>, vector<2x128xf32>, vector<128x128xf32> -> vector<128x128xf32>
    %73 = arith.addf %70, %72 : vector<128x128xf32>
    %74 = arith.negf %73 : vector<128x128xf32>
    %75 = math.exp %74 : vector<128x128xf32>
    %cst_25 = arith.constant 1.000000e+00 : f32
    %76 = vector.broadcast %cst_25 : f32 to vector<128x128xf32>
    %77 = arith.addf %76, %75 : vector<128x128xf32>
    %78 = arith.divf %76, %77 : vector<128x128xf32>
    %79 = vector.extract_strided_slice %78 {offsets = [0, 0], sizes = [128, 32], strides = [1, 1]} : vector<128x128xf32> to vector<128x32xf32>
    %80 = vector.extract_strided_slice %78 {offsets = [0, 32], sizes = [128, 32], strides = [1, 1]} : vector<128x128xf32> to vector<128x32xf32>
    %81 = vector.extract_strided_slice %78 {offsets = [0, 64], sizes = [128, 32], strides = [1, 1]} : vector<128x128xf32> to vector<128x32xf32>
    %cst_26 = arith.constant 2.000000e+00 : f32
    %82 = vector.broadcast %cst_26 : f32 to vector<128x32xf32>
    %83 = arith.mulf %82, %81 : vector<128x32xf32>
    %cst_27 = arith.constant 1.000000e+00 : f32
    %84 = vector.broadcast %cst_27 : f32 to vector<128x32xf32>
    %85 = arith.subf %83, %84 : vector<128x32xf32>
    %86 = vector.extract_strided_slice %78 {offsets = [0, 96], sizes = [128, 32], strides = [1, 1]} : vector<128x128xf32> to vector<128x32xf32>
    %87 = arith.mulf %80, %67 : vector<128x32xf32>
    %88 = arith.mulf %79, %85 : vector<128x32xf32>
    %89 = arith.addf %87, %88 : vector<128x32xf32>
    %90 = math.tanh %89 : vector<128x32xf32>
    %91 = arith.mulf %86, %90 : vector<128x32xf32>
    %cst_28 = arith.constant dense<0.000000e+00> : vector<128x128xf32>
    %92 = tpu.matmul %91, %1, %cst_28 {dimension_numbers = #tpu.dot_dimension_numbers<[1], [0], [0], [1], [0, 0, 1, 1], [], []>} : vector<128x32xf32>, vector<32x128xf32>, vector<128x128xf32> -> vector<128x128xf32>
    %93 = vector.extract_strided_slice %0 {offsets = [0, 8], sizes = [128, 2], strides = [1, 1]} : vector<128x16xf32> to vector<128x2xf32>
    %cst_29 = arith.constant dense<0.000000e+00> : vector<128x128xf32>
    %94 = tpu.matmul %93, %2, %cst_29 {dimension_numbers = #tpu.dot_dimension_numbers<[1], [0], [0], [1], [0, 0, 1, 1], [], []>} : vector<128x2xf32>, vector<2x128xf32>, vector<128x128xf32> -> vector<128x128xf32>
    %95 = arith.addf %92, %94 : vector<128x128xf32>
    %96 = arith.negf %95 : vector<128x128xf32>
    %97 = math.exp %96 : vector<128x128xf32>
    %cst_30 = arith.constant 1.000000e+00 : f32
    %98 = vector.broadcast %cst_30 : f32 to vector<128x128xf32>
    %99 = arith.addf %98, %97 : vector<128x128xf32>
    %100 = arith.divf %98, %99 : vector<128x128xf32>
    %101 = vector.extract_strided_slice %100 {offsets = [0, 0], sizes = [128, 32], strides = [1, 1]} : vector<128x128xf32> to vector<128x32xf32>
    %102 = vector.extract_strided_slice %100 {offsets = [0, 32], sizes = [128, 32], strides = [1, 1]} : vector<128x128xf32> to vector<128x32xf32>
    %103 = vector.extract_strided_slice %100 {offsets = [0, 64], sizes = [128, 32], strides = [1, 1]} : vector<128x128xf32> to vector<128x32xf32>
    %cst_31 = arith.constant 2.000000e+00 : f32
    %104 = vector.broadcast %cst_31 : f32 to vector<128x32xf32>
    %105 = arith.mulf %104, %103 : vector<128x32xf32>
    %cst_32 = arith.constant 1.000000e+00 : f32
    %106 = vector.broadcast %cst_32 : f32 to vector<128x32xf32>
    %107 = arith.subf %105, %106 : vector<128x32xf32>
    %108 = vector.extract_strided_slice %100 {offsets = [0, 96], sizes = [128, 32], strides = [1, 1]} : vector<128x128xf32> to vector<128x32xf32>
    %109 = arith.mulf %102, %89 : vector<128x32xf32>
    %110 = arith.mulf %101, %107 : vector<128x32xf32>
    %111 = arith.addf %109, %110 : vector<128x32xf32>
    %112 = math.tanh %111 : vector<128x32xf32>
    %113 = arith.mulf %108, %112 : vector<128x32xf32>
    %cst_33 = arith.constant dense<0.000000e+00> : vector<128x128xf32>
    %114 = tpu.matmul %113, %1, %cst_33 {dimension_numbers = #tpu.dot_dimension_numbers<[1], [0], [0], [1], [0, 0, 1, 1], [], []>} : vector<128x32xf32>, vector<32x128xf32>, vector<128x128xf32> -> vector<128x128xf32>
    %115 = vector.extract_strided_slice %0 {offsets = [0, 10], sizes = [128, 2], strides = [1, 1]} : vector<128x16xf32> to vector<128x2xf32>
    %cst_34 = arith.constant dense<0.000000e+00> : vector<128x128xf32>
    %116 = tpu.matmul %115, %2, %cst_34 {dimension_numbers = #tpu.dot_dimension_numbers<[1], [0], [0], [1], [0, 0, 1, 1], [], []>} : vector<128x2xf32>, vector<2x128xf32>, vector<128x128xf32> -> vector<128x128xf32>
    %117 = arith.addf %114, %116 : vector<128x128xf32>
    %118 = arith.negf %117 : vector<128x128xf32>
    %119 = math.exp %118 : vector<128x128xf32>
    %cst_35 = arith.constant 1.000000e+00 : f32
    %120 = vector.broadcast %cst_35 : f32 to vector<128x128xf32>
    %121 = arith.addf %120, %119 : vector<128x128xf32>
    %122 = arith.divf %120, %121 : vector<128x128xf32>
    %123 = vector.extract_strided_slice %122 {offsets = [0, 0], sizes = [128, 32], strides = [1, 1]} : vector<128x128xf32> to vector<128x32xf32>
    %124 = vector.extract_strided_slice %122 {offsets = [0, 32], sizes = [128, 32], strides = [1, 1]} : vector<128x128xf32> to vector<128x32xf32>
    %125 = vector.extract_strided_slice %122 {offsets = [0, 64], sizes = [128, 32], strides = [1, 1]} : vector<128x128xf32> to vector<128x32xf32>
    %cst_36 = arith.constant 2.000000e+00 : f32
    %126 = vector.broadcast %cst_36 : f32 to vector<128x32xf32>
    %127 = arith.mulf %126, %125 : vector<128x32xf32>
    %cst_37 = arith.constant 1.000000e+00 : f32
    %128 = vector.broadcast %cst_37 : f32 to vector<128x32xf32>
    %129 = arith.subf %127, %128 : vector<128x32xf32>
    %130 = vector.extract_strided_slice %122 {offsets = [0, 96], sizes = [128, 32], strides = [1, 1]} : vector<128x128xf32> to vector<128x32xf32>
    %131 = arith.mulf %124, %111 : vector<128x32xf32>
    %132 = arith.mulf %123, %129 : vector<128x32xf32>
    %133 = arith.addf %131, %132 : vector<128x32xf32>
    %134 = math.tanh %133 : vector<128x32xf32>
    %135 = arith.mulf %130, %134 : vector<128x32xf32>
    %cst_38 = arith.constant dense<0.000000e+00> : vector<128x128xf32>
    %136 = tpu.matmul %135, %1, %cst_38 {dimension_numbers = #tpu.dot_dimension_numbers<[1], [0], [0], [1], [0, 0, 1, 1], [], []>} : vector<128x32xf32>, vector<32x128xf32>, vector<128x128xf32> -> vector<128x128xf32>
    %137 = vector.extract_strided_slice %0 {offsets = [0, 12], sizes = [128, 2], strides = [1, 1]} : vector<128x16xf32> to vector<128x2xf32>
    %cst_39 = arith.constant dense<0.000000e+00> : vector<128x128xf32>
    %138 = tpu.matmul %137, %2, %cst_39 {dimension_numbers = #tpu.dot_dimension_numbers<[1], [0], [0], [1], [0, 0, 1, 1], [], []>} : vector<128x2xf32>, vector<2x128xf32>, vector<128x128xf32> -> vector<128x128xf32>
    %139 = arith.addf %136, %138 : vector<128x128xf32>
    %140 = arith.negf %139 : vector<128x128xf32>
    %141 = math.exp %140 : vector<128x128xf32>
    %cst_40 = arith.constant 1.000000e+00 : f32
    %142 = vector.broadcast %cst_40 : f32 to vector<128x128xf32>
    %143 = arith.addf %142, %141 : vector<128x128xf32>
    %144 = arith.divf %142, %143 : vector<128x128xf32>
    %145 = vector.extract_strided_slice %144 {offsets = [0, 0], sizes = [128, 32], strides = [1, 1]} : vector<128x128xf32> to vector<128x32xf32>
    %146 = vector.extract_strided_slice %144 {offsets = [0, 32], sizes = [128, 32], strides = [1, 1]} : vector<128x128xf32> to vector<128x32xf32>
    %147 = vector.extract_strided_slice %144 {offsets = [0, 64], sizes = [128, 32], strides = [1, 1]} : vector<128x128xf32> to vector<128x32xf32>
    %cst_41 = arith.constant 2.000000e+00 : f32
    %148 = vector.broadcast %cst_41 : f32 to vector<128x32xf32>
    %149 = arith.mulf %148, %147 : vector<128x32xf32>
    %cst_42 = arith.constant 1.000000e+00 : f32
    %150 = vector.broadcast %cst_42 : f32 to vector<128x32xf32>
    %151 = arith.subf %149, %150 : vector<128x32xf32>
    %152 = vector.extract_strided_slice %144 {offsets = [0, 96], sizes = [128, 32], strides = [1, 1]} : vector<128x128xf32> to vector<128x32xf32>
    %153 = arith.mulf %146, %133 : vector<128x32xf32>
    %154 = arith.mulf %145, %151 : vector<128x32xf32>
    %155 = arith.addf %153, %154 : vector<128x32xf32>
    %156 = math.tanh %155 : vector<128x32xf32>
    %157 = arith.mulf %152, %156 : vector<128x32xf32>
    %cst_43 = arith.constant dense<0.000000e+00> : vector<128x128xf32>
    %158 = tpu.matmul %157, %1, %cst_43 {dimension_numbers = #tpu.dot_dimension_numbers<[1], [0], [0], [1], [0, 0, 1, 1], [], []>} : vector<128x32xf32>, vector<32x128xf32>, vector<128x128xf32> -> vector<128x128xf32>
    %159 = vector.extract_strided_slice %0 {offsets = [0, 14], sizes = [128, 2], strides = [1, 1]} : vector<128x16xf32> to vector<128x2xf32>
    %cst_44 = arith.constant dense<0.000000e+00> : vector<128x128xf32>
    %160 = tpu.matmul %159, %2, %cst_44 {dimension_numbers = #tpu.dot_dimension_numbers<[1], [0], [0], [1], [0, 0, 1, 1], [], []>} : vector<128x2xf32>, vector<2x128xf32>, vector<128x128xf32> -> vector<128x128xf32>
    %161 = arith.addf %158, %160 : vector<128x128xf32>
    %162 = arith.negf %161 : vector<128x128xf32>
    %163 = math.exp %162 : vector<128x128xf32>
    %cst_45 = arith.constant 1.000000e+00 : f32
    %164 = vector.broadcast %cst_45 : f32 to vector<128x128xf32>
    %165 = arith.addf %164, %163 : vector<128x128xf32>
    %166 = arith.divf %164, %165 : vector<128x128xf32>
    %167 = vector.extract_strided_slice %166 {offsets = [0, 0], sizes = [128, 32], strides = [1, 1]} : vector<128x128xf32> to vector<128x32xf32>
    %168 = vector.extract_strided_slice %166 {offsets = [0, 32], sizes = [128, 32], strides = [1, 1]} : vector<128x128xf32> to vector<128x32xf32>
    %169 = vector.extract_strided_slice %166 {offsets = [0, 64], sizes = [128, 32], strides = [1, 1]} : vector<128x128xf32> to vector<128x32xf32>
    %cst_46 = arith.constant 2.000000e+00 : f32
    %170 = vector.broadcast %cst_46 : f32 to vector<128x32xf32>
    %171 = arith.mulf %170, %169 : vector<128x32xf32>
    %cst_47 = arith.constant 1.000000e+00 : f32
    %172 = vector.broadcast %cst_47 : f32 to vector<128x32xf32>
    %173 = arith.subf %171, %172 : vector<128x32xf32>
    %174 = vector.extract_strided_slice %166 {offsets = [0, 96], sizes = [128, 32], strides = [1, 1]} : vector<128x128xf32> to vector<128x32xf32>
    %175 = arith.mulf %168, %155 : vector<128x32xf32>
    %176 = arith.mulf %167, %173 : vector<128x32xf32>
    %177 = arith.addf %175, %176 : vector<128x32xf32>
    %178 = math.tanh %177 : vector<128x32xf32>
    %179 = arith.mulf %174, %178 : vector<128x32xf32>
    %180 = vector.extract_strided_slice %0 {offsets = [0, 14], sizes = [128, 2], strides = [1, 1]} : vector<128x16xf32> to vector<128x2xf32>
    %cst_48 = arith.constant dense<0.000000e+00> : vector<128x128xf32>
    %181 = tpu.matmul %180, %3, %cst_48 {dimension_numbers = #tpu.dot_dimension_numbers<[1], [0], [0], [1], [0, 0, 1, 1], [], []>} : vector<128x2xf32>, vector<2x128xf32>, vector<128x128xf32> -> vector<128x128xf32>
    %182 = arith.negf %181 : vector<128x128xf32>
    %183 = math.exp %182 : vector<128x128xf32>
    %cst_49 = arith.constant 1.000000e+00 : f32
    %184 = vector.broadcast %cst_49 : f32 to vector<128x128xf32>
    %185 = arith.addf %184, %183 : vector<128x128xf32>
    %186 = arith.divf %184, %185 : vector<128x128xf32>
    %187 = vector.extract_strided_slice %186 {offsets = [0, 0], sizes = [128, 32], strides = [1, 1]} : vector<128x128xf32> to vector<128x32xf32>
    %188 = vector.extract_strided_slice %186 {offsets = [0, 64], sizes = [128, 32], strides = [1, 1]} : vector<128x128xf32> to vector<128x32xf32>
    %cst_50 = arith.constant 2.000000e+00 : f32
    %189 = vector.broadcast %cst_50 : f32 to vector<128x32xf32>
    %190 = arith.mulf %189, %188 : vector<128x32xf32>
    %cst_51 = arith.constant 1.000000e+00 : f32
    %191 = vector.broadcast %cst_51 : f32 to vector<128x32xf32>
    %192 = arith.subf %190, %191 : vector<128x32xf32>
    %193 = vector.extract_strided_slice %186 {offsets = [0, 96], sizes = [128, 32], strides = [1, 1]} : vector<128x128xf32> to vector<128x32xf32>
    %194 = arith.mulf %187, %192 : vector<128x32xf32>
    %195 = math.tanh %194 : vector<128x32xf32>
    %196 = arith.mulf %193, %195 : vector<128x32xf32>
    %cst_52 = arith.constant dense<0.000000e+00> : vector<128x128xf32>
    %197 = tpu.matmul %179, %4, %cst_52 {dimension_numbers = #tpu.dot_dimension_numbers<[1], [0], [0], [1], [0, 0, 1, 1], [], []>} : vector<128x32xf32>, vector<32x128xf32>, vector<128x128xf32> -> vector<128x128xf32>
    %cst_53 = arith.constant dense<0.000000e+00> : vector<128x128xf32>
    %198 = tpu.matmul %196, %5, %cst_53 {dimension_numbers = #tpu.dot_dimension_numbers<[1], [0], [0], [1], [0, 0, 1, 1], [], []>} : vector<128x32xf32>, vector<32x128xf32>, vector<128x128xf32> -> vector<128x128xf32>
    %199 = arith.addf %197, %198 : vector<128x128xf32>
    %200 = vector.broadcast %6 : vector<1x128xf32> to vector<128x128xf32>
    %201 = arith.addf %199, %200 : vector<128x128xf32>
    %cst_54 = arith.constant 0.000000e+00 : f32
    %202 = vector.broadcast %cst_54 : f32 to vector<128x128xf32>
    %203 = arith.maximumf %201, %202 : vector<128x128xf32>
    %cst_55 = arith.constant dense<0.000000e+00> : vector<128x128xf32>
    %204 = tpu.matmul %203, %7, %cst_55 {dimension_numbers = #tpu.dot_dimension_numbers<[1], [0], [0], [1], [0, 0, 1, 1], [], []>} : vector<128x128xf32>, vector<128x128xf32>, vector<128x128xf32> -> vector<128x128xf32>
    %205 = vector.broadcast %8 : vector<1x128xf32> to vector<128x128xf32>
    %206 = arith.addf %204, %205 : vector<128x128xf32>
    %207 = arith.negf %206 : vector<128x128xf32>
    %208 = math.exp %207 : vector<128x128xf32>
    %cst_56 = arith.constant 1.000000e+00 : f32
    %209 = vector.broadcast %cst_56 : f32 to vector<128x128xf32>
    %210 = arith.addf %209, %208 : vector<128x128xf32>
    %211 = arith.divf %209, %210 : vector<128x128xf32>
    %c0_57 = arith.constant 0 : index
    %c0_58 = arith.constant 0 : index
    %212 = vector.load %arg3[%c0_57, %c0_58] : memref<128x128xf32, #tpu.memory_space<vmem>>, vector<128x128xf32>
    tpu.vector_store %arg3[%c0_57, %c0_58], %211 {strides = array<i32>} : memref<128x128xf32, #tpu.memory_space<vmem>>, vector<128x128xf32>,
    return
  }
  func.func @transform_0(%arg0: i32) -> (i32, i32) {
    %c0_i32 = arith.constant 0 : i32
    %c0_i32_0 = arith.constant 0 : i32
    return %arg0, %c0_i32 : i32, i32
  }
  func.func @transform_1(%arg0: i32) -> (i32, i32) {
    %c0_i32 = arith.constant 0 : i32
    %c0_i32_0 = arith.constant 0 : i32
    %c0_i32_1 = arith.constant 0 : i32
    return %c0_i32, %c0_i32_0 : i32, i32
  }
  func.func @transform_2(%arg0: i32) -> (i32, i32) {
    %c0_i32 = arith.constant 0 : i32
    %c0_i32_0 = arith.constant 0 : i32
    return %arg0, %c0_i32 : i32, i32
  }
}

</mosaic_0001>

<bundles_post_ra>
// kernel: lstm_model_forward.1
= control target key start
LH: loop header
LB: loop body
LE: loop exit
PB: predicated region body
PF: predicated region fallthrough
CT: control target
= control target key end

     0   :  { %s10456_s9 = smov 0   ;;  %s13351_s0 = inlined_call_operand.vmem [shape: f32[256,16], index: 0, kind: input, shape index: {}]   ;;  %s13352_s1 = inlined_call_operand.vmem [shape: f32[248,128], index: 1, kind: input, shape index: {}]   ;;  %s13353_s2 = inlined_call_operand.vmem [shape: f32[256,128], index: 2, kind: output, shape index: {}]  }
   0x1 LB: > { %s7855_s10 = sadd.s32 4294967295, %s10429_s9   ;;  %p7859_p0 = scmp.ge.s32.totalorder %s10429_s9, 1  ;;  %s10429_s9 = sphi %s10456_s9, %s12_s9  }
   0x2   : > { %p113_p1 = scmp.lt.s32.totalorder %s10429_s9, 3 }
   0x4   : > { %p114_p2 = pnand %p7859_p0, %p113_p1 }
   0x5   : > { %s7860_s13 = sshll.u32 (!%p114_p2), %s7855_s10, 4  ;;  %s10431_s18 = smov (!%p114_p2), 64  }
   0x6   : > { %117 = sbr.rel (%p114_p2) target bundleno = 6164 (0x1814), region = 28  ;;  %p136_p3 = scmp.lt.s32.totalorder (!%p114_p2), %s7860_s13, 31 }
   0x7   : > { %s10432_s19 = smov (!%p114_p2), 96   ;;  %s10433_s20 = smov (!%p114_p2), 126  }
   0x8   : > { %s10434_s21 = smov (!%p114_p2), 32   ;;  %s10435_s30 = smov (!%p114_p2), 124  }
   0x9   : > { %s10436_s16 = smov (!%p114_p2), 122   ;;  %s10438_s4 = smov (!%p114_p2), 118  }
   0xa   : > { %s10439_s5 = smov (!%p114_p2), 116   ;;  %s10440_s22 = smov (!%p114_p2), 114  }
   0xb   : > { %v10467_v0 = vld [vmem:[%s13352_s1 + $0x20] sm:$0x3]  ;;  %vm244_vm0 = vcmask 1041408   ;;  %s13355_s13 = smov (!%p136_p3, %s7860_s13), 31  ;;  %vm195_vm1 = vcmask 15360   ;;  %vm954_vm2 = vcmask 261120  }
   0xc   : > { %8834 = vmatprep.subr.msk.mxu0 %vm244_vm0, %v10467_v0  ;;  %9412 = vmatprep.subr.msk.mxu1 %vm244_vm0, %v10467_v0  ;;  %s7861_s14 = sshll.u32 %s13355_s13, 3 }
   0xd   : > { %8835 = vmatpush3.msk.msra.mxu0 %vm244_vm0, %v10467_v0  ;;  %9413 = vmatpush3.msk.msra.mxu1 %vm244_vm0, %v10467_v0  ;;  %s10487_s17 = scalar_lea.vmem %s13351_s0, %s7861_s14  ;;  %s13322_s28 = scalar_lea.vmem %s13353_s2, %s7861_s14 }
   0xe   : > { %8860 = vmatprep.subr.msk.mxu1 %vm244_vm0, %v10467_v0  ;;  %v10490_v1 = vld [vmem:[%s10487_s17] sm:$0xff]  ;;  %v10493_v2 = vld [vmem:[%s10487_s17 + $0x8] sm:$0xff]  ;;  %v10496_v3 = vld [vmem:[%s10487_s17 + $0x10] sm:$0xff] }
   0xf   : > { %8836 = vmatprep.mubr.msk.f32.mxu0 %vm195_vm1, %v10490_v1  ;;  %v10503_v4 = vld [vmem:[%s10487_s17 + $0x40] sm:$0xff]  ;;  %v10508_v5 = vld [vmem:[%s10487_s17 + $0x18] sm:$0xff]  ;;  %v10513_v6 = vld [vmem:[%s10487_s17 + $0x48] sm:$0xff] }
  0x10   : > { %8837 = vmatmul.mubr.msk.f32.vlgmr.msra.gmra.mxu0 %vm195_vm1, %v10493_v2  ;;  %8848 = vmatprep.mubr.msk.f32.mxu1 %vm195_vm1, %v10503_v4  ;;  %v10516_v7 = vld [vmem:[%s10487_s17 + $0x50] sm:$0xff]  ;;  %v10519_v8 = vld [vmem:[%s10487_s17 + $0x20] sm:$0xff]  ;;  %v10526_v9 = vld [vmem:[%s10487_s17 + $0x58] sm:$0xff] }
  0x11   : > { %8839 = vmatprep.mubr.msk.f32.mxu0 %vm195_vm1, %v10496_v3  ;;  %8849 = vmatmul.mubr.msk.f32.vlgmr.msra.gmra.mxu1 %vm195_vm1, %v10513_v6  ;;  %v10533_v10 = vld [vmem:[%s10487_s17 + $0x60] sm:$0xff]  ;;  %v10540_v11 = vld [vmem:[%s10487_s17 + $0x28] sm:$0xff]  ;;  %v10543_v12 = vld [vmem:[%s10487_s17 + $0x30] sm:$0xff] }
  0x12   : > { %8851 = vmatprep.mubr.msk.f32.mxu1 %vm195_vm1, %v10516_v7  ;;  %8861 = vmatpush3.msk.msra.mxu1 %vm244_vm0, %v10467_v0  ;;  %v10550_v13 = vld [vmem:[%s10487_s17 + $0x68] sm:$0xff]  ;;  %v10555_v14 = vld [vmem:[%s10487_s17 + $0x70] sm:$0xff]  ;;  %v10560_v15 = vld [vmem:[%s10487_s17 + $0x38] sm:$0xff] }
  0x13   : > { %8918 = vmatprep.subr.msk.mxu1 %vm244_vm0, %v10467_v0  ;;  %v10567_v16 = vld [vmem:[%s10487_s17 + $0x78] sm:$0xff] }
  0x14   : > { %8840 = vmatmul.mubr.msk.f32.gmra.mxu0 %vm195_vm1, %v10508_v5 }
  0x15   : > { %8842 = vmatprep.mubr.msk.f32.mxu0 %vm195_vm1, %v10519_v8  ;;  %8852 = vmatmul.mubr.msk.f32.gmra.mxu1 %vm195_vm1, %v10526_v9 }
  0x16   : > { %8854 = vmatprep.mubr.msk.f32.mxu1 %vm195_vm1, %v10533_v10 }
  0x18   : > { %8843 = vmatmul.mubr.msk.f32.gmra.mxu0 %vm195_vm1, %v10540_v11 }
  0x19   : > { %8845 = vmatprep.mubr.msk.f32.mxu0 %vm195_vm1, %v10543_v12  ;;  %8855 = vmatmul.mubr.msk.f32.gmra.mxu1 %vm195_vm1, %v10550_v13 }
  0x1a   : > { %8857 = vmatprep.mubr.msk.f32.mxu1 %vm195_vm1, %v10555_v14 }
  0x1c   : > { %8846 = vmatmul.mubr.msk.f32.gmra.mxu0 %vm195_vm1, %v10560_v15 }
  0x1d   : > { %8858 = vmatmul.mubr.msk.f32.gmra.mxu1 %vm195_vm1, %v10567_v16 }
  0xd0   : > { %v8838_v17 = vpop.f32.mrf.mxu0 }
  0xd1   : > { %v7882_v18 = vmul.f32 -1.442695, %v8838_v17  ;;  %v8850_v20 = vpop.f32.mrf.mxu1 }
  0xd2   : > { %v314_v19 = vpop.f32.mrf.mxu0  ;;  %v7890_v30 = vmul.f32 -1.442695, %v8850_v20 }
  0xd3   : > { %9432 = vpow2.f32 %v7882_v18  ;;  %v7881_v21 = vmul.f32 -1.442695, %v314_v19  ;;  %v354_v23 = vpop.f32.mrf.mxu1 }
  0xd4   : > { %v8841_v22 = vpop.f32.mrf.mxu0  ;;  %v7889_v26 = vmul.f32 -1.442695, %v354_v23 }
  0xd5   : > { %9434 = vpow2.f32 %v7881_v21  ;;  %v7884_v24 = vmul.f32 -1.442695, %v8841_v22  ;;  %v8853_v27 = vpop.f32.mrf.mxu1 }
  0xd6   : > { %v324_v25 = vpop.f32.mrf.mxu0  ;;  %v7892_v41 = vmul.f32 -1.442695, %v8853_v27 }
  0xd7   : > { %9436 = vpow2.f32 %v7884_v24  ;;  %v7883_v28 = vmul.f32 -1.442695, %v324_v25  ;;  %v364_v31 = vpop.f32.mrf.mxu1 }
  0xd8   : > { %v8844_v29 = vpop.f32.mrf.mxu0  ;;  %v7891_v34 = vmul.f32 -1.442695, %v364_v31 }
  0xd9   : > { %9438 = vpow2.f32 %v7883_v28  ;;  %v7886_v32 = vmul.f32 -1.442695, %v8844_v29  ;;  %v8856_v35 = vpop.f32.mrf.mxu1 }
  0xda   : > { %v334_v33 = vpop.f32.mrf.mxu0  ;;  %9440 = vpow2.f32 %v7889_v26  ;;  %v7894_v49 = vmul.f32 -1.442695, %v8856_v35 }
  0xdb   : > { %9442 = vpow2.f32 %v7886_v32  ;;  %v7885_v36 = vmul.f32 -1.442695, %v334_v33  ;;  %v374_v38 = vpop.f32.mrf.mxu1 }
  0xdc   : > { %v8847_v37 = vpop.f32.mrf.mxu0  ;;  %9444 = vpow2.f32 %v7890_v30  ;;  %v7893_v44 = vmul.f32 -1.442695, %v374_v38 }
  0xdd   : > { %9446 = vpow2.f32 %v7885_v36  ;;  %v7888_v39 = vmul.f32 -1.442695, %v8847_v37  ;;  %v8859_v42 = vpop.f32.mrf.mxu1 }
  0xde   : > { %v344_v40 = vpop.f32.mrf.mxu0  ;;  %9448 = vpow2.f32 %v7891_v34  ;;  %v7896_v55 = vmul.f32 -1.442695, %v8859_v42 }
  0xdf   : > { %9450 = vpow2.f32 %v7888_v39  ;;  %v7887_v43 = vmul.f32 -1.442695, %v344_v40  ;;  %v384_v46 = vpop.f32.mrf.mxu1 }
  0xe0   : > { %v9433_v45 = vpop.eup %9432  ;;  %v7895_v51 = vmul.f32 -1.442695, %v384_v46 }
  0xe1   : > { %v442_v47 = vadd.f32 1.0, %v9433_v45  ;;  %9452 = vpow2.f32 %v7887_v43 }
  0xe2   : > { %v9435_v48 = vpop.eup %9434  ;;  %9454 = vpow2.f32 %v7892_v41 }
  0xe3   : > { %v441_v50 = vadd.f32 1.0, %v9435_v48  ;;  %9456 = vpow2.f32 %v7893_v44 }
  0xe4   : > { %v9437_v52 = vpop.eup %9436  ;;  %9458 = vrcp.f32 %v442_v47 }
  0xe5   : > { %9460 = vrcp.f32 %v441_v50  ;;  %v444_v53 = vadd.f32 1.0, %v9437_v52 }
  0xe6   : > { %v9439_v54 = vpop.eup %9438  ;;  %9462 = vpow2.f32 %v7894_v49 }
  0xe7   : > { %v9441_v56 = vpop.eup %9440  ;;  %v443_v57 = vadd.f32 1.0, %v9439_v54  ;;  %9464 = vpow2.f32 %v7895_v51 }
  0xe8   : > { %v9443_v58 = vpop.eup %9442  ;;  %9466 = vrcp.f32 %v444_v53  ;;  %v449_v62 = vadd.f32 1.0, %v9441_v56 }
  0xe9   : > { %v9445_v59 = vpop.eup %9444  ;;  %9468 = vrcp.f32 %v443_v57  ;;  %v446_v60 = vadd.f32 1.0, %v9443_v58 }
  0xea   : > { %v9447_v61 = vpop.eup %9446  ;;  %9470 = vpow2.f32 %v7896_v55  ;;  %v450_v21 = vadd.f32 1.0, %v9445_v59 }
  0xeb   : > { %v9449_v63 = vpop.eup %9448  ;;  %9472 = vrcp.f32 %v446_v60  ;;  %v445_v17 = vadd.f32 1.0, %v9447_v61 }
  0xec   : > { %v9451_v18 = vpop.eup %9450  ;;  %v451_v24 = vadd.f32 1.0, %v9449_v63 }
  0xed   : > { %9474 = vrcp.f32 %v445_v17  ;;  %v448_v19 = vadd.f32 1.0, %v9451_v18 }
  0xee   : > { %v9453_v20 = vpop.eup %9452  ;;  %9476 = vrcp.f32 %v449_v62 }
  0xef   : > { %v9455_v22 = vpop.eup %9454  ;;  %9478 = vrcp.f32 %v448_v19  ;;  %v447_v23 = vadd.f32 1.0, %v9453_v20 }
  0xf0   : > { %v9457_v25 = vpop.eup %9456  ;;  %v452_v28 = vadd.f32 1.0, %v9455_v22 }
  0xf1   : > { %v10573_v26 = vpop.eup %9458  ;;  %9480 = vrcp.f32 %v447_v23  ;;  %v453_v30 = vadd.f32 1.0, %v9457_v25 }
  0xf2   : > { %v10575_v27 = vpop.eup %9460  ;;  %9482 = vrcp.f32 %v450_v21  ;;  %v490_v35 = vmul.f32 2.0, %v10573_v26 }
  0xf3   : > { %v9463_v29 = vpop.eup %9462  ;;  %9484 = vrcp.f32 %v451_v24  ;;  %v489_v31 = vmul.f32 2.0, %v10575_v27 }
  0xf4   : > { %v9465_v32 = vpop.eup %9464  ;;  %9486 = vrcp.f32 %v452_v28  ;;  %v454_v37 = vadd.f32 1.0, %v9463_v29  ;;  %v7898_v42 = vadd.f32 -1.0, %v490_v35 }
  0xf5   : > { %v10578_v33 = vpop.eup %9466  ;;  %v7897_v34 = vadd.f32 -1.0, %v489_v31  ;;  %9488 = vrcp.f32 %v453_v30  ;;  %v455_v39 = vadd.f32 1.0, %v9465_v32 }
  0xf6   : > { %v10581_v36 = vpop.eup %9468  ;;  %v492_v44 = vmul.f32 2.0, %v10578_v33  ;;  %9490 = vrcp.f32 %v454_v37 }
  0xf7   : > { %v9471_v38 = vpop.eup %9470  ;;  %537 = vrot.lane.b32.xlu0 %v7897_v34, %s10431_s18  ;;  %v491_v40 = vmul.f32 2.0, %v10581_v36  ;;  %9492 = vrcp.f32 %v455_v39 }
  0xf8   : > { %v10585_v41 = vpop.eup %9472  ;;  %v456_v46 = vadd.f32 1.0, %v9471_v38  ;;  %v7900_v51 = vadd.f32 -1.0, %v492_v44 }
  0xf9   : > { %v7899_v43 = vadd.f32 -1.0, %v491_v40  ;;  %v494_v49 = vmul.f32 2.0, %v10585_v41 }
  0xfa   : > { %v10588_v45 = vpop.eup %9474  ;;  %9494 = vrcp.f32 %v456_v46 }
  0xfb   : > { %v10590_v47 = vpop.eup %9476  ;;  %539 = vrot.lane.b32.xlu0 %v7898_v42, %s10431_s18  ;;  %541 = vrot.lane.b32.xlu1 %v7899_v43, %s10431_s18  ;;  %v493_v48 = vmul.f32 2.0, %v10588_v45  ;;  %v7902_v55 = vadd.f32 -1.0, %v494_v49 }
  0xfc   : > { %v10596_v50 = vpop.eup %9478  ;;  %v497_v58 = vmul.f32 2.0, %v10590_v47 }
  0xfd   : > { %v7901_v52 = vadd.f32 -1.0, %v493_v48  ;;  %v496_v57 = vmul.f32 2.0, %v10596_v50 }
  0xfe   : > { %v10598_v53 = vpop.eup %9480  ;;  %v7905_v63 = vadd.f32 -1.0, %v497_v58 }
  0xff   : > { %v10600_v54 = vpop.eup %9482  ;;  %543 = vrot.lane.b32.xlu1 %v7900_v51, %s10431_s18  ;;  %545 = vrot.lane.b32.xlu0 %v7901_v52, %s10431_s18  ;;  %v495_v56 = vmul.f32 2.0, %v10598_v53  ;;  %v7904_v62 = vadd.f32 -1.0, %v496_v57 }
 0x100   : > { %v10607_v59 = vpop.eup %9484  ;;  %v498_v17 = vmul.f32 2.0, %v10600_v54 }
 0x101   : > { %v7903_v60 = vadd.f32 -1.0, %v495_v56  ;;  %v10609_v61 = vpop.eup %9486  ;;  %v499_v18 = vmul.f32 2.0, %v10607_v59 }
 0x102   : > { %v10615_v19 = vpop.eup %9488  ;;  %v7906_v21 = vadd.f32 -1.0, %v498_v17  ;;  %v500_v23 = vmul.f32 2.0, %v10609_v61 }
 0x103   : > { %547 = vrot.lane.b32.xlu1 %v7902_v55, %s10431_s18  ;;  %549 = vrot.lane.b32.xlu0 %v7903_v60, %s10431_s18  ;;  %v10617_v20 = vpop.eup %9490  ;;  %v7907_v22 = vadd.f32 -1.0, %v499_v18  ;;  %v501_v24 = vmul.f32 2.0, %v10615_v19 }
 0x104   : > { %v10623_v25 = vpop.eup %9492  ;;  %v7908_v29 = vadd.f32 -1.0, %v500_v23  ;;  %v502_v31 = vmul.f32 2.0, %v10617_v20 }
 0x105   : > { %v7909_v30 = vadd.f32 -1.0, %v501_v24  ;;  %v503_v32 = vmul.f32 2.0, %v10623_v25 }
 0x106   : > { %v7910_v34 = vadd.f32 -1.0, %v502_v31 }
 0x107   : > { %551 = vrot.lane.b32.xlu1 %v7904_v62, %s10431_s18  ;;  %553 = vrot.lane.b32.xlu0 %v7905_v63, %s10431_s18  ;;  %v10625_v28 = vpop.eup %9494  ;;  %v7911_v35 = vadd.f32 -1.0, %v503_v32 }
 0x108   : > { %v504_v37 = vmul.f32 2.0, %v10625_v28 }
 0x10a   : > { %v7912_v38 = vadd.f32 -1.0, %v504_v37 }
 0x10b   : > { %555 = vrot.lane.b32.xlu1 %v7906_v21, %s10431_s18  ;;  %557 = vrot.lane.b32.xlu0 %v7907_v22, %s10431_s18 }
 0x10f   : > { %559 = vrot.lane.b32.xlu1 %v7908_v29, %s10431_s18  ;;  %561 = vrot.lane.b32.xlu0 %v7909_v30, %s10431_s18 }
 0x113   : > { %563 = vrot.lane.b32.xlu1 %v7910_v34, %s10431_s18  ;;  %565 = vrot.lane.b32.xlu0 %v7911_v35, %s10431_s18 }
 0x117   : > { %567 = vrot.lane.b32.xlu1 %v7912_v38, %s10431_s18 }
 0x169   : > { %v538_v39 = vpop.permute.xlu0 %537 }
 0x16a   : > { %v10638_v40 = vmul.f32 %v10575_v27, %v538_v39 }
 0x16c   : > { %9496 = vtanh.f32 %v10638_v40 }
 0x16d   : > { %v540_v42 = vpop.permute.xlu0 %539  ;;  %v542_v43 = vpop.permute.xlu1 %541 }
 0x16e   : > { %v10642_v44 = vmul.f32 %v10573_v26, %v540_v42  ;;  %v10645_v46 = vmul.f32 %v10581_v36, %v542_v43 }
 0x170   : > { %9498 = vtanh.f32 %v10642_v44 }
 0x171   : > { %9500 = vtanh.f32 %v10645_v46  ;;  %v544_v48 = vpop.permute.xlu1 %543  ;;  %v546_v49 = vpop.permute.xlu0 %545 }
 0x172   : > { %v10650_v51 = vmul.f32 %v10578_v33, %v544_v48  ;;  %v10653_v52 = vmul.f32 %v10588_v45, %v546_v49 }
 0x174   : > { %9502 = vtanh.f32 %v10650_v51 }
 0x175   : > { %9504 = vtanh.f32 %v10653_v52  ;;  %v548_v55 = vpop.permute.xlu1 %547  ;;  %v550_v56 = vpop.permute.xlu0 %549 }
 0x176   : > { %v10658_v57 = vmul.f32 %v10585_v41, %v548_v55  ;;  %v10661_v58 = vmul.f32 %v10598_v53, %v550_v56 }
 0x178   : > { %9506 = vtanh.f32 %v10658_v57 }
 0x179   : > { %v9497_v60 = vpop.eup %9496  ;;  %9508 = vtanh.f32 %v10661_v58  ;;  %v552_v62 = vpop.permute.xlu1 %551 }
 0x17a   : > { %v554_v63 = vpop.permute.xlu0 %553  ;;  %v10666_v17 = vmul.f32 %v10596_v50, %v552_v62  ;;  %633 = vrot.lane.b32.xlu0 %v9497_v60, %s10432_s19 }
 0x17b   : > { %v10669_v18 = vmul.f32 %v10590_v47, %v554_v63 }
 0x17c   : > { %9510 = vtanh.f32 %v10666_v17 }
 0x17d   : > { %v9499_v21 = vpop.eup %9498  ;;  %9512 = vtanh.f32 %v10669_v18  ;;  %v556_v22 = vpop.permute.xlu1 %555 }
 0x17e   : > { %v558_v23 = vpop.permute.xlu0 %557  ;;  %v9501_v24 = vpop.eup %9500  ;;  %v10675_v29 = vmul.f32 %v10600_v54, %v556_v22  ;;  %635 = vrot.lane.b32.xlu1 %v9499_v21, %s10432_s19 }
 0x17f   : > { %v10678_v30 = vmul.f32 %v10607_v59, %v558_v23  ;;  %637 = vrot.lane.b32.xlu0 %v9501_v24, %s10432_s19 }
 0x180   : > { %9514 = vtanh.f32 %v10675_v29 }
 0x181   : > { %v9503_v31 = vpop.eup %9502  ;;  %9516 = vtanh.f32 %v10678_v30  ;;  %v560_v32 = vpop.permute.xlu1 %559 }
 0x182   : > { %v562_v34 = vpop.permute.xlu0 %561  ;;  %v9505_v35 = vpop.eup %9504  ;;  %v10685_v37 = vmul.f32 %v10609_v61, %v560_v32  ;;  %639 = vrot.lane.b32.xlu1 %v9503_v31, %s10432_s19 }
 0x183   : > { %v10688_v38 = vmul.f32 %v10615_v19, %v562_v34  ;;  %641 = vrot.lane.b32.xlu0 %v9505_v35, %s10432_s19 }
 0x184   : > { %9518 = vtanh.f32 %v10685_v37 }
 0x185   : > { %v9507_v39 = vpop.eup %9506  ;;  %9520 = vtanh.f32 %v10688_v38  ;;  %v564_v42 = vpop.permute.xlu1 %563 }
 0x186   : > { %v566_v43 = vpop.permute.xlu0 %565  ;;  %v9509_v48 = vpop.eup %9508  ;;  %v10695_v49 = vmul.f32 %v10617_v20, %v564_v42  ;;  %643 = vrot.lane.b32.xlu1 %v9507_v39, %s10432_s19 }
 0x187   : > { %v10698_v55 = vmul.f32 %v10623_v25, %v566_v43  ;;  %645 = vrot.lane.b32.xlu0 %v9509_v48, %s10432_s19 }
 0x188   : > { %9522 = vtanh.f32 %v10695_v49 }
 0x189   : > { %v9511_v56 = vpop.eup %9510  ;;  %9524 = vtanh.f32 %v10698_v55  ;;  %v568_v60 = vpop.permute.xlu1 %567 }
 0x18a   : > { %v9513_v62 = vpop.eup %9512  ;;  %v10705_v63 = vmul.f32 %v10625_v28, %v568_v60  ;;  %647 = vrot.lane.b32.xlu1 %v9511_v56, %s10432_s19 }
 0x18b   : > { %649 = vrot.lane.b32.xlu0 %v9513_v62, %s10432_s19 }
 0x18c   : > { %9526 = vtanh.f32 %v10705_v63 }
 0x18d   : > { %v9515_v21 = vpop.eup %9514 }
 0x18e   : > { %v9517_v22 = vpop.eup %9516  ;;  %651 = vrot.lane.b32.xlu1 %v9515_v21, %s10432_s19 }
 0x18f   : > { %653 = vrot.lane.b32.xlu0 %v9517_v22, %s10432_s19 }
 0x191   : > { %v9519_v23 = vpop.eup %9518 }
 0x192   : > { %v9521_v24 = vpop.eup %9520  ;;  %655 = vrot.lane.b32.xlu1 %v9519_v23, %s10432_s19 }
 0x193   : > { %657 = vrot.lane.b32.xlu0 %v9521_v24, %s10432_s19 }
 0x195   : > { %v9523_v31 = vpop.eup %9522 }
 0x196   : > { %v9525_v32 = vpop.eup %9524  ;;  %659 = vrot.lane.b32.xlu1 %v9523_v31, %s10432_s19 }
 0x197   : > { %661 = vrot.lane.b32.xlu0 %v9525_v32, %s10432_s19 }
 0x199   : > { %v9527_v34 = vpop.eup %9526 }
 0x19a   : > { %663 = vrot.lane.b32.xlu1 %v9527_v34, %s10432_s19 }
 0x19b   : > { %697 = vrot.lane.b32.xlu0 %v10490_v1, %s10433_s20  ;;  %v10738_v1 = vld [vmem:[%s13352_s1 + $0x18] sm:$0xff] }
 0x19c   : > { %8886 = vmatprep.subr.mxu0 %v10738_v1 }
 0x19d   : > { %8887 = vmatpush3.msra.mxu0 %v10738_v1 }
 0x19f   : > { %699 = vrot.lane.b32.xlu0 %v10493_v2, %s10433_s20  ;;  %v10743_v2 = vld [vmem:[%s13352_s1 + $0x10] sm:$0xff] }
 0x1a0   : > { %8888 = vmatprep.subr.mxu0 %v10743_v2 }
 0x1a1   : > { %8889 = vmatpush3.msra.mxu0 %v10743_v2 }
 0x1a3   : > { %701 = vrot.lane.b32.xlu0 %v10496_v3, %s10433_s20 }
 0x1a7   : > { %703 = vrot.lane.b32.xlu0 %v10508_v5, %s10433_s20 }
 0x1ab   : > { %705 = vrot.lane.b32.xlu0 %v10519_v8, %s10433_s20 }
 0x1af   : > { %707 = vrot.lane.b32.xlu0 %v10540_v11, %s10433_s20 }
 0x1b3   : > { %709 = vrot.lane.b32.xlu0 %v10543_v12, %s10433_s20 }
 0x1b7   : > { %711 = vrot.lane.b32.xlu0 %v10560_v15, %s10433_s20 }
 0x1bb   : > { %713 = vrot.lane.b32.xlu0 %v10503_v4, %s10433_s20 }
 0x1bf   : > { %715 = vrot.lane.b32.xlu0 %v10513_v6, %s10433_s20 }
 0x1c3   : > { %717 = vrot.lane.b32.xlu0 %v10516_v7, %s10433_s20 }
 0x1c7   : > { %719 = vrot.lane.b32.xlu0 %v10526_v9, %s10433_s20  ;;  %v10754_v9 = vld [vmem:[%s13352_s1 + $0x8] sm:$0xff] }
 0x1c8   : > { %8890 = vmatprep.subr.mxu0 %v10754_v9 }
 0x1c9   : > { %8891 = vmatpush3.msra.mxu0 %v10754_v9 }
 0x1cb   : > { %721 = vrot.lane.b32.xlu0 %v10533_v10, %s10433_s20  ;;  %v10759_v10 = vld [vmem:[%s13352_s1] sm:$0xff] }
 0x1cc   : > { %8892 = vmatprep.subr.mxu0 %v10759_v10 }
 0x1cd   : > { %8893 = vmatpush3.msra.mxu0 %v10759_v10 }
 0x1ce   : > { %8944 = vmatprep.subr.mxu0 %v10738_v1 }
 0x1cf   : > { %723 = vrot.lane.b32.xlu0 %v10550_v13, %s10433_s20 }
 0x1d3   : > { %725 = vrot.lane.b32.xlu0 %v10555_v14, %s10433_s20 }
 0x1d7   : > { %727 = vrot.lane.b32.xlu0 %v10567_v16, %s10433_s20  ;;  %s10437_s20 = smov 120  }
 0x1db   : > { %1276 = vrot.lane.b32.xlu0 %v10638_v40, %s10434_s21 }
 0x1ec   : > { %v634_v3 = vpop.permute.xlu0 %633 }
 0x1ed   : > { %v681_v40 = vmul.f32 %v10575_v27, %v634_v3 }
 0x1f0   : > { %v636_v4 = vpop.permute.xlu1 %635 }
 0x1f1   : > { %v682_v5 = vmul.f32 %v10573_v26, %v636_v4  ;;  %v638_v6 = vpop.permute.xlu0 %637 }
 0x1f3   : > { %924 = vrot.lane.b32.xlu1 %v682_v5, %s10434_s21 }
 0x1f4   : > { %v640_v7 = vpop.permute.xlu1 %639 }
 0x1f5   : > { %v642_v8 = vpop.permute.xlu0 %641  ;;  %v684_v43 = vmul.f32 %v10578_v33, %v640_v7 }
 0x1f6   : > { %v685_v60 = vmul.f32 %v10588_v45, %v642_v8 }
 0x1f8   : > { %v644_v11 = vpop.permute.xlu1 %643 }
 0x1f9   : > { %v646_v12 = vpop.permute.xlu0 %645 }
 0x1fc   : > { %v648_v13 = vpop.permute.xlu1 %647 }
 0x1fd   : > { %v650_v14 = vpop.permute.xlu0 %649 }
 0x1fe   : > { %v689_v39 = vmul.f32 %v10590_v47, %v650_v14 }
 0x200   : > { %v652_v15 = vpop.permute.xlu1 %651 }
 0x201   : > { %v690_v16 = vmul.f32 %v10600_v54, %v652_v15  ;;  %v654_v26 = vpop.permute.xlu0 %653  ;;  %v683_v54 = vmul.f32 %v10581_v36, %v638_v6  ;;  %v686_v36 = vmul.f32 %v10585_v41, %v644_v11  ;;  %v687_v41 = vmul.f32 %v10598_v53, %v646_v12 }
 0x202   : > { %v691_v27 = vmul.f32 %v10607_v59, %v654_v26 }
 0x203   : > { %940 = vrot.lane.b32.xlu1 %v690_v16, %s10434_s21 }
 0x204   : > { %v656_v22 = vpop.permute.xlu1 %655 }
 0x205   : > { %v658_v35 = vpop.permute.xlu0 %657  ;;  %v692_v45 = vmul.f32 %v10609_v61, %v656_v22 }
 0x207   : > { %922 = vrot.lane.b32.xlu1 %v681_v40, %s10434_s21 }
 0x208   : > { %v660_v31 = vpop.permute.xlu1 %659 }
 0x209   : > { %v662_v42 = vpop.permute.xlu0 %661  ;;  %v694_v53 = vmul.f32 %v10617_v20, %v660_v31 }
 0x20a   : > { %v695_v61 = vmul.f32 %v10623_v25, %v662_v42 }
 0x20b   : > { %938 = vrot.lane.b32.xlu1 %v689_v39, %s10434_s21 }
 0x20c   : > { %v664_v3 = vpop.permute.xlu1 %663 }
 0x20d   : > { %v698_v48 = vpop.permute.xlu0 %697 }
 0x20e   : > { %8862 = vmatprep.mubr.msk.f32.mxu1 %vm195_vm1, %v698_v48 }
 0x20f   : > { %928 = vrot.lane.b32.xlu1 %v684_v43, %s10434_s21 }
 0x211   : > { %v700_v56 = vpop.permute.xlu0 %699 }
 0x212   : > { %8863 = vmatmul.mubr.msk.f32.vlgmr.msra.gmra.mxu1 %vm195_vm1, %v700_v56 }
 0x213   : > { %926 = vrot.lane.b32.xlu1 %v683_v54, %s10434_s21  ;;  %8919 = vmatpush3.msk.msra.mxu1 %vm244_vm0, %v10467_v0 }
 0x214   : > { %8976 = vmatprep.subr.msk.mxu1 %vm244_vm0, %v10467_v0  ;;  %v688_v0 = vmul.f32 %v10596_v50, %v648_v13  ;;  %v693_v50 = vmul.f32 %v10615_v19, %v658_v35  ;;  %v696_v19 = vmul.f32 %v10625_v28, %v664_v3 }
 0x215   : > { %v702_v33 = vpop.permute.xlu0 %701 }
 0x216   : > { %8865 = vmatprep.mubr.msk.f32.mxu1 %vm195_vm1, %v702_v33 }
 0x217   : > { %942 = vrot.lane.b32.xlu1 %v691_v27, %s10434_s21 }
 0x219   : > { %v704_v47 = vpop.permute.xlu0 %703 }
 0x21a   : > { %8866 = vmatmul.mubr.msk.f32.gmra.mxu1 %vm195_vm1, %v704_v47 }
 0x21b   : > { %932 = vrot.lane.b32.xlu1 %v686_v36, %s10434_s21 }
 0x21d   : > { %v706_v62 = vpop.permute.xlu0 %705 }
 0x21e   : > { %8868 = vmatprep.mubr.msk.f32.mxu1 %vm195_vm1, %v706_v62 }
 0x21f   : > { %930 = vrot.lane.b32.xlu1 %v685_v60, %s10434_s21 }
 0x221   : > { %v708_v59 = vpop.permute.xlu0 %707 }
 0x222   : > { %8869 = vmatmul.mubr.msk.f32.gmra.mxu1 %vm195_vm1, %v708_v59 }
 0x223   : > { %936 = vrot.lane.b32.xlu1 %v688_v0, %s10434_s21 }
 0x225   : > { %v710_v21 = vpop.permute.xlu0 %709 }
 0x226   : > { %8871 = vmatprep.mubr.msk.f32.mxu1 %vm195_vm1, %v710_v21 }
 0x227   : > { %934 = vrot.lane.b32.xlu1 %v687_v41, %s10434_s21 }
 0x229   : > { %v712_v23 = vpop.permute.xlu0 %711 }
 0x22a   : > { %8872 = vmatmul.mubr.msk.f32.gmra.mxu1 %vm195_vm1, %v712_v23 }
 0x22b   : > { %944 = vrot.lane.b32.xlu1 %v692_v45, %s10434_s21 }
 0x22d   : > { %v714_v24 = vpop.permute.xlu0 %713 }
 0x22e   : > { %8874 = vmatprep.mubr.msk.f32.mxu1 %vm195_vm1, %v714_v24 }
 0x22f   : > { %946 = vrot.lane.b32.xlu1 %v693_v50, %s10434_s21 }
 0x231   : > { %v716_v32 = vpop.permute.xlu0 %715 }
 0x232   : > { %8875 = vmatmul.mubr.msk.f32.gmra.mxu1 %vm195_vm1, %v716_v32 }
 0x233   : > { %948 = vrot.lane.b32.xlu1 %v694_v53, %s10434_s21 }
 0x235   : > { %v718_v34 = vpop.permute.xlu0 %717 }
 0x236   : > { %8877 = vmatprep.mubr.msk.f32.mxu1 %vm195_vm1, %v718_v34 }
 0x237   : > { %950 = vrot.lane.b32.xlu1 %v695_v61, %s10434_s21 }
 0x239   : > { %v720_v4 = vpop.permute.xlu0 %719 }
 0x23a   : > { %8878 = vmatmul.mubr.msk.f32.gmra.mxu1 %vm195_vm1, %v720_v4 }
 0x23b   : > { %952 = vrot.lane.b32.xlu1 %v696_v19, %s10434_s21 }
 0x23d   : > { %v722_v20 = vpop.permute.xlu0 %721 }
 0x23e   : > { %8880 = vmatprep.mubr.msk.f32.mxu1 %vm195_vm1, %v722_v20 }
 0x23f   : > { %1278 = vrot.lane.b32.xlu1 %v10642_v44, %s10434_s21 }
 0x241   : > { %v724_v25 = vpop.permute.xlu0 %723 }
 0x242   : > { %8881 = vmatmul.mubr.msk.f32.gmra.mxu1 %vm195_vm1, %v724_v25 }
 0x245   : > { %v726_v5 = vpop.permute.xlu0 %725 }
 0x246   : > { %8883 = vmatprep.mubr.msk.f32.mxu1 %vm195_vm1, %v726_v5 }
 0x249   : > { %v728_v6 = vpop.permute.xlu0 %727 }
 0x24a   : > { %8884 = vmatmul.mubr.msk.f32.gmra.mxu1 %vm195_vm1, %v728_v6 }
 0x265   : > { %v925_v28 = vpop.permute.xlu1 %924 }
 0x275   : > { %v941_v7 = vpop.permute.xlu1 %940 }
 0x279   : > { %v923_v8 = vpop.permute.xlu1 %922 }
 0x27a   : > { %8894 = vmatprep.mubr.msk.f32.mxu0 %vm954_vm2, %v923_v8 }
 0x27b   : > { %8895 = vmatmul.mubr.msk.f32.vlgmr.msra.gmra.mxu0 %vm954_vm2, %v925_v28 }
 0x27c   : > { %8945 = vmatpush3.msra.mxu0 %v10738_v1 }
 0x27d   : > { %v939_v44 = vpop.permute.xlu1 %938  ;;  %8946 = vmatprep.subr.mxu0 %v10743_v2 }
 0x27e   : > { %8947 = vmatpush3.msra.mxu0 %v10743_v2 }
 0x27f   : > { %8948 = vmatprep.subr.mxu0 %v10754_v9 }
 0x280   : > { %8949 = vmatpush3.msra.mxu0 %v10754_v9 }
 0x281   : > { %v929_v11 = vpop.permute.xlu1 %928  ;;  %8950 = vmatprep.subr.mxu0 %v10759_v10 }
 0x282   : > { %8951 = vmatpush3.msra.mxu0 %v10759_v10 }
 0x283   : > { %9002 = vmatprep.subr.mxu0 %v10738_v1 }
 0x285   : > { %v927_v12 = vpop.permute.xlu1 %926 }
 0x286   : > { %8897 = vmatprep.mubr.msk.f32.mxu0 %vm954_vm2, %v927_v12 }
 0x287   : > { %8898 = vmatmul.mubr.msk.f32.gmra.mxu0 %vm954_vm2, %v929_v11 }
 0x289   : > { %v943_v13 = vpop.permute.xlu1 %942 }
 0x28d   : > { %v933_v14 = vpop.permute.xlu1 %932 }
 0x291   : > { %v931_v15 = vpop.permute.xlu1 %930 }
 0x292   : > { %8900 = vmatprep.mubr.msk.f32.mxu0 %vm954_vm2, %v931_v15 }
 0x293   : > { %8901 = vmatmul.mubr.msk.f32.gmra.mxu0 %vm954_vm2, %v933_v14 }
 0x295   : > { %v937_v2 = vpop.permute.xlu1 %936 }
 0x299   : > { %v935_v9 = vpop.permute.xlu1 %934 }
 0x29a   : > { %8903 = vmatprep.mubr.msk.f32.mxu0 %vm954_vm2, %v935_v9 }
 0x29b   : > { %8904 = vmatmul.mubr.msk.f32.gmra.mxu0 %vm954_vm2, %v937_v2 }
 0x29c   : > { %8906 = vmatprep.mubr.msk.f32.mxu0 %vm954_vm2, %v939_v44 }
 0x29d   : > { %v945_v1 = vpop.permute.xlu1 %944 }
 0x29f   : > { %8907 = vmatmul.mubr.msk.f32.gmra.mxu0 %vm954_vm2, %v941_v7 }
 0x2a0   : > { %8909 = vmatprep.mubr.msk.f32.mxu0 %vm954_vm2, %v943_v13 }
 0x2a1   : > { %v947_v10 = vpop.permute.xlu1 %946 }
 0x2a3   : > { %8910 = vmatmul.mubr.msk.f32.gmra.mxu0 %vm954_vm2, %v945_v1 }
 0x2a4   : > { %8912 = vmatprep.mubr.msk.f32.mxu0 %vm954_vm2, %v947_v10 }
 0x2a5   : > { %v949_v16 = vpop.permute.xlu1 %948 }
 0x2a7   : > { %8913 = vmatmul.mubr.msk.f32.gmra.mxu0 %vm954_vm2, %v949_v16 }
 0x2a9   : > { %v951_v26 = vpop.permute.xlu1 %950 }
 0x2aa   : > { %8915 = vmatprep.mubr.msk.f32.mxu0 %vm954_vm2, %v951_v26 }
 0x2ad   : > { %v953_v40 = vpop.permute.xlu1 %952 }
 0x2ae   : > { %8916 = vmatmul.mubr.msk.f32.gmra.mxu0 %vm954_vm2, %v953_v40 }
 0x2d2   : > { %v8864_v35 = vpop.f32.mrf.mxu1 }
 0x2d4   : > { %v827_v42 = vpop.f32.mrf.mxu1 }
 0x2da   : > { %v8867_v33 = vpop.f32.mrf.mxu1 }
 0x2dc   : > { %v837_v36 = vpop.f32.mrf.mxu1 }
 0x2e2   : > { %v8870_v60 = vpop.f32.mrf.mxu1 }
 0x2e4   : > { %v847_v21 = vpop.f32.mrf.mxu1 }
 0x2ea   : > { %v8873_v23 = vpop.f32.mrf.mxu1 }
 0x2ec   : > { %v857_v53 = vpop.f32.mrf.mxu1 }
 0x2f2   : > { %v8876_v61 = vpop.f32.mrf.mxu1 }
 0x2f4   : > { %v867_v20 = vpop.f32.mrf.mxu1 }
 0x2fa   : > { %v8879_v8 = vpop.f32.mrf.mxu1 }
 0x2fc   : > { %v877_v10 = vpop.f32.mrf.mxu1 }
 0x33b   : > { %v8896_v39 = vpop.f32.mrf.mxu0 }
 0x33c   : > { %v1059_v43 = vadd.f32 %v8896_v39, %v8864_v35 }
 0x33d   : > { %v1053_v48 = vpop.f32.mrf.mxu0 }
 0x33e   : > { %v7947_v54 = vmul.f32 -1.442695, %v1059_v43  ;;  %v1054_v56 = vadd.f32 %v1053_v48, %v827_v42 }
 0x340   : > { %9528 = vpow2.f32 %v7947_v54  ;;  %v7946_v27 = vmul.f32 -1.442695, %v1054_v56  ;;  %v8882_v56 = vpop.f32.mrf.mxu1 }
 0x342   : > { %9530 = vpow2.f32 %v7946_v27 }
 0x347   : > { %v8899_v47 = vpop.f32.mrf.mxu0 }
 0x348   : > { %v1069_v62 = vadd.f32 %v8899_v47, %v8867_v33 }
 0x349   : > { %v1063_v0 = vpop.f32.mrf.mxu0 }
 0x34a   : > { %v7949_v59 = vmul.f32 -1.442695, %v1069_v62  ;;  %v1064_v41 = vadd.f32 %v1063_v0, %v837_v36 }
 0x34c   : > { %9532 = vpow2.f32 %v7949_v59  ;;  %v7948_v22 = vmul.f32 -1.442695, %v1064_v41 }
 0x34d   : > { %v9529_v45 = vpop.eup %9528 }
 0x34e   : > { %v1181_v50 = vadd.f32 1.0, %v9529_v45  ;;  %9534 = vpow2.f32 %v7948_v22 }
 0x34f   : > { %v9531_v24 = vpop.eup %9530 }
 0x350   : > { %9536 = vrcp.f32 %v1181_v50  ;;  %v1180_v31 = vadd.f32 1.0, %v9531_v24 }
 0x352   : > { %9538 = vrcp.f32 %v1180_v31 }
 0x353   : > { %v8902_v32 = vpop.f32.mrf.mxu0 }
 0x354   : > { %v1079_v34 = vadd.f32 %v8902_v32, %v8870_v60 }
 0x355   : > { %v1073_v3 = vpop.f32.mrf.mxu0 }
 0x356   : > { %v7951_v19 = vmul.f32 -1.442695, %v1079_v34  ;;  %v1074_v4 = vadd.f32 %v1073_v3, %v847_v21  ;;  %v887_v21 = vpop.f32.mrf.mxu1 }
 0x358   : > { %9540 = vpow2.f32 %v7951_v19  ;;  %v7950_v25 = vmul.f32 -1.442695, %v1074_v4 }
 0x359   : > { %v9533_v5 = vpop.eup %9532 }
 0x35a   : > { %v1183_v6 = vadd.f32 1.0, %v9533_v5  ;;  %9542 = vpow2.f32 %v7950_v25 }
 0x35b   : > { %v9535_v28 = vpop.eup %9534  ;;  %v8905_v7 = vpop.f32.mrf.mxu0 }
 0x35c   : > { %9544 = vrcp.f32 %v1183_v6  ;;  %v1182_v44 = vadd.f32 1.0, %v9535_v28  ;;  %v1089_v11 = vadd.f32 %v8905_v7, %v8873_v23 }
 0x35d   : > { %v10842_v12 = vpop.eup %9536  ;;  %v1083_v13 = vpop.f32.mrf.mxu0 }
 0x35e   : > { %9546 = vrcp.f32 %v1182_v44  ;;  %v7953_v14 = vmul.f32 -1.442695, %v1089_v11  ;;  %v1084_v15 = vadd.f32 %v1083_v13, %v857_v53  ;;  %v1229_v2 = vmul.f32 2.0, %v10842_v12 }
 0x35f   : > { %v10845_v9 = vpop.eup %9538  ;;  %v8908_v1 = vpop.f32.mrf.mxu0 }
 0x360   : > { %9548 = vpow2.f32 %v7953_v14  ;;  %v7952_v16 = vmul.f32 -1.442695, %v1084_v15  ;;  %v1099_v26 = vadd.f32 %v8908_v1, %v8876_v61  ;;  %v7963_v40 = vadd.f32 -1.0, %v1229_v2  ;;  %v8885_v61 = vpop.f32.mrf.mxu1 }
 0x361   : > { %v1093_v35 = vpop.f32.mrf.mxu0  ;;  %v1228_v39 = vmul.f32 2.0, %v10845_v9 }
 0x362   : > { %9550 = vpow2.f32 %v7952_v16  ;;  %v7955_v42 = vmul.f32 -1.442695, %v1099_v26  ;;  %v1094_v43 = vadd.f32 %v1093_v35, %v867_v20  ;;  %1358 = vrot.lane.b32.xlu1 %v7963_v40, %s10431_s18  ;;  %v897_v28 = vpop.f32.mrf.mxu1 }
 0x363   : > { %v8911_v48 = vpop.f32.mrf.mxu0  ;;  %v7962_v54 = vadd.f32 -1.0, %v1228_v39 }
 0x364   : > { %9552 = vpow2.f32 %v7955_v42  ;;  %v7954_v27 = vmul.f32 -1.442695, %v1094_v43  ;;  %v1109_v33 = vadd.f32 %v8911_v48, %v8879_v8 }
 0x365   : > { %v9541_v36 = vpop.eup %9540  ;;  %1356 = vrot.lane.b32.xlu0 %v7962_v54, %s10431_s18  ;;  %v1103_v47 = vpop.f32.mrf.mxu0 }
 0x366   : > { %v1185_v60 = vadd.f32 1.0, %v9541_v36  ;;  %9554 = vpow2.f32 %v7954_v27  ;;  %v7957_v62 = vmul.f32 -1.442695, %v1109_v33  ;;  %v1104_v0 = vadd.f32 %v1103_v47, %v877_v10 }
 0x367   : > { %v9543_v59 = vpop.eup %9542  ;;  %v8914_v41 = vpop.f32.mrf.mxu0 }
 0x368   : > { %9556 = vrcp.f32 %v1185_v60  ;;  %v1184_v22 = vadd.f32 1.0, %v9543_v59  ;;  %v7956_v45 = vmul.f32 -1.442695, %v1104_v0  ;;  %v1119_v23 = vadd.f32 %v8914_v41, %v8882_v56 }
 0x369   : > { %v10850_v50 = vpop.eup %9544  ;;  %9558 = vpow2.f32 %v7957_v62  ;;  %v1113_v24 = vpop.f32.mrf.mxu0 }
 0x36a   : > { %9560 = vrcp.f32 %v1184_v22  ;;  %v7959_v31 = vmul.f32 -1.442695, %v1119_v23  ;;  %v1114_v53 = vadd.f32 %v1113_v24, %v887_v21  ;;  %v1231_v32 = vmul.f32 2.0, %v10850_v50 }
 0x36b   : > { %v10853_v34 = vpop.eup %9546  ;;  %9562 = vpow2.f32 %v7956_v45 }
 0x36c   : > { %9564 = vpow2.f32 %v7959_v31  ;;  %v7958_v3 = vmul.f32 -1.442695, %v1114_v53  ;;  %v7965_v19 = vadd.f32 -1.0, %v1231_v32  ;;  %v1230_v4 = vmul.f32 2.0, %v10853_v34 }
 0x36d   : > { %v9549_v20 = vpop.eup %9548 }
 0x36e   : > { %v1187_v25 = vadd.f32 1.0, %v9549_v20  ;;  %9566 = vpow2.f32 %v7958_v3  ;;  %v8917_v5 = vpop.f32.mrf.mxu0  ;;  %1362 = vrot.lane.b32.xlu1 %v7965_v19, %s10431_s18  ;;  %v7964_v6 = vadd.f32 -1.0, %v1230_v4 }
 0x36f   : > { %v9551_v7 = vpop.eup %9550  ;;  %v1129_v8 = vadd.f32 %v8917_v5, %v8885_v61 }
 0x370   : > { %9568 = vrcp.f32 %v1187_v25  ;;  %v1186_v44 = vadd.f32 1.0, %v9551_v7  ;;  %v1123_v11 = vpop.f32.mrf.mxu0  ;;  %1360 = vrot.lane.b32.xlu0 %v7964_v6, %s10431_s18 }
 0x371   : > { %v9553_v13 = vpop.eup %9552  ;;  %v7961_v14 = vmul.f32 -1.442695, %v1129_v8  ;;  %v1124_v15 = vadd.f32 %v1123_v11, %v897_v28 }
 0x372   : > { %9570 = vrcp.f32 %v1186_v44  ;;  %v1189_v2 = vadd.f32 1.0, %v9553_v13 }
 0x373   : > { %v9555_v1 = vpop.eup %9554  ;;  %9572 = vpow2.f32 %v7961_v14  ;;  %v7960_v10 = vmul.f32 -1.442695, %v1124_v15 }
 0x374   : > { %9574 = vrcp.f32 %v1189_v2  ;;  %v1188_v16 = vadd.f32 1.0, %v9555_v1 }
 0x375   : > { %v10858_v26 = vpop.eup %9556  ;;  %9576 = vpow2.f32 %v7960_v10 }
 0x376   : > { %v9559_v40 = vpop.eup %9558  ;;  %9578 = vrcp.f32 %v1188_v16  ;;  %v1233_v35 = vmul.f32 2.0, %v10858_v26 }
 0x377   : > { %v10861_v39 = vpop.eup %9560  ;;  %v1191_v42 = vadd.f32 1.0, %v9559_v40 }
 0x378   : > { %v9563_v43 = vpop.eup %9562  ;;  %v7967_v48 = vadd.f32 -1.0, %v1233_v35  ;;  %v1232_v54 = vmul.f32 2.0, %v10861_v39 }
 0x379   : > { %v9565_v56 = vpop.eup %9564  ;;  %9580 = vrcp.f32 %v1191_v42  ;;  %v1190_v27 = vadd.f32 1.0, %v9563_v43 }
 0x37a   : > { %v1193_v33 = vadd.f32 1.0, %v9565_v56  ;;  %1366 = vrot.lane.b32.xlu1 %v7967_v48, %s10431_s18  ;;  %v7966_v36 = vadd.f32 -1.0, %v1232_v54 }
 0x37b   : > { %v9567_v47 = vpop.eup %9566  ;;  %9582 = vrcp.f32 %v1190_v27 }
 0x37c   : > { %9584 = vrcp.f32 %v1193_v33  ;;  %v1192_v60 = vadd.f32 1.0, %v9567_v47  ;;  %1364 = vrot.lane.b32.xlu0 %v7966_v36, %s10431_s18 }
 0x37d   : > { %v10866_v62 = vpop.eup %9568 }
 0x37e   : > { %9586 = vrcp.f32 %v1192_v60  ;;  %v1235_v0 = vmul.f32 2.0, %v10866_v62 }
 0x37f   : > { %v10869_v59 = vpop.eup %9570 }
 0x380   : > { %v9573_v41 = vpop.eup %9572  ;;  %v7969_v21 = vadd.f32 -1.0, %v1235_v0  ;;  %v1234_v22 = vmul.f32 2.0, %v10869_v59 }
 0x381   : > { %v10872_v45 = vpop.eup %9574  ;;  %v1195_v23 = vadd.f32 1.0, %v9573_v41 }
 0x382   : > { %v9577_v24 = vpop.eup %9576  ;;  %1370 = vrot.lane.b32.xlu1 %v7969_v21, %s10431_s18  ;;  %v7968_v31 = vadd.f32 -1.0, %v1234_v22  ;;  %v1237_v53 = vmul.f32 2.0, %v10872_v45 }
 0x383   : > { %v10876_v32 = vpop.eup %9578  ;;  %9588 = vrcp.f32 %v1195_v23  ;;  %v1194_v61 = vadd.f32 1.0, %v9577_v24 }
 0x384   : > { %1368 = vrot.lane.b32.xlu0 %v7968_v31, %s10431_s18  ;;  %v7971_v3 = vadd.f32 -1.0, %v1237_v53  ;;  %v1236_v19 = vmul.f32 2.0, %v10876_v32 }
 0x385   : > { %9590 = vrcp.f32 %v1194_v61 }
 0x386   : > { %v10880_v4 = vpop.eup %9580  ;;  %1374 = vrot.lane.b32.xlu1 %v7971_v3, %s10431_s18  ;;  %v7970_v20 = vadd.f32 -1.0, %v1236_v19 }
 0x387   : > { %v1239_v25 = vmul.f32 2.0, %v10880_v4 }
 0x388   : > { %v10884_v5 = vpop.eup %9582  ;;  %1372 = vrot.lane.b32.xlu0 %v7970_v20, %s10431_s18 }
 0x389   : > { %v10887_v6 = vpop.eup %9584  ;;  %v7973_v28 = vadd.f32 -1.0, %v1239_v25  ;;  %v1238_v7 = vmul.f32 2.0, %v10884_v5 }
 0x38a   : > { %v1241_v8 = vmul.f32 2.0, %v10887_v6 }
 0x38b   : > { %v10891_v44 = vpop.eup %9586  ;;  %1378 = vrot.lane.b32.xlu1 %v7973_v28, %s10431_s18  ;;  %v7972_v11 = vadd.f32 -1.0, %v1238_v7 }
 0x38c   : > { %v7975_v13 = vadd.f32 -1.0, %v1241_v8  ;;  %v1240_v14 = vmul.f32 2.0, %v10891_v44 }
 0x38d   : > { %1376 = vrot.lane.b32.xlu0 %v7972_v11, %s10431_s18 }
 0x38e   : > { %v7974_v15 = vadd.f32 -1.0, %v1240_v14 }
 0x38f   : > { %1382 = vrot.lane.b32.xlu1 %v7975_v13, %s10431_s18 }
 0x390   : > { %v10897_v2 = vpop.eup %9588 }
 0x391   : > { %1380 = vrot.lane.b32.xlu0 %v7974_v15, %s10431_s18  ;;  %v1243_v1 = vmul.f32 2.0, %v10897_v2 }
 0x392   : > { %v10901_v10 = vpop.eup %9590 }
 0x393   : > { %v7977_v16 = vadd.f32 -1.0, %v1243_v1  ;;  %v1242_v40 = vmul.f32 2.0, %v10901_v10 }
 0x395   : > { %1386 = vrot.lane.b32.xlu1 %v7977_v16, %s10431_s18  ;;  %v7976_v35 = vadd.f32 -1.0, %v1242_v40 }
 0x397   : > { %1384 = vrot.lane.b32.xlu0 %v7976_v35, %s10431_s18 }
 0x399   : > { %1282 = vrot.lane.b32.xlu1 %v10650_v51, %s10434_s21  ;;  %v10936_v51 = vpop.permute.xlu0 %1276 }
 0x39b   : > { %1280 = vrot.lane.b32.xlu0 %v10645_v46, %s10434_s21  ;;  %v10934_v46 = vpop.permute.xlu1 %1278 }
 0x39d   : > { %1286 = vrot.lane.b32.xlu1 %v10658_v57, %s10434_s21 }
 0x39f   : > { %1284 = vrot.lane.b32.xlu0 %v10653_v52, %s10434_s21 }
 0x3a1   : > { %1290 = vrot.lane.b32.xlu1 %v10666_v17, %s10434_s21 }
 0x3a3   : > { %1288 = vrot.lane.b32.xlu0 %v10661_v58, %s10434_s21 }
 0x3a5   : > { %1294 = vrot.lane.b32.xlu1 %v10675_v29, %s10434_s21 }
 0x3a7   : > { %1292 = vrot.lane.b32.xlu0 %v10669_v18, %s10434_s21 }
 0x3a9   : > { %1298 = vrot.lane.b32.xlu1 %v10685_v37, %s10434_s21 }
 0x3ab   : > { %1296 = vrot.lane.b32.xlu0 %v10678_v30, %s10434_s21 }
 0x3ad   : > { %1302 = vrot.lane.b32.xlu1 %v10695_v49, %s10434_s21 }
 0x3af   : > { %1300 = vrot.lane.b32.xlu0 %v10688_v38, %s10434_s21 }
 0x3b1   : > { %1306 = vrot.lane.b32.xlu1 %v10705_v63, %s10434_s21 }
 0x3b3   : > { %1304 = vrot.lane.b32.xlu0 %v10698_v55, %s10434_s21 }
 0x3d4   : > { %v1359_v52 = vpop.permute.xlu1 %1358 }
 0x3d5   : > { %v1405_v57 = vmul.f32 %v10842_v12, %v1359_v52  ;;  %v1325_v52 = vmul.f32 %v10842_v12, %v10934_v46 }
 0x3d7   : > { %v1357_v58 = vpop.permute.xlu0 %1356  ;;  %1438 = vrot.lane.b32.xlu1 %v1405_v57, %s10434_s21 }
 0x3d8   : > { %v1404_v17 = vmul.f32 %v10845_v9, %v1357_v58 }
 0x3da   : > { %1436 = vrot.lane.b32.xlu0 %v1404_v17, %s10434_s21  ;;  %v1324_v17 = vmul.f32 %v10845_v9, %v10936_v51 }
 0x3e0   : > { %v1363_v18 = vpop.permute.xlu1 %1362 }
 0x3e1   : > { %v1407_v29 = vmul.f32 %v10850_v50, %v1363_v18 }
 0x3e2   : > { %v1361_v30 = vpop.permute.xlu0 %1360 }
 0x3e3   : > { %v1406_v37 = vmul.f32 %v10853_v34, %v1361_v30  ;;  %1442 = vrot.lane.b32.xlu1 %v1407_v29, %s10434_s21 }
 0x3e5   : > { %1440 = vrot.lane.b32.xlu0 %v1406_v37, %s10434_s21 }
 0x3ec   : > { %v1367_v38 = vpop.permute.xlu1 %1366 }
 0x3ed   : > { %v1409_v49 = vmul.f32 %v10858_v26, %v1367_v38 }
 0x3ee   : > { %v1365_v55 = vpop.permute.xlu0 %1364 }
 0x3ef   : > { %v1408_v63 = vmul.f32 %v10861_v39, %v1365_v55  ;;  %1446 = vrot.lane.b32.xlu1 %v1409_v49, %s10434_s21 }
 0x3f1   : > { %1444 = vrot.lane.b32.xlu0 %v1408_v63, %s10434_s21 }
 0x3f4   : > { %v1371_v42 = vpop.permute.xlu1 %1370 }
 0x3f5   : > { %v1411_v43 = vmul.f32 %v10866_v62, %v1371_v42 }
 0x3f6   : > { %v1369_v48 = vpop.permute.xlu0 %1368 }
 0x3f7   : > { %v1410_v54 = vmul.f32 %v10869_v59, %v1369_v48  ;;  %1450 = vrot.lane.b32.xlu1 %v1411_v43, %s10434_s21 }
 0x3f8   : > { %v1375_v56 = vpop.permute.xlu1 %1374 }
 0x3f9   : > { %v1413_v27 = vmul.f32 %v10872_v45, %v1375_v56  ;;  %1448 = vrot.lane.b32.xlu0 %v1410_v54, %s10434_s21 }
 0x3fa   : > { %v1373_v33 = vpop.permute.xlu0 %1372 }
 0x3fb   : > { %v1412_v36 = vmul.f32 %v10876_v32, %v1373_v33  ;;  %1454 = vrot.lane.b32.xlu1 %v1413_v27, %s10434_s21 }
 0x3fd   : > { %v1379_v47 = vpop.permute.xlu1 %1378  ;;  %1452 = vrot.lane.b32.xlu0 %v1412_v36, %s10434_s21 }
 0x3fe   : > { %v1415_v60 = vmul.f32 %v10880_v4, %v1379_v47 }
 0x3ff   : > { %v1377_v0 = vpop.permute.xlu0 %1376 }
 0x400   : > { %v1414_v41 = vmul.f32 %v10884_v5, %v1377_v0  ;;  %1458 = vrot.lane.b32.xlu1 %v1415_v60, %s10434_s21 }
 0x401   : > { %v1383_v21 = vpop.permute.xlu1 %1382 }
 0x402   : > { %v1417_v22 = vmul.f32 %v10887_v6, %v1383_v21  ;;  %1456 = vrot.lane.b32.xlu0 %v1414_v41, %s10434_s21 }
 0x403   : > { %v1381_v23 = vpop.permute.xlu0 %1380 }
 0x404   : > { %v1416_v24 = vmul.f32 %v10891_v44, %v1381_v23  ;;  %1462 = vrot.lane.b32.xlu1 %v1417_v22, %s10434_s21 }
 0x406   : > { %1460 = vrot.lane.b32.xlu0 %v1416_v24, %s10434_s21 }
 0x407   : > { %v1387_v31 = vpop.permute.xlu1 %1386 }
 0x408   : > { %v1419_v53 = vmul.f32 %v10897_v2, %v1387_v31 }
 0x409   : > { %v1385_v61 = vpop.permute.xlu0 %1384 }
 0x40a   : > { %v1418_v3 = vmul.f32 %v10901_v10, %v1385_v61  ;;  %1466 = vrot.lane.b32.xlu1 %v1419_v53, %s10434_s21 }
 0x40b   : > { %v1283_v19 = vpop.permute.xlu1 %1282 }
 0x40c   : > { %1464 = vrot.lane.b32.xlu0 %v1418_v3, %s10434_s21  ;;  %v1327_v30 = vmul.f32 %v10850_v50, %v1283_v19 }
 0x40d   : > { %v1281_v20 = vpop.permute.xlu0 %1280 }
 0x40e   : > { %v1326_v38 = vmul.f32 %v10853_v34, %v1281_v20 }
 0x40f   : > { %v1287_v25 = vpop.permute.xlu1 %1286 }
 0x410   : > { %v1329_v42 = vmul.f32 %v10858_v26, %v1287_v25 }
 0x411   : > { %v1285_v28 = vpop.permute.xlu0 %1284 }
 0x412   : > { %v1328_v48 = vmul.f32 %v10861_v39, %v1285_v28 }
 0x413   : > { %v1291_v7 = vpop.permute.xlu1 %1290 }
 0x414   : > { %v1331_v47 = vmul.f32 %v10866_v62, %v1291_v7 }
 0x415   : > { %v1289_v8 = vpop.permute.xlu0 %1288 }
 0x416   : > { %v1330_v0 = vmul.f32 %v10869_v59, %v1289_v8 }
 0x417   : > { %v1295_v11 = vpop.permute.xlu1 %1294 }
 0x418   : > { %v1333_v22 = vmul.f32 %v10872_v45, %v1295_v11 }
 0x419   : > { %v1293_v13 = vpop.permute.xlu0 %1292 }
 0x41a   : > { %v1332_v31 = vmul.f32 %v10876_v32, %v1293_v13 }
 0x41b   : > { %v1299_v14 = vpop.permute.xlu1 %1298 }
 0x41c   : > { %v1335_v20 = vmul.f32 %v10880_v4, %v1299_v14 }
 0x41d   : > { %v1297_v15 = vpop.permute.xlu0 %1296 }
 0x41e   : > { %v1334_v7 = vmul.f32 %v10884_v5, %v1297_v15 }
 0x41f   : > { %v1303_v1 = vpop.permute.xlu1 %1302 }
 0x420   : > { %v1337_v13 = vmul.f32 %v10887_v6, %v1303_v1 }
 0x421   : > { %v10970_v16 = vpop.permute.xlu0 %1300 }
 0x423   : > { %v10972_v40 = vpop.permute.xlu1 %1306 }
 0x425   : > { %v10974_v35 = vpop.permute.xlu0 %1304 }
 0x449   : > { %v1439_v57 = vpop.permute.xlu1 %1438 }
 0x44a   : > { %v10978_v58 = vadd.f32 %v1439_v57, %v1325_v52  ;;  %v1336_v57 = vmul.f32 %v10891_v44, %v10970_v16 }
 0x44c   : > { %9592 = vtanh.f32 %v10978_v58  ;;  %v1437_v18 = vpop.permute.xlu0 %1436 }
 0x44d   : > { %v10983_v29 = vadd.f32 %v1437_v18, %v1324_v17 }
 0x44f   : > { %9594 = vtanh.f32 %v10983_v29 }
 0x455   : > { %v1443_v37 = vpop.permute.xlu1 %1442 }
 0x456   : > { %v10988_v49 = vadd.f32 %v1443_v37, %v1327_v30  ;;  %v1339_v37 = vmul.f32 %v10897_v2, %v10972_v40 }
 0x457   : > { %v1441_v46 = vpop.permute.xlu0 %1440 }
 0x458   : > { %9596 = vtanh.f32 %v10988_v49  ;;  %v10991_v55 = vadd.f32 %v1441_v46, %v1326_v38  ;;  %v1338_v46 = vmul.f32 %v10901_v10, %v10974_v35 }
 0x459   : > { %v9593_v51 = vpop.eup %9592 }
 0x45a   : > { %9598 = vtanh.f32 %v10991_v55  ;;  %1534 = vrot.lane.b32.xlu1 %v9593_v51, %s10431_s18 }
 0x45c   : > { %v9595_v63 = vpop.eup %9594 }
 0x45d   : > { %1532 = vrot.lane.b32.xlu0 %v9595_v63, %s10431_s18 }
 0x461   : > { %v1447_v43 = vpop.permute.xlu1 %1446 }
 0x462   : > { %v10998_v54 = vadd.f32 %v1447_v43, %v1329_v42 }
 0x463   : > { %v1445_v56 = vpop.permute.xlu0 %1444 }
 0x464   : > { %9600 = vtanh.f32 %v10998_v54  ;;  %v11001_v27 = vadd.f32 %v1445_v56, %v1328_v48 }
 0x465   : > { %v9597_v33 = vpop.eup %9596 }
 0x466   : > { %9602 = vtanh.f32 %v11001_v27  ;;  %1538 = vrot.lane.b32.xlu1 %v9597_v33, %s10431_s18 }
 0x467   : > { %v9599_v36 = vpop.eup %9598 }
 0x468   : > { %1536 = vrot.lane.b32.xlu0 %v9599_v36, %s10431_s18 }
 0x469   : > { %v1451_v60 = vpop.permute.xlu1 %1450 }
 0x46a   : > { %v11008_v41 = vadd.f32 %v1451_v60, %v1331_v47  ;;  %v11062_v47 = vld [vmem:[%s10487_s17] sm:$0xff]  ;;  %v11067_v60 = vld [vmem:[%s10487_s17 + $0x8] sm:$0xff] }
 0x46b   : > { %v1449_v21 = vpop.permute.xlu0 %1448 }
 0x46c   : > { %9604 = vtanh.f32 %v11008_v41  ;;  %v11012_v23 = vadd.f32 %v1449_v21, %v1330_v0  ;;  %v11072_v0 = vld [vmem:[%s10487_s17 + $0x10] sm:$0xff]  ;;  %v11077_v21 = vld [vmem:[%s10487_s17 + $0x18] sm:$0xff] }
 0x46d   : > { %v1455_v24 = vpop.permute.xlu1 %1454 }
 0x46e   : > { %9606 = vtanh.f32 %v11012_v23  ;;  %v11016_v53 = vadd.f32 %v1455_v24, %v1333_v22  ;;  %v11082_v22 = vld [vmem:[%s10487_s17 + $0x20] sm:$0xff]  ;;  %v11087_v24 = vld [vmem:[%s10487_s17 + $0x28] sm:$0xff] }
 0x46f   : > { %v1453_v61 = vpop.permute.xlu0 %1452 }
 0x470   : > { %9608 = vtanh.f32 %v11016_v53  ;;  %v11019_v3 = vadd.f32 %v1453_v61, %v1332_v31  ;;  %v11092_v31 = vld [vmem:[%s10487_s17 + $0x30] sm:$0xff]  ;;  %v11097_v61 = vld [vmem:[%s10487_s17 + $0x38] sm:$0xff] }
 0x471   : > { %v9601_v19 = vpop.eup %9600 }
 0x472   : > { %9610 = vtanh.f32 %v11019_v3  ;;  %v1459_v25 = vpop.permute.xlu1 %1458  ;;  %1542 = vrot.lane.b32.xlu1 %v9601_v19, %s10431_s18  ;;  %v11102_v19 = vld [vmem:[%s10487_s17 + $0x40] sm:$0xff] }
 0x473   : > { %v9603_v28 = vpop.eup %9602  ;;  %v11025_v8 = vadd.f32 %v1459_v25, %v1335_v20  ;;  %v11107_v20 = vld [vmem:[%s10487_s17 + $0x48] sm:$0xff]  ;;  %v11112_v25 = vld [vmem:[%s10487_s17 + $0x50] sm:$0xff] }
 0x474   : > { %v1457_v11 = vpop.permute.xlu0 %1456  ;;  %1540 = vrot.lane.b32.xlu0 %v9603_v28, %s10431_s18  ;;  %v11117_v28 = vld [vmem:[%s10487_s17 + $0x58] sm:$0xff] }
 0x475   : > { %9612 = vtanh.f32 %v11025_v8  ;;  %v11030_v52 = vadd.f32 %v1457_v11, %v1334_v7  ;;  %v11122_v7 = vld [vmem:[%s10487_s17 + $0x60] sm:$0xff]  ;;  %v11127_v11 = vld [vmem:[%s10487_s17 + $0x68] sm:$0xff] }
 0x476   : > { %v1463_v14 = vpop.permute.xlu1 %1462 }
 0x477   : > { %9614 = vtanh.f32 %v11030_v52  ;;  %v11035_v17 = vadd.f32 %v1463_v14, %v1337_v13  ;;  %v11132_v13 = vld [vmem:[%s10487_s17 + $0x70] sm:$0xff] }
 0x478   : > { %v1461_v15 = vpop.permute.xlu0 %1460 }
 0x479   : > { %v9605_v18 = vpop.eup %9604  ;;  %9616 = vtanh.f32 %v11035_v17  ;;  %v11038_v30 = vadd.f32 %v1461_v15, %v1336_v57 }
 0x47a   : > { %1546 = vrot.lane.b32.xlu1 %v9605_v18, %s10431_s18  ;;  %v11139_v18 = vld [vmem:[%s10487_s17 + $0x78] sm:$0xff] }
 0x47b   : > { %v9607_v1 = vpop.eup %9606  ;;  %9618 = vtanh.f32 %v11038_v30 }
 0x47c   : > { %v1467_v38 = vpop.permute.xlu1 %1466  ;;  %1544 = vrot.lane.b32.xlu0 %v9607_v1, %s10431_s18 }
 0x47d   : > { %v9609_v16 = vpop.eup %9608  ;;  %v11047_v51 = vadd.f32 %v1467_v38, %v1339_v37 }
 0x47e   : > { %1550 = vrot.lane.b32.xlu1 %v9609_v16, %s10431_s18  ;;  %v1465_v63 = vpop.permute.xlu0 %1464 }
 0x47f   : > { %v9611_v42 = vpop.eup %9610  ;;  %9620 = vtanh.f32 %v11047_v51  ;;  %v11051_v43 = vadd.f32 %v1465_v63, %v1338_v46 }
 0x480   : > { %1548 = vrot.lane.b32.xlu0 %v9611_v42, %s10431_s18 }
 0x481   : > { %9622 = vtanh.f32 %v11051_v43 }
 0x482   : > { %v9613_v40 = vpop.eup %9612 }
 0x483   : > { %1554 = vrot.lane.b32.xlu1 %v9613_v40, %s10431_s18 }
 0x484   : > { %v9615_v35 = vpop.eup %9614 }
 0x485   : > { %1552 = vrot.lane.b32.xlu0 %v9615_v35, %s10431_s18 }
 0x486   : > { %v9617_v48 = vpop.eup %9616 }
 0x487   : > { %1558 = vrot.lane.b32.xlu1 %v9617_v48, %s10431_s18 }
 0x488   : > { %v9619_v56 = vpop.eup %9618 }
 0x489   : > { %1556 = vrot.lane.b32.xlu0 %v9619_v56, %s10431_s18 }
 0x48c   : > { %v9621_v33 = vpop.eup %9620 }
 0x48d   : > { %1562 = vrot.lane.b32.xlu1 %v9621_v33, %s10431_s18 }
 0x48e   : > { %v9623_v36 = vpop.eup %9622 }
 0x48f   : > { %1560 = vrot.lane.b32.xlu0 %v9623_v36, %s10431_s18 }
 0x493   : > { %1596 = vrot.lane.b32.xlu0 %v11062_v47, %s10435_s30 }
 0x497   : > { %1598 = vrot.lane.b32.xlu0 %v11067_v60, %s10435_s30 }
 0x49b   : > { %1600 = vrot.lane.b32.xlu0 %v11072_v0, %s10435_s30 }
 0x49f   : > { %1602 = vrot.lane.b32.xlu0 %v11077_v21, %s10435_s30 }
 0x4a3   : > { %1604 = vrot.lane.b32.xlu0 %v11082_v22, %s10435_s30 }
 0x4a7   : > { %1606 = vrot.lane.b32.xlu0 %v11087_v24, %s10435_s30 }
 0x4ab   : > { %1608 = vrot.lane.b32.xlu0 %v11092_v31, %s10435_s30 }
 0x4af   : > { %1610 = vrot.lane.b32.xlu0 %v11097_v61, %s10435_s30 }
 0x4b3   : > { %1612 = vrot.lane.b32.xlu0 %v11102_v19, %s10435_s30 }
 0x4b7   : > { %1614 = vrot.lane.b32.xlu0 %v11107_v20, %s10435_s30 }
 0x4bb   : > { %1616 = vrot.lane.b32.xlu0 %v11112_v25, %s10435_s30 }
 0x4bf   : > { %1618 = vrot.lane.b32.xlu0 %v11117_v28, %s10435_s30 }
 0x4c3   : > { %1620 = vrot.lane.b32.xlu0 %v11122_v7, %s10435_s30 }
 0x4c7   : > { %1622 = vrot.lane.b32.xlu0 %v11127_v11, %s10435_s30 }
 0x4cb   : > { %1624 = vrot.lane.b32.xlu0 %v11132_v13, %s10435_s30 }
 0x4cc   : > { %v1535_v14 = vpop.permute.xlu1 %1534 }
 0x4cd   : > { %v1581_v57 = vmul.f32 %v10842_v12, %v1535_v14 }
 0x4cf   : > { %v1533_v15 = vpop.permute.xlu0 %1532  ;;  %1823 = vrot.lane.b32.xlu1 %v1581_v57, %s10434_s21  ;;  %1626 = vrot.lane.b32.xlu0 %v11139_v18, %s10435_s30 }
 0x4d0   : > { %v1580_v1 = vmul.f32 %v10845_v9, %v1533_v15 }
 0x4d3   : > { %1821 = vrot.lane.b32.xlu1 %v1580_v1, %s10434_s21 }
 0x4d8   : > { %v1539_v37 = vpop.permute.xlu1 %1538 }
 0x4d9   : > { %v1583_v38 = vmul.f32 %v10850_v50, %v1539_v37 }
 0x4da   : > { %v1537_v16 = vpop.permute.xlu0 %1536 }
 0x4db   : > { %1827 = vrot.lane.b32.xlu1 %v1583_v38, %s10434_s21  ;;  %v1582_v12 = vmul.f32 %v10853_v34, %v1537_v16 }
 0x4df   : > { %1825 = vrot.lane.b32.xlu1 %v1582_v12, %s10434_s21 }
 0x4e4   : > { %v1543_v46 = vpop.permute.xlu1 %1542 }
 0x4e5   : > { %v1585_v63 = vmul.f32 %v10858_v26, %v1543_v46 }
 0x4e6   : > { %v1541_v42 = vpop.permute.xlu0 %1540 }
 0x4e7   : > { %1831 = vrot.lane.b32.xlu1 %v1585_v63, %s10434_s21  ;;  %v1584_v9 = vmul.f32 %v10861_v39, %v1541_v42 }
 0x4eb   : > { %1829 = vrot.lane.b32.xlu1 %v1584_v9, %s10434_s21 }
 0x4ec   : > { %v1547_v40 = vpop.permute.xlu1 %1546 }
 0x4ed   : > { %v1587_v50 = vmul.f32 %v10866_v62, %v1547_v40 }
 0x4ee   : > { %v1545_v35 = vpop.permute.xlu0 %1544 }
 0x4ef   : > { %1835 = vrot.lane.b32.xlu1 %v1587_v50, %s10434_s21  ;;  %v1586_v34 = vmul.f32 %v10869_v59, %v1545_v35 }
 0x4f0   : > { %v1551_v48 = vpop.permute.xlu1 %1550 }
 0x4f1   : > { %v1589_v26 = vmul.f32 %v10872_v45, %v1551_v48 }
 0x4f2   : > { %v1549_v56 = vpop.permute.xlu0 %1548 }
 0x4f3   : > { %1833 = vrot.lane.b32.xlu1 %v1586_v34, %s10434_s21  ;;  %v1588_v39 = vmul.f32 %v10876_v32, %v1549_v56 }
 0x4f5   : > { %v1555_v36 = vpop.permute.xlu1 %1554 }
 0x4f6   : > { %v1591_v62 = vmul.f32 %v10880_v4, %v1555_v36  ;;  %v11174_v4 = vld [vmem:[%s13352_s1 + $0x20] sm:$0x3]  ;;  %v11216_v36 = vld [vmem:[%s13352_s1 + $0x8] sm:$0xff] }
 0x4f7   : > { %v1553_v33 = vpop.permute.xlu0 %1552  ;;  %1839 = vrot.lane.b32.xlu1 %v1589_v26, %s10434_s21 }
 0x4f8   : > { %v1590_v59 = vmul.f32 %v10884_v5, %v1553_v33  ;;  %v11203_v33 = vld [vmem:[%s13352_s1 + $0x18] sm:$0xff] }
 0x4f9   : > { %v1559_v15 = vpop.permute.xlu1 %1558 }
 0x4fa   : > { %v1593_v45 = vmul.f32 %v10887_v6, %v1559_v15 }
 0x4fb   : > { %1837 = vrot.lane.b32.xlu1 %v1588_v39, %s10434_s21  ;;  %v1557_v14 = vpop.permute.xlu0 %1556  ;;  %v11209_v39 = vld [vmem:[%s13352_s1 + $0x10] sm:$0xff] }
 0x4fc   : > { %v1592_v32 = vmul.f32 %v10891_v44, %v1557_v14  ;;  %v11223_v14 = vld [vmem:[%s13352_s1] sm:$0xff] }
 0x4ff   : > { %1843 = vrot.lane.b32.xlu1 %v1591_v62, %s10434_s21  ;;  %v1563_v44 = vpop.permute.xlu1 %1562 }
 0x500   : > { %v1595_v38 = vmul.f32 %v10897_v2, %v1563_v44 }
 0x501   : > { %v1561_v57 = vpop.permute.xlu0 %1560 }
 0x502   : > { %v1594_v5 = vmul.f32 %v10901_v10, %v1561_v57 }
 0x503   : > { %1841 = vrot.lane.b32.xlu1 %v1590_v59, %s10434_s21 }
 0x505   : > { %v1597_v1 = vpop.permute.xlu0 %1596 }
 0x506   : > { %8920 = vmatprep.mubr.msk.f32.mxu1 %vm195_vm1, %v1597_v1 }
 0x507   : > { %1847 = vrot.lane.b32.xlu1 %v1593_v45, %s10434_s21 }
 0x509   : > { %v1599_v37 = vpop.permute.xlu0 %1598 }
 0x50a   : > { %8921 = vmatmul.mubr.msk.f32.vlgmr.msra.gmra.mxu1 %vm195_vm1, %v1599_v37 }
 0x50b   : > { %1845 = vrot.lane.b32.xlu1 %v1592_v32, %s10434_s21  ;;  %8977 = vmatpush3.msk.msra.mxu1 %vm244_vm0, %v11174_v4 }
 0x50c   : > { %9034 = vmatprep.subr.msk.mxu1 %vm244_vm0, %v11174_v4 }
 0x50d   : > { %v1601_v6 = vpop.permute.xlu0 %1600 }
 0x50e   : > { %8923 = vmatprep.mubr.msk.f32.mxu1 %vm195_vm1, %v1601_v6 }
 0x50f   : > { %1849 = vrot.lane.b32.xlu1 %v1594_v5, %s10434_s21 }
 0x511   : > { %v1603_v16 = vpop.permute.xlu0 %1602 }
 0x512   : > { %8924 = vmatmul.mubr.msk.f32.gmra.mxu1 %vm195_vm1, %v1603_v16 }
 0x513   : > { %1851 = vrot.lane.b32.xlu1 %v1595_v38, %s10434_s21 }
 0x515   : > { %v1605_v12 = vpop.permute.xlu0 %1604 }
 0x516   : > { %8926 = vmatprep.mubr.msk.f32.mxu1 %vm195_vm1, %v1605_v12 }
 0x519   : > { %v1607_v46 = vpop.permute.xlu0 %1606 }
 0x51a   : > { %8927 = vmatmul.mubr.msk.f32.gmra.mxu1 %vm195_vm1, %v1607_v46 }
 0x51d   : > { %v1609_v10 = vpop.permute.xlu0 %1608 }
 0x51e   : > { %8929 = vmatprep.mubr.msk.f32.mxu1 %vm195_vm1, %v1609_v10 }
 0x521   : > { %v1611_v63 = vpop.permute.xlu0 %1610 }
 0x522   : > { %8930 = vmatmul.mubr.msk.f32.gmra.mxu1 %vm195_vm1, %v1611_v63 }
 0x525   : > { %v1613_v42 = vpop.permute.xlu0 %1612 }
 0x526   : > { %8932 = vmatprep.mubr.msk.f32.mxu1 %vm195_vm1, %v1613_v42 }
 0x529   : > { %v1615_v2 = vpop.permute.xlu0 %1614 }
 0x52a   : > { %8933 = vmatmul.mubr.msk.f32.gmra.mxu1 %vm195_vm1, %v1615_v2 }
 0x52d   : > { %v1617_v9 = vpop.permute.xlu0 %1616 }
 0x52e   : > { %8935 = vmatprep.mubr.msk.f32.mxu1 %vm195_vm1, %v1617_v9 }
 0x531   : > { %v1619_v40 = vpop.permute.xlu0 %1618 }
 0x532   : > { %8936 = vmatmul.mubr.msk.f32.gmra.mxu1 %vm195_vm1, %v1619_v40 }
 0x535   : > { %v1621_v50 = vpop.permute.xlu0 %1620 }
 0x536   : > { %8938 = vmatprep.mubr.msk.f32.mxu1 %vm195_vm1, %v1621_v50 }
 0x539   : > { %v1623_v35 = vpop.permute.xlu0 %1622 }
 0x53a   : > { %8939 = vmatmul.mubr.msk.f32.gmra.mxu1 %vm195_vm1, %v1623_v35 }
 0x53d   : > { %v1625_v34 = vpop.permute.xlu0 %1624 }
 0x53e   : > { %8941 = vmatprep.mubr.msk.f32.mxu1 %vm195_vm1, %v1625_v34 }
 0x541   : > { %v1824_v48 = vpop.permute.xlu1 %1823  ;;  %v1627_v56 = vpop.permute.xlu0 %1626 }
 0x542   : > { %8942 = vmatmul.mubr.msk.f32.gmra.mxu1 %vm195_vm1, %v1627_v56 }
 0x545   : > { %v1822_v26 = vpop.permute.xlu1 %1821 }
 0x546   : > { %8952 = vmatprep.mubr.msk.f32.mxu0 %vm954_vm2, %v1822_v26 }
 0x547   : > { %8953 = vmatmul.mubr.msk.f32.vlgmr.msra.gmra.mxu0 %vm954_vm2, %v1824_v48 }
 0x548   : > { %9003 = vmatpush3.msra.mxu0 %v11203_v33 }
 0x549   : > { %9004 = vmatprep.subr.mxu0 %v11209_v39 }
 0x54a   : > { %9005 = vmatpush3.msra.mxu0 %v11209_v39 }
 0x54b   : > { %9006 = vmatprep.subr.mxu0 %v11216_v36 }
 0x54c   : > { %9007 = vmatpush3.msra.mxu0 %v11216_v36 }
 0x54d   : > { %v1828_v62 = vpop.permute.xlu1 %1827  ;;  %9008 = vmatprep.subr.mxu0 %v11223_v14 }
 0x54e   : > { %9009 = vmatpush3.msra.mxu0 %v11223_v14 }
 0x54f   : > { %9060 = vmatprep.subr.mxu0 %v11203_v33 }
 0x551   : > { %v1826_v59 = vpop.permute.xlu1 %1825 }
 0x552   : > { %8955 = vmatprep.mubr.msk.f32.mxu0 %vm954_vm2, %v1826_v59 }
 0x553   : > { %8956 = vmatmul.mubr.msk.f32.gmra.mxu0 %vm954_vm2, %v1828_v62 }
 0x559   : > { %v1832_v57 = vpop.permute.xlu1 %1831 }
 0x55d   : > { %v1830_v15 = vpop.permute.xlu1 %1829 }
 0x55e   : > { %8958 = vmatprep.mubr.msk.f32.mxu0 %vm954_vm2, %v1830_v15 }
 0x55f   : > { %8959 = vmatmul.mubr.msk.f32.gmra.mxu0 %vm954_vm2, %v1832_v57 }
 0x561   : > { %v1836_v45 = vpop.permute.xlu1 %1835 }
 0x565   : > { %v1834_v1 = vpop.permute.xlu1 %1833 }
 0x566   : > { %8961 = vmatprep.mubr.msk.f32.mxu0 %vm954_vm2, %v1834_v1 }
 0x567   : > { %8962 = vmatmul.mubr.msk.f32.gmra.mxu0 %vm954_vm2, %v1836_v45 }
 0x569   : > { %v1840_v32 = vpop.permute.xlu1 %1839 }
 0x56d   : > { %v1838_v37 = vpop.permute.xlu1 %1837 }
 0x56e   : > { %8964 = vmatprep.mubr.msk.f32.mxu0 %vm954_vm2, %v1838_v37 }
 0x56f   : > { %8965 = vmatmul.mubr.msk.f32.gmra.mxu0 %vm954_vm2, %v1840_v32 }
 0x571   : > { %v1844_v5 = vpop.permute.xlu1 %1843 }
 0x575   : > { %v1842_v6 = vpop.permute.xlu1 %1841 }
 0x576   : > { %8967 = vmatprep.mubr.msk.f32.mxu0 %vm954_vm2, %v1842_v6 }
 0x577   : > { %8968 = vmatmul.mubr.msk.f32.gmra.mxu0 %vm954_vm2, %v1844_v5 }
 0x579   : > { %v1848_v44 = vpop.permute.xlu1 %1847 }
 0x57d   : > { %v1846_v38 = vpop.permute.xlu1 %1845 }
 0x57e   : > { %8970 = vmatprep.mubr.msk.f32.mxu0 %vm954_vm2, %v1846_v38 }
 0x57f   : > { %8971 = vmatmul.mubr.msk.f32.gmra.mxu0 %vm954_vm2, %v1848_v44 }
 0x581   : > { %v1850_v16 = vpop.permute.xlu1 %1849 }
 0x582   : > { %8973 = vmatprep.mubr.msk.f32.mxu0 %vm954_vm2, %v1850_v16 }
 0x585   : > { %v1852_v12 = vpop.permute.xlu1 %1851 }
 0x586   : > { %8974 = vmatmul.mubr.msk.f32.gmra.mxu0 %vm954_vm2, %v1852_v12 }
 0x5ca   : > { %v8922_v46 = vpop.f32.mrf.mxu1 }
 0x5cc   : > { %v1726_v63 = vpop.f32.mrf.mxu1 }
 0x5d2   : > { %v8925_v35 = vpop.f32.mrf.mxu1 }
 0x5d4   : > { %v1736_v48 = vpop.f32.mrf.mxu1 }
 0x5da   : > { %v8928_v37 = vpop.f32.mrf.mxu1 }
 0x5dc   : > { %v1746_v44 = vpop.f32.mrf.mxu1 }
 0x607   : > { %v8954_v10 = vpop.f32.mrf.mxu0 }
 0x608   : > { %v1957_v42 = vadd.f32 %v8954_v10, %v8922_v46 }
 0x609   : > { %v1951_v2 = vpop.f32.mrf.mxu0 }
 0x60a   : > { %v8012_v9 = vmul.f32 -1.442695, %v1957_v42  ;;  %v1952_v40 = vadd.f32 %v1951_v2, %v1726_v63  ;;  %v8931_v63 = vpop.f32.mrf.mxu1 }
 0x60c   : > { %9624 = vpow2.f32 %v8012_v9  ;;  %v8011_v50 = vmul.f32 -1.442695, %v1952_v40 }
 0x60e   : > { %9626 = vpow2.f32 %v8011_v50 }
 0x613   : > { %v8957_v34 = vpop.f32.mrf.mxu0 }
 0x614   : > { %v1967_v56 = vadd.f32 %v8957_v34, %v8925_v35  ;;  %v1756_v34 = vpop.f32.mrf.mxu1 }
 0x615   : > { %v1961_v26 = vpop.f32.mrf.mxu0 }
 0x616   : > { %v8014_v62 = vmul.f32 -1.442695, %v1967_v56  ;;  %v1962_v59 = vadd.f32 %v1961_v26, %v1736_v48 }
 0x618   : > { %9628 = vpow2.f32 %v8014_v62  ;;  %v8013_v57 = vmul.f32 -1.442695, %v1962_v59 }
 0x619   : > { %v9625_v15 = vpop.eup %9624 }
 0x61a   : > { %v2079_v45 = vadd.f32 1.0, %v9625_v15  ;;  %9630 = vpow2.f32 %v8013_v57 }
 0x61b   : > { %v9627_v1 = vpop.eup %9626 }
 0x61c   : > { %9632 = vrcp.f32 %v2079_v45  ;;  %v2078_v32 = vadd.f32 1.0, %v9627_v1  ;;  %v8934_v1 = vpop.f32.mrf.mxu1 }
 0x61e   : > { %9634 = vrcp.f32 %v2078_v32 }
 0x61f   : > { %v8960_v5 = vpop.f32.mrf.mxu0 }
 0x620   : > { %v1977_v6 = vadd.f32 %v8960_v5, %v8928_v37 }
 0x621   : > { %v1971_v38 = vpop.f32.mrf.mxu0 }
 0x622   : > { %v8016_v16 = vmul.f32 -1.442695, %v1977_v6  ;;  %v1972_v12 = vadd.f32 %v1971_v38, %v1746_v44  ;;  %v1766_v44 = vpop.f32.mrf.mxu1 }
 0x624   : > { %9636 = vpow2.f32 %v8016_v16  ;;  %v8015_v46 = vmul.f32 -1.442695, %v1972_v12 }
 0x625   : > { %v9629_v10 = vpop.eup %9628 }
 0x626   : > { %v2081_v42 = vadd.f32 1.0, %v9629_v10  ;;  %9638 = vpow2.f32 %v8015_v46 }
 0x627   : > { %v9631_v2 = vpop.eup %9630  ;;  %v8963_v9 = vpop.f32.mrf.mxu0 }
 0x628   : > { %9640 = vrcp.f32 %v2081_v42  ;;  %v2080_v40 = vadd.f32 1.0, %v9631_v2  ;;  %v1987_v50 = vadd.f32 %v8963_v9, %v8931_v63  ;;  %v8937_v9 = vpop.f32.mrf.mxu1 }
 0x629   : > { %v11242_v35 = vpop.eup %9632  ;;  %v1981_v48 = vpop.f32.mrf.mxu0 }
 0x62a   : > { %9642 = vrcp.f32 %v2080_v40  ;;  %v8018_v56 = vmul.f32 -1.442695, %v1987_v50  ;;  %v1982_v26 = vadd.f32 %v1981_v48, %v1756_v34  ;;  %v2127_v62 = vmul.f32 2.0, %v11242_v35 }
 0x62b   : > { %v11245_v59 = vpop.eup %9634 }
 0x62c   : > { %9644 = vpow2.f32 %v8018_v56  ;;  %v8017_v57 = vmul.f32 -1.442695, %v1982_v26  ;;  %v8028_v15 = vadd.f32 -1.0, %v2127_v62  ;;  %v2126_v45 = vmul.f32 2.0, %v11245_v59 }
 0x62e   : > { %9646 = vpow2.f32 %v8017_v57  ;;  %2192 = vrot.lane.b32.xlu1 %v8028_v15, %s10431_s18  ;;  %v8027_v32 = vadd.f32 -1.0, %v2126_v45  ;;  %v1776_v57 = vpop.f32.mrf.mxu1 }
 0x62f   : > { %v8966_v37 = vpop.f32.mrf.mxu0 }
 0x630   : > { %v1997_v5 = vadd.f32 %v8966_v37, %v8934_v1  ;;  %2190 = vrot.lane.b32.xlu0 %v8027_v32, %s10431_s18 }
 0x631   : > { %v9637_v6 = vpop.eup %9636  ;;  %v1991_v38 = vpop.f32.mrf.mxu0 }
 0x632   : > { %v2083_v16 = vadd.f32 1.0, %v9637_v6  ;;  %v8020_v12 = vmul.f32 -1.442695, %v1997_v5  ;;  %v1992_v46 = vadd.f32 %v1991_v38, %v1766_v44  ;;  %v8940_v38 = vpop.f32.mrf.mxu1 }
 0x633   : > { %v9639_v10 = vpop.eup %9638 }
 0x634   : > { %9648 = vrcp.f32 %v2083_v16  ;;  %v2082_v63 = vadd.f32 1.0, %v9639_v10  ;;  %v8019_v42 = vmul.f32 -1.442695, %v1992_v46  ;;  %v1786_v10 = vpop.f32.mrf.mxu1 }
 0x635   : > { %v11250_v2 = vpop.eup %9640  ;;  %9650 = vpow2.f32 %v8020_v12 }
 0x636   : > { %9652 = vrcp.f32 %v2082_v63  ;;  %v2129_v40 = vmul.f32 2.0, %v11250_v2 }
 0x637   : > { %v11253_v50 = vpop.eup %9642  ;;  %9654 = vpow2.f32 %v8019_v42  ;;  %v8969_v34 = vpop.f32.mrf.mxu0 }
 0x638   : > { %v2007_v48 = vadd.f32 %v8969_v34, %v8937_v9  ;;  %v8030_v56 = vadd.f32 -1.0, %v2129_v40  ;;  %v2128_v26 = vmul.f32 2.0, %v11253_v50 }
 0x639   : > { %v9645_v62 = vpop.eup %9644  ;;  %v2001_v15 = vpop.f32.mrf.mxu0 }
 0x63a   : > { %v2085_v45 = vadd.f32 1.0, %v9645_v62  ;;  %v8022_v1 = vmul.f32 -1.442695, %v2007_v48  ;;  %v2002_v32 = vadd.f32 %v2001_v15, %v1776_v57  ;;  %2196 = vrot.lane.b32.xlu1 %v8030_v56, %s10431_s18  ;;  %v8029_v37 = vadd.f32 -1.0, %v2128_v26  ;;  %v8943_v57 = vpop.f32.mrf.mxu1 }
 0x63b   : > { %v9647_v5 = vpop.eup %9646 }
 0x63c   : > { %9656 = vrcp.f32 %v2085_v45  ;;  %v2084_v6 = vadd.f32 1.0, %v9647_v5  ;;  %v8021_v44 = vmul.f32 -1.442695, %v2002_v32  ;;  %2194 = vrot.lane.b32.xlu0 %v8029_v37, %s10431_s18 }
 0x63d   : > { %9658 = vpow2.f32 %v8022_v1 }
 0x63e   : > { %9660 = vrcp.f32 %v2084_v6  ;;  %v1796_v6 = vpop.f32.mrf.mxu1 }
 0x63f   : > { %9662 = vpow2.f32 %v8021_v44  ;;  %v8972_v16 = vpop.f32.mrf.mxu0 }
 0x640   : > { %v2017_v12 = vadd.f32 %v8972_v16, %v8940_v38 }
 0x641   : > { %v11258_v46 = vpop.eup %9648  ;;  %v2011_v63 = vpop.f32.mrf.mxu0 }
 0x642   : > { %v9651_v42 = vpop.eup %9650  ;;  %v8024_v9 = vmul.f32 -1.442695, %v2017_v12  ;;  %v2012_v40 = vadd.f32 %v2011_v63, %v1786_v10  ;;  %v2131_v34 = vmul.f32 2.0, %v11258_v46 }
 0x643   : > { %v11261_v48 = vpop.eup %9652  ;;  %v2087_v56 = vadd.f32 1.0, %v9651_v42 }
 0x644   : > { %v9655_v26 = vpop.eup %9654  ;;  %9664 = vpow2.f32 %v8024_v9  ;;  %v8023_v62 = vmul.f32 -1.442695, %v2012_v40  ;;  %v8032_v15 = vadd.f32 -1.0, %v2131_v34  ;;  %v2130_v45 = vmul.f32 2.0, %v11261_v48 }
 0x645   : > { %9666 = vrcp.f32 %v2087_v56  ;;  %v2086_v1 = vadd.f32 1.0, %v9655_v26 }
 0x646   : > { %9668 = vpow2.f32 %v8023_v62  ;;  %v8975_v32 = vpop.f32.mrf.mxu0  ;;  %2200 = vrot.lane.b32.xlu1 %v8032_v15, %s10431_s18  ;;  %v8031_v37 = vadd.f32 -1.0, %v2130_v45 }
 0x647   : > { %9670 = vrcp.f32 %v2086_v1  ;;  %v2027_v5 = vadd.f32 %v8975_v32, %v8943_v57 }
 0x648   : > { %v2021_v44 = vpop.f32.mrf.mxu0  ;;  %2198 = vrot.lane.b32.xlu0 %v8031_v37, %s10431_s18 }
 0x649   : > { %v11266_v38 = vpop.eup %9656  ;;  %v8026_v16 = vmul.f32 -1.442695, %v2027_v5  ;;  %v2022_v12 = vadd.f32 %v2021_v44, %v1796_v6 }
 0x64a   : > { %v9659_v10 = vpop.eup %9658  ;;  %v2133_v63 = vmul.f32 2.0, %v11266_v38 }
 0x64b   : > { %v11269_v42 = vpop.eup %9660  ;;  %v2089_v9 = vadd.f32 1.0, %v9659_v10  ;;  %9672 = vpow2.f32 %v8026_v16  ;;  %v8025_v40 = vmul.f32 -1.442695, %v2022_v12 }
 0x64c   : > { %v9663_v34 = vpop.eup %9662  ;;  %v8034_v56 = vadd.f32 -1.0, %v2133_v63  ;;  %v2132_v26 = vmul.f32 2.0, %v11269_v42 }
 0x64d   : > { %9674 = vrcp.f32 %v2089_v9  ;;  %v2088_v62 = vadd.f32 1.0, %v9663_v34 }
 0x64e   : > { %9676 = vpow2.f32 %v8025_v40  ;;  %2204 = vrot.lane.b32.xlu1 %v8034_v56, %s10431_s18  ;;  %v8033_v57 = vadd.f32 -1.0, %v2132_v26 }
 0x64f   : > { %9678 = vrcp.f32 %v2088_v62 }
 0x650   : > { %2202 = vrot.lane.b32.xlu0 %v8033_v57, %s10431_s18 }
 0x651   : > { %v9665_v15 = vpop.eup %9664 }
 0x652   : > { %v11274_v45 = vpop.eup %9666  ;;  %v2091_v1 = vadd.f32 1.0, %v9665_v15 }
 0x653   : > { %v9669_v32 = vpop.eup %9668  ;;  %v2135_v37 = vmul.f32 2.0, %v11274_v45 }
 0x654   : > { %v11277_v5 = vpop.eup %9670  ;;  %9680 = vrcp.f32 %v2091_v1  ;;  %v2090_v6 = vadd.f32 1.0, %v9669_v32 }
 0x655   : > { %v8036_v44 = vadd.f32 -1.0, %v2135_v37  ;;  %v2134_v16 = vmul.f32 2.0, %v11277_v5 }
 0x656   : > { %9682 = vrcp.f32 %v2090_v6 }
 0x657   : > { %2208 = vrot.lane.b32.xlu1 %v8036_v44, %s10431_s18  ;;  %v8035_v12 = vadd.f32 -1.0, %v2134_v16 }
 0x658   : > { %v9673_v10 = vpop.eup %9672 }
 0x659   : > { %v2093_v63 = vadd.f32 1.0, %v9673_v10  ;;  %2206 = vrot.lane.b32.xlu0 %v8035_v12, %s10431_s18 }
 0x65a   : > { %v11282_v9 = vpop.eup %9674 }
 0x65b   : > { %v9677_v40 = vpop.eup %9676  ;;  %9684 = vrcp.f32 %v2093_v63  ;;  %v2137_v34 = vmul.f32 2.0, %v11282_v9 }
 0x65c   : > { %v11285_v56 = vpop.eup %9678  ;;  %v2092_v26 = vadd.f32 1.0, %v9677_v40 }
 0x65d   : > { %v8038_v62 = vadd.f32 -1.0, %v2137_v34  ;;  %v2136_v57 = vmul.f32 2.0, %v11285_v56 }
 0x65e   : > { %9686 = vrcp.f32 %v2092_v26 }
 0x65f   : > { %2212 = vrot.lane.b32.xlu1 %v8038_v62, %s10431_s18  ;;  %v8037_v15 = vadd.f32 -1.0, %v2136_v57 }
 0x661   : > { %v11289_v1 = vpop.eup %9680  ;;  %2210 = vrot.lane.b32.xlu0 %v8037_v15, %s10431_s18 }
 0x662   : > { %v2139_v32 = vmul.f32 2.0, %v11289_v1 }
 0x663   : > { %v11293_v37 = vpop.eup %9682 }
 0x664   : > { %v8040_v6 = vadd.f32 -1.0, %v2139_v32  ;;  %v2138_v44 = vmul.f32 2.0, %v11293_v37 }
 0x666   : > { %2216 = vrot.lane.b32.xlu1 %v8040_v6, %s10431_s18  ;;  %v8039_v16 = vadd.f32 -1.0, %v2138_v44 }
 0x668   : > { %v11297_v12 = vpop.eup %9684  ;;  %2214 = vrot.lane.b32.xlu0 %v8039_v16, %s10431_s18 }
 0x669   : > { %v2141_v10 = vmul.f32 2.0, %v11297_v12 }
 0x66b   : > { %v11301_v63 = vpop.eup %9686  ;;  %v8042_v40 = vadd.f32 -1.0, %v2141_v10 }
 0x66c   : > { %v2140_v34 = vmul.f32 2.0, %v11301_v63 }
 0x66d   : > { %2220 = vrot.lane.b32.xlu1 %v8042_v40, %s10431_s18 }
 0x66e   : > { %v8041_v26 = vadd.f32 -1.0, %v2140_v34 }
 0x670   : > { %2218 = vrot.lane.b32.xlu0 %v8041_v26, %s10431_s18 }
 0x6a0   : > { %v2193_v62 = vpop.permute.xlu1 %2192 }
 0x6a1   : > { %v2239_v57 = vmul.f32 %v11242_v35, %v2193_v62 }
 0x6a2   : > { %v2191_v15 = vpop.permute.xlu0 %2190 }
 0x6a3   : > { %v2238_v32 = vmul.f32 %v11245_v59, %v2191_v15  ;;  %2272 = vrot.lane.b32.xlu1 %v2239_v57, %s10434_s21 }
 0x6a5   : > { %2270 = vrot.lane.b32.xlu0 %v2238_v32, %s10434_s21 }
 0x6ac   : > { %v2197_v6 = vpop.permute.xlu1 %2196 }
 0x6ad   : > { %v2241_v44 = vmul.f32 %v11250_v2, %v2197_v6 }
 0x6ae   : > { %v2195_v16 = vpop.permute.xlu0 %2194 }
 0x6af   : > { %v2240_v10 = vmul.f32 %v11253_v50, %v2195_v16  ;;  %2276 = vrot.lane.b32.xlu1 %v2241_v44, %s10434_s21 }
 0x6b1   : > { %2274 = vrot.lane.b32.xlu0 %v2240_v10, %s10434_s21 }
 0x6b8   : > { %v2201_v40 = vpop.permute.xlu1 %2200 }
 0x6b9   : > { %v2243_v34 = vmul.f32 %v11258_v46, %v2201_v40 }
 0x6ba   : > { %v2199_v26 = vpop.permute.xlu0 %2198 }
 0x6bb   : > { %v2242_v62 = vmul.f32 %v11261_v48, %v2199_v26  ;;  %2280 = vrot.lane.b32.xlu1 %v2243_v34, %s10434_s21 }
 0x6bd   : > { %2278 = vrot.lane.b32.xlu0 %v2242_v62, %s10434_s21 }
 0x6c0   : > { %v2205_v57 = vpop.permute.xlu1 %2204 }
 0x6c1   : > { %v2245_v15 = vmul.f32 %v11266_v38, %v2205_v57 }
 0x6c2   : > { %v2203_v32 = vpop.permute.xlu0 %2202 }
 0x6c3   : > { %v2244_v6 = vmul.f32 %v11269_v42, %v2203_v32  ;;  %2284 = vrot.lane.b32.xlu1 %v2245_v15, %s10434_s21 }
 0x6c5   : > { %2282 = vrot.lane.b32.xlu0 %v2244_v6, %s10434_s21 }
 0x6c9   : > { %v2209_v44 = vpop.permute.xlu1 %2208 }
 0x6ca   : > { %v2247_v16 = vmul.f32 %v11274_v45, %v2209_v44 }
 0x6cb   : > { %v2207_v10 = vpop.permute.xlu0 %2206 }
 0x6cc   : > { %v2246_v40 = vmul.f32 %v11277_v5, %v2207_v10  ;;  %2288 = vrot.lane.b32.xlu1 %v2247_v16, %s10434_s21 }
 0x6ce   : > { %2286 = vrot.lane.b32.xlu0 %v2246_v40, %s10434_s21 }
 0x6d1   : > { %v2213_v34 = vpop.permute.xlu1 %2212 }
 0x6d2   : > { %v2249_v26 = vmul.f32 %v11282_v9, %v2213_v34 }
 0x6d3   : > { %v2211_v62 = vpop.permute.xlu0 %2210 }
 0x6d4   : > { %v2248_v57 = vmul.f32 %v11285_v56, %v2211_v62  ;;  %2292 = vrot.lane.b32.xlu1 %v2249_v26, %s10434_s21  ;;  %v2159_v26 = vmul.f32 %v11242_v35, %v10978_v58  ;;  %v2160_v58 = vmul.f32 %v11253_v50, %v10991_v55  ;;  %v2162_v55 = vmul.f32 %v11261_v48, %v11001_v27 }
 0x6d5   : > { %v2164_v27 = vmul.f32 %v11269_v42, %v11012_v23  ;;  %v2166_v23 = vmul.f32 %v11277_v5, %v11019_v3  ;;  %v2168_v3 = vmul.f32 %v11285_v56, %v11030_v52 }
 0x6d6   : > { %2290 = vrot.lane.b32.xlu0 %v2248_v57, %s10434_s21 }
 0x6d8   : > { %v2217_v15 = vpop.permute.xlu1 %2216 }
 0x6d9   : > { %v2251_v32 = vmul.f32 %v11289_v1, %v2217_v15  ;;  %v2158_v15 = vmul.f32 %v11245_v59, %v10983_v29 }
 0x6da   : > { %v2215_v6 = vpop.permute.xlu0 %2214 }
 0x6db   : > { %v2250_v44 = vmul.f32 %v11293_v37, %v2215_v6  ;;  %2296 = vrot.lane.b32.xlu1 %v2251_v32, %s10434_s21 }
 0x6dd   : > { %2294 = vrot.lane.b32.xlu0 %v2250_v44, %s10434_s21  ;;  %v2161_v44 = vmul.f32 %v11250_v2, %v10988_v49  ;;  %v2163_v49 = vmul.f32 %v11258_v46, %v10998_v54  ;;  %v2165_v54 = vmul.f32 %v11266_v38, %v11008_v41 }
 0x6df   : > { %v2221_v16 = vpop.permute.xlu1 %2220 }
 0x6e0   : > { %v2253_v10 = vmul.f32 %v11297_v12, %v2221_v16 }
 0x6e2   : > { %v2219_v40 = vpop.permute.xlu0 %2218  ;;  %2300 = vrot.lane.b32.xlu1 %v2253_v10, %s10434_s21 }
 0x6e3   : > { %v2252_v34 = vmul.f32 %v11301_v63, %v2219_v40 }
 0x6e5   : > { %2298 = vrot.lane.b32.xlu0 %v2252_v34, %s10434_s21 }
 0x715   : > { %v2273_v62 = vpop.permute.xlu1 %2272 }
 0x716   : > { %v11340_v57 = vadd.f32 %v2273_v62, %v2159_v26 }
 0x717   : > { %v2271_v32 = vpop.permute.xlu0 %2270 }
 0x718   : > { %9688 = vtanh.f32 %v11340_v57  ;;  %v11345_v6 = vadd.f32 %v2271_v32, %v2158_v15 }
 0x71a   : > { %9690 = vtanh.f32 %v11345_v6 }
 0x721   : > { %v2277_v16 = vpop.permute.xlu1 %2276 }
 0x722   : > { %v11350_v10 = vadd.f32 %v2277_v16, %v2161_v44 }
 0x723   : > { %v2275_v40 = vpop.permute.xlu0 %2274 }
 0x724   : > { %9692 = vtanh.f32 %v11350_v10  ;;  %v11355_v29 = vadd.f32 %v2275_v40, %v2160_v58 }
 0x725   : > { %v9689_v34 = vpop.eup %9688 }
 0x726   : > { %9694 = vtanh.f32 %v11355_v29  ;;  %2368 = vrot.lane.b32.xlu1 %v9689_v34, %s10431_s18 }
 0x727   : > { %v9691_v26 = vpop.eup %9690 }
 0x728   : > { %2366 = vrot.lane.b32.xlu0 %v9691_v26, %s10431_s18 }
 0x72d   : > { %v2281_v62 = vpop.permute.xlu1 %2280 }
 0x72e   : > { %v11362_v15 = vadd.f32 %v2281_v62, %v2163_v49 }
 0x72f   : > { %v2279_v32 = vpop.permute.xlu0 %2278 }
 0x730   : > { %9696 = vtanh.f32 %v11362_v15  ;;  %v11367_v44 = vadd.f32 %v2279_v32, %v2162_v55  ;;  %v2167_v55 = vmul.f32 %v11274_v45, %v11016_v53  ;;  %v2169_v53 = vmul.f32 %v11282_v9, %v11025_v8 }
 0x731   : > { %v9693_v16 = vpop.eup %9692  ;;  %v2171_v8 = vmul.f32 %v11289_v1, %v11035_v17  ;;  %v2173_v17 = vmul.f32 %v11297_v12, %v11047_v51 }
 0x732   : > { %9698 = vtanh.f32 %v11367_v44  ;;  %2372 = vrot.lane.b32.xlu1 %v9693_v16, %s10431_s18 }
 0x733   : > { %v9695_v58 = vpop.eup %9694 }
 0x734   : > { %2370 = vrot.lane.b32.xlu0 %v9695_v58, %s10431_s18 }
 0x735   : > { %v2285_v40 = vpop.permute.xlu1 %2284 }
 0x736   : > { %v11374_v34 = vadd.f32 %v2285_v40, %v2165_v54 }
 0x737   : > { %v2283_v26 = vpop.permute.xlu0 %2282 }
 0x738   : > { %9700 = vtanh.f32 %v11374_v34  ;;  %v11379_v49 = vadd.f32 %v2283_v26, %v2164_v27 }
 0x73a   : > { %9702 = vtanh.f32 %v11379_v49 }
 0x73d   : > { %v9697_v62 = vpop.eup %9696 }
 0x73e   : > { %v2289_v32 = vpop.permute.xlu1 %2288  ;;  %2376 = vrot.lane.b32.xlu1 %v9697_v62, %s10431_s18 }
 0x73f   : > { %v9699_v41 = vpop.eup %9698  ;;  %v11385_v16 = vadd.f32 %v2289_v32, %v2167_v55 }
 0x740   : > { %v2287_v58 = vpop.permute.xlu0 %2286  ;;  %2374 = vrot.lane.b32.xlu0 %v9699_v41, %s10431_s18 }
 0x741   : > { %9704 = vtanh.f32 %v11385_v16  ;;  %v11391_v54 = vadd.f32 %v2287_v58, %v2166_v23 }
 0x743   : > { %9706 = vtanh.f32 %v11391_v54 }
 0x745   : > { %v9701_v40 = vpop.eup %9700 }
 0x746   : > { %v2293_v27 = vpop.permute.xlu1 %2292  ;;  %2380 = vrot.lane.b32.xlu1 %v9701_v40, %s10431_s18  ;;  %v2170_v40 = vmul.f32 %v11293_v37, %v11038_v30  ;;  %v2172_v30 = vmul.f32 %v11301_v63, %v11051_v43 }
 0x747   : > { %v9703_v26 = vpop.eup %9702  ;;  %v11397_v62 = vadd.f32 %v2293_v27, %v2169_v53 }
 0x748   : > { %v2291_v55 = vpop.permute.xlu0 %2290  ;;  %2378 = vrot.lane.b32.xlu0 %v9703_v26, %s10431_s18 }
 0x749   : > { %9708 = vtanh.f32 %v11397_v62  ;;  %v11403_v32 = vadd.f32 %v2291_v55, %v2168_v3 }
 0x74b   : > { %9710 = vtanh.f32 %v11403_v32 }
 0x74d   : > { %v2297_v41 = vpop.permute.xlu1 %2296 }
 0x74e   : > { %v9705_v23 = vpop.eup %9704  ;;  %v11408_v58 = vadd.f32 %v2297_v41, %v2171_v8 }
 0x74f   : > { %2384 = vrot.lane.b32.xlu1 %v9705_v23, %s10431_s18  ;;  %v2295_v52 = vpop.permute.xlu0 %2294 }
 0x750   : > { %v9707_v53 = vpop.eup %9706  ;;  %9712 = vtanh.f32 %v11408_v58  ;;  %v11414_v27 = vadd.f32 %v2295_v52, %v2170_v40 }
 0x751   : > { %2382 = vrot.lane.b32.xlu0 %v9707_v53, %s10431_s18 }
 0x752   : > { %9714 = vtanh.f32 %v11414_v27 }
 0x754   : > { %v2301_v26 = vpop.permute.xlu1 %2300 }
 0x755   : > { %v11420_v3 = vadd.f32 %v2301_v26, %v2173_v17 }
 0x756   : > { %v9709_v55 = vpop.eup %9708 }
 0x757   : > { %9716 = vtanh.f32 %v11420_v3  ;;  %2388 = vrot.lane.b32.xlu1 %v9709_v55, %s10431_s18  ;;  %v2299_v8 = vpop.permute.xlu0 %2298 }
 0x758   : > { %v9711_v41 = vpop.eup %9710  ;;  %v11426_v23 = vadd.f32 %v2299_v8, %v2172_v30 }
 0x759   : > { %2386 = vrot.lane.b32.xlu0 %v9711_v41, %s10431_s18 }
 0x75a   : > { %9718 = vtanh.f32 %v11426_v23 }
 0x75d   : > { %v9713_v51 = vpop.eup %9712 }
 0x75e   : > { %2392 = vrot.lane.b32.xlu1 %v9713_v51, %s10431_s18 }
 0x75f   : > { %v9715_v40 = vpop.eup %9714 }
 0x760   : > { %2390 = vrot.lane.b32.xlu0 %v9715_v40, %s10431_s18 }
 0x764   : > { %v9717_v52 = vpop.eup %9716 }
 0x765   : > { %2396 = vrot.lane.b32.xlu1 %v9717_v52, %s10431_s18 }
 0x767   : > { %v9719_v43 = vpop.eup %9718 }
 0x768   : > { %2394 = vrot.lane.b32.xlu0 %v9719_v43, %s10431_s18 }
 0x76c   : > { %2430 = vrot.lane.b32.xlu0 %v11062_v47, %s10436_s16 }
 0x770   : > { %2432 = vrot.lane.b32.xlu0 %v11067_v60, %s10436_s16 }
 0x774   : > { %2434 = vrot.lane.b32.xlu0 %v11072_v0, %s10436_s16 }
 0x778   : > { %2436 = vrot.lane.b32.xlu0 %v11077_v21, %s10436_s16 }
 0x77c   : > { %2438 = vrot.lane.b32.xlu0 %v11082_v22, %s10436_s16 }
 0x780   : > { %2440 = vrot.lane.b32.xlu0 %v11087_v24, %s10436_s16 }
 0x784   : > { %2442 = vrot.lane.b32.xlu0 %v11092_v31, %s10436_s16 }
 0x788   : > { %2444 = vrot.lane.b32.xlu0 %v11097_v61, %s10436_s16 }
 0x78c   : > { %2446 = vrot.lane.b32.xlu0 %v11102_v19, %s10436_s16 }
 0x790   : > { %2448 = vrot.lane.b32.xlu0 %v11107_v20, %s10436_s16 }
 0x794   : > { %2450 = vrot.lane.b32.xlu0 %v11112_v25, %s10436_s16 }
 0x798   : > { %v2369_v47 = vpop.permute.xlu1 %2368  ;;  %2452 = vrot.lane.b32.xlu0 %v11117_v28, %s10436_s16 }
 0x799   : > { %v2415_v60 = vmul.f32 %v11242_v35, %v2369_v47 }
 0x79a   : > { %v2367_v0 = vpop.permute.xlu0 %2366 }
 0x79b   : > { %2657 = vrot.lane.b32.xlu1 %v2415_v60, %s10434_s21  ;;  %v2414_v21 = vmul.f32 %v11245_v59, %v2367_v0 }
 0x79c   : > { %2454 = vrot.lane.b32.xlu0 %v11122_v7, %s10436_s16 }
 0x79f   : > { %2655 = vrot.lane.b32.xlu1 %v2414_v21, %s10434_s21 }
 0x7a0   : > { %2456 = vrot.lane.b32.xlu0 %v11127_v11, %s10436_s16 }
 0x7a4   : > { %v2373_v22 = vpop.permute.xlu1 %2372  ;;  %2458 = vrot.lane.b32.xlu0 %v11132_v13, %s10436_s16 }
 0x7a5   : > { %v2417_v24 = vmul.f32 %v11250_v2, %v2373_v22 }
 0x7a6   : > { %v2371_v31 = vpop.permute.xlu0 %2370 }
 0x7a7   : > { %2661 = vrot.lane.b32.xlu1 %v2417_v24, %s10434_s21  ;;  %v2416_v61 = vmul.f32 %v11253_v50, %v2371_v31 }
 0x7a8   : > { %2460 = vrot.lane.b32.xlu0 %v11139_v18, %s10436_s16 }
 0x7ab   : > { %2659 = vrot.lane.b32.xlu1 %v2416_v61, %s10434_s21 }
 0x7b0   : > { %v2377_v19 = vpop.permute.xlu1 %2376 }
 0x7b1   : > { %v2419_v20 = vmul.f32 %v11258_v46, %v2377_v19 }
 0x7b2   : > { %v2375_v25 = vpop.permute.xlu0 %2374 }
 0x7b3   : > { %2665 = vrot.lane.b32.xlu1 %v2419_v20, %s10434_s21  ;;  %v2418_v28 = vmul.f32 %v11261_v48, %v2375_v25 }
 0x7b7   : > { %2663 = vrot.lane.b32.xlu1 %v2418_v28, %s10434_s21 }
 0x7b8   : > { %v2381_v7 = vpop.permute.xlu1 %2380 }
 0x7b9   : > { %v2421_v11 = vmul.f32 %v11266_v38, %v2381_v7 }
 0x7ba   : > { %v2379_v13 = vpop.permute.xlu0 %2378 }
 0x7bb   : > { %2669 = vrot.lane.b32.xlu1 %v2421_v11, %s10434_s21  ;;  %v2420_v18 = vmul.f32 %v11269_v42, %v2379_v13 }
 0x7bf   : > { %2667 = vrot.lane.b32.xlu1 %v2420_v18, %s10434_s21 }
 0x7c1   : > { %v2385_v35 = vpop.permute.xlu1 %2384 }
 0x7c2   : > { %v2423_v59 = vmul.f32 %v11274_v45, %v2385_v35 }
 0x7c3   : > { %v2383_v2 = vpop.permute.xlu0 %2382 }
 0x7c4   : > { %2673 = vrot.lane.b32.xlu1 %v2423_v59, %s10434_s21  ;;  %v2422_v50 = vmul.f32 %v11277_v5, %v2383_v2 }
 0x7c8   : > { %2671 = vrot.lane.b32.xlu1 %v2422_v50, %s10434_s21 }
 0x7c9   : > { %v2389_v46 = vpop.permute.xlu1 %2388 }
 0x7ca   : > { %v2425_v48 = vmul.f32 %v11282_v9, %v2389_v46 }
 0x7cb   : > { %v2387_v38 = vpop.permute.xlu0 %2386 }
 0x7cc   : > { %2677 = vrot.lane.b32.xlu1 %v2425_v48, %s10434_s21  ;;  %v2424_v42 = vmul.f32 %v11285_v56, %v2387_v38 }
 0x7d0   : > { %2675 = vrot.lane.b32.xlu1 %v2424_v42, %s10434_s21  ;;  %v2393_v53 = vpop.permute.xlu1 %2392 }
 0x7d1   : > { %v2427_v45 = vmul.f32 %v11289_v1, %v2393_v53 }
 0x7d2   : > { %v2391_v17 = vpop.permute.xlu0 %2390 }
 0x7d3   : > { %v2426_v5 = vmul.f32 %v11293_v37, %v2391_v17 }
 0x7d4   : > { %2681 = vrot.lane.b32.xlu1 %v2427_v45, %s10434_s21 }
 0x7d7   : > { %v2397_v55 = vpop.permute.xlu1 %2396 }
 0x7d8   : > { %2679 = vrot.lane.b32.xlu1 %v2426_v5, %s10434_s21  ;;  %v2429_v56 = vmul.f32 %v11297_v12, %v2397_v55 }
 0x7da   : > { %v2395_v26 = vpop.permute.xlu0 %2394 }
 0x7db   : > { %v2428_v9 = vmul.f32 %v11301_v63, %v2395_v26 }
 0x7dd   : > { %2683 = vrot.lane.b32.xlu1 %v2428_v9, %s10434_s21 }
 0x7de   : > { %v2431_v30 = vpop.permute.xlu0 %2430 }
 0x7df   : > { %8978 = vmatprep.mubr.msk.f32.mxu1 %vm195_vm1, %v2431_v30 }
 0x7e1   : > { %2685 = vrot.lane.b32.xlu1 %v2429_v56, %s10434_s21 }
 0x7e2   : > { %v2433_v1 = vpop.permute.xlu0 %2432 }
 0x7e3   : > { %8979 = vmatmul.mubr.msk.f32.vlgmr.msra.gmra.mxu1 %vm195_vm1, %v2433_v1 }
 0x7e4   : > { %9035 = vmatpush3.msk.msra.mxu1 %vm244_vm0, %v11174_v4 }
 0x7e5   : > { %9092 = vmatprep.subr.msk.mxu1 %vm244_vm0, %v11174_v4 }
 0x7e6   : > { %v2435_v37 = vpop.permute.xlu0 %2434 }
 0x7e7   : > { %8981 = vmatprep.mubr.msk.f32.mxu1 %vm195_vm1, %v2435_v37 }
 0x7ea   : > { %v2437_v63 = vpop.permute.xlu0 %2436 }
 0x7eb   : > { %8982 = vmatmul.mubr.msk.f32.gmra.mxu1 %vm195_vm1, %v2437_v63 }
 0x7ee   : > { %v2439_v12 = vpop.permute.xlu0 %2438 }
 0x7ef   : > { %8984 = vmatprep.mubr.msk.f32.mxu1 %vm195_vm1, %v2439_v12 }
 0x7f2   : > { %v2441_v8 = vpop.permute.xlu0 %2440 }
 0x7f3   : > { %8985 = vmatmul.mubr.msk.f32.gmra.mxu1 %vm195_vm1, %v2441_v8 }
 0x7f6   : > { %v2443_v41 = vpop.permute.xlu0 %2442 }
 0x7f7   : > { %8987 = vmatprep.mubr.msk.f32.mxu1 %vm195_vm1, %v2443_v41 }
 0x7fa   : > { %v2445_v51 = vpop.permute.xlu0 %2444 }
 0x7fb   : > { %8988 = vmatmul.mubr.msk.f32.gmra.mxu1 %vm195_vm1, %v2445_v51 }
 0x7fe   : > { %v2447_v40 = vpop.permute.xlu0 %2446 }
 0x7ff   : > { %8990 = vmatprep.mubr.msk.f32.mxu1 %vm195_vm1, %v2447_v40 }
 0x802   : > { %v2449_v4 = vpop.permute.xlu0 %2448 }
 0x803   : > { %8991 = vmatmul.mubr.msk.f32.gmra.mxu1 %vm195_vm1, %v2449_v4 }
 0x806   : > { %v2451_v52 = vpop.permute.xlu0 %2450 }
 0x807   : > { %8993 = vmatprep.mubr.msk.f32.mxu1 %vm195_vm1, %v2451_v52 }
 0x80a   : > { %v2453_v43 = vpop.permute.xlu0 %2452 }
 0x80b   : > { %8994 = vmatmul.mubr.msk.f32.gmra.mxu1 %vm195_vm1, %v2453_v43 }
 0x80d   : > { %v2658_v47 = vpop.permute.xlu1 %2657 }
 0x80e   : > { %v2455_v60 = vpop.permute.xlu0 %2454 }
 0x80f   : > { %8996 = vmatprep.mubr.msk.f32.mxu1 %vm195_vm1, %v2455_v60 }
 0x811   : > { %v2656_v0 = vpop.permute.xlu1 %2655 }
 0x812   : > { %9010 = vmatprep.mubr.msk.f32.mxu0 %vm954_vm2, %v2656_v0  ;;  %v2457_v21 = vpop.permute.xlu0 %2456 }
 0x813   : > { %9011 = vmatmul.mubr.msk.f32.vlgmr.msra.gmra.mxu0 %vm954_vm2, %v2658_v47  ;;  %8997 = vmatmul.mubr.msk.f32.gmra.mxu1 %vm195_vm1, %v2457_v21 }
 0x814   : > { %9061 = vmatpush3.msra.mxu0 %v11203_v33 }
 0x815   : > { %9062 = vmatprep.subr.mxu0 %v11209_v39 }
 0x816   : > { %v2459_v22 = vpop.permute.xlu0 %2458  ;;  %9063 = vmatpush3.msra.mxu0 %v11209_v39 }
 0x817   : > { %8999 = vmatprep.mubr.msk.f32.mxu1 %vm195_vm1, %v2459_v22  ;;  %9064 = vmatprep.subr.mxu0 %v11216_v36 }
 0x818   : > { %9065 = vmatpush3.msra.mxu0 %v11216_v36 }
 0x819   : > { %v2662_v24 = vpop.permute.xlu1 %2661  ;;  %9066 = vmatprep.subr.mxu0 %v11223_v14 }
 0x81a   : > { %v2461_v31 = vpop.permute.xlu0 %2460  ;;  %9067 = vmatpush3.msra.mxu0 %v11223_v14 }
 0x81b   : > { %9000 = vmatmul.mubr.msk.f32.gmra.mxu1 %vm195_vm1, %v2461_v31  ;;  %9118 = vmatprep.subr.mxu0 %v11203_v33 }
 0x81d   : > { %v2660_v61 = vpop.permute.xlu1 %2659 }
 0x81e   : > { %9013 = vmatprep.mubr.msk.f32.mxu0 %vm954_vm2, %v2660_v61 }
 0x81f   : > { %9014 = vmatmul.mubr.msk.f32.gmra.mxu0 %vm954_vm2, %v2662_v24 }
 0x825   : > { %v2666_v39 = vpop.permute.xlu1 %2665 }
 0x829   : > { %v2664_v19 = vpop.permute.xlu1 %2663 }
 0x82a   : > { %9016 = vmatprep.mubr.msk.f32.mxu0 %vm954_vm2, %v2664_v19 }
 0x82b   : > { %9017 = vmatmul.mubr.msk.f32.gmra.mxu0 %vm954_vm2, %v2666_v39 }
 0x82d   : > { %v2670_v36 = vpop.permute.xlu1 %2669 }
 0x831   : > { %v2668_v20 = vpop.permute.xlu1 %2667 }
 0x832   : > { %9019 = vmatprep.mubr.msk.f32.mxu0 %vm954_vm2, %v2668_v20 }
 0x833   : > { %9020 = vmatmul.mubr.msk.f32.gmra.mxu0 %vm954_vm2, %v2670_v36 }
 0x836   : > { %v2674_v14 = vpop.permute.xlu1 %2673 }
 0x83a   : > { %v2672_v25 = vpop.permute.xlu1 %2671 }
 0x83b   : > { %9022 = vmatprep.mubr.msk.f32.mxu0 %vm954_vm2, %v2672_v25 }
 0x83c   : > { %9023 = vmatmul.mubr.msk.f32.gmra.mxu0 %vm954_vm2, %v2674_v14 }
 0x83e   : > { %v2678_v33 = vpop.permute.xlu1 %2677 }
 0x842   : > { %v2676_v28 = vpop.permute.xlu1 %2675 }
 0x843   : > { %9025 = vmatprep.mubr.msk.f32.mxu0 %vm954_vm2, %v2676_v28 }
 0x844   : > { %9026 = vmatmul.mubr.msk.f32.gmra.mxu0 %vm954_vm2, %v2678_v33 }
 0x846   : > { %v2682_v7 = vpop.permute.xlu1 %2681 }
 0x84a   : > { %v2680_v11 = vpop.permute.xlu1 %2679 }
 0x84b   : > { %9028 = vmatprep.mubr.msk.f32.mxu0 %vm954_vm2, %v2680_v11 }
 0x84c   : > { %9029 = vmatmul.mubr.msk.f32.gmra.mxu0 %vm954_vm2, %v2682_v7 }
 0x84f   : > { %v2684_v13 = vpop.permute.xlu1 %2683 }
 0x850   : > { %9031 = vmatprep.mubr.msk.f32.mxu0 %vm954_vm2, %v2684_v13 }
 0x853   : > { %v2686_v18 = vpop.permute.xlu1 %2685 }
 0x854   : > { %9032 = vmatmul.mubr.msk.f32.gmra.mxu0 %vm954_vm2, %v2686_v18 }
 0x8a3   : > { %v8980_v35 = vpop.f32.mrf.mxu1 }
 0x8a5   : > { %v2560_v2 = vpop.f32.mrf.mxu1 }
 0x8ab   : > { %v8983_v53 = vpop.f32.mrf.mxu1 }
 0x8ad   : > { %v2570_v17 = vpop.f32.mrf.mxu1 }
 0x8b3   : > { %v8986_v12 = vpop.f32.mrf.mxu1 }
 0x8b5   : > { %v2580_v51 = vpop.f32.mrf.mxu1 }
 0x8bb   : > { %v8989_v60 = vpop.f32.mrf.mxu1 }
 0x8bd   : > { %v2590_v39 = vpop.f32.mrf.mxu1 }
 0x8c3   : > { %v8992_v11 = vpop.f32.mrf.mxu1 }
 0x8d3   : > { %v9012_v59 = vpop.f32.mrf.mxu0 }
 0x8d4   : > { %v2791_v50 = vadd.f32 %v9012_v59, %v8980_v35 }
 0x8d5   : > { %v2785_v46 = vpop.f32.mrf.mxu0 }
 0x8d6   : > { %v8077_v48 = vmul.f32 -1.442695, %v2791_v50  ;;  %v2786_v38 = vadd.f32 %v2785_v46, %v2560_v2  ;;  %v2600_v50 = vpop.f32.mrf.mxu1 }
 0x8d8   : > { %9720 = vpow2.f32 %v8077_v48  ;;  %v8076_v42 = vmul.f32 -1.442695, %v2786_v38 }
 0x8da   : > { %9722 = vpow2.f32 %v8076_v42 }
 0x8df   : > { %v9015_v45 = vpop.f32.mrf.mxu0 }
 0x8e0   : > { %v2801_v5 = vadd.f32 %v9015_v45, %v8983_v53 }
 0x8e1   : > { %v2795_v26 = vpop.f32.mrf.mxu0 }
 0x8e2   : > { %v8079_v9 = vmul.f32 -1.442695, %v2801_v5  ;;  %v2796_v55 = vadd.f32 %v2795_v26, %v2570_v17  ;;  %v8995_v5 = vpop.f32.mrf.mxu1 }
 0x8e4   : > { %9724 = vpow2.f32 %v8079_v9  ;;  %v8078_v30 = vmul.f32 -1.442695, %v2796_v55 }
 0x8e5   : > { %v9721_v56 = vpop.eup %9720 }
 0x8e6   : > { %v2913_v1 = vadd.f32 1.0, %v9721_v56  ;;  %9726 = vpow2.f32 %v8078_v30 }
 0x8e7   : > { %v9723_v37 = vpop.eup %9722 }
 0x8e8   : > { %9728 = vrcp.f32 %v2913_v1  ;;  %v2912_v63 = vadd.f32 1.0, %v9723_v37 }
 0x8ea   : > { %9730 = vrcp.f32 %v2912_v63 }
 0x8eb   : > { %v9018_v8 = vpop.f32.mrf.mxu0 }
 0x8ec   : > { %v2811_v41 = vadd.f32 %v9018_v8, %v8986_v12  ;;  %v2610_v12 = vpop.f32.mrf.mxu1 }
 0x8ed   : > { %v2805_v40 = vpop.f32.mrf.mxu0 }
 0x8ee   : > { %v8081_v4 = vmul.f32 -1.442695, %v2811_v41  ;;  %v2806_v52 = vadd.f32 %v2805_v40, %v2580_v51 }
 0x8f0   : > { %9732 = vpow2.f32 %v8081_v4  ;;  %v8080_v43 = vmul.f32 -1.442695, %v2806_v52 }
 0x8f1   : > { %v9725_v47 = vpop.eup %9724 }
 0x8f2   : > { %v2915_v0 = vadd.f32 1.0, %v9725_v47  ;;  %9734 = vpow2.f32 %v8080_v43  ;;  %v8998_v47 = vpop.f32.mrf.mxu1 }
 0x8f3   : > { %v9727_v21 = vpop.eup %9726  ;;  %v9021_v22 = vpop.f32.mrf.mxu0 }
 0x8f4   : > { %9736 = vrcp.f32 %v2915_v0  ;;  %v2914_v24 = vadd.f32 1.0, %v9727_v21  ;;  %v2821_v31 = vadd.f32 %v9021_v22, %v8989_v60 }
 0x8f5   : > { %v11526_v61 = vpop.eup %9728  ;;  %v2815_v19 = vpop.f32.mrf.mxu0 }
 0x8f6   : > { %9738 = vrcp.f32 %v2914_v24  ;;  %v8083_v36 = vmul.f32 -1.442695, %v2821_v31  ;;  %v2816_v20 = vadd.f32 %v2815_v19, %v2590_v39  ;;  %v2961_v14 = vmul.f32 2.0, %v11526_v61  ;;  %v2620_v24 = vpop.f32.mrf.mxu1 }
 0x8f7   : > { %v11529_v25 = vpop.eup %9730 }
 0x8f8   : > { %9740 = vpow2.f32 %v8083_v36  ;;  %v8082_v33 = vmul.f32 -1.442695, %v2816_v20  ;;  %v8093_v28 = vadd.f32 -1.0, %v2961_v14  ;;  %v2960_v7 = vmul.f32 2.0, %v11529_v25 }
 0x8fa   : > { %9742 = vpow2.f32 %v8082_v33  ;;  %3026 = vrot.lane.b32.xlu1 %v8093_v28, %s10431_s18  ;;  %v8092_v13 = vadd.f32 -1.0, %v2960_v7 }
 0x8fc   : > { %v9024_v18 = vpop.f32.mrf.mxu0  ;;  %3024 = vrot.lane.b32.xlu0 %v8092_v13, %s10431_s18 }
 0x8fd   : > { %v9733_v35 = vpop.eup %9732  ;;  %v2831_v59 = vadd.f32 %v9024_v18, %v8992_v11  ;;  %v9001_v18 = vpop.f32.mrf.mxu1 }
 0x8fe   : > { %v2917_v2 = vadd.f32 1.0, %v9733_v35  ;;  %v2825_v46 = vpop.f32.mrf.mxu0 }
 0x8ff   : > { %v9735_v48 = vpop.eup %9734  ;;  %v8085_v38 = vmul.f32 -1.442695, %v2831_v59  ;;  %v2826_v42 = vadd.f32 %v2825_v46, %v2600_v50 }
 0x900   : > { %9744 = vrcp.f32 %v2917_v2  ;;  %v2916_v53 = vadd.f32 1.0, %v9735_v48  ;;  %v2630_v48 = vpop.f32.mrf.mxu1 }
 0x901   : > { %v11534_v45 = vpop.eup %9736  ;;  %9746 = vpow2.f32 %v8085_v38  ;;  %v8084_v17 = vmul.f32 -1.442695, %v2826_v42 }
 0x902   : > { %9748 = vrcp.f32 %v2916_v53  ;;  %v2963_v26 = vmul.f32 2.0, %v11534_v45 }
 0x903   : > { %v11537_v9 = vpop.eup %9738  ;;  %9750 = vpow2.f32 %v8084_v17 }
 0x904   : > { %v9027_v55 = vpop.f32.mrf.mxu0  ;;  %v8095_v30 = vadd.f32 -1.0, %v2963_v26  ;;  %v2962_v56 = vmul.f32 2.0, %v11537_v9 }
 0x905   : > { %v9741_v1 = vpop.eup %9740  ;;  %v2841_v37 = vadd.f32 %v9027_v55, %v8995_v5 }
 0x906   : > { %v2919_v63 = vadd.f32 1.0, %v9741_v1  ;;  %v2835_v8 = vpop.f32.mrf.mxu0  ;;  %3030 = vrot.lane.b32.xlu1 %v8095_v30, %s10431_s18  ;;  %v8094_v41 = vadd.f32 -1.0, %v2962_v56 }
 0x907   : > { %v9743_v51 = vpop.eup %9742  ;;  %v8087_v40 = vmul.f32 -1.442695, %v2841_v37  ;;  %v2836_v4 = vadd.f32 %v2835_v8, %v2610_v12 }
 0x908   : > { %9752 = vrcp.f32 %v2919_v63  ;;  %v2918_v52 = vadd.f32 1.0, %v9743_v51  ;;  %3028 = vrot.lane.b32.xlu0 %v8094_v41, %s10431_s18 }
 0x909   : > { %9754 = vpow2.f32 %v8087_v40  ;;  %v8086_v43 = vmul.f32 -1.442695, %v2836_v4 }
 0x90a   : > { %9756 = vrcp.f32 %v2918_v52 }
 0x90b   : > { %9758 = vpow2.f32 %v8086_v43 }
 0x90c   : > { %v9030_v60 = vpop.f32.mrf.mxu0 }
 0x90d   : > { %v11542_v0 = vpop.eup %9744  ;;  %v2851_v21 = vadd.f32 %v9030_v60, %v8998_v47 }
 0x90e   : > { %v9747_v22 = vpop.eup %9746  ;;  %v2845_v31 = vpop.f32.mrf.mxu0  ;;  %v2965_v39 = vmul.f32 2.0, %v11542_v0 }
 0x90f   : > { %v11545_v19 = vpop.eup %9748  ;;  %v2921_v36 = vadd.f32 1.0, %v9747_v22  ;;  %v8089_v20 = vmul.f32 -1.442695, %v2851_v21  ;;  %v2846_v14 = vadd.f32 %v2845_v31, %v2620_v24 }
 0x910   : > { %v9751_v33 = vpop.eup %9750  ;;  %v8097_v28 = vadd.f32 -1.0, %v2965_v39  ;;  %v2964_v7 = vmul.f32 2.0, %v11545_v19 }
 0x911   : > { %9760 = vrcp.f32 %v2921_v36  ;;  %v2920_v11 = vadd.f32 1.0, %v9751_v33  ;;  %v8088_v13 = vmul.f32 -1.442695, %v2846_v14 }
 0x912   : > { %9762 = vpow2.f32 %v8089_v20  ;;  %3034 = vrot.lane.b32.xlu1 %v8097_v28, %s10431_s18  ;;  %v8096_v35 = vadd.f32 -1.0, %v2964_v7 }
 0x913   : > { %9764 = vrcp.f32 %v2920_v11 }
 0x914   : > { %9766 = vpow2.f32 %v8088_v13  ;;  %v9033_v59 = vpop.f32.mrf.mxu0  ;;  %3032 = vrot.lane.b32.xlu0 %v8096_v35, %s10431_s18 }
 0x915   : > { %v11550_v2 = vpop.eup %9752  ;;  %v2861_v50 = vadd.f32 %v9033_v59, %v9001_v18 }
 0x916   : > { %v9755_v46 = vpop.eup %9754  ;;  %v2855_v38 = vpop.f32.mrf.mxu0  ;;  %v2967_v42 = vmul.f32 2.0, %v11550_v2 }
 0x917   : > { %v11553_v53 = vpop.eup %9756  ;;  %v2923_v17 = vadd.f32 1.0, %v9755_v46  ;;  %v8091_v5 = vmul.f32 -1.442695, %v2861_v50  ;;  %v2856_v26 = vadd.f32 %v2855_v38, %v2630_v48 }
 0x918   : > { %v9759_v55 = vpop.eup %9758  ;;  %v8099_v30 = vadd.f32 -1.0, %v2967_v42  ;;  %v2966_v56 = vmul.f32 2.0, %v11553_v53 }
 0x919   : > { %9768 = vrcp.f32 %v2923_v17  ;;  %v2922_v1 = vadd.f32 1.0, %v9759_v55  ;;  %v8090_v37 = vmul.f32 -1.442695, %v2856_v26 }
 0x91a   : > { %9770 = vpow2.f32 %v8091_v5  ;;  %3038 = vrot.lane.b32.xlu1 %v8099_v30, %s10431_s18  ;;  %v8098_v63 = vadd.f32 -1.0, %v2966_v56 }
 0x91b   : > { %9772 = vrcp.f32 %v2922_v1 }
 0x91c   : > { %9774 = vpow2.f32 %v8090_v37  ;;  %3036 = vrot.lane.b32.xlu0 %v8098_v63, %s10431_s18 }
 0x91e   : > { %v11558_v12 = vpop.eup %9760 }
 0x91f   : > { %v9763_v8 = vpop.eup %9762  ;;  %v2969_v41 = vmul.f32 2.0, %v11558_v12 }
 0x920   : > { %v11561_v51 = vpop.eup %9764  ;;  %v2925_v40 = vadd.f32 1.0, %v9763_v8 }
 0x921   : > { %v9767_v4 = vpop.eup %9766  ;;  %v8101_v52 = vadd.f32 -1.0, %v2969_v41  ;;  %v2968_v43 = vmul.f32 2.0, %v11561_v51 }
 0x922   : > { %9776 = vrcp.f32 %v2925_v40  ;;  %v2924_v47 = vadd.f32 1.0, %v9767_v4 }
 0x923   : > { %3042 = vrot.lane.b32.xlu1 %v8101_v52, %s10431_s18  ;;  %v8100_v60 = vadd.f32 -1.0, %v2968_v43 }
 0x924   : > { %9778 = vrcp.f32 %v2924_v47 }
 0x925   : > { %3040 = vrot.lane.b32.xlu0 %v8100_v60, %s10431_s18 }
 0x926   : > { %v11566_v21 = vpop.eup %9768 }
 0x927   : > { %v9771_v22 = vpop.eup %9770  ;;  %v2971_v24 = vmul.f32 2.0, %v11566_v21 }
 0x928   : > { %v11569_v31 = vpop.eup %9772  ;;  %v2927_v39 = vadd.f32 1.0, %v9771_v22 }
 0x929   : > { %v9775_v36 = vpop.eup %9774  ;;  %v8103_v20 = vadd.f32 -1.0, %v2971_v24  ;;  %v2970_v14 = vmul.f32 2.0, %v11569_v31 }
 0x92a   : > { %9780 = vrcp.f32 %v2927_v39  ;;  %v2926_v33 = vadd.f32 1.0, %v9775_v36 }
 0x92b   : > { %3046 = vrot.lane.b32.xlu1 %v8103_v20, %s10431_s18  ;;  %v8102_v28 = vadd.f32 -1.0, %v2970_v14 }
 0x92c   : > { %9782 = vrcp.f32 %v2926_v33 }
 0x92d   : > { %3044 = vrot.lane.b32.xlu0 %v8102_v28, %s10431_s18 }
 0x92f   : > { %v11574_v7 = vpop.eup %9776 }
 0x930   : > { %v2973_v11 = vmul.f32 2.0, %v11574_v7 }
 0x931   : > { %v11577_v13 = vpop.eup %9778 }
 0x932   : > { %v8105_v18 = vadd.f32 -1.0, %v2973_v11  ;;  %v2972_v35 = vmul.f32 2.0, %v11577_v13 }
 0x934   : > { %3050 = vrot.lane.b32.xlu1 %v8105_v18, %s10431_s18  ;;  %v8104_v59 = vadd.f32 -1.0, %v2972_v35 }
 0x936   : > { %3048 = vrot.lane.b32.xlu0 %v8104_v59, %s10431_s18 }
 0x937   : > { %v11582_v50 = vpop.eup %9780 }
 0x938   : > { %v2975_v46 = vmul.f32 2.0, %v11582_v50 }
 0x939   : > { %v11585_v48 = vpop.eup %9782 }
 0x93a   : > { %v8107_v38 = vadd.f32 -1.0, %v2975_v46  ;;  %v2974_v42 = vmul.f32 2.0, %v11585_v48 }
 0x93c   : > { %3054 = vrot.lane.b32.xlu1 %v8107_v38, %s10431_s18  ;;  %v8106_v17 = vadd.f32 -1.0, %v2974_v42 }
 0x93e   : > { %3052 = vrot.lane.b32.xlu0 %v8106_v17, %s10431_s18 }
 0x96c   : > { %v3027_v5 = vpop.permute.xlu1 %3026 }
 0x96d   : > { %v3073_v26 = vmul.f32 %v11526_v61, %v3027_v5  ;;  %v2993_v5 = vmul.f32 %v11526_v61, %v11340_v57  ;;  %v2994_v57 = vmul.f32 %v11537_v9, %v11355_v29  ;;  %v2996_v29 = vmul.f32 %v11545_v19, %v11367_v44 }
 0x96e   : > { %v3025_v55 = vpop.permute.xlu0 %3024  ;;  %v2998_v44 = vmul.f32 %v11553_v53, %v11379_v49  ;;  %v3000_v49 = vmul.f32 %v11561_v51, %v11391_v54  ;;  %v3002_v54 = vmul.f32 %v11569_v31, %v11403_v32  ;;  %v3004_v32 = vmul.f32 %v11577_v13, %v11414_v27 }
 0x96f   : > { %v3072_v30 = vmul.f32 %v11529_v25, %v3025_v55  ;;  %3106 = vrot.lane.b32.xlu1 %v3073_v26, %s10434_s21  ;;  %v3006_v27 = vmul.f32 %v11585_v48, %v11426_v23 }
 0x971   : > { %3104 = vrot.lane.b32.xlu0 %v3072_v30, %s10434_s21  ;;  %v2992_v30 = vmul.f32 %v11529_v25, %v11345_v6 }
 0x978   : > { %v3031_v56 = vpop.permute.xlu1 %3030 }
 0x979   : > { %v3075_v1 = vmul.f32 %v11534_v45, %v3031_v56 }
 0x97a   : > { %v3029_v37 = vpop.permute.xlu0 %3028 }
 0x97b   : > { %v3074_v63 = vmul.f32 %v11537_v9, %v3029_v37  ;;  %3110 = vrot.lane.b32.xlu1 %v3075_v1, %s10434_s21  ;;  %v2995_v37 = vmul.f32 %v11534_v45, %v11350_v10  ;;  %v2997_v10 = vmul.f32 %v11542_v0, %v11362_v15  ;;  %v2999_v15 = vmul.f32 %v11550_v2, %v11374_v34 }
 0x97d   : > { %3108 = vrot.lane.b32.xlu0 %v3074_v63, %s10434_s21 }
 0x984   : > { %v3035_v8 = vpop.permute.xlu1 %3034 }
 0x985   : > { %v3077_v41 = vmul.f32 %v11542_v0, %v3035_v8 }
 0x986   : > { %v3033_v40 = vpop.permute.xlu0 %3032 }
 0x987   : > { %v3076_v4 = vmul.f32 %v11545_v19, %v3033_v40  ;;  %3114 = vrot.lane.b32.xlu1 %v3077_v41, %s10434_s21 }
 0x989   : > { %3112 = vrot.lane.b32.xlu0 %v3076_v4, %s10434_s21 }
 0x98c   : > { %v3039_v52 = vpop.permute.xlu1 %3038 }
 0x98d   : > { %v3079_v43 = vmul.f32 %v11550_v2, %v3039_v52 }
 0x98e   : > { %v3037_v47 = vpop.permute.xlu0 %3036 }
 0x98f   : > { %v3078_v60 = vmul.f32 %v11553_v53, %v3037_v47  ;;  %3118 = vrot.lane.b32.xlu1 %v3079_v43, %s10434_s21 }
 0x991   : > { %3116 = vrot.lane.b32.xlu0 %v3078_v60, %s10434_s21 }
 0x995   : > { %v3043_v22 = vpop.permute.xlu1 %3042 }
 0x996   : > { %v3081_v24 = vmul.f32 %v11558_v12, %v3043_v22 }
 0x997   : > { %v3041_v39 = vpop.permute.xlu0 %3040 }
 0x998   : > { %v3080_v36 = vmul.f32 %v11561_v51, %v3041_v39  ;;  %3122 = vrot.lane.b32.xlu1 %v3081_v24, %s10434_s21 }
 0x99a   : > { %3120 = vrot.lane.b32.xlu0 %v3080_v36, %s10434_s21 }
 0x99d   : > { %v3047_v20 = vpop.permute.xlu1 %3046 }
 0x99e   : > { %v3083_v14 = vmul.f32 %v11566_v21, %v3047_v20 }
 0x99f   : > { %v3045_v33 = vpop.permute.xlu0 %3044 }
 0x9a0   : > { %v3082_v28 = vmul.f32 %v11569_v31, %v3045_v33  ;;  %3126 = vrot.lane.b32.xlu1 %v3083_v14, %s10434_s21 }
 0x9a2   : > { %3124 = vrot.lane.b32.xlu0 %v3082_v28, %s10434_s21  ;;  %v3001_v28 = vmul.f32 %v11558_v12, %v11385_v16  ;;  %v3003_v16 = vmul.f32 %v11566_v21, %v11397_v62  ;;  %v3005_v62 = vmul.f32 %v11574_v7, %v11408_v58  ;;  %v3007_v58 = vmul.f32 %v11582_v50, %v11420_v3 }
 0x9a6   : > { %v3051_v11 = vpop.permute.xlu1 %3050 }
 0x9a7   : > { %v3085_v18 = vmul.f32 %v11574_v7, %v3051_v11 }
 0x9a8   : > { %v3049_v35 = vpop.permute.xlu0 %3048 }
 0x9a9   : > { %v3084_v59 = vmul.f32 %v11577_v13, %v3049_v35  ;;  %3130 = vrot.lane.b32.xlu1 %v3085_v18, %s10434_s21 }
 0x9ab   : > { %3128 = vrot.lane.b32.xlu0 %v3084_v59, %s10434_s21 }
 0x9ae   : > { %v3055_v46 = vpop.permute.xlu1 %3054 }
 0x9af   : > { %v3087_v38 = vmul.f32 %v11582_v50, %v3055_v46 }
 0x9b0   : > { %v3053_v42 = vpop.permute.xlu0 %3052 }
 0x9b1   : > { %v3086_v17 = vmul.f32 %v11585_v48, %v3053_v42  ;;  %3134 = vrot.lane.b32.xlu1 %v3087_v38, %s10434_s21 }
 0x9b3   : > { %3132 = vrot.lane.b32.xlu0 %v3086_v17, %s10434_s21 }
 0x9e1   : > { %v3107_v26 = vpop.permute.xlu1 %3106 }
 0x9e2   : > { %v11624_v55 = vadd.f32 %v3107_v26, %v2993_v5 }
 0x9e3   : > { %v3105_v56 = vpop.permute.xlu0 %3104 }
 0x9e4   : > { %9784 = vtanh.f32 %v11624_v55  ;;  %v11629_v1 = vadd.f32 %v3105_v56, %v2992_v30 }
 0x9e6   : > { %9786 = vtanh.f32 %v11629_v1 }
 0x9ed   : > { %v3111_v63 = vpop.permute.xlu1 %3110 }
 0x9ee   : > { %v11634_v8 = vadd.f32 %v3111_v63, %v2995_v37 }
 0x9ef   : > { %v3109_v41 = vpop.permute.xlu0 %3108 }
 0x9f0   : > { %9788 = vtanh.f32 %v11634_v8  ;;  %v11639_v6 = vadd.f32 %v3109_v41, %v2994_v57 }
 0x9f1   : > { %v9785_v40 = vpop.eup %9784 }
 0x9f2   : > { %9790 = vtanh.f32 %v11639_v6  ;;  %3202 = vrot.lane.b32.xlu1 %v9785_v40, %s10431_s18 }
 0x9f3   : > { %v9787_v4 = vpop.eup %9786 }
 0x9f4   : > { %3200 = vrot.lane.b32.xlu0 %v9787_v4, %s10431_s18 }
 0x9f9   : > { %v3115_v52 = vpop.permute.xlu1 %3114 }
 0x9fa   : > { %v11646_v43 = vadd.f32 %v3115_v52, %v2997_v10 }
 0x9fb   : > { %v3113_v47 = vpop.permute.xlu0 %3112 }
 0x9fc   : > { %9792 = vtanh.f32 %v11646_v43  ;;  %v11651_v60 = vadd.f32 %v3113_v47, %v2996_v29 }
 0x9fd   : > { %v9789_v22 = vpop.eup %9788 }
 0x9fe   : > { %9794 = vtanh.f32 %v11651_v60  ;;  %3206 = vrot.lane.b32.xlu1 %v9789_v22, %s10431_s18 }
 0x9ff   : > { %v9791_v24 = vpop.eup %9790 }
 0xa00   : > { %3204 = vrot.lane.b32.xlu0 %v9791_v24, %s10431_s18 }
 0xa01   : > { %v3119_v39 = vpop.permute.xlu1 %3118 }
 0xa02   : > { %v11658_v36 = vadd.f32 %v3119_v39, %v2999_v15  ;;  %v11719_v15 = vld [vmem:[%s10487_s17] sm:$0xff]  ;;  %v11724_v39 = vld [vmem:[%s10487_s17 + $0x8] sm:$0xff] }
 0xa03   : > { %v3117_v20 = vpop.permute.xlu0 %3116 }
 0xa04   : > { %9796 = vtanh.f32 %v11658_v36  ;;  %v11663_v14 = vadd.f32 %v3117_v20, %v2998_v44  ;;  %v11729_v44 = vld [vmem:[%s10487_s17 + $0x10] sm:$0xff]  ;;  %v11734_v20 = vld [vmem:[%s10487_s17 + $0x18] sm:$0xff] }
 0xa06   : > { %9798 = vtanh.f32 %v11663_v14 }
 0xa09   : > { %v9793_v33 = vpop.eup %9792 }
 0xa0a   : > { %v3123_v11 = vpop.permute.xlu1 %3122  ;;  %3210 = vrot.lane.b32.xlu1 %v9793_v33, %s10431_s18  ;;  %v11739_v33 = vld [vmem:[%s10487_s17 + $0x20] sm:$0xff] }
 0xa0b   : > { %v9795_v34 = vpop.eup %9794  ;;  %v11669_v18 = vadd.f32 %v3123_v11, %v3001_v28  ;;  %v11744_v28 = vld [vmem:[%s10487_s17 + $0x28] sm:$0xff]  ;;  %v11749_v11 = vld [vmem:[%s10487_s17 + $0x30] sm:$0xff] }
 0xa0c   : > { %v3121_v35 = vpop.permute.xlu0 %3120  ;;  %3208 = vrot.lane.b32.xlu0 %v9795_v34, %s10431_s18  ;;  %v11754_v34 = vld [vmem:[%s10487_s17 + $0x38] sm:$0xff] }
 0xa0d   : > { %9800 = vtanh.f32 %v11669_v18  ;;  %v11675_v59 = vadd.f32 %v3121_v35, %v3000_v49  ;;  %v11759_v49 = vld [vmem:[%s10487_s17 + $0x40] sm:$0xff]  ;;  %v11764_v35 = vld [vmem:[%s10487_s17 + $0x48] sm:$0xff] }
 0xa0f   : > { %9802 = vtanh.f32 %v11675_v59 }
 0xa11   : > { %v9797_v46 = vpop.eup %9796 }
 0xa12   : > { %v3127_v38 = vpop.permute.xlu1 %3126  ;;  %3214 = vrot.lane.b32.xlu1 %v9797_v46, %s10431_s18  ;;  %v11769_v46 = vld [vmem:[%s10487_s17 + $0x50] sm:$0xff] }
 0xa13   : > { %v9799_v42 = vpop.eup %9798  ;;  %v11681_v17 = vadd.f32 %v3127_v38, %v3003_v16 }
 0xa14   : > { %v3125_v5 = vpop.permute.xlu0 %3124  ;;  %3212 = vrot.lane.b32.xlu0 %v9799_v42, %s10431_s18 }
 0xa15   : > { %9804 = vtanh.f32 %v11681_v17  ;;  %v11687_v26 = vadd.f32 %v3125_v5, %v3002_v54  ;;  %v11775_v54 = vld [vmem:[%s10487_s17 + $0x58] sm:$0xff] }
 0xa17   : > { %9806 = vtanh.f32 %v11687_v26 }
 0xa1a   : > { %v9801_v30 = vpop.eup %9800 }
 0xa1b   : > { %v3131_v56 = vpop.permute.xlu1 %3130  ;;  %3218 = vrot.lane.b32.xlu1 %v9801_v30, %s10431_s18  ;;  %v11782_v30 = vld [vmem:[%s10487_s17 + $0x60] sm:$0xff] }
 0xa1c   : > { %v9803_v37 = vpop.eup %9802  ;;  %v11693_v63 = vadd.f32 %v3131_v56, %v3005_v62  ;;  %v11788_v62 = vld [vmem:[%s10487_s17 + $0x68] sm:$0xff] }
 0xa1d   : > { %v3129_v57 = vpop.permute.xlu0 %3128  ;;  %3216 = vrot.lane.b32.xlu0 %v9803_v37, %s10431_s18 }
 0xa1e   : > { %9808 = vtanh.f32 %v11693_v63  ;;  %v11699_v41 = vadd.f32 %v3129_v57, %v3004_v32  ;;  %v11794_v32 = vld [vmem:[%s10487_s17 + $0x70] sm:$0xff]  ;;  %v11801_v57 = vld [vmem:[%s10487_s17 + $0x78] sm:$0xff] }
 0xa20   : > { %9810 = vtanh.f32 %v11699_v41 }
 0xa22   : > { %v9805_v40 = vpop.eup %9804 }
 0xa23   : > { %v3135_v4 = vpop.permute.xlu1 %3134  ;;  %3222 = vrot.lane.b32.xlu1 %v9805_v40, %s10431_s18 }
 0xa24   : > { %v9807_v10 = vpop.eup %9806  ;;  %v11705_v52 = vadd.f32 %v3135_v4, %v3007_v58 }
 0xa25   : > { %v3133_v29 = vpop.permute.xlu0 %3132  ;;  %3220 = vrot.lane.b32.xlu0 %v9807_v10, %s10431_s18 }
 0xa26   : > { %9812 = vtanh.f32 %v11705_v52  ;;  %v11711_v47 = vadd.f32 %v3133_v29, %v3006_v27 }
 0xa28   : > { %9814 = vtanh.f32 %v11711_v47 }
 0xa2b   : > { %v9809_v3 = vpop.eup %9808 }
 0xa2c   : > { %3226 = vrot.lane.b32.xlu1 %v9809_v3, %s10431_s18 }
 0xa2d   : > { %v9811_v22 = vpop.eup %9810 }
 0xa2e   : > { %3224 = vrot.lane.b32.xlu0 %v9811_v22, %s10431_s18 }
 0xa33   : > { %v9813_v23 = vpop.eup %9812 }
 0xa34   : > { %3230 = vrot.lane.b32.xlu1 %v9813_v23, %s10431_s18 }
 0xa35   : > { %v9815_v24 = vpop.eup %9814 }
 0xa36   : > { %3228 = vrot.lane.b32.xlu0 %v9815_v24, %s10431_s18 }
 0xa3a   : > { %3264 = vrot.lane.b32.xlu0 %v11719_v15, %s10437_s20 }
 0xa3e   : > { %3266 = vrot.lane.b32.xlu0 %v11724_v39, %s10437_s20 }
 0xa42   : > { %3268 = vrot.lane.b32.xlu0 %v11729_v44, %s10437_s20 }
 0xa46   : > { %3270 = vrot.lane.b32.xlu0 %v11734_v20, %s10437_s20 }
 0xa4a   : > { %3272 = vrot.lane.b32.xlu0 %v11739_v33, %s10437_s20 }
 0xa4e   : > { %3274 = vrot.lane.b32.xlu0 %v11744_v28, %s10437_s20 }
 0xa52   : > { %3276 = vrot.lane.b32.xlu0 %v11749_v11, %s10437_s20 }
 0xa56   : > { %3278 = vrot.lane.b32.xlu0 %v11754_v34, %s10437_s20 }
 0xa5a   : > { %3280 = vrot.lane.b32.xlu0 %v11759_v49, %s10437_s20 }
 0xa5e   : > { %3282 = vrot.lane.b32.xlu0 %v11764_v35, %s10437_s20 }
 0xa62   : > { %3284 = vrot.lane.b32.xlu0 %v11769_v46, %s10437_s20 }
 0xa64   : > { %v3203_v16 = vpop.permute.xlu1 %3202 }
 0xa65   : > { %v3249_v38 = vmul.f32 %v11526_v61, %v3203_v16 }
 0xa66   : > { %v3201_v42 = vpop.permute.xlu0 %3200  ;;  %3286 = vrot.lane.b32.xlu0 %v11775_v54, %s10437_s20 }
 0xa67   : > { %3491 = vrot.lane.b32.xlu1 %v3249_v38, %s10434_s21  ;;  %v3248_v5 = vmul.f32 %v11529_v25, %v3201_v42 }
 0xa6a   : > { %3288 = vrot.lane.b32.xlu0 %v11782_v30, %s10437_s20 }
 0xa6b   : > { %3489 = vrot.lane.b32.xlu1 %v3248_v5, %s10434_s21 }
 0xa6e   : > { %3290 = vrot.lane.b32.xlu0 %v11788_v62, %s10437_s20 }
 0xa70   : > { %v3207_v61 = vpop.permute.xlu1 %3206 }
 0xa71   : > { %v3251_v56 = vmul.f32 %v11534_v45, %v3207_v61 }
 0xa72   : > { %v3205_v37 = vpop.permute.xlu0 %3204  ;;  %3292 = vrot.lane.b32.xlu0 %v11794_v32, %s10437_s20 }
 0xa73   : > { %3495 = vrot.lane.b32.xlu1 %v3251_v56, %s10434_s21  ;;  %v3250_v25 = vmul.f32 %v11537_v9, %v3205_v37 }
 0xa76   : > { %3294 = vrot.lane.b32.xlu0 %v11801_v57, %s10437_s20 }
 0xa77   : > { %3493 = vrot.lane.b32.xlu1 %v3250_v25, %s10434_s21 }
 0xa7c   : > { %v3211_v40 = vpop.permute.xlu1 %3210 }
 0xa7d   : > { %v3253_v45 = vmul.f32 %v11542_v0, %v3211_v40 }
 0xa7e   : > { %v3209_v58 = vpop.permute.xlu0 %3208 }
 0xa7f   : > { %3499 = vrot.lane.b32.xlu1 %v3253_v45, %s10434_s21  ;;  %v3252_v4 = vmul.f32 %v11545_v19, %v3209_v58 }
 0xa83   : > { %3497 = vrot.lane.b32.xlu1 %v3252_v4, %s10434_s21 }
 0xa84   : > { %v3215_v10 = vpop.permute.xlu1 %3214 }
 0xa85   : > { %v3255_v9 = vmul.f32 %v11550_v2, %v3215_v10 }
 0xa86   : > { %v3213_v27 = vpop.permute.xlu0 %3212 }
 0xa87   : > { %3503 = vrot.lane.b32.xlu1 %v3255_v9, %s10434_s21  ;;  %v3254_v29 = vmul.f32 %v11553_v53, %v3213_v27 }
 0xa8b   : > { %3501 = vrot.lane.b32.xlu1 %v3254_v29, %s10434_s21 }
 0xa8d   : > { %v3219_v3 = vpop.permute.xlu1 %3218 }
 0xa8e   : > { %v3257_v0 = vmul.f32 %v11558_v12, %v3219_v3 }
 0xa8f   : > { %v3217_v22 = vpop.permute.xlu0 %3216 }
 0xa90   : > { %3507 = vrot.lane.b32.xlu1 %v3257_v0, %s10434_s21  ;;  %v3256_v19 = vmul.f32 %v11561_v51, %v3217_v22  ;;  %v11857_v0 = vld [vmem:[%s13352_s1 + $0x18] sm:$0xff]  ;;  %v11864_v22 = vld [vmem:[%s13352_s1 + $0x10] sm:$0xff] }
 0xa94   : > { %3505 = vrot.lane.b32.xlu1 %v3256_v19, %s10434_s21  ;;  %v11871_v19 = vld [vmem:[%s13352_s1 + $0x8] sm:$0xff] }
 0xa95   : > { %v3223_v23 = vpop.permute.xlu1 %3222 }
 0xa96   : > { %v3259_v2 = vmul.f32 %v11566_v21, %v3223_v23 }
 0xa97   : > { %v3221_v24 = vpop.permute.xlu0 %3220 }
 0xa98   : > { %3511 = vrot.lane.b32.xlu1 %v3259_v2, %s10434_s21  ;;  %v3258_v53 = vmul.f32 %v11569_v31, %v3221_v24  ;;  %v11879_v24 = vld [vmem:[%s13352_s1] sm:$0xff] }
 0xa9c   : > { %3509 = vrot.lane.b32.xlu1 %v3258_v53, %s10434_s21 }
 0xa9e   : > { %v3227_v16 = vpop.permute.xlu1 %3226 }
 0xa9f   : > { %v3261_v12 = vmul.f32 %v11574_v7, %v3227_v16 }
 0xaa0   : > { %v3225_v38 = vpop.permute.xlu0 %3224 }
 0xaa1   : > { %3515 = vrot.lane.b32.xlu1 %v3261_v12, %s10434_s21  ;;  %v3260_v51 = vmul.f32 %v11577_v13, %v3225_v38  ;;  %v11835_v13 = vld [vmem:[%s13352_s1 + $0x20] sm:$0x3] }
 0xaa5   : > { %3513 = vrot.lane.b32.xlu1 %v3260_v51, %s10434_s21 }
 0xaa6   : > { %v3231_v5 = vpop.permute.xlu1 %3230 }
 0xaa7   : > { %v3263_v31 = vmul.f32 %v11582_v50, %v3231_v5 }
 0xaa8   : > { %v3229_v42 = vpop.permute.xlu0 %3228 }
 0xaa9   : > { %v3262_v21 = vmul.f32 %v11585_v48, %v3229_v42 }
 0xaab   : > { %3517 = vrot.lane.b32.xlu1 %v3262_v21, %s10434_s21 }
 0xaac   : > { %v3265_v61 = vpop.permute.xlu0 %3264 }
 0xaad   : > { %9036 = vmatprep.mubr.msk.f32.mxu1 %vm195_vm1, %v3265_v61 }
 0xaaf   : > { %3519 = vrot.lane.b32.xlu1 %v3263_v31, %s10434_s21 }
 0xab0   : > { %v3267_v7 = vpop.permute.xlu0 %3266 }
 0xab1   : > { %9037 = vmatmul.mubr.msk.f32.vlgmr.msra.gmra.mxu1 %vm195_vm1, %v3267_v7 }
 0xab2   : > { %9093 = vmatpush3.msk.msra.mxu1 %vm244_vm0, %v11835_v13 }
 0xab3   : > { %9150 = vmatprep.subr.msk.mxu1 %vm244_vm0, %v11835_v13 }
 0xab4   : > { %v3269_v48 = vpop.permute.xlu0 %3268 }
 0xab5   : > { %9039 = vmatprep.mubr.msk.f32.mxu1 %vm195_vm1, %v3269_v48 }
 0xab8   : > { %v3271_v50 = vpop.permute.xlu0 %3270 }
 0xab9   : > { %9040 = vmatmul.mubr.msk.f32.gmra.mxu1 %vm195_vm1, %v3271_v50 }
 0xabc   : > { %v3273_v56 = vpop.permute.xlu0 %3272 }
 0xabd   : > { %9042 = vmatprep.mubr.msk.f32.mxu1 %vm195_vm1, %v3273_v56 }
 0xac0   : > { %v3275_v37 = vpop.permute.xlu0 %3274 }
 0xac1   : > { %9043 = vmatmul.mubr.msk.f32.gmra.mxu1 %vm195_vm1, %v3275_v37 }
 0xac4   : > { %v3277_v25 = vpop.permute.xlu0 %3276 }
 0xac5   : > { %9045 = vmatprep.mubr.msk.f32.mxu1 %vm195_vm1, %v3277_v25 }
 0xac8   : > { %v3279_v40 = vpop.permute.xlu0 %3278 }
 0xac9   : > { %9046 = vmatmul.mubr.msk.f32.gmra.mxu1 %vm195_vm1, %v3279_v40 }
 0xacc   : > { %v3281_v45 = vpop.permute.xlu0 %3280 }
 0xacd   : > { %9048 = vmatprep.mubr.msk.f32.mxu1 %vm195_vm1, %v3281_v45 }
 0xad0   : > { %v3283_v58 = vpop.permute.xlu0 %3282 }
 0xad1   : > { %9049 = vmatmul.mubr.msk.f32.gmra.mxu1 %vm195_vm1, %v3283_v58 }
 0xad4   : > { %v3285_v4 = vpop.permute.xlu0 %3284 }
 0xad5   : > { %9051 = vmatprep.mubr.msk.f32.mxu1 %vm195_vm1, %v3285_v4 }
 0xad8   : > { %v3287_v10 = vpop.permute.xlu0 %3286 }
 0xad9   : > { %v3492_v9 = vpop.permute.xlu1 %3491  ;;  %9052 = vmatmul.mubr.msk.f32.gmra.mxu1 %vm195_vm1, %v3287_v10 }
 0xadc   : > { %v3289_v27 = vpop.permute.xlu0 %3288 }
 0xadd   : > { %v3490_v29 = vpop.permute.xlu1 %3489  ;;  %9054 = vmatprep.mubr.msk.f32.mxu1 %vm195_vm1, %v3289_v27 }
 0xade   : > { %9068 = vmatprep.mubr.msk.f32.mxu0 %vm954_vm2, %v3490_v29 }
 0xadf   : > { %9069 = vmatmul.mubr.msk.f32.vlgmr.msra.gmra.mxu0 %vm954_vm2, %v3492_v9 }
 0xae0   : > { %v3291_v3 = vpop.permute.xlu0 %3290  ;;  %9119 = vmatpush3.msra.mxu0 %v11857_v0 }
 0xae1   : > { %9055 = vmatmul.mubr.msk.f32.gmra.mxu1 %vm195_vm1, %v3291_v3  ;;  %9120 = vmatprep.subr.mxu0 %v11864_v22 }
 0xae2   : > { %9121 = vmatpush3.msra.mxu0 %v11864_v22 }
 0xae3   : > { %9122 = vmatprep.subr.mxu0 %v11871_v19 }
 0xae4   : > { %v3293_v23 = vpop.permute.xlu0 %3292  ;;  %9123 = vmatpush3.msra.mxu0 %v11871_v19 }
 0xae5   : > { %v3496_v2 = vpop.permute.xlu1 %3495  ;;  %9057 = vmatprep.mubr.msk.f32.mxu1 %vm195_vm1, %v3293_v23  ;;  %9124 = vmatprep.subr.mxu0 %v11879_v24 }
 0xae6   : > { %9125 = vmatpush3.msra.mxu0 %v11879_v24 }
 0xae7   : > { %9176 = vmatprep.subr.mxu0 %v11857_v0 }
 0xae8   : > { %v3295_v53 = vpop.permute.xlu0 %3294 }
 0xae9   : > { %v3494_v16 = vpop.permute.xlu1 %3493  ;;  %9058 = vmatmul.mubr.msk.f32.gmra.mxu1 %vm195_vm1, %v3295_v53 }
 0xaea   : > { %9071 = vmatprep.mubr.msk.f32.mxu0 %vm954_vm2, %v3494_v16 }
 0xaeb   : > { %9072 = vmatmul.mubr.msk.f32.gmra.mxu0 %vm954_vm2, %v3496_v2 }
 0xaf1   : > { %v3500_v12 = vpop.permute.xlu1 %3499 }
 0xaf5   : > { %v3498_v38 = vpop.permute.xlu1 %3497 }
 0xaf6   : > { %9074 = vmatprep.mubr.msk.f32.mxu0 %vm954_vm2, %v3498_v38 }
 0xaf7   : > { %9075 = vmatmul.mubr.msk.f32.gmra.mxu0 %vm954_vm2, %v3500_v12 }
 0xaf9   : > { %v3504_v51 = vpop.permute.xlu1 %3503 }
 0xafd   : > { %v3502_v42 = vpop.permute.xlu1 %3501 }
 0xafe   : > { %9077 = vmatprep.mubr.msk.f32.mxu0 %vm954_vm2, %v3502_v42 }
 0xaff   : > { %9078 = vmatmul.mubr.msk.f32.gmra.mxu0 %vm954_vm2, %v3504_v51 }
 0xb02   : > { %v3508_v21 = vpop.permute.xlu1 %3507 }
 0xb06   : > { %v3506_v5 = vpop.permute.xlu1 %3505 }
 0xb07   : > { %9080 = vmatprep.mubr.msk.f32.mxu0 %vm954_vm2, %v3506_v5 }
 0xb08   : > { %9081 = vmatmul.mubr.msk.f32.gmra.mxu0 %vm954_vm2, %v3508_v21 }
 0xb0a   : > { %v3512_v61 = vpop.permute.xlu1 %3511 }
 0xb0e   : > { %v3510_v31 = vpop.permute.xlu1 %3509 }
 0xb0f   : > { %9083 = vmatprep.mubr.msk.f32.mxu0 %vm954_vm2, %v3510_v31 }
 0xb10   : > { %9084 = vmatmul.mubr.msk.f32.gmra.mxu0 %vm954_vm2, %v3512_v61 }
 0xb13   : > { %v3516_v7 = vpop.permute.xlu1 %3515 }
 0xb17   : > { %v3514_v48 = vpop.permute.xlu1 %3513 }
 0xb18   : > { %9086 = vmatprep.mubr.msk.f32.mxu0 %vm954_vm2, %v3514_v48 }
 0xb19   : > { %9087 = vmatmul.mubr.msk.f32.gmra.mxu0 %vm954_vm2, %v3516_v7 }
 0xb1d   : > { %v3518_v50 = vpop.permute.xlu1 %3517 }
 0xb1e   : > { %9089 = vmatprep.mubr.msk.f32.mxu0 %vm954_vm2, %v3518_v50 }
 0xb21   : > { %v3520_v56 = vpop.permute.xlu1 %3519 }
 0xb22   : > { %9090 = vmatmul.mubr.msk.f32.gmra.mxu0 %vm954_vm2, %v3520_v56 }
 0xb71   : > { %v9038_v37 = vpop.f32.mrf.mxu1 }
 0xb73   : > { %v3394_v40 = vpop.f32.mrf.mxu1 }
 0xb79   : > { %v9041_v27 = vpop.f32.mrf.mxu1 }
 0xb7b   : > { %v3404_v3 = vpop.f32.mrf.mxu1 }
 0xb81   : > { %v9044_v21 = vpop.f32.mrf.mxu1 }
 0xb83   : > { %v3414_v31 = vpop.f32.mrf.mxu1 }
 0xb9f   : > { %v9070_v25 = vpop.f32.mrf.mxu0 }
 0xba0   : > { %v3625_v45 = vadd.f32 %v9070_v25, %v9038_v37  ;;  %v9047_v37 = vpop.f32.mrf.mxu1 }
 0xba1   : > { %v3619_v58 = vpop.f32.mrf.mxu0 }
 0xba2   : > { %v8142_v4 = vmul.f32 -1.442695, %v3625_v45  ;;  %v3620_v10 = vadd.f32 %v3619_v58, %v3394_v40 }
 0xba4   : > { %9816 = vpow2.f32 %v8142_v4  ;;  %v8141_v9 = vmul.f32 -1.442695, %v3620_v10  ;;  %v3424_v10 = vpop.f32.mrf.mxu1 }
 0xba6   : > { %9818 = vpow2.f32 %v8141_v9 }
 0xbab   : > { %v9073_v29 = vpop.f32.mrf.mxu0 }
 0xbac   : > { %v3635_v23 = vadd.f32 %v9073_v29, %v9041_v27 }
 0xbad   : > { %v3629_v2 = vpop.f32.mrf.mxu0 }
 0xbae   : > { %v8144_v53 = vmul.f32 -1.442695, %v3635_v23  ;;  %v3630_v16 = vadd.f32 %v3629_v2, %v3404_v3 }
 0xbb0   : > { %9820 = vpow2.f32 %v8144_v53  ;;  %v8143_v12 = vmul.f32 -1.442695, %v3630_v16 }
 0xbb1   : > { %v9817_v38 = vpop.eup %9816 }
 0xbb2   : > { %v3747_v51 = vadd.f32 1.0, %v9817_v38  ;;  %9822 = vpow2.f32 %v8143_v12 }
 0xbb3   : > { %v9819_v42 = vpop.eup %9818 }
 0xbb4   : > { %9824 = vrcp.f32 %v3747_v51  ;;  %v3746_v5 = vadd.f32 1.0, %v9819_v42  ;;  %v9050_v51 = vpop.f32.mrf.mxu1 }
 0xbb6   : > { %9826 = vrcp.f32 %v3746_v5 }
 0xbb7   : > { %v9076_v61 = vpop.f32.mrf.mxu0 }
 0xbb8   : > { %v3645_v7 = vadd.f32 %v9076_v61, %v9044_v21  ;;  %v3434_v61 = vpop.f32.mrf.mxu1 }
 0xbb9   : > { %v3639_v48 = vpop.f32.mrf.mxu0 }
 0xbba   : > { %v8146_v50 = vmul.f32 -1.442695, %v3645_v7  ;;  %v3640_v56 = vadd.f32 %v3639_v48, %v3414_v31 }
 0xbbc   : > { %9828 = vpow2.f32 %v8146_v50  ;;  %v8145_v25 = vmul.f32 -1.442695, %v3640_v56 }
 0xbbd   : > { %v9821_v40 = vpop.eup %9820 }
 0xbbe   : > { %v3749_v45 = vadd.f32 1.0, %v9821_v40  ;;  %9830 = vpow2.f32 %v8145_v25 }
 0xbbf   : > { %v9823_v58 = vpop.eup %9822  ;;  %v9079_v4 = vpop.f32.mrf.mxu0 }
 0xbc0   : > { %9832 = vrcp.f32 %v3749_v45  ;;  %v3748_v9 = vadd.f32 1.0, %v9823_v58  ;;  %v3655_v27 = vadd.f32 %v9079_v4, %v9047_v37  ;;  %v9053_v45 = vpop.f32.mrf.mxu1 }
 0xbc1   : > { %v11899_v29 = vpop.eup %9824  ;;  %v3649_v3 = vpop.f32.mrf.mxu0 }
 0xbc2   : > { %9834 = vrcp.f32 %v3748_v9  ;;  %v8148_v23 = vmul.f32 -1.442695, %v3655_v27  ;;  %v3650_v2 = vadd.f32 %v3649_v3, %v3424_v10  ;;  %v3795_v53 = vmul.f32 2.0, %v11899_v29  ;;  %v3444_v3 = vpop.f32.mrf.mxu1 }
 0xbc3   : > { %v11902_v16 = vpop.eup %9826 }
 0xbc4   : > { %9836 = vpow2.f32 %v8148_v23  ;;  %v8147_v12 = vmul.f32 -1.442695, %v3650_v2  ;;  %v8158_v38 = vadd.f32 -1.0, %v3795_v53  ;;  %v3794_v42 = vmul.f32 2.0, %v11902_v16 }
 0xbc6   : > { %9838 = vpow2.f32 %v8147_v12  ;;  %3860 = vrot.lane.b32.xlu1 %v8158_v38, %s10431_s18  ;;  %v8157_v21 = vadd.f32 -1.0, %v3794_v42 }
 0xbc8   : > { %v9082_v5 = vpop.f32.mrf.mxu0  ;;  %3858 = vrot.lane.b32.xlu0 %v8157_v21, %s10431_s18 }
 0xbc9   : > { %v9829_v31 = vpop.eup %9828  ;;  %v3665_v7 = vadd.f32 %v9082_v5, %v9050_v51 }
 0xbca   : > { %v3751_v48 = vadd.f32 1.0, %v9829_v31  ;;  %v3659_v50 = vpop.f32.mrf.mxu0 }
 0xbcb   : > { %v9831_v56 = vpop.eup %9830  ;;  %v8150_v37 = vmul.f32 -1.442695, %v3665_v7  ;;  %v3660_v25 = vadd.f32 %v3659_v50, %v3434_v61 }
 0xbcc   : > { %9840 = vrcp.f32 %v3751_v48  ;;  %v3750_v40 = vadd.f32 1.0, %v9831_v56  ;;  %v9056_v48 = vpop.f32.mrf.mxu1 }
 0xbcd   : > { %v11907_v58 = vpop.eup %9832  ;;  %9842 = vpow2.f32 %v8150_v37  ;;  %v8149_v4 = vmul.f32 -1.442695, %v3660_v25 }
 0xbce   : > { %9844 = vrcp.f32 %v3750_v40  ;;  %v3797_v10 = vmul.f32 2.0, %v11907_v58  ;;  %v3454_v37 = vpop.f32.mrf.mxu1 }
 0xbcf   : > { %v11910_v9 = vpop.eup %9834  ;;  %9846 = vpow2.f32 %v8149_v4 }
 0xbd0   : > { %v9085_v27 = vpop.f32.mrf.mxu0  ;;  %v8160_v23 = vadd.f32 -1.0, %v3797_v10  ;;  %v3796_v2 = vmul.f32 2.0, %v11910_v9 }
 0xbd1   : > { %v9837_v53 = vpop.eup %9836  ;;  %v3675_v12 = vadd.f32 %v9085_v27, %v9053_v45 }
 0xbd2   : > { %v3753_v38 = vadd.f32 1.0, %v9837_v53  ;;  %v3669_v51 = vpop.f32.mrf.mxu0  ;;  %3864 = vrot.lane.b32.xlu1 %v8160_v23, %s10431_s18  ;;  %v8159_v42 = vadd.f32 -1.0, %v3796_v2 }
 0xbd3   : > { %v9839_v21 = vpop.eup %9838  ;;  %v8152_v5 = vmul.f32 -1.442695, %v3675_v12  ;;  %v3670_v61 = vadd.f32 %v3669_v51, %v3444_v3 }
 0xbd4   : > { %9848 = vrcp.f32 %v3753_v38  ;;  %v3752_v31 = vadd.f32 1.0, %v9839_v21  ;;  %3862 = vrot.lane.b32.xlu0 %v8159_v42, %s10431_s18  ;;  %v9059_v21 = vpop.f32.mrf.mxu1 }
 0xbd5   : > { %9850 = vpow2.f32 %v8152_v5  ;;  %v8151_v7 = vmul.f32 -1.442695, %v3670_v61 }
 0xbd6   : > { %9852 = vrcp.f32 %v3752_v31 }
 0xbd7   : > { %9854 = vpow2.f32 %v8151_v7 }
 0xbd9   : > { %v11915_v50 = vpop.eup %9840  ;;  %v9088_v56 = vpop.f32.mrf.mxu0 }
 0xbda   : > { %v9843_v25 = vpop.eup %9842  ;;  %v3685_v40 = vadd.f32 %v9088_v56, %v9056_v48  ;;  %v3799_v45 = vmul.f32 2.0, %v11915_v50 }
 0xbdb   : > { %v11918_v4 = vpop.eup %9844  ;;  %v3755_v10 = vadd.f32 1.0, %v9843_v25  ;;  %v3679_v27 = vpop.f32.mrf.mxu0 }
 0xbdc   : > { %v9847_v3 = vpop.eup %9846  ;;  %v8154_v23 = vmul.f32 -1.442695, %v3685_v40  ;;  %v3680_v2 = vadd.f32 %v3679_v27, %v3454_v37  ;;  %v8162_v53 = vadd.f32 -1.0, %v3799_v45  ;;  %v3798_v12 = vmul.f32 2.0, %v11918_v4  ;;  %v3464_v40 = vpop.f32.mrf.mxu1 }
 0xbdd   : > { %9856 = vrcp.f32 %v3755_v10  ;;  %v3754_v38 = vadd.f32 1.0, %v9847_v3 }
 0xbde   : > { %9858 = vpow2.f32 %v8154_v23  ;;  %v8153_v51 = vmul.f32 -1.442695, %v3680_v2  ;;  %3868 = vrot.lane.b32.xlu1 %v8162_v53, %s10431_s18  ;;  %v8161_v42 = vadd.f32 -1.0, %v3798_v12 }
 0xbdf   : > { %9860 = vrcp.f32 %v3754_v38 }
 0xbe0   : > { %9862 = vpow2.f32 %v8153_v51  ;;  %3866 = vrot.lane.b32.xlu0 %v8161_v42, %s10431_s18 }
 0xbe1   : > { %v11923_v5 = vpop.eup %9848 }
 0xbe2   : > { %v9851_v61 = vpop.eup %9850  ;;  %v9091_v31 = vpop.f32.mrf.mxu0  ;;  %v3801_v7 = vmul.f32 2.0, %v11923_v5 }
 0xbe3   : > { %v11926_v48 = vpop.eup %9852  ;;  %v3757_v56 = vadd.f32 1.0, %v9851_v61  ;;  %v3695_v37 = vadd.f32 %v9091_v31, %v9059_v21 }
 0xbe4   : > { %v9855_v25 = vpop.eup %9854  ;;  %v3689_v45 = vpop.f32.mrf.mxu0  ;;  %v8164_v10 = vadd.f32 -1.0, %v3801_v7  ;;  %v3800_v27 = vmul.f32 2.0, %v11926_v48 }
 0xbe5   : > { %9864 = vrcp.f32 %v3757_v56  ;;  %v3756_v3 = vadd.f32 1.0, %v9855_v25  ;;  %v8156_v23 = vmul.f32 -1.442695, %v3695_v37  ;;  %v3690_v2 = vadd.f32 %v3689_v45, %v3464_v40 }
 0xbe6   : > { %3872 = vrot.lane.b32.xlu1 %v8164_v10, %s10431_s18  ;;  %v8163_v53 = vadd.f32 -1.0, %v3800_v27 }
 0xbe7   : > { %9866 = vrcp.f32 %v3756_v3  ;;  %v8155_v12 = vmul.f32 -1.442695, %v3690_v2 }
 0xbe8   : > { %9868 = vpow2.f32 %v8156_v23  ;;  %3870 = vrot.lane.b32.xlu0 %v8163_v53, %s10431_s18 }
 0xbe9   : > { %9870 = vpow2.f32 %v8155_v12 }
 0xbea   : > { %v11931_v38 = vpop.eup %9856 }
 0xbeb   : > { %v9859_v51 = vpop.eup %9858  ;;  %v3803_v42 = vmul.f32 2.0, %v11931_v38 }
 0xbec   : > { %v11934_v21 = vpop.eup %9860  ;;  %v3759_v61 = vadd.f32 1.0, %v9859_v51 }
 0xbed   : > { %v9863_v31 = vpop.eup %9862  ;;  %v8166_v7 = vadd.f32 -1.0, %v3803_v42  ;;  %v3802_v56 = vmul.f32 2.0, %v11934_v21 }
 0xbee   : > { %9872 = vrcp.f32 %v3759_v61  ;;  %v3758_v37 = vadd.f32 1.0, %v9863_v31 }
 0xbef   : > { %3876 = vrot.lane.b32.xlu1 %v8166_v7, %s10431_s18  ;;  %v8165_v25 = vadd.f32 -1.0, %v3802_v56 }
 0xbf0   : > { %9874 = vrcp.f32 %v3758_v37 }
 0xbf1   : > { %3874 = vrot.lane.b32.xlu0 %v8165_v25, %s10431_s18 }
 0xbf2   : > { %v11939_v40 = vpop.eup %9864 }
 0xbf3   : > { %v3805_v45 = vmul.f32 2.0, %v11939_v40 }
 0xbf4   : > { %v11942_v10 = vpop.eup %9866 }
 0xbf5   : > { %v9869_v27 = vpop.eup %9868  ;;  %v8168_v3 = vadd.f32 -1.0, %v3805_v45  ;;  %v3804_v23 = vmul.f32 2.0, %v11942_v10 }
 0xbf6   : > { %v9871_v2 = vpop.eup %9870  ;;  %v3761_v53 = vadd.f32 1.0, %v9869_v27 }
 0xbf7   : > { %v3760_v12 = vadd.f32 1.0, %v9871_v2  ;;  %3880 = vrot.lane.b32.xlu1 %v8168_v3, %s10431_s18  ;;  %v8167_v51 = vadd.f32 -1.0, %v3804_v23 }
 0xbf8   : > { %9876 = vrcp.f32 %v3761_v53 }
 0xbf9   : > { %9878 = vrcp.f32 %v3760_v12  ;;  %3878 = vrot.lane.b32.xlu0 %v8167_v51, %s10431_s18 }
 0xbfb   : > { %v11947_v42 = vpop.eup %9872 }
 0xbfc   : > { %v3807_v61 = vmul.f32 2.0, %v11947_v42 }
 0xbfd   : > { %v11950_v31 = vpop.eup %9874 }
 0xbfe   : > { %v8170_v7 = vadd.f32 -1.0, %v3807_v61  ;;  %v3806_v56 = vmul.f32 2.0, %v11950_v31 }
 0xc00   : > { %3884 = vrot.lane.b32.xlu1 %v8170_v7, %s10431_s18  ;;  %v8169_v37 = vadd.f32 -1.0, %v3806_v56 }
 0xc02   : > { %3882 = vrot.lane.b32.xlu0 %v8169_v37, %s10431_s18 }
 0xc05   : > { %v11955_v25 = vpop.eup %9876 }
 0xc06   : > { %v11957_v45 = vpop.eup %9878  ;;  %v3809_v27 = vmul.f32 2.0, %v11955_v25 }
 0xc07   : > { %v3808_v3 = vmul.f32 2.0, %v11957_v45 }
 0xc08   : > { %v8172_v23 = vadd.f32 -1.0, %v3809_v27 }
 0xc09   : > { %v8171_v2 = vadd.f32 -1.0, %v3808_v3 }
 0xc0a   : > { %3888 = vrot.lane.b32.xlu1 %v8172_v23, %s10431_s18 }
 0xc0b   : > { %3886 = vrot.lane.b32.xlu0 %v8171_v2, %s10431_s18 }
 0xc38   : > { %v3861_v53 = vpop.permute.xlu1 %3860 }
 0xc39   : > { %v3907_v12 = vmul.f32 %v11899_v29, %v3861_v53 }
 0xc3a   : > { %v3859_v51 = vpop.permute.xlu0 %3858 }
 0xc3b   : > { %v3906_v61 = vmul.f32 %v11902_v16, %v3859_v51  ;;  %3940 = vrot.lane.b32.xlu1 %v3907_v12, %s10434_s21 }
 0xc3d   : > { %3938 = vrot.lane.b32.xlu0 %v3906_v61, %s10434_s21 }
 0xc44   : > { %v3865_v7 = vpop.permute.xlu1 %3864 }
 0xc45   : > { %v3909_v56 = vmul.f32 %v11907_v58, %v3865_v7 }
 0xc46   : > { %v3863_v37 = vpop.permute.xlu0 %3862 }
 0xc47   : > { %v3908_v27 = vmul.f32 %v11910_v9, %v3863_v37  ;;  %3944 = vrot.lane.b32.xlu1 %v3909_v56, %s10434_s21 }
 0xc49   : > { %3942 = vrot.lane.b32.xlu0 %v3908_v27, %s10434_s21 }
 0xc50   : > { %v3869_v3 = vpop.permute.xlu1 %3868 }
 0xc51   : > { %v3911_v23 = vmul.f32 %v11915_v50, %v3869_v3 }
 0xc52   : > { %v3867_v2 = vpop.permute.xlu0 %3866 }
 0xc53   : > { %v3910_v53 = vmul.f32 %v11918_v4, %v3867_v2  ;;  %3948 = vrot.lane.b32.xlu1 %v3911_v23, %s10434_s21 }
 0xc55   : > { %3946 = vrot.lane.b32.xlu0 %v3910_v53, %s10434_s21 }
 0xc58   : > { %v3873_v12 = vpop.permute.xlu1 %3872 }
 0xc59   : > { %v3913_v51 = vmul.f32 %v11923_v5, %v3873_v12 }
 0xc5a   : > { %v3871_v61 = vpop.permute.xlu0 %3870 }
 0xc5b   : > { %v3912_v7 = vmul.f32 %v11926_v48, %v3871_v61  ;;  %3952 = vrot.lane.b32.xlu1 %v3913_v51, %s10434_s21 }
 0xc5d   : > { %3950 = vrot.lane.b32.xlu0 %v3912_v7, %s10434_s21 }
 0xc61   : > { %v3877_v56 = vpop.permute.xlu1 %3876 }
 0xc62   : > { %v3915_v37 = vmul.f32 %v11931_v38, %v3877_v56 }
 0xc63   : > { %v3875_v27 = vpop.permute.xlu0 %3874 }
 0xc64   : > { %v3914_v3 = vmul.f32 %v11934_v21, %v3875_v27  ;;  %3956 = vrot.lane.b32.xlu1 %v3915_v37, %s10434_s21 }
 0xc66   : > { %3954 = vrot.lane.b32.xlu0 %v3914_v3, %s10434_s21 }
 0xc69   : > { %v3881_v23 = vpop.permute.xlu1 %3880 }
 0xc6a   : > { %v3917_v2 = vmul.f32 %v11939_v40, %v3881_v23 }
 0xc6b   : > { %v3879_v53 = vpop.permute.xlu0 %3878 }
 0xc6c   : > { %v3916_v12 = vmul.f32 %v11942_v10, %v3879_v53  ;;  %3960 = vrot.lane.b32.xlu1 %v3917_v2, %s10434_s21  ;;  %v3827_v2 = vmul.f32 %v11899_v29, %v11624_v55  ;;  %v3828_v55 = vmul.f32 %v11910_v9, %v11639_v6  ;;  %v3830_v6 = vmul.f32 %v11918_v4, %v11651_v60 }
 0xc6d   : > { %v3832_v60 = vmul.f32 %v11926_v48, %v11663_v14  ;;  %v3834_v14 = vmul.f32 %v11934_v21, %v11675_v59  ;;  %v3836_v59 = vmul.f32 %v11942_v10, %v11687_v26  ;;  %v3838_v26 = vmul.f32 %v11950_v31, %v11699_v41 }
 0xc6e   : > { %3958 = vrot.lane.b32.xlu0 %v3916_v12, %s10434_s21  ;;  %v3840_v41 = vmul.f32 %v11957_v45, %v11711_v47 }
 0xc72   : > { %v3885_v51 = vpop.permute.xlu1 %3884 }
 0xc73   : > { %v3919_v61 = vmul.f32 %v11947_v42, %v3885_v51  ;;  %v3826_v51 = vmul.f32 %v11902_v16, %v11629_v1 }
 0xc74   : > { %v3883_v7 = vpop.permute.xlu0 %3882 }
 0xc75   : > { %v3918_v56 = vmul.f32 %v11950_v31, %v3883_v7  ;;  %3964 = vrot.lane.b32.xlu1 %v3919_v61, %s10434_s21 }
 0xc77   : > { %3962 = vrot.lane.b32.xlu0 %v3918_v56, %s10434_s21  ;;  %v3829_v56 = vmul.f32 %v11907_v58, %v11634_v8  ;;  %v3831_v8 = vmul.f32 %v11915_v50, %v11646_v43  ;;  %v3833_v43 = vmul.f32 %v11923_v5, %v11658_v36 }
 0xc7c   : > { %v3889_v37 = vpop.permute.xlu1 %3888 }
 0xc7d   : > { %v3921_v27 = vmul.f32 %v11955_v25, %v3889_v37  ;;  %v3887_v3 = vpop.permute.xlu0 %3886 }
 0xc7e   : > { %v3920_v23 = vmul.f32 %v11957_v45, %v3887_v3 }
 0xc7f   : > { %3968 = vrot.lane.b32.xlu1 %v3921_v27, %s10434_s21 }
 0xc80   : > { %3966 = vrot.lane.b32.xlu0 %v3920_v23, %s10434_s21 }
 0xcad   : > { %v3941_v53 = vpop.permute.xlu1 %3940 }
 0xcae   : > { %v11997_v12 = vadd.f32 %v3941_v53, %v3827_v2 }
 0xcaf   : > { %v3939_v61 = vpop.permute.xlu0 %3938 }
 0xcb0   : > { %9880 = vtanh.f32 %v11997_v12  ;;  %v12002_v7 = vadd.f32 %v3939_v61, %v3826_v51 }
 0xcb2   : > { %9882 = vtanh.f32 %v12002_v7 }
 0xcb9   : > { %v3945_v37 = vpop.permute.xlu1 %3944 }
 0xcba   : > { %v12007_v27 = vadd.f32 %v3945_v37, %v3829_v56 }
 0xcbb   : > { %v3943_v3 = vpop.permute.xlu0 %3942 }
 0xcbc   : > { %9884 = vtanh.f32 %v12007_v27  ;;  %v12012_v1 = vadd.f32 %v3943_v3, %v3828_v55 }
 0xcbd   : > { %v9881_v23 = vpop.eup %9880 }
 0xcbe   : > { %9886 = vtanh.f32 %v12012_v1  ;;  %4036 = vrot.lane.b32.xlu1 %v9881_v23, %s10431_s18 }
 0xcbf   : > { %v9883_v2 = vpop.eup %9882 }
 0xcc0   : > { %4034 = vrot.lane.b32.xlu0 %v9883_v2, %s10431_s18 }
 0xcc5   : > { %v3949_v53 = vpop.permute.xlu1 %3948 }
 0xcc6   : > { %v12019_v51 = vadd.f32 %v3949_v53, %v3831_v8 }
 0xcc7   : > { %v3947_v61 = vpop.permute.xlu0 %3946 }
 0xcc8   : > { %9888 = vtanh.f32 %v12019_v51  ;;  %v12024_v56 = vadd.f32 %v3947_v61, %v3830_v6  ;;  %v3835_v6 = vmul.f32 %v11931_v38, %v11669_v18  ;;  %v3837_v18 = vmul.f32 %v11939_v40, %v11681_v17 }
 0xcc9   : > { %v9885_v37 = vpop.eup %9884  ;;  %v3839_v17 = vmul.f32 %v11947_v42, %v11693_v63 }
 0xcca   : > { %9890 = vtanh.f32 %v12024_v56  ;;  %4040 = vrot.lane.b32.xlu1 %v9885_v37, %s10431_s18 }
 0xccb   : > { %v9887_v55 = vpop.eup %9886 }
 0xccc   : > { %4038 = vrot.lane.b32.xlu0 %v9887_v55, %s10431_s18 }
 0xccd   : > { %v3953_v3 = vpop.permute.xlu1 %3952 }
 0xcce   : > { %v12031_v23 = vadd.f32 %v3953_v3, %v3833_v43 }
 0xccf   : > { %v3951_v2 = vpop.permute.xlu0 %3950 }
 0xcd0   : > { %9892 = vtanh.f32 %v12031_v23  ;;  %v12036_v8 = vadd.f32 %v3951_v2, %v3832_v60 }
 0xcd2   : > { %9894 = vtanh.f32 %v12036_v8 }
 0xcd5   : > { %v9889_v53 = vpop.eup %9888 }
 0xcd6   : > { %v3957_v61 = vpop.permute.xlu1 %3956  ;;  %4044 = vrot.lane.b32.xlu1 %v9889_v53, %s10431_s18 }
 0xcd7   : > { %v9891_v36 = vpop.eup %9890  ;;  %v12042_v37 = vadd.f32 %v3957_v61, %v3835_v6 }
 0xcd8   : > { %v3955_v55 = vpop.permute.xlu0 %3954  ;;  %4042 = vrot.lane.b32.xlu0 %v9891_v36, %s10431_s18 }
 0xcd9   : > { %9896 = vtanh.f32 %v12042_v37  ;;  %v12048_v43 = vadd.f32 %v3955_v55, %v3834_v14 }
 0xcdb   : > { %9898 = vtanh.f32 %v12048_v43 }
 0xcdd   : > { %v9893_v3 = vpop.eup %9892 }
 0xcde   : > { %v3961_v60 = vpop.permute.xlu1 %3960  ;;  %4048 = vrot.lane.b32.xlu1 %v9893_v3, %s10431_s18 }
 0xcdf   : > { %v9895_v2 = vpop.eup %9894  ;;  %v12054_v53 = vadd.f32 %v3961_v60, %v3837_v18 }
 0xce0   : > { %v3959_v6 = vpop.permute.xlu0 %3958  ;;  %4046 = vrot.lane.b32.xlu0 %v9895_v2, %s10431_s18 }
 0xce1   : > { %9900 = vtanh.f32 %v12054_v53  ;;  %v12060_v61 = vadd.f32 %v3959_v6, %v3836_v59  ;;  %v3841_v59 = vmul.f32 %v11955_v25, %v11705_v52 }
 0xce3   : > { %9902 = vtanh.f32 %v12060_v61 }
 0xce6   : > { %v9897_v36 = vpop.eup %9896 }
 0xce7   : > { %v3965_v14 = vpop.permute.xlu1 %3964  ;;  %4052 = vrot.lane.b32.xlu1 %v9897_v36, %s10431_s18 }
 0xce8   : > { %v9899_v55 = vpop.eup %9898  ;;  %v12066_v3 = vadd.f32 %v3965_v14, %v3839_v17 }
 0xce9   : > { %v3963_v18 = vpop.permute.xlu0 %3962  ;;  %4050 = vrot.lane.b32.xlu0 %v9899_v55, %s10431_s18 }
 0xcea   : > { %9904 = vtanh.f32 %v12066_v3  ;;  %v12072_v60 = vadd.f32 %v3963_v18, %v3838_v26 }
 0xcec   : > { %9906 = vtanh.f32 %v12072_v60 }
 0xcee   : > { %v9901_v2 = vpop.eup %9900 }
 0xcef   : > { %4056 = vrot.lane.b32.xlu1 %v9901_v2, %s10431_s18 }
 0xcf0   : > { %v9903_v63 = vpop.eup %9902 }
 0xcf1   : > { %v3969_v6 = vpop.permute.xlu1 %3968  ;;  %4054 = vrot.lane.b32.xlu0 %v9903_v63, %s10431_s18 }
 0xcf2   : > { %v12081_v36 = vadd.f32 %v3969_v6, %v3841_v59  ;;  %v3967_v17 = vpop.permute.xlu0 %3966 }
 0xcf3   : > { %v12083_v14 = vadd.f32 %v3967_v17, %v3840_v41 }
 0xcf4   : > { %9908 = vtanh.f32 %v12081_v36 }
 0xcf5   : > { %9910 = vtanh.f32 %v12083_v14 }
 0xcf7   : > { %v9905_v55 = vpop.eup %9904 }
 0xcf8   : > { %4060 = vrot.lane.b32.xlu1 %v9905_v55, %s10431_s18 }
 0xcf9   : > { %v9907_v26 = vpop.eup %9906 }
 0xcfa   : > { %4058 = vrot.lane.b32.xlu0 %v9907_v26, %s10431_s18 }
 0xd01   : > { %v9909_v52 = vpop.eup %9908 }
 0xd02   : > { %v9911_v18 = vpop.eup %9910  ;;  %4064 = vrot.lane.b32.xlu1 %v9909_v52, %s10431_s18 }
 0xd03   : > { %4062 = vrot.lane.b32.xlu0 %v9911_v18, %s10431_s18 }
 0xd07   : > { %4098 = vrot.lane.b32.xlu0 %v11719_v15, %s10438_s4 }
 0xd0b   : > { %4100 = vrot.lane.b32.xlu0 %v11724_v39, %s10438_s4 }
 0xd0f   : > { %4102 = vrot.lane.b32.xlu0 %v11729_v44, %s10438_s4 }
 0xd13   : > { %4104 = vrot.lane.b32.xlu0 %v11734_v20, %s10438_s4 }
 0xd17   : > { %4106 = vrot.lane.b32.xlu0 %v11739_v33, %s10438_s4 }
 0xd1b   : > { %4108 = vrot.lane.b32.xlu0 %v11744_v28, %s10438_s4 }
 0xd1f   : > { %4110 = vrot.lane.b32.xlu0 %v11749_v11, %s10438_s4 }
 0xd23   : > { %4112 = vrot.lane.b32.xlu0 %v11754_v34, %s10438_s4 }
 0xd27   : > { %4114 = vrot.lane.b32.xlu0 %v11759_v49, %s10438_s4 }
 0xd2b   : > { %4116 = vrot.lane.b32.xlu0 %v11764_v35, %s10438_s4 }
 0xd2f   : > { %4118 = vrot.lane.b32.xlu0 %v11769_v46, %s10438_s4 }
 0xd30   : > { %v4037_v47 = vpop.permute.xlu1 %4036 }
 0xd31   : > { %v4083_v15 = vmul.f32 %v11899_v29, %v4037_v47 }
 0xd32   : > { %v4035_v39 = vpop.permute.xlu0 %4034 }
 0xd33   : > { %4325 = vrot.lane.b32.xlu1 %v4083_v15, %s10434_s21  ;;  %4120 = vrot.lane.b32.xlu0 %v11775_v54, %s10438_s4  ;;  %v4082_v44 = vmul.f32 %v11902_v16, %v4035_v39 }
 0xd37   : > { %4323 = vrot.lane.b32.xlu1 %v4082_v44, %s10434_s21  ;;  %4122 = vrot.lane.b32.xlu0 %v11782_v30, %s10438_s4 }
 0xd3b   : > { %4124 = vrot.lane.b32.xlu0 %v11788_v62, %s10438_s4 }
 0xd3c   : > { %v4041_v20 = vpop.permute.xlu1 %4040 }
 0xd3d   : > { %v4085_v33 = vmul.f32 %v11907_v58, %v4041_v20 }
 0xd3e   : > { %v4039_v28 = vpop.permute.xlu0 %4038 }
 0xd3f   : > { %4329 = vrot.lane.b32.xlu1 %v4085_v33, %s10434_s21  ;;  %4126 = vrot.lane.b32.xlu0 %v11794_v32, %s10438_s4  ;;  %v4084_v11 = vmul.f32 %v11910_v9, %v4039_v28 }
 0xd43   : > { %4327 = vrot.lane.b32.xlu1 %v4084_v11, %s10434_s21  ;;  %4128 = vrot.lane.b32.xlu0 %v11801_v57, %s10438_s4 }
 0xd48   : > { %v4045_v34 = vpop.permute.xlu1 %4044 }
 0xd49   : > { %v4087_v49 = vmul.f32 %v11915_v50, %v4045_v34 }
 0xd4a   : > { %v4043_v35 = vpop.permute.xlu0 %4042 }
 0xd4b   : > { %4333 = vrot.lane.b32.xlu1 %v4087_v49, %s10434_s21  ;;  %v4086_v46 = vmul.f32 %v11918_v4, %v4043_v35 }
 0xd4f   : > { %4331 = vrot.lane.b32.xlu1 %v4086_v46, %s10434_s21 }
 0xd50   : > { %v4049_v54 = vpop.permute.xlu1 %4048 }
 0xd51   : > { %v4089_v30 = vmul.f32 %v11923_v5, %v4049_v54 }
 0xd52   : > { %v4047_v62 = vpop.permute.xlu0 %4046 }
 0xd53   : > { %4337 = vrot.lane.b32.xlu1 %v4089_v30, %s10434_s21  ;;  %v4088_v32 = vmul.f32 %v11926_v48, %v4047_v62 }
 0xd57   : > { %4335 = vrot.lane.b32.xlu1 %v4088_v32, %s10434_s21 }
 0xd59   : > { %v4053_v57 = vpop.permute.xlu1 %4052 }
 0xd5a   : > { %v4091_v29 = vmul.f32 %v11931_v38, %v4053_v57 }
 0xd5b   : > { %v4051_v16 = vpop.permute.xlu0 %4050 }
 0xd5c   : > { %4341 = vrot.lane.b32.xlu1 %v4091_v29, %s10434_s21  ;;  %v4090_v58 = vmul.f32 %v11934_v21, %v4051_v16 }
 0xd60   : > { %4339 = vrot.lane.b32.xlu1 %v4090_v58, %s10434_s21 }
 0xd61   : > { %v4057_v9 = vpop.permute.xlu1 %4056 }
 0xd62   : > { %v4093_v50 = vmul.f32 %v11939_v40, %v4057_v9 }
 0xd63   : > { %v4055_v4 = vpop.permute.xlu0 %4054 }
 0xd64   : > { %4345 = vrot.lane.b32.xlu1 %v4093_v50, %s10434_s21  ;;  %v4092_v5 = vmul.f32 %v11942_v10, %v4055_v4 }
 0xd68   : > { %4343 = vrot.lane.b32.xlu1 %v4092_v5, %s10434_s21 }
 0xd6a   : > { %v4061_v48 = vpop.permute.xlu1 %4060 }
 0xd6b   : > { %v4095_v38 = vmul.f32 %v11947_v42, %v4061_v48 }
 0xd6c   : > { %v4059_v2 = vpop.permute.xlu0 %4058 }
 0xd6d   : > { %4349 = vrot.lane.b32.xlu1 %v4095_v38, %s10434_s21  ;;  %v4094_v21 = vmul.f32 %v11950_v31, %v4059_v2 }
 0xd71   : > { %4347 = vrot.lane.b32.xlu1 %v4094_v21, %s10434_s21 }
 0xd74   : > { %v4065_v59 = vpop.permute.xlu1 %4064 }
 0xd75   : > { %v4063_v63 = vpop.permute.xlu0 %4062  ;;  %v4097_v10 = vmul.f32 %v11955_v25, %v4065_v59 }
 0xd76   : > { %v4096_v40 = vmul.f32 %v11957_v45, %v4063_v63 }
 0xd78   : > { %4351 = vrot.lane.b32.xlu1 %v4096_v40, %s10434_s21 }
 0xd79   : > { %v4099_v6 = vpop.permute.xlu0 %4098 }
 0xd7a   : > { %9094 = vmatprep.mubr.msk.f32.mxu1 %vm195_vm1, %v4099_v6 }
 0xd7c   : > { %4353 = vrot.lane.b32.xlu1 %v4097_v10, %s10434_s21 }
 0xd7d   : > { %v4101_v42 = vpop.permute.xlu0 %4100 }
 0xd7e   : > { %9095 = vmatmul.mubr.msk.f32.vlgmr.msra.gmra.mxu1 %vm195_vm1, %v4101_v42 }
 0xd7f   : > { %9151 = vmatpush3.msk.msra.mxu1 %vm244_vm0, %v11835_v13 }
 0xd80   : > { %9208 = vmatprep.subr.msk.mxu1 %vm244_vm0, %v11835_v13 }
 0xd81   : > { %v4103_v31 = vpop.permute.xlu0 %4102 }
 0xd82   : > { %9097 = vmatprep.mubr.msk.f32.mxu1 %vm195_vm1, %v4103_v31 }
 0xd85   : > { %v4105_v45 = vpop.permute.xlu0 %4104 }
 0xd86   : > { %9098 = vmatmul.mubr.msk.f32.gmra.mxu1 %vm195_vm1, %v4105_v45 }
 0xd89   : > { %v4107_v25 = vpop.permute.xlu0 %4106 }
 0xd8a   : > { %9100 = vmatprep.mubr.msk.f32.mxu1 %vm195_vm1, %v4107_v25 }
 0xd8d   : > { %v4109_v41 = vpop.permute.xlu0 %4108 }
 0xd8e   : > { %9101 = vmatmul.mubr.msk.f32.gmra.mxu1 %vm195_vm1, %v4109_v41 }
 0xd91   : > { %v4111_v17 = vpop.permute.xlu0 %4110 }
 0xd92   : > { %9103 = vmatprep.mubr.msk.f32.mxu1 %vm195_vm1, %v4111_v17 }
 0xd95   : > { %v4113_v55 = vpop.permute.xlu0 %4112 }
 0xd96   : > { %9104 = vmatmul.mubr.msk.f32.gmra.mxu1 %vm195_vm1, %v4113_v55 }
 0xd99   : > { %v4115_v26 = vpop.permute.xlu0 %4114 }
 0xd9a   : > { %9106 = vmatprep.mubr.msk.f32.mxu1 %vm195_vm1, %v4115_v26 }
 0xd9d   : > { %v4117_v13 = vpop.permute.xlu0 %4116 }
 0xd9e   : > { %9107 = vmatmul.mubr.msk.f32.gmra.mxu1 %vm195_vm1, %v4117_v13 }
 0xda1   : > { %v4119_v52 = vpop.permute.xlu0 %4118 }
 0xda2   : > { %9109 = vmatprep.mubr.msk.f32.mxu1 %vm195_vm1, %v4119_v52 }
 0xda5   : > { %v4326_v18 = vpop.permute.xlu1 %4325  ;;  %v4121_v47 = vpop.permute.xlu0 %4120 }
 0xda6   : > { %9110 = vmatmul.mubr.msk.f32.gmra.mxu1 %vm195_vm1, %v4121_v47 }
 0xda9   : > { %v4324_v15 = vpop.permute.xlu1 %4323  ;;  %v4123_v39 = vpop.permute.xlu0 %4122 }
 0xdaa   : > { %9126 = vmatprep.mubr.msk.f32.mxu0 %vm954_vm2, %v4324_v15  ;;  %9112 = vmatprep.mubr.msk.f32.mxu1 %vm195_vm1, %v4123_v39 }
 0xdab   : > { %9127 = vmatmul.mubr.msk.f32.vlgmr.msra.gmra.mxu0 %vm954_vm2, %v4326_v18 }
 0xdac   : > { %9177 = vmatpush3.msra.mxu0 %v11857_v0 }
 0xdad   : > { %v4125_v44 = vpop.permute.xlu0 %4124  ;;  %9178 = vmatprep.subr.mxu0 %v11864_v22 }
 0xdae   : > { %9113 = vmatmul.mubr.msk.f32.gmra.mxu1 %vm195_vm1, %v4125_v44  ;;  %9179 = vmatpush3.msra.mxu0 %v11864_v22 }
 0xdaf   : > { %9180 = vmatprep.subr.mxu0 %v11871_v19 }
 0xdb0   : > { %9181 = vmatpush3.msra.mxu0 %v11871_v19 }
 0xdb1   : > { %v4330_v20 = vpop.permute.xlu1 %4329  ;;  %v4127_v33 = vpop.permute.xlu0 %4126  ;;  %9182 = vmatprep.subr.mxu0 %v11879_v24 }
 0xdb2   : > { %9115 = vmatprep.mubr.msk.f32.mxu1 %vm195_vm1, %v4127_v33  ;;  %9183 = vmatpush3.msra.mxu0 %v11879_v24 }
 0xdb3   : > { %9234 = vmatprep.subr.mxu0 %v11857_v0 }
 0xdb5   : > { %v4328_v28 = vpop.permute.xlu1 %4327  ;;  %v4129_v11 = vpop.permute.xlu0 %4128 }
 0xdb6   : > { %9129 = vmatprep.mubr.msk.f32.mxu0 %vm954_vm2, %v4328_v28  ;;  %9116 = vmatmul.mubr.msk.f32.gmra.mxu1 %vm195_vm1, %v4129_v11 }
 0xdb7   : > { %9130 = vmatmul.mubr.msk.f32.gmra.mxu0 %vm954_vm2, %v4330_v20 }
 0xdbd   : > { %v4334_v22 = vpop.permute.xlu1 %4333 }
 0xdc1   : > { %v4332_v19 = vpop.permute.xlu1 %4331 }
 0xdc2   : > { %9132 = vmatprep.mubr.msk.f32.mxu0 %vm954_vm2, %v4332_v19 }
 0xdc3   : > { %9133 = vmatmul.mubr.msk.f32.gmra.mxu0 %vm954_vm2, %v4334_v22 }
 0xdc5   : > { %v4338_v34 = vpop.permute.xlu1 %4337 }
 0xdc9   : > { %v4336_v49 = vpop.permute.xlu1 %4335 }
 0xdca   : > { %9135 = vmatprep.mubr.msk.f32.mxu0 %vm954_vm2, %v4336_v49 }
 0xdcb   : > { %9136 = vmatmul.mubr.msk.f32.gmra.mxu0 %vm954_vm2, %v4338_v34 }
 0xdce   : > { %v4342_v0 = vpop.permute.xlu1 %4341 }
 0xdd2   : > { %v4340_v24 = vpop.permute.xlu1 %4339 }
 0xdd3   : > { %9138 = vmatprep.mubr.msk.f32.mxu0 %vm954_vm2, %v4340_v24 }
 0xdd4   : > { %9139 = vmatmul.mubr.msk.f32.gmra.mxu0 %vm954_vm2, %v4342_v0 }
 0xdd6   : > { %v4346_v35 = vpop.permute.xlu1 %4345 }
 0xdda   : > { %v4344_v46 = vpop.permute.xlu1 %4343 }
 0xddb   : > { %9141 = vmatprep.mubr.msk.f32.mxu0 %vm954_vm2, %v4344_v46 }
 0xddc   : > { %9142 = vmatmul.mubr.msk.f32.gmra.mxu0 %vm954_vm2, %v4346_v35 }
 0xddf   : > { %v4350_v54 = vpop.permute.xlu1 %4349 }
 0xde3   : > { %v4348_v30 = vpop.permute.xlu1 %4347 }
 0xde4   : > { %9144 = vmatprep.mubr.msk.f32.mxu0 %vm954_vm2, %v4348_v30 }
 0xde5   : > { %9145 = vmatmul.mubr.msk.f32.gmra.mxu0 %vm954_vm2, %v4350_v54 }
 0xdea   : > { %v4352_v62 = vpop.permute.xlu1 %4351 }
 0xdeb   : > { %9147 = vmatprep.mubr.msk.f32.mxu0 %vm954_vm2, %v4352_v62 }
 0xdee   : > { %v4354_v32 = vpop.permute.xlu1 %4353 }
 0xdef   : > { %9148 = vmatmul.mubr.msk.f32.gmra.mxu0 %vm954_vm2, %v4354_v32 }
 0xe3e   : > { %v9096_v57 = vpop.f32.mrf.mxu1 }
 0xe40   : > { %v4228_v16 = vpop.f32.mrf.mxu1 }
 0xe46   : > { %v9099_v48 = vpop.f32.mrf.mxu1 }
 0xe48   : > { %v4238_v2 = vpop.f32.mrf.mxu1 }
 0xe4e   : > { %v9102_v45 = vpop.f32.mrf.mxu1 }
 0xe50   : > { %v4248_v17 = vpop.f32.mrf.mxu1 }
 0xe56   : > { %v9105_v18 = vpop.f32.mrf.mxu1 }
 0xe58   : > { %v4258_v33 = vpop.f32.mrf.mxu1 }
 0xe5e   : > { %v9108_v54 = vpop.f32.mrf.mxu1 }
 0xe6b   : > { %v9128_v29 = vpop.f32.mrf.mxu0 }
 0xe6c   : > { %v4459_v58 = vadd.f32 %v9128_v29, %v9096_v57  ;;  %v4268_v57 = vpop.f32.mrf.mxu1 }
 0xe6d   : > { %v4453_v9 = vpop.f32.mrf.mxu0 }
 0xe6e   : > { %v8207_v50 = vmul.f32 -1.442695, %v4459_v58  ;;  %v4454_v4 = vadd.f32 %v4453_v9, %v4228_v16 }
 0xe70   : > { %9912 = vpow2.f32 %v8207_v50  ;;  %v8206_v5 = vmul.f32 -1.442695, %v4454_v4 }
 0xe72   : > { %9914 = vpow2.f32 %v8206_v5 }
 0xe77   : > { %v9131_v38 = vpop.f32.mrf.mxu0 }
 0xe78   : > { %v4469_v21 = vadd.f32 %v9131_v38, %v9099_v48  ;;  %v9111_v38 = vpop.f32.mrf.mxu1 }
 0xe79   : > { %v4463_v63 = vpop.f32.mrf.mxu0 }
 0xe7a   : > { %v8209_v40 = vmul.f32 -1.442695, %v4469_v21  ;;  %v4464_v59 = vadd.f32 %v4463_v63, %v4238_v2 }
 0xe7c   : > { %9916 = vpow2.f32 %v8209_v40  ;;  %v8208_v6 = vmul.f32 -1.442695, %v4464_v59 }
 0xe7d   : > { %v9913_v10 = vpop.eup %9912 }
 0xe7e   : > { %v4581_v42 = vadd.f32 1.0, %v9913_v10  ;;  %9918 = vpow2.f32 %v8208_v6  ;;  %v4278_v6 = vpop.f32.mrf.mxu1 }
 0xe7f   : > { %v9915_v31 = vpop.eup %9914 }
 0xe80   : > { %9920 = vrcp.f32 %v4581_v42  ;;  %v4580_v25 = vadd.f32 1.0, %v9915_v31 }
 0xe82   : > { %9922 = vrcp.f32 %v4580_v25 }
 0xe83   : > { %v9134_v41 = vpop.f32.mrf.mxu0 }
 0xe84   : > { %v4479_v55 = vadd.f32 %v9134_v41, %v9102_v45 }
 0xe85   : > { %v4473_v26 = vpop.f32.mrf.mxu0 }
 0xe86   : > { %v8211_v13 = vmul.f32 -1.442695, %v4479_v55  ;;  %v4474_v52 = vadd.f32 %v4473_v26, %v4248_v17 }
 0xe88   : > { %9924 = vpow2.f32 %v8211_v13  ;;  %v8210_v47 = vmul.f32 -1.442695, %v4474_v52 }
 0xe89   : > { %v9917_v15 = vpop.eup %9916 }
 0xe8a   : > { %v4583_v39 = vadd.f32 1.0, %v9917_v15  ;;  %9926 = vpow2.f32 %v8210_v47  ;;  %v9114_v47 = vpop.f32.mrf.mxu1 }
 0xe8b   : > { %v9919_v44 = vpop.eup %9918  ;;  %v9137_v20 = vpop.f32.mrf.mxu0 }
 0xe8c   : > { %9928 = vrcp.f32 %v4583_v39  ;;  %v4582_v28 = vadd.f32 1.0, %v9919_v44  ;;  %v4489_v11 = vadd.f32 %v9137_v20, %v9105_v18  ;;  %v4288_v44 = vpop.f32.mrf.mxu1 }
 0xe8d   : > { %v12183_v22 = vpop.eup %9920  ;;  %v4483_v19 = vpop.f32.mrf.mxu0 }
 0xe8e   : > { %9930 = vrcp.f32 %v4582_v28  ;;  %v8213_v34 = vmul.f32 -1.442695, %v4489_v11  ;;  %v4484_v49 = vadd.f32 %v4483_v19, %v4258_v33  ;;  %v4629_v0 = vmul.f32 2.0, %v12183_v22 }
 0xe8f   : > { %v12186_v24 = vpop.eup %9922 }
 0xe90   : > { %9932 = vpow2.f32 %v8213_v34  ;;  %v8212_v35 = vmul.f32 -1.442695, %v4484_v49  ;;  %v8223_v46 = vadd.f32 -1.0, %v4629_v0  ;;  %v4628_v30 = vmul.f32 2.0, %v12186_v24 }
 0xe92   : > { %9934 = vpow2.f32 %v8212_v35  ;;  %4694 = vrot.lane.b32.xlu1 %v8223_v46, %s10431_s18  ;;  %v8222_v62 = vadd.f32 -1.0, %v4628_v30 }
 0xe94   : > { %v9140_v32 = vpop.f32.mrf.mxu0  ;;  %4692 = vrot.lane.b32.xlu0 %v8222_v62, %s10431_s18 }
 0xe95   : > { %v9925_v29 = vpop.eup %9924  ;;  %v4499_v16 = vadd.f32 %v9140_v32, %v9108_v54 }
 0xe96   : > { %v4585_v58 = vadd.f32 1.0, %v9925_v29  ;;  %v4493_v9 = vpop.f32.mrf.mxu0  ;;  %v9117_v29 = vpop.f32.mrf.mxu1 }
 0xe97   : > { %v9927_v50 = vpop.eup %9926  ;;  %v8215_v4 = vmul.f32 -1.442695, %v4499_v16  ;;  %v4494_v5 = vadd.f32 %v4493_v9, %v4268_v57 }
 0xe98   : > { %9936 = vrcp.f32 %v4585_v58  ;;  %v4584_v48 = vadd.f32 1.0, %v9927_v50 }
 0xe99   : > { %v12191_v2 = vpop.eup %9928  ;;  %9938 = vpow2.f32 %v8215_v4  ;;  %v8214_v21 = vmul.f32 -1.442695, %v4494_v5 }
 0xe9a   : > { %9940 = vrcp.f32 %v4584_v48  ;;  %v4631_v63 = vmul.f32 2.0, %v12191_v2 }
 0xe9b   : > { %v12194_v40 = vpop.eup %9930  ;;  %9942 = vpow2.f32 %v8214_v21 }
 0xe9c   : > { %v9143_v59 = vpop.f32.mrf.mxu0  ;;  %v8225_v10 = vadd.f32 -1.0, %v4631_v63  ;;  %v4630_v42 = vmul.f32 2.0, %v12194_v40 }
 0xe9d   : > { %v9933_v31 = vpop.eup %9932  ;;  %v4509_v45 = vadd.f32 %v9143_v59, %v9111_v38  ;;  %v4298_v59 = vpop.f32.mrf.mxu1 }
 0xe9e   : > { %v4587_v25 = vadd.f32 1.0, %v9933_v31  ;;  %v4503_v41 = vpop.f32.mrf.mxu0  ;;  %4698 = vrot.lane.b32.xlu1 %v8225_v10, %s10431_s18  ;;  %v8224_v17 = vadd.f32 -1.0, %v4630_v42 }
 0xe9f   : > { %v9935_v55 = vpop.eup %9934  ;;  %v8217_v26 = vmul.f32 -1.442695, %v4509_v45  ;;  %v4504_v13 = vadd.f32 %v4503_v41, %v4278_v6 }
 0xea0   : > { %9944 = vrcp.f32 %v4587_v25  ;;  %v4586_v52 = vadd.f32 1.0, %v9935_v55  ;;  %4696 = vrot.lane.b32.xlu0 %v8224_v17, %s10431_s18 }
 0xea1   : > { %9946 = vpow2.f32 %v8217_v26  ;;  %v8216_v18 = vmul.f32 -1.442695, %v4504_v13 }
 0xea2   : > { %9948 = vrcp.f32 %v4586_v52 }
 0xea3   : > { %9950 = vpow2.f32 %v8216_v18 }
 0xea5   : > { %v12199_v15 = vpop.eup %9936  ;;  %v9146_v39 = vpop.f32.mrf.mxu0 }
 0xea6   : > { %v9939_v20 = vpop.eup %9938  ;;  %v4519_v33 = vadd.f32 %v9146_v39, %v9114_v47  ;;  %v4633_v28 = vmul.f32 2.0, %v12199_v15 }
 0xea7   : > { %v12202_v11 = vpop.eup %9940  ;;  %v4589_v19 = vadd.f32 1.0, %v9939_v20  ;;  %v4513_v34 = vpop.f32.mrf.mxu0 }
 0xea8   : > { %v9943_v49 = vpop.eup %9942  ;;  %v8219_v0 = vmul.f32 -1.442695, %v4519_v33  ;;  %v4514_v35 = vadd.f32 %v4513_v34, %v4288_v44  ;;  %v8227_v46 = vadd.f32 -1.0, %v4633_v28  ;;  %v4632_v54 = vmul.f32 2.0, %v12202_v11 }
 0xea9   : > { %9952 = vrcp.f32 %v4589_v19  ;;  %v4588_v30 = vadd.f32 1.0, %v9943_v49 }
 0xeaa   : > { %9954 = vpow2.f32 %v8219_v0  ;;  %v8218_v62 = vmul.f32 -1.442695, %v4514_v35  ;;  %4702 = vrot.lane.b32.xlu1 %v8227_v46, %s10431_s18  ;;  %v8226_v32 = vadd.f32 -1.0, %v4632_v54 }
 0xeab   : > { %9956 = vrcp.f32 %v4588_v30 }
 0xeac   : > { %9958 = vpow2.f32 %v8218_v62  ;;  %4700 = vrot.lane.b32.xlu0 %v8226_v32, %s10431_s18 }
 0xead   : > { %v12207_v57 = vpop.eup %9944 }
 0xeae   : > { %v9947_v16 = vpop.eup %9946  ;;  %v4635_v58 = vmul.f32 2.0, %v12207_v57 }
 0xeaf   : > { %v12210_v9 = vpop.eup %9948  ;;  %v4591_v50 = vadd.f32 1.0, %v9947_v16  ;;  %v9149_v4 = vpop.f32.mrf.mxu0 }
 0xeb0   : > { %v9951_v5 = vpop.eup %9950  ;;  %v4529_v48 = vadd.f32 %v9149_v4, %v9117_v29  ;;  %v8229_v38 = vadd.f32 -1.0, %v4635_v58  ;;  %v4634_v21 = vmul.f32 2.0, %v12210_v9 }
 0xeb1   : > { %9960 = vrcp.f32 %v4591_v50  ;;  %v4590_v63 = vadd.f32 1.0, %v9951_v5  ;;  %v4523_v6 = vpop.f32.mrf.mxu0 }
 0xeb2   : > { %v8221_v10 = vmul.f32 -1.442695, %v4529_v48  ;;  %v4524_v42 = vadd.f32 %v4523_v6, %v4298_v59  ;;  %4706 = vrot.lane.b32.xlu1 %v8229_v38, %s10431_s18  ;;  %v8228_v31 = vadd.f32 -1.0, %v4634_v21 }
 0xeb3   : > { %9962 = vrcp.f32 %v4590_v63 }
 0xeb4   : > { %9964 = vpow2.f32 %v8221_v10  ;;  %v8220_v45 = vmul.f32 -1.442695, %v4524_v42  ;;  %4704 = vrot.lane.b32.xlu0 %v8228_v31, %s10431_s18 }
 0xeb6   : > { %v12215_v25 = vpop.eup %9952  ;;  %9966 = vpow2.f32 %v8220_v45 }
 0xeb7   : > { %v9955_v41 = vpop.eup %9954  ;;  %v4637_v17 = vmul.f32 2.0, %v12215_v25 }
 0xeb8   : > { %v12218_v55 = vpop.eup %9956  ;;  %v4593_v26 = vadd.f32 1.0, %v9955_v41 }
 0xeb9   : > { %v9959_v13 = vpop.eup %9958  ;;  %v8231_v52 = vadd.f32 -1.0, %v4637_v17  ;;  %v4636_v18 = vmul.f32 2.0, %v12218_v55 }
 0xeba   : > { %9968 = vrcp.f32 %v4593_v26  ;;  %v4592_v47 = vadd.f32 1.0, %v9959_v13 }
 0xebb   : > { %4710 = vrot.lane.b32.xlu1 %v8231_v52, %s10431_s18  ;;  %v8230_v39 = vadd.f32 -1.0, %v4636_v18 }
 0xebc   : > { %9970 = vrcp.f32 %v4592_v47 }
 0xebd   : > { %4708 = vrot.lane.b32.xlu0 %v8230_v39, %s10431_s18 }
 0xebe   : > { %v12223_v44 = vpop.eup %9960 }
 0xebf   : > { %v4639_v20 = vmul.f32 2.0, %v12223_v44 }
 0xec0   : > { %v12226_v33 = vpop.eup %9962 }
 0xec1   : > { %v9965_v28 = vpop.eup %9964  ;;  %v8233_v19 = vadd.f32 -1.0, %v4639_v20  ;;  %v4638_v34 = vmul.f32 2.0, %v12226_v33 }
 0xec2   : > { %v4595_v49 = vadd.f32 1.0, %v9965_v28 }
 0xec3   : > { %v9967_v0 = vpop.eup %9966  ;;  %4714 = vrot.lane.b32.xlu1 %v8233_v19, %s10431_s18  ;;  %v8232_v35 = vadd.f32 -1.0, %v4638_v34 }
 0xec4   : > { %9972 = vrcp.f32 %v4595_v49  ;;  %v4594_v46 = vadd.f32 1.0, %v9967_v0 }
 0xec5   : > { %4712 = vrot.lane.b32.xlu0 %v8232_v35, %s10431_s18 }
 0xec6   : > { %9974 = vrcp.f32 %v4594_v46 }
 0xec7   : > { %v12231_v54 = vpop.eup %9968 }
 0xec8   : > { %v4641_v30 = vmul.f32 2.0, %v12231_v54 }
 0xec9   : > { %v12234_v62 = vpop.eup %9970 }
 0xeca   : > { %v8235_v32 = vadd.f32 -1.0, %v4641_v30  ;;  %v4640_v29 = vmul.f32 2.0, %v12234_v62 }
 0xecc   : > { %4718 = vrot.lane.b32.xlu1 %v8235_v32, %s10431_s18  ;;  %v8234_v16 = vadd.f32 -1.0, %v4640_v29 }
 0xece   : > { %4716 = vrot.lane.b32.xlu0 %v8234_v16, %s10431_s18 }
 0xed1   : > { %v12239_v58 = vpop.eup %9972 }
 0xed2   : > { %v4643_v50 = vmul.f32 2.0, %v12239_v58 }
 0xed3   : > { %v12242_v4 = vpop.eup %9974 }
 0xed4   : > { %v8237_v5 = vadd.f32 -1.0, %v4643_v50  ;;  %v4642_v48 = vmul.f32 2.0, %v12242_v4 }
 0xed6   : > { %4722 = vrot.lane.b32.xlu1 %v8237_v5, %s10431_s18  ;;  %v8236_v38 = vadd.f32 -1.0, %v4642_v48 }
 0xed8   : > { %4720 = vrot.lane.b32.xlu0 %v8236_v38, %s10431_s18 }
 0xf04   : > { %v4695_v21 = vpop.permute.xlu1 %4694 }
 0xf05   : > { %v4741_v63 = vmul.f32 %v12183_v22, %v4695_v21  ;;  %v4661_v21 = vmul.f32 %v12183_v22, %v11997_v12  ;;  %v4662_v12 = vmul.f32 %v12194_v40, %v12012_v1  ;;  %v4664_v1 = vmul.f32 %v12202_v11, %v12024_v56 }
 0xf06   : > { %v4693_v59 = vpop.permute.xlu0 %4692  ;;  %v4666_v56 = vmul.f32 %v12210_v9, %v12036_v8  ;;  %v4668_v8 = vmul.f32 %v12218_v55, %v12048_v43  ;;  %v4670_v43 = vmul.f32 %v12226_v33, %v12060_v61  ;;  %v4672_v61 = vmul.f32 %v12234_v62, %v12072_v60 }
 0xf07   : > { %v4740_v6 = vmul.f32 %v12186_v24, %v4693_v59  ;;  %4774 = vrot.lane.b32.xlu1 %v4741_v63, %s10434_s21 }
 0xf09   : > { %4772 = vrot.lane.b32.xlu0 %v4740_v6, %s10434_s21  ;;  %v4660_v6 = vmul.f32 %v12186_v24, %v12002_v7 }
 0xf10   : > { %v4699_v10 = vpop.permute.xlu1 %4698 }
 0xf11   : > { %v4743_v42 = vmul.f32 %v12191_v2, %v4699_v10 }
 0xf12   : > { %v4697_v31 = vpop.permute.xlu0 %4696 }
 0xf13   : > { %v4742_v45 = vmul.f32 %v12194_v40, %v4697_v31  ;;  %4778 = vrot.lane.b32.xlu1 %v4743_v42, %s10434_s21  ;;  %v4663_v31 = vmul.f32 %v12191_v2, %v12007_v27  ;;  %v4665_v27 = vmul.f32 %v12199_v15, %v12019_v51  ;;  %v4667_v51 = vmul.f32 %v12207_v57, %v12031_v23 }
 0xf15   : > { %4776 = vrot.lane.b32.xlu0 %v4742_v45, %s10434_s21 }
 0xf1c   : > { %v4703_v41 = vpop.permute.xlu1 %4702 }
 0xf1d   : > { %v4745_v17 = vmul.f32 %v12199_v15, %v4703_v41 }
 0xf1e   : > { %v4701_v26 = vpop.permute.xlu0 %4700 }
 0xf1f   : > { %v4744_v13 = vmul.f32 %v12202_v11, %v4701_v26  ;;  %4782 = vrot.lane.b32.xlu1 %v4745_v17, %s10434_s21 }
 0xf21   : > { %4780 = vrot.lane.b32.xlu0 %v4744_v13, %s10434_s21 }
 0xf24   : > { %v4707_v52 = vpop.permute.xlu1 %4706 }
 0xf25   : > { %v4747_v18 = vmul.f32 %v12207_v57, %v4707_v52 }
 0xf26   : > { %v4705_v47 = vpop.permute.xlu0 %4704 }
 0xf27   : > { %v4746_v39 = vmul.f32 %v12210_v9, %v4705_v47  ;;  %4786 = vrot.lane.b32.xlu1 %v4747_v18, %s10434_s21 }
 0xf29   : > { %4784 = vrot.lane.b32.xlu0 %v4746_v39, %s10434_s21 }
 0xf2d   : > { %v4711_v20 = vpop.permute.xlu1 %4710 }
 0xf2e   : > { %v4749_v28 = vmul.f32 %v12215_v25, %v4711_v20 }
 0xf2f   : > { %v4709_v19 = vpop.permute.xlu0 %4708 }
 0xf30   : > { %v4748_v34 = vmul.f32 %v12218_v55, %v4709_v19  ;;  %4790 = vrot.lane.b32.xlu1 %v4749_v28, %s10434_s21 }
 0xf32   : > { %4788 = vrot.lane.b32.xlu0 %v4748_v34, %s10434_s21 }
 0xf35   : > { %v4715_v49 = vpop.permute.xlu1 %4714 }
 0xf36   : > { %v4751_v0 = vmul.f32 %v12223_v44, %v4715_v49 }
 0xf37   : > { %v4713_v35 = vpop.permute.xlu0 %4712 }
 0xf38   : > { %v4750_v46 = vmul.f32 %v12226_v33, %v4713_v35  ;;  %4794 = vrot.lane.b32.xlu1 %v4751_v0, %s10434_s21 }
 0xf3a   : > { %4792 = vrot.lane.b32.xlu0 %v4750_v46, %s10434_s21  ;;  %v4669_v46 = vmul.f32 %v12215_v25, %v12042_v37  ;;  %v4671_v37 = vmul.f32 %v12223_v44, %v12054_v53  ;;  %v4673_v53 = vmul.f32 %v12231_v54, %v12066_v3 }
 0xf3e   : > { %v4719_v30 = vpop.permute.xlu1 %4718 }
 0xf3f   : > { %v4753_v32 = vmul.f32 %v12231_v54, %v4719_v30 }
 0xf40   : > { %v4717_v29 = vpop.permute.xlu0 %4716 }
 0xf41   : > { %v4752_v16 = vmul.f32 %v12234_v62, %v4717_v29  ;;  %4798 = vrot.lane.b32.xlu1 %v4753_v32, %s10434_s21 }
 0xf43   : > { %4796 = vrot.lane.b32.xlu0 %v4752_v16, %s10434_s21 }
 0xf48   : > { %v4723_v50 = vpop.permute.xlu1 %4722 }
 0xf49   : > { %v4755_v5 = vmul.f32 %v12239_v58, %v4723_v50 }
 0xf4a   : > { %v4721_v48 = vpop.permute.xlu0 %4720 }
 0xf4b   : > { %v4754_v38 = vmul.f32 %v12242_v4, %v4721_v48  ;;  %4802 = vrot.lane.b32.xlu1 %v4755_v5, %s10434_s21 }
 0xf4d   : > { %4800 = vrot.lane.b32.xlu0 %v4754_v38, %s10434_s21 }
 0xf79   : > { %v4775_v63 = vpop.permute.xlu1 %4774 }
 0xf7a   : > { %v12281_v59 = vadd.f32 %v4775_v63, %v4661_v21 }
 0xf7b   : > { %v4773_v10 = vpop.permute.xlu0 %4772 }
 0xf7c   : > { %9976 = vtanh.f32 %v12281_v59  ;;  %v12286_v42 = vadd.f32 %v4773_v10, %v4660_v6 }
 0xf7e   : > { %9978 = vtanh.f32 %v12286_v42 }
 0xf85   : > { %v4779_v45 = vpop.permute.xlu1 %4778 }
 0xf86   : > { %v12291_v41 = vadd.f32 %v4779_v45, %v4663_v31 }
 0xf87   : > { %v4777_v17 = vpop.permute.xlu0 %4776 }
 0xf88   : > { %9980 = vtanh.f32 %v12291_v41  ;;  %v12296_v7 = vadd.f32 %v4777_v17, %v4662_v12 }
 0xf89   : > { %v9977_v26 = vpop.eup %9976 }
 0xf8a   : > { %9982 = vtanh.f32 %v12296_v7  ;;  %4870 = vrot.lane.b32.xlu1 %v9977_v26, %s10431_s18 }
 0xf8b   : > { %v9979_v13 = vpop.eup %9978 }
 0xf8c   : > { %4868 = vrot.lane.b32.xlu0 %v9979_v13, %s10431_s18  ;;  %v4675_v13 = vmul.f32 %v12239_v58, %v12081_v36 }
 0xf91   : > { %v4783_v52 = vpop.permute.xlu1 %4782 }
 0xf92   : > { %v12303_v18 = vadd.f32 %v4783_v52, %v4665_v27  ;;  %v4674_v52 = vmul.f32 %v12242_v4, %v12083_v14 }
 0xf93   : > { %v4781_v47 = vpop.permute.xlu0 %4780 }
 0xf94   : > { %9984 = vtanh.f32 %v12303_v18  ;;  %v12308_v39 = vadd.f32 %v4781_v47, %v4664_v1 }
 0xf95   : > { %v9981_v20 = vpop.eup %9980 }
 0xf96   : > { %9986 = vtanh.f32 %v12308_v39  ;;  %4874 = vrot.lane.b32.xlu1 %v9981_v20, %s10431_s18 }
 0xf97   : > { %v9983_v28 = vpop.eup %9982 }
 0xf98   : > { %4872 = vrot.lane.b32.xlu0 %v9983_v28, %s10431_s18 }
 0xf99   : > { %v4787_v19 = vpop.permute.xlu1 %4786 }
 0xf9a   : > { %v12315_v34 = vadd.f32 %v4787_v19, %v4667_v51  ;;  %v12376_v51 = vld [vmem:[%s10487_s17] sm:$0xff]  ;;  %v12381_v19 = vld [vmem:[%s10487_s17 + $0x8] sm:$0xff] }
 0xf9b   : > { %v4785_v49 = vpop.permute.xlu0 %4784 }
 0xf9c   : > { %9988 = vtanh.f32 %v12315_v34  ;;  %v12320_v0 = vadd.f32 %v4785_v49, %v4666_v56  ;;  %v12386_v56 = vld [vmem:[%s10487_s17 + $0x10] sm:$0xff]  ;;  %v12391_v49 = vld [vmem:[%s10487_s17 + $0x18] sm:$0xff] }
 0xf9e   : > { %9990 = vtanh.f32 %v12320_v0 }
 0xfa1   : > { %v9985_v35 = vpop.eup %9984 }
 0xfa2   : > { %v4791_v30 = vpop.permute.xlu1 %4790  ;;  %4878 = vrot.lane.b32.xlu1 %v9985_v35, %s10431_s18  ;;  %v12396_v35 = vld [vmem:[%s10487_s17 + $0x20] sm:$0xff] }
 0xfa3   : > { %v9987_v23 = vpop.eup %9986  ;;  %v12326_v32 = vadd.f32 %v4791_v30, %v4669_v46  ;;  %v12401_v46 = vld [vmem:[%s10487_s17 + $0x28] sm:$0xff]  ;;  %v12406_v30 = vld [vmem:[%s10487_s17 + $0x30] sm:$0xff] }
 0xfa4   : > { %v4789_v29 = vpop.permute.xlu0 %4788  ;;  %4876 = vrot.lane.b32.xlu0 %v9987_v23, %s10431_s18  ;;  %v12411_v23 = vld [vmem:[%s10487_s17 + $0x38] sm:$0xff] }
 0xfa5   : > { %9992 = vtanh.f32 %v12326_v32  ;;  %v12332_v16 = vadd.f32 %v4789_v29, %v4668_v8  ;;  %v12416_v8 = vld [vmem:[%s10487_s17 + $0x40] sm:$0xff]  ;;  %v12421_v29 = vld [vmem:[%s10487_s17 + $0x48] sm:$0xff] }
 0xfa7   : > { %9994 = vtanh.f32 %v12332_v16 }
 0xfa9   : > { %v9989_v50 = vpop.eup %9988 }
 0xfaa   : > { %v4795_v5 = vpop.permute.xlu1 %4794  ;;  %4882 = vrot.lane.b32.xlu1 %v9989_v50, %s10431_s18 }
 0xfab   : > { %v9991_v48 = vpop.eup %9990  ;;  %v12338_v38 = vadd.f32 %v4795_v5, %v4671_v37  ;;  %v12426_v37 = vld [vmem:[%s10487_s17 + $0x50] sm:$0xff] }
 0xfac   : > { %v4793_v21 = vpop.permute.xlu0 %4792  ;;  %4880 = vrot.lane.b32.xlu0 %v9991_v48, %s10431_s18 }
 0xfad   : > { %9996 = vtanh.f32 %v12338_v38  ;;  %v12344_v63 = vadd.f32 %v4793_v21, %v4670_v43  ;;  %v12433_v43 = vld [vmem:[%s10487_s17 + $0x58] sm:$0xff] }
 0xfaf   : > { %9998 = vtanh.f32 %v12344_v63 }
 0xfb2   : > { %v9993_v6 = vpop.eup %9992 }
 0xfb3   : > { %v4799_v10 = vpop.permute.xlu1 %4798  ;;  %4886 = vrot.lane.b32.xlu1 %v9993_v6, %s10431_s18  ;;  %v12440_v6 = vld [vmem:[%s10487_s17 + $0x60] sm:$0xff] }
 0xfb4   : > { %v9995_v31 = vpop.eup %9994  ;;  %v12350_v45 = vadd.f32 %v4799_v10, %v4673_v53 }
 0xfb5   : > { %v4797_v12 = vpop.permute.xlu0 %4796  ;;  %4884 = vrot.lane.b32.xlu0 %v9995_v31, %s10431_s18 }
 0xfb6   : > { %10000 = vtanh.f32 %v12350_v45  ;;  %v12356_v17 = vadd.f32 %v4797_v12, %v4672_v61  ;;  %v12452_v61 = vld [vmem:[%s10487_s17 + $0x70] sm:$0xff]  ;;  %v12459_v12 = vld [vmem:[%s10487_s17 + $0x78] sm:$0xff] }
 0xfb8   : > { %10002 = vtanh.f32 %v12356_v17 }
 0xfba   : > { %v9997_v26 = vpop.eup %9996 }
 0xfbb   : > { %4890 = vrot.lane.b32.xlu1 %v9997_v26, %s10431_s18 }
 0xfbc   : > { %v9999_v3 = vpop.eup %9998 }
 0xfbd   : > { %v4803_v27 = vpop.permute.xlu1 %4802  ;;  %4888 = vrot.lane.b32.xlu0 %v9999_v3, %s10431_s18 }
 0xfbe   : > { %v12363_v60 = vadd.f32 %v4803_v27, %v4675_v13 }
 0xfbf   : > { %v4801_v1 = vpop.permute.xlu0 %4800 }
 0xfc0   : > { %10004 = vtanh.f32 %v12363_v60  ;;  %v12368_v47 = vadd.f32 %v4801_v1, %v4674_v52 }
 0xfc2   : > { %10006 = vtanh.f32 %v12368_v47 }
 0xfc3   : > { %v10001_v36 = vpop.eup %10000 }
 0xfc4   : > { %4894 = vrot.lane.b32.xlu1 %v10001_v36, %s10431_s18 }
 0xfc5   : > { %v10003_v20 = vpop.eup %10002 }
 0xfc6   : > { %4892 = vrot.lane.b32.xlu0 %v10003_v20, %s10431_s18 }
 0xfcd   : > { %v10005_v28 = vpop.eup %10004 }
 0xfce   : > { %4898 = vrot.lane.b32.xlu1 %v10005_v28, %s10431_s18 }
 0xfcf   : > { %v10007_v14 = vpop.eup %10006 }
 0xfd0   : > { %4896 = vrot.lane.b32.xlu0 %v10007_v14, %s10431_s18 }
 0xfd4   : > { %4932 = vrot.lane.b32.xlu0 %v12376_v51, %s10439_s5 }
 0xfd8   : > { %4934 = vrot.lane.b32.xlu0 %v12381_v19, %s10439_s5 }
 0xfdc   : > { %4936 = vrot.lane.b32.xlu0 %v12386_v56, %s10439_s5 }
 0xfe0   : > { %4938 = vrot.lane.b32.xlu0 %v12391_v49, %s10439_s5 }
 0xfe4   : > { %4940 = vrot.lane.b32.xlu0 %v12396_v35, %s10439_s5 }
 0xfe8   : > { %4942 = vrot.lane.b32.xlu0 %v12401_v46, %s10439_s5 }
 0xfec   : > { %4944 = vrot.lane.b32.xlu0 %v12406_v30, %s10439_s5 }
 0xff0   : > { %4946 = vrot.lane.b32.xlu0 %v12411_v23, %s10439_s5 }
 0xff4   : > { %4948 = vrot.lane.b32.xlu0 %v12416_v8, %s10439_s5 }
 0xff8   : > { %4950 = vrot.lane.b32.xlu0 %v12421_v29, %s10439_s5 }
 0xffc   : > { %v4871_v50 = vpop.permute.xlu1 %4870  ;;  %4952 = vrot.lane.b32.xlu0 %v12426_v37, %s10439_s5 }
 0xffd   : > { %v4917_v5 = vmul.f32 %v12183_v22, %v4871_v50  ;;  %v12445_v22 = vld [vmem:[%s10487_s17 + $0x68] sm:$0xff] }
 0xffe   : > { %v4869_v48 = vpop.permute.xlu0 %4868 }
 0xfff   : > { %5159 = vrot.lane.b32.xlu1 %v4917_v5, %s10434_s21  ;;  %v4916_v21 = vmul.f32 %v12186_v24, %v4869_v48 }
0x1000   : > { %4954 = vrot.lane.b32.xlu0 %v12433_v43, %s10439_s5 }
0x1003   : > { %5157 = vrot.lane.b32.xlu1 %v4916_v21, %s10434_s21 }
0x1004   : > { %4956 = vrot.lane.b32.xlu0 %v12440_v6, %s10439_s5 }
0x1008   : > { %v4875_v53 = vpop.permute.xlu1 %4874  ;;  %4958 = vrot.lane.b32.xlu0 %v12445_v22, %s10439_s5 }
0x1009   : > { %v4919_v10 = vmul.f32 %v12191_v2, %v4875_v53 }
0x100a   : > { %v4873_v31 = vpop.permute.xlu0 %4872 }
0x100b   : > { %5163 = vrot.lane.b32.xlu1 %v4919_v10, %s10434_s21  ;;  %v4918_v24 = vmul.f32 %v12194_v40, %v4873_v31 }
0x100c   : > { %4960 = vrot.lane.b32.xlu0 %v12452_v61, %s10439_s5 }
0x100f   : > { %5161 = vrot.lane.b32.xlu1 %v4918_v24, %s10434_s21 }
0x1010   : > { %4962 = vrot.lane.b32.xlu0 %v12459_v12, %s10439_s5 }
0x1014   : > { %v4879_v26 = vpop.permute.xlu1 %4878 }
0x1015   : > { %v4921_v2 = vmul.f32 %v12199_v15, %v4879_v26 }
0x1016   : > { %v4877_v3 = vpop.permute.xlu0 %4876 }
0x1017   : > { %5167 = vrot.lane.b32.xlu1 %v4921_v2, %s10434_s21  ;;  %v4920_v13 = vmul.f32 %v12202_v11, %v4877_v3 }
0x101b   : > { %5165 = vrot.lane.b32.xlu1 %v4920_v13, %s10434_s21 }
0x101c   : > { %v4883_v27 = vpop.permute.xlu1 %4882 }
0x101d   : > { %v4923_v40 = vmul.f32 %v12207_v57, %v4883_v27 }
0x101e   : > { %v4881_v52 = vpop.permute.xlu0 %4880 }
0x101f   : > { %5171 = vrot.lane.b32.xlu1 %v4923_v40, %s10434_s21  ;;  %v4922_v1 = vmul.f32 %v12210_v9, %v4881_v52 }
0x1023   : > { %5169 = vrot.lane.b32.xlu1 %v4922_v1, %s10434_s21 }
0x1025   : > { %v4887_v36 = vpop.permute.xlu1 %4886 }
0x1026   : > { %v4925_v15 = vmul.f32 %v12215_v25, %v4887_v36  ;;  %v10419_v36 = vld [vmem:[%s13352_s1 + $0x18] sm:$0xff] }
0x1027   : > { %v4885_v20 = vpop.permute.xlu0 %4884 }
0x1028   : > { %5175 = vrot.lane.b32.xlu1 %v4925_v15, %s10434_s21  ;;  %v4924_v11 = vmul.f32 %v12218_v55, %v4885_v20  ;;  %v10420_v15 = vld [vmem:[%s13352_s1 + $0x10] sm:$0xff] }
0x102c   : > { %5173 = vrot.lane.b32.xlu1 %v4924_v11, %s10434_s21  ;;  %v10421_v11 = vld [vmem:[%s13352_s1 + $0x8] sm:$0xff] }
0x102d   : > { %v4891_v28 = vpop.permute.xlu1 %4890 }
0x102e   : > { %v4927_v57 = vmul.f32 %v12223_v44, %v4891_v28 }
0x102f   : > { %v4889_v14 = vpop.permute.xlu0 %4888 }
0x1030   : > { %5179 = vrot.lane.b32.xlu1 %v4927_v57, %s10434_s21  ;;  %v4926_v9 = vmul.f32 %v12226_v33, %v4889_v14  ;;  %v10422_v57 = vld [vmem:[%s13352_s1] sm:$0xff] }
0x1034   : > { %5177 = vrot.lane.b32.xlu1 %v4926_v9, %s10434_s21 }
0x1036   : > { %v4895_v50 = vpop.permute.xlu1 %4894 }
0x1037   : > { %v4929_v25 = vmul.f32 %v12231_v54, %v4895_v50 }
0x1038   : > { %v4893_v5 = vpop.permute.xlu0 %4892 }
0x1039   : > { %5183 = vrot.lane.b32.xlu1 %v4929_v25, %s10434_s21  ;;  %v4928_v55 = vmul.f32 %v12234_v62, %v4893_v5  ;;  %v10418_v62 = vld [vmem:[%s13352_s1 + $0x20] sm:$0x3] }
0x103d   : > { %5181 = vrot.lane.b32.xlu1 %v4928_v55, %s10434_s21 }
0x1040   : > { %v4899_v21 = vpop.permute.xlu1 %4898 }
0x1041   : > { %v4931_v33 = vmul.f32 %v12239_v58, %v4899_v21 }
0x1042   : > { %v4897_v48 = vpop.permute.xlu0 %4896 }
0x1043   : > { %v4930_v44 = vmul.f32 %v12242_v4, %v4897_v48 }
0x1045   : > { %5185 = vrot.lane.b32.xlu1 %v4930_v44, %s10434_s21 }
0x1046   : > { %v4933_v53 = vpop.permute.xlu0 %4932 }
0x1047   : > { %9152 = vmatprep.mubr.msk.f32.mxu1 %vm195_vm1, %v4933_v53 }
0x1049   : > { %5187 = vrot.lane.b32.xlu1 %v4931_v33, %s10434_s21 }
0x104a   : > { %v4935_v54 = vpop.permute.xlu0 %4934 }
0x104b   : > { %9153 = vmatmul.mubr.msk.f32.vlgmr.msra.gmra.mxu1 %vm195_vm1, %v4935_v54 }
0x104c   : > { %9209 = vmatpush3.msk.msra.mxu1 %vm244_vm0, %v10418_v62 }
0x104e   : > { %v4937_v4 = vpop.permute.xlu0 %4936 }
0x104f   : > { %9155 = vmatprep.mubr.msk.f32.mxu1 %vm195_vm1, %v4937_v4 }
0x1052   : > { %v4939_v10 = vpop.permute.xlu0 %4938 }
0x1053   : > { %9156 = vmatmul.mubr.msk.f32.gmra.mxu1 %vm195_vm1, %v4939_v10 }
0x1056   : > { %v4941_v58 = vpop.permute.xlu0 %4940 }
0x1057   : > { %9158 = vmatprep.mubr.msk.f32.mxu1 %vm195_vm1, %v4941_v58 }
0x105a   : > { %v4943_v31 = vpop.permute.xlu0 %4942 }
0x105b   : > { %9159 = vmatmul.mubr.msk.f32.gmra.mxu1 %vm195_vm1, %v4943_v31 }
0x105e   : > { %v4945_v24 = vpop.permute.xlu0 %4944 }
0x105f   : > { %9161 = vmatprep.mubr.msk.f32.mxu1 %vm195_vm1, %v4945_v24 }
0x1062   : > { %v4947_v26 = vpop.permute.xlu0 %4946 }
0x1063   : > { %9162 = vmatmul.mubr.msk.f32.gmra.mxu1 %vm195_vm1, %v4947_v26 }
0x1066   : > { %v4949_v2 = vpop.permute.xlu0 %4948 }
0x1067   : > { %9164 = vmatprep.mubr.msk.f32.mxu1 %vm195_vm1, %v4949_v2 }
0x106a   : > { %v4951_v3 = vpop.permute.xlu0 %4950 }
0x106b   : > { %9165 = vmatmul.mubr.msk.f32.gmra.mxu1 %vm195_vm1, %v4951_v3 }
0x106e   : > { %v4953_v13 = vpop.permute.xlu0 %4952 }
0x106f   : > { %9167 = vmatprep.mubr.msk.f32.mxu1 %vm195_vm1, %v4953_v13 }
0x1071   : > { %v5160_v27 = vpop.permute.xlu1 %5159 }
0x1072   : > { %v4955_v40 = vpop.permute.xlu0 %4954 }
0x1073   : > { %9168 = vmatmul.mubr.msk.f32.gmra.mxu1 %vm195_vm1, %v4955_v40 }
0x1075   : > { %v5158_v52 = vpop.permute.xlu1 %5157 }
0x1076   : > { %9184 = vmatprep.mubr.msk.f32.mxu0 %vm954_vm2, %v5158_v52  ;;  %v4957_v1 = vpop.permute.xlu0 %4956 }
0x1077   : > { %9185 = vmatmul.mubr.msk.f32.vlgmr.msra.gmra.mxu0 %vm954_vm2, %v5160_v27  ;;  %9170 = vmatprep.mubr.msk.f32.mxu1 %vm195_vm1, %v4957_v1 }
0x1078   : > { %9235 = vmatpush3.msra.mxu0 %v10419_v36 }
0x1079   : > { %9236 = vmatprep.subr.mxu0 %v10420_v15 }
0x107a   : > { %v4959_v20 = vpop.permute.xlu0 %4958  ;;  %9237 = vmatpush3.msra.mxu0 %v10420_v15 }
0x107b   : > { %9171 = vmatmul.mubr.msk.f32.gmra.mxu1 %vm195_vm1, %v4959_v20  ;;  %9238 = vmatprep.subr.mxu0 %v10421_v11 }
0x107c   : > { %9239 = vmatpush3.msra.mxu0 %v10421_v11 }
0x107d   : > { %v5164_v28 = vpop.permute.xlu1 %5163  ;;  %9240 = vmatprep.subr.mxu0 %v10422_v57 }
0x107e   : > { %v4961_v14 = vpop.permute.xlu0 %4960  ;;  %9241 = vmatpush3.msra.mxu0 %v10422_v57 }
0x107f   : > { %9173 = vmatprep.mubr.msk.f32.mxu1 %vm195_vm1, %v4961_v14 }
0x1081   : > { %v5162_v9 = vpop.permute.xlu1 %5161 }
0x1082   : > { %9187 = vmatprep.mubr.msk.f32.mxu0 %vm954_vm2, %v5162_v9  ;;  %v4963_v50 = vpop.permute.xlu0 %4962 }
0x1083   : > { %9188 = vmatmul.mubr.msk.f32.gmra.mxu0 %vm954_vm2, %v5164_v28  ;;  %9174 = vmatmul.mubr.msk.f32.gmra.mxu1 %vm195_vm1, %v4963_v50 }
0x1089   : > { %v5168_v25 = vpop.permute.xlu1 %5167 }
0x108d   : > { %v5166_v5 = vpop.permute.xlu1 %5165 }
0x108e   : > { %9190 = vmatprep.mubr.msk.f32.mxu0 %vm954_vm2, %v5166_v5 }
0x108f   : > { %9191 = vmatmul.mubr.msk.f32.gmra.mxu0 %vm954_vm2, %v5168_v25 }
0x1091   : > { %v5172_v55 = vpop.permute.xlu1 %5171 }
0x1095   : > { %v5170_v48 = vpop.permute.xlu1 %5169 }
0x1096   : > { %9193 = vmatprep.mubr.msk.f32.mxu0 %vm954_vm2, %v5170_v48 }
0x1097   : > { %9194 = vmatmul.mubr.msk.f32.gmra.mxu0 %vm954_vm2, %v5172_v55 }
0x109a   : > { %v5176_v44 = vpop.permute.xlu1 %5175 }
0x109e   : > { %v5174_v21 = vpop.permute.xlu1 %5173 }
0x109f   : > { %9196 = vmatprep.mubr.msk.f32.mxu0 %vm954_vm2, %v5174_v21 }
0x10a0   : > { %9197 = vmatmul.mubr.msk.f32.gmra.mxu0 %vm954_vm2, %v5176_v44 }
0x10a2   : > { %v5180_v53 = vpop.permute.xlu1 %5179 }
0x10a6   : > { %v5178_v33 = vpop.permute.xlu1 %5177 }
0x10a7   : > { %9199 = vmatprep.mubr.msk.f32.mxu0 %vm954_vm2, %v5178_v33 }
0x10a8   : > { %9200 = vmatmul.mubr.msk.f32.gmra.mxu0 %vm954_vm2, %v5180_v53 }
0x10ab   : > { %v5184_v54 = vpop.permute.xlu1 %5183 }
0x10af   : > { %v5182_v62 = vpop.permute.xlu1 %5181 }
0x10b0   : > { %9202 = vmatprep.mubr.msk.f32.mxu0 %vm954_vm2, %v5182_v62 }
0x10b1   : > { %9203 = vmatmul.mubr.msk.f32.gmra.mxu0 %vm954_vm2, %v5184_v54 }
0x10b7   : > { %v5186_v4 = vpop.permute.xlu1 %5185 }
0x10b8   : > { %9205 = vmatprep.mubr.msk.f32.mxu0 %vm954_vm2, %v5186_v4 }
0x10bb   : > { %v5188_v10 = vpop.permute.xlu1 %5187 }
0x10bc   : > { %9206 = vmatmul.mubr.msk.f32.gmra.mxu0 %vm954_vm2, %v5188_v10 }
0x110b   : > { %v9154_v58 = vpop.f32.mrf.mxu1 }
0x110d   : > { %v5062_v24 = vpop.f32.mrf.mxu1 }
0x1113   : > { %v9157_v40 = vpop.f32.mrf.mxu1 }
0x1115   : > { %v5072_v1 = vpop.f32.mrf.mxu1 }
0x111b   : > { %v9160_v50 = vpop.f32.mrf.mxu1 }
0x111d   : > { %v5082_v55 = vpop.f32.mrf.mxu1 }
0x1123   : > { %v9163_v33 = vpop.f32.mrf.mxu1 }
0x1137   : > { %v9186_v31 = vpop.f32.mrf.mxu0 }
0x1138   : > { %v5293_v26 = vadd.f32 %v9186_v31, %v9154_v58  ;;  %v5092_v31 = vpop.f32.mrf.mxu1 }
0x1139   : > { %v5287_v2 = vpop.f32.mrf.mxu0 }
0x113a   : > { %v8272_v3 = vmul.f32 -1.442695, %v5293_v26  ;;  %v5288_v13 = vadd.f32 %v5287_v2, %v5062_v24 }
0x113c   : > { %10008 = vpow2.f32 %v8272_v3  ;;  %v8271_v27 = vmul.f32 -1.442695, %v5288_v13 }
0x113e   : > { %10010 = vpow2.f32 %v8271_v27 }
0x1143   : > { %v9189_v52 = vpop.f32.mrf.mxu0 }
0x1144   : > { %v5303_v36 = vadd.f32 %v9189_v52, %v9157_v40 }
0x1145   : > { %v5297_v15 = vpop.f32.mrf.mxu0 }
0x1146   : > { %v8274_v20 = vmul.f32 -1.442695, %v5303_v36  ;;  %v5298_v11 = vadd.f32 %v5297_v15, %v5072_v1  ;;  %v9166_v15 = vpop.f32.mrf.mxu1 }
0x1148   : > { %10012 = vpow2.f32 %v8274_v20  ;;  %v8273_v28 = vmul.f32 -1.442695, %v5298_v11 }
0x1149   : > { %v10009_v57 = vpop.eup %10008 }
0x114a   : > { %v5415_v14 = vadd.f32 1.0, %v10009_v57  ;;  %10014 = vpow2.f32 %v8273_v28  ;;  %v5102_v57 = vpop.f32.mrf.mxu1 }
0x114b   : > { %v10011_v9 = vpop.eup %10010 }
0x114c   : > { %10016 = vrcp.f32 %v5415_v14  ;;  %v5414_v25 = vadd.f32 1.0, %v10011_v9 }
0x114e   : > { %10018 = vrcp.f32 %v5414_v25 }
0x114f   : > { %v9192_v5 = vpop.f32.mrf.mxu0 }
0x1150   : > { %v5313_v48 = vadd.f32 %v9192_v5, %v9160_v50 }
0x1151   : > { %v5307_v44 = vpop.f32.mrf.mxu0 }
0x1152   : > { %v8276_v21 = vmul.f32 -1.442695, %v5313_v48  ;;  %v5308_v53 = vadd.f32 %v5307_v44, %v5082_v55 }
0x1154   : > { %10020 = vpow2.f32 %v8276_v21  ;;  %v8275_v54 = vmul.f32 -1.442695, %v5308_v53  ;;  %v9169_v21 = vpop.f32.mrf.mxu1 }
0x1155   : > { %v10013_v62 = vpop.eup %10012 }
0x1156   : > { %v5417_v4 = vadd.f32 1.0, %v10013_v62  ;;  %10022 = vpow2.f32 %v8275_v54 }
0x1157   : > { %v10015_v10 = vpop.eup %10014  ;;  %v9195_v58 = vpop.f32.mrf.mxu0 }
0x1158   : > { %10024 = vrcp.f32 %v5417_v4  ;;  %v5416_v24 = vadd.f32 1.0, %v10015_v10  ;;  %v5323_v26 = vadd.f32 %v9195_v58, %v9163_v33  ;;  %v5112_v10 = vpop.f32.mrf.mxu1 }
0x1159   : > { %v12535_v2 = vpop.eup %10016  ;;  %v5317_v3 = vpop.f32.mrf.mxu0 }
0x115a   : > { %10026 = vrcp.f32 %v5416_v24  ;;  %v8278_v13 = vmul.f32 -1.442695, %v5323_v26  ;;  %v5318_v27 = vadd.f32 %v5317_v3, %v5092_v31  ;;  %v5463_v40 = vmul.f32 2.0, %v12535_v2 }
0x115b   : > { %v12538_v52 = vpop.eup %10018 }
0x115c   : > { %10028 = vpow2.f32 %v8278_v13  ;;  %v8277_v1 = vmul.f32 -1.442695, %v5318_v27  ;;  %v8288_v36 = vadd.f32 -1.0, %v5463_v40  ;;  %v5462_v20 = vmul.f32 2.0, %v12538_v52 }
0x115e   : > { %10030 = vpow2.f32 %v8277_v1  ;;  %5528 = vrot.lane.b32.xlu1 %v8288_v36, %s10431_s18  ;;  %v8287_v11 = vadd.f32 -1.0, %v5462_v20 }
0x1160   : > { %v9198_v28 = vpop.f32.mrf.mxu0  ;;  %5526 = vrot.lane.b32.xlu0 %v8287_v11, %s10431_s18  ;;  %v9172_v11 = vpop.f32.mrf.mxu1 }
0x1161   : > { %v10021_v14 = vpop.eup %10020  ;;  %v5333_v9 = vadd.f32 %v9198_v28, %v9166_v15 }
0x1162   : > { %v5419_v50 = vadd.f32 1.0, %v10021_v14  ;;  %v5327_v25 = vpop.f32.mrf.mxu0  ;;  %v5122_v14 = vpop.f32.mrf.mxu1 }
0x1163   : > { %v10023_v5 = vpop.eup %10022  ;;  %v8280_v55 = vmul.f32 -1.442695, %v5333_v9  ;;  %v5328_v48 = vadd.f32 %v5327_v25, %v5102_v57 }
0x1164   : > { %10032 = vrcp.f32 %v5419_v50  ;;  %v5418_v44 = vadd.f32 1.0, %v10023_v5 }
0x1165   : > { %v12543_v53 = vpop.eup %10024  ;;  %10034 = vpow2.f32 %v8280_v55  ;;  %v8279_v33 = vmul.f32 -1.442695, %v5328_v48 }
0x1166   : > { %10036 = vrcp.f32 %v5418_v44  ;;  %v5465_v54 = vmul.f32 2.0, %v12543_v53 }
0x1167   : > { %v12546_v62 = vpop.eup %10026  ;;  %10038 = vpow2.f32 %v8279_v33 }
0x1168   : > { %v9201_v4 = vpop.f32.mrf.mxu0  ;;  %v8290_v58 = vadd.f32 -1.0, %v5465_v54  ;;  %v5464_v31 = vmul.f32 2.0, %v12546_v62 }
0x1169   : > { %v10029_v24 = vpop.eup %10028  ;;  %v5343_v26 = vadd.f32 %v9201_v4, %v9169_v21 }
0x116a   : > { %v5421_v3 = vadd.f32 1.0, %v10029_v24  ;;  %v5337_v13 = vpop.f32.mrf.mxu0  ;;  %5532 = vrot.lane.b32.xlu1 %v8290_v58, %s10431_s18  ;;  %v8289_v27 = vadd.f32 -1.0, %v5464_v31 }
0x116b   : > { %v10031_v40 = vpop.eup %10030  ;;  %v8282_v1 = vmul.f32 -1.442695, %v5343_v26  ;;  %v5338_v36 = vadd.f32 %v5337_v13, %v5112_v10 }
0x116c   : > { %10040 = vrcp.f32 %v5421_v3  ;;  %v5420_v15 = vadd.f32 1.0, %v10031_v40  ;;  %5530 = vrot.lane.b32.xlu0 %v8289_v27, %s10431_s18  ;;  %v9175_v3 = vpop.f32.mrf.mxu1 }
0x116d   : > { %10042 = vpow2.f32 %v8282_v1  ;;  %v8281_v20 = vmul.f32 -1.442695, %v5338_v36 }
0x116e   : > { %10044 = vrcp.f32 %v5420_v15 }
0x116f   : > { %10046 = vpow2.f32 %v8281_v20 }
0x1171   : > { %v12551_v28 = vpop.eup %10032  ;;  %v9204_v57 = vpop.f32.mrf.mxu0 }
0x1172   : > { %v10035_v9 = vpop.eup %10034  ;;  %v5353_v50 = vadd.f32 %v9204_v57, %v9172_v11  ;;  %v5467_v25 = vmul.f32 2.0, %v12551_v28 }
0x1173   : > { %v12554_v5 = vpop.eup %10036  ;;  %v5423_v55 = vadd.f32 1.0, %v10035_v9  ;;  %v5347_v48 = vpop.f32.mrf.mxu0 }
0x1174   : > { %v10039_v44 = vpop.eup %10038  ;;  %v8284_v21 = vmul.f32 -1.442695, %v5353_v50  ;;  %v5348_v33 = vadd.f32 %v5347_v48, %v5122_v14  ;;  %v8292_v54 = vadd.f32 -1.0, %v5467_v25  ;;  %v5466_v4 = vmul.f32 2.0, %v12554_v5  ;;  %v5132_v14 = vpop.f32.mrf.mxu1 }
0x1175   : > { %10048 = vrcp.f32 %v5423_v55  ;;  %v5422_v10 = vadd.f32 1.0, %v10039_v44 }
0x1176   : > { %10050 = vpow2.f32 %v8284_v21  ;;  %v8283_v58 = vmul.f32 -1.442695, %v5348_v33  ;;  %5536 = vrot.lane.b32.xlu1 %v8292_v54, %s10431_s18  ;;  %v8291_v31 = vadd.f32 -1.0, %v5466_v4 }
0x1177   : > { %10052 = vrcp.f32 %v5422_v10 }
0x1178   : > { %10054 = vpow2.f32 %v8283_v58  ;;  %5534 = vrot.lane.b32.xlu0 %v8291_v31, %s10431_s18 }
0x1179   : > { %v12559_v24 = vpop.eup %10040 }
0x117a   : > { %v10043_v26 = vpop.eup %10042  ;;  %v5469_v13 = vmul.f32 2.0, %v12559_v24 }
0x117b   : > { %v12562_v27 = vpop.eup %10044  ;;  %v5425_v40 = vadd.f32 1.0, %v10043_v26 }
0x117c   : > { %v10047_v1 = vpop.eup %10046  ;;  %v9207_v36 = vpop.f32.mrf.mxu0  ;;  %v8294_v15 = vadd.f32 -1.0, %v5469_v13  ;;  %v5468_v20 = vmul.f32 2.0, %v12562_v27 }
0x117d   : > { %10056 = vrcp.f32 %v5425_v40  ;;  %v5424_v11 = vadd.f32 1.0, %v10047_v1  ;;  %v5363_v57 = vadd.f32 %v9207_v36, %v9175_v3 }
0x117e   : > { %v5357_v9 = vpop.f32.mrf.mxu0  ;;  %5540 = vrot.lane.b32.xlu1 %v8294_v15, %s10431_s18  ;;  %v8293_v50 = vadd.f32 -1.0, %v5468_v20 }
0x117f   : > { %10058 = vrcp.f32 %v5424_v11  ;;  %v8286_v25 = vmul.f32 -1.442695, %v5363_v57  ;;  %v5358_v55 = vadd.f32 %v5357_v9, %v5132_v14 }
0x1180   : > { %5538 = vrot.lane.b32.xlu0 %v8293_v50, %s10431_s18 }
0x1181   : > { %10060 = vpow2.f32 %v8286_v25  ;;  %v8285_v48 = vmul.f32 -1.442695, %v5358_v55 }
0x1182   : > { %v12567_v44 = vpop.eup %10048 }
0x1183   : > { %v10051_v21 = vpop.eup %10050  ;;  %10062 = vpow2.f32 %v8285_v48  ;;  %v5471_v33 = vmul.f32 2.0, %v12567_v44 }
0x1184   : > { %v12570_v54 = vpop.eup %10052  ;;  %v5427_v4 = vadd.f32 1.0, %v10051_v21 }
0x1185   : > { %v10055_v10 = vpop.eup %10054  ;;  %v8296_v58 = vadd.f32 -1.0, %v5471_v33  ;;  %v5470_v31 = vmul.f32 2.0, %v12570_v54 }
0x1186   : > { %10064 = vrcp.f32 %v5427_v4  ;;  %v5426_v26 = vadd.f32 1.0, %v10055_v10 }
0x1187   : > { %5544 = vrot.lane.b32.xlu1 %v8296_v58, %s10431_s18  ;;  %v8295_v3 = vadd.f32 -1.0, %v5470_v31 }
0x1188   : > { %10066 = vrcp.f32 %v5426_v26 }
0x1189   : > { %5542 = vrot.lane.b32.xlu0 %v8295_v3, %s10431_s18 }
0x118a   : > { %v12575_v13 = vpop.eup %10056 }
0x118b   : > { %v5473_v40 = vmul.f32 2.0, %v12575_v13 }
0x118c   : > { %v12578_v1 = vpop.eup %10058 }
0x118d   : > { %v8298_v36 = vadd.f32 -1.0, %v5473_v40  ;;  %v5472_v15 = vmul.f32 2.0, %v12578_v1 }
0x118e   : > { %v10061_v20 = vpop.eup %10060 }
0x118f   : > { %v5429_v11 = vadd.f32 1.0, %v10061_v20  ;;  %5548 = vrot.lane.b32.xlu1 %v8298_v36, %s10431_s18  ;;  %v8297_v57 = vadd.f32 -1.0, %v5472_v15 }
0x1190   : > { %v10063_v14 = vpop.eup %10062 }
0x1191   : > { %10068 = vrcp.f32 %v5429_v11  ;;  %v5428_v9 = vadd.f32 1.0, %v10063_v14  ;;  %5546 = vrot.lane.b32.xlu0 %v8297_v57, %s10431_s18 }
0x1193   : > { %v12583_v50 = vpop.eup %10064  ;;  %10070 = vrcp.f32 %v5428_v9 }
0x1194   : > { %v5475_v25 = vmul.f32 2.0, %v12583_v50 }
0x1195   : > { %v12586_v55 = vpop.eup %10066 }
0x1196   : > { %v8300_v48 = vadd.f32 -1.0, %v5475_v25  ;;  %v5474_v21 = vmul.f32 2.0, %v12586_v55 }
0x1198   : > { %5552 = vrot.lane.b32.xlu1 %v8300_v48, %s10431_s18  ;;  %v8299_v33 = vadd.f32 -1.0, %v5474_v21 }
0x119a   : > { %5550 = vrot.lane.b32.xlu0 %v8299_v33, %s10431_s18 }
0x119e   : > { %v12591_v4 = vpop.eup %10068 }
0x119f   : > { %v5477_v10 = vmul.f32 2.0, %v12591_v4 }
0x11a0   : > { %v12594_v58 = vpop.eup %10070 }
0x11a1   : > { %v8302_v31 = vadd.f32 -1.0, %v5477_v10  ;;  %v5476_v26 = vmul.f32 2.0, %v12594_v58 }
0x11a3   : > { %5556 = vrot.lane.b32.xlu1 %v8302_v31, %s10431_s18  ;;  %v8301_v3 = vadd.f32 -1.0, %v5476_v26 }
0x11a5   : > { %5554 = vrot.lane.b32.xlu0 %v8301_v3, %s10431_s18 }
0x11d0   : > { %v5529_v40 = vpop.permute.xlu1 %5528 }
0x11d1   : > { %v5575_v36 = vmul.f32 %v12535_v2, %v5529_v40 }
0x11d2   : > { %v5527_v15 = vpop.permute.xlu0 %5526 }
0x11d3   : > { %v5574_v20 = vmul.f32 %v12538_v52, %v5527_v15  ;;  %5608 = vrot.lane.b32.xlu1 %v5575_v36, %s10434_s21 }
0x11d5   : > { %5606 = vrot.lane.b32.xlu0 %v5574_v20, %s10434_s21 }
0x11dc   : > { %v5533_v11 = vpop.permute.xlu1 %5532 }
0x11dd   : > { %v5577_v57 = vmul.f32 %v12543_v53, %v5533_v11 }
0x11de   : > { %v5531_v14 = vpop.permute.xlu0 %5530 }
0x11df   : > { %v5576_v9 = vmul.f32 %v12546_v62, %v5531_v14  ;;  %5612 = vrot.lane.b32.xlu1 %v5577_v57, %s10434_s21 }
0x11e1   : > { %5610 = vrot.lane.b32.xlu0 %v5576_v9, %s10434_s21 }
0x11e8   : > { %v5537_v25 = vpop.permute.xlu1 %5536 }
0x11e9   : > { %v5579_v48 = vmul.f32 %v12551_v28, %v5537_v25 }
0x11ea   : > { %v5535_v21 = vpop.permute.xlu0 %5534 }
0x11eb   : > { %v5578_v33 = vmul.f32 %v12554_v5, %v5535_v21  ;;  %5616 = vrot.lane.b32.xlu1 %v5579_v48, %s10434_s21 }
0x11ed   : > { %5614 = vrot.lane.b32.xlu0 %v5578_v33, %s10434_s21 }
0x11f0   : > { %v5541_v10 = vpop.permute.xlu1 %5540 }
0x11f1   : > { %v5581_v31 = vmul.f32 %v12559_v24, %v5541_v10 }
0x11f2   : > { %v5539_v26 = vpop.permute.xlu0 %5538 }
0x11f3   : > { %v5580_v3 = vmul.f32 %v12562_v27, %v5539_v26  ;;  %5620 = vrot.lane.b32.xlu1 %v5581_v31, %s10434_s21 }
0x11f5   : > { %5618 = vrot.lane.b32.xlu0 %v5580_v3, %s10434_s21 }
0x11f9   : > { %v5545_v40 = vpop.permute.xlu1 %5544 }
0x11fa   : > { %v5583_v36 = vmul.f32 %v12567_v44, %v5545_v40  ;;  %v5495_v40 = vmul.f32 %v12535_v2, %v12281_v59  ;;  %v5496_v59 = vmul.f32 %v12546_v62, %v12296_v7  ;;  %v5498_v7 = vmul.f32 %v12554_v5, %v12308_v39 }
0x11fb   : > { %v5543_v15 = vpop.permute.xlu0 %5542  ;;  %v5500_v39 = vmul.f32 %v12562_v27, %v12320_v0  ;;  %v5502_v0 = vmul.f32 %v12570_v54, %v12332_v16  ;;  %v5504_v16 = vmul.f32 %v12578_v1, %v12344_v63  ;;  %v5506_v63 = vmul.f32 %v12586_v55, %v12356_v17 }
0x11fc   : > { %v5582_v20 = vmul.f32 %v12570_v54, %v5543_v15  ;;  %5624 = vrot.lane.b32.xlu1 %v5583_v36, %s10434_s21 }
0x11fe   : > { %5622 = vrot.lane.b32.xlu0 %v5582_v20, %s10434_s21  ;;  %v5494_v20 = vmul.f32 %v12538_v52, %v12286_v42 }
0x1201   : > { %v5549_v11 = vpop.permute.xlu1 %5548 }
0x1202   : > { %v5585_v57 = vmul.f32 %v12575_v13, %v5549_v11 }
0x1203   : > { %v5547_v14 = vpop.permute.xlu0 %5546 }
0x1204   : > { %v5584_v9 = vmul.f32 %v12578_v1, %v5547_v14  ;;  %5628 = vrot.lane.b32.xlu1 %v5585_v57, %s10434_s21  ;;  %v5497_v14 = vmul.f32 %v12543_v53, %v12291_v41  ;;  %v5499_v41 = vmul.f32 %v12551_v28, %v12303_v18  ;;  %v5501_v18 = vmul.f32 %v12559_v24, %v12315_v34 }
0x1206   : > { %5626 = vrot.lane.b32.xlu0 %v5584_v9, %s10434_s21 }
0x120a   : > { %v5553_v25 = vpop.permute.xlu1 %5552 }
0x120b   : > { %v5587_v48 = vmul.f32 %v12583_v50, %v5553_v25 }
0x120c   : > { %v5551_v21 = vpop.permute.xlu0 %5550 }
0x120d   : > { %v5586_v33 = vmul.f32 %v12586_v55, %v5551_v21  ;;  %5632 = vrot.lane.b32.xlu1 %v5587_v48, %s10434_s21 }
0x120f   : > { %5630 = vrot.lane.b32.xlu0 %v5586_v33, %s10434_s21 }
0x1215   : > { %v5557_v10 = vpop.permute.xlu1 %5556 }
0x1216   : > { %v5589_v31 = vmul.f32 %v12591_v4, %v5557_v10 }
0x1217   : > { %v5555_v26 = vpop.permute.xlu0 %5554 }
0x1218   : > { %v5588_v3 = vmul.f32 %v12594_v58, %v5555_v26  ;;  %5636 = vrot.lane.b32.xlu1 %v5589_v31, %s10434_s21 }
0x121a   : > { %5634 = vrot.lane.b32.xlu0 %v5588_v3, %s10434_s21 }
0x1245   : > { %v5609_v36 = vpop.permute.xlu1 %5608 }
0x1246   : > { %v12633_v15 = vadd.f32 %v5609_v36, %v5495_v40 }
0x1247   : > { %v5607_v11 = vpop.permute.xlu0 %5606 }
0x1248   : > { %10072 = vtanh.f32 %v12633_v15  ;;  %v12638_v57 = vadd.f32 %v5607_v11, %v5494_v20 }
0x124a   : > { %10074 = vtanh.f32 %v12638_v57 }
0x1251   : > { %v5613_v9 = vpop.permute.xlu1 %5612 }
0x1252   : > { %v12643_v25 = vadd.f32 %v5613_v9, %v5497_v14 }
0x1253   : > { %v5611_v48 = vpop.permute.xlu0 %5610 }
0x1254   : > { %10076 = vtanh.f32 %v12643_v25  ;;  %v12648_v42 = vadd.f32 %v5611_v48, %v5496_v59  ;;  %v5503_v48 = vmul.f32 %v12567_v44, %v12326_v32  ;;  %v5505_v32 = vmul.f32 %v12575_v13, %v12338_v38 }
0x1255   : > { %v10073_v21 = vpop.eup %10072  ;;  %v5507_v38 = vmul.f32 %v12583_v50, %v12350_v45 }
0x1256   : > { %10078 = vtanh.f32 %v12648_v42  ;;  %5704 = vrot.lane.b32.xlu1 %v10073_v21, %s10431_s18 }
0x1257   : > { %v10075_v33 = vpop.eup %10074 }
0x1258   : > { %5702 = vrot.lane.b32.xlu0 %v10075_v33, %s10431_s18 }
0x125d   : > { %v5617_v10 = vpop.permute.xlu1 %5616 }
0x125e   : > { %v12655_v31 = vadd.f32 %v5617_v10, %v5499_v41 }
0x125f   : > { %v5615_v26 = vpop.permute.xlu0 %5614 }
0x1260   : > { %10080 = vtanh.f32 %v12655_v31  ;;  %v12660_v3 = vadd.f32 %v5615_v26, %v5498_v7 }
0x1261   : > { %v10077_v40 = vpop.eup %10076 }
0x1262   : > { %10082 = vtanh.f32 %v12660_v3  ;;  %5708 = vrot.lane.b32.xlu1 %v10077_v40, %s10431_s18 }
0x1263   : > { %v10079_v36 = vpop.eup %10078 }
0x1264   : > { %5706 = vrot.lane.b32.xlu0 %v10079_v36, %s10431_s18 }
0x1265   : > { %v5621_v20 = vpop.permute.xlu1 %5620 }
0x1266   : > { %v12667_v11 = vadd.f32 %v5621_v20, %v5501_v18 }
0x1267   : > { %v5619_v14 = vpop.permute.xlu0 %5618 }
0x1268   : > { %10084 = vtanh.f32 %v12667_v11  ;;  %v12672_v9 = vadd.f32 %v5619_v14, %v5500_v39 }
0x126a   : > { %10086 = vtanh.f32 %v12672_v9 }
0x126d   : > { %v10081_v59 = vpop.eup %10080 }
0x126e   : > { %v5625_v21 = vpop.permute.xlu1 %5624  ;;  %5712 = vrot.lane.b32.xlu1 %v10081_v59, %s10431_s18 }
0x126f   : > { %v10083_v34 = vpop.eup %10082  ;;  %v12678_v33 = vadd.f32 %v5625_v21, %v5503_v48 }
0x1270   : > { %v5623_v41 = vpop.permute.xlu0 %5622  ;;  %5710 = vrot.lane.b32.xlu0 %v10083_v34, %s10431_s18 }
0x1271   : > { %10088 = vtanh.f32 %v12678_v33  ;;  %v12684_v10 = vadd.f32 %v5623_v41, %v5502_v0  ;;  %v5509_v41 = vmul.f32 %v12591_v4, %v12363_v60 }
0x1273   : > { %10090 = vtanh.f32 %v12684_v10 }
0x1275   : > { %v10085_v7 = vpop.eup %10084 }
0x1276   : > { %v5629_v26 = vpop.permute.xlu1 %5628  ;;  %5716 = vrot.lane.b32.xlu1 %v10085_v7, %s10431_s18 }
0x1277   : > { %v10087_v40 = vpop.eup %10086  ;;  %v12690_v36 = vadd.f32 %v5629_v26, %v5505_v32  ;;  %v5508_v32 = vmul.f32 %v12594_v58, %v12368_v47  ;;  %v12738_v47 = vld [vmem:[%s13352_s1 + $0x22] sm:$0x3] }
0x1278   : > { %v5627_v18 = vpop.permute.xlu0 %5626  ;;  %5714 = vrot.lane.b32.xlu0 %v10087_v40, %s10431_s18  ;;  %9266 = vmatprep.subr.msk.mxu1 %vm244_vm0, %v12738_v47 }
0x1279   : > { %10092 = vtanh.f32 %v12690_v36  ;;  %v12696_v20 = vadd.f32 %v5627_v18, %v5504_v16 }
0x127b   : > { %10094 = vtanh.f32 %v12696_v20 }
0x127e   : > { %v10089_v39 = vpop.eup %10088 }
0x127f   : > { %v5633_v14 = vpop.permute.xlu1 %5632  ;;  %5720 = vrot.lane.b32.xlu1 %v10089_v39, %s10431_s18 }
0x1280   : > { %v10091_v59 = vpop.eup %10090  ;;  %v12702_v48 = vadd.f32 %v5633_v14, %v5507_v38 }
0x1281   : > { %v5631_v21 = vpop.permute.xlu0 %5630  ;;  %5718 = vrot.lane.b32.xlu0 %v10091_v59, %s10431_s18 }
0x1282   : > { %10096 = vtanh.f32 %v12702_v48  ;;  %v12708_v34 = vadd.f32 %v5631_v21, %v5506_v63 }
0x1284   : > { %10098 = vtanh.f32 %v12708_v34 }
0x1286   : > { %v10093_v0 = vpop.eup %10092 }
0x1287   : > { %5724 = vrot.lane.b32.xlu1 %v10093_v0, %s10431_s18 }
0x1288   : > { %v10095_v45 = vpop.eup %10094 }
0x1289   : > { %5722 = vrot.lane.b32.xlu0 %v10095_v45, %s10431_s18 }
0x128a   : > { %v5637_v7 = vpop.permute.xlu1 %5636 }
0x128b   : > { %v12715_v17 = vadd.f32 %v5637_v7, %v5509_v41 }
0x128c   : > { %v5635_v26 = vpop.permute.xlu0 %5634 }
0x128d   : > { %10100 = vtanh.f32 %v12715_v17  ;;  %v12720_v40 = vadd.f32 %v5635_v26, %v5508_v32 }
0x128f   : > { %v10097_v16 = vpop.eup %10096  ;;  %10102 = vtanh.f32 %v12720_v40 }
0x1290   : > { %5728 = vrot.lane.b32.xlu1 %v10097_v16, %s10431_s18 }
0x1291   : > { %v10099_v18 = vpop.eup %10098 }
0x1292   : > { %5726 = vrot.lane.b32.xlu0 %v10099_v18, %s10431_s18 }
0x129a   : > { %v10101_v60 = vpop.eup %10100 }
0x129b   : > { %5732 = vrot.lane.b32.xlu1 %v10101_v60, %s10431_s18 }
0x129c   : > { %v10103_v39 = vpop.eup %10102 }
0x129d   : > { %5730 = vrot.lane.b32.xlu0 %v10103_v39, %s10431_s18 }
0x12a1   : > { %5766 = vrot.lane.b32.xlu0 %v12376_v51, %s10440_s22 }
0x12a5   : > { %5768 = vrot.lane.b32.xlu0 %v12381_v19, %s10440_s22 }
0x12a9   : > { %5770 = vrot.lane.b32.xlu0 %v12386_v56, %s10440_s22 }
0x12ad   : > { %5772 = vrot.lane.b32.xlu0 %v12391_v49, %s10440_s22 }
0x12b1   : > { %5774 = vrot.lane.b32.xlu0 %v12396_v35, %s10440_s22 }
0x12b5   : > { %5776 = vrot.lane.b32.xlu0 %v12401_v46, %s10440_s22 }
0x12b9   : > { %5778 = vrot.lane.b32.xlu0 %v12406_v30, %s10440_s22 }
0x12bd   : > { %5780 = vrot.lane.b32.xlu0 %v12411_v23, %s10440_s22 }
0x12c1   : > { %5782 = vrot.lane.b32.xlu0 %v12416_v8, %s10440_s22 }
0x12c5   : > { %5784 = vrot.lane.b32.xlu0 %v12421_v29, %s10440_s22 }
0x12c8   : > { %v5705_v51 = vpop.permute.xlu1 %5704 }
0x12c9   : > { %5786 = vrot.lane.b32.xlu0 %v12426_v37, %s10440_s22  ;;  %v5751_v19 = vmul.f32 %v12535_v2, %v5705_v51 }
0x12ca   : > { %v5703_v56 = vpop.permute.xlu0 %5702 }
0x12cb   : > { %5993 = vrot.lane.b32.xlu1 %v5751_v19, %s10434_s21  ;;  %v5750_v49 = vmul.f32 %v12538_v52, %v5703_v56 }
0x12cd   : > { %5788 = vrot.lane.b32.xlu0 %v12433_v43, %s10440_s22 }
0x12cf   : > { %5991 = vrot.lane.b32.xlu1 %v5750_v49, %s10434_s21 }
0x12d1   : > { %5790 = vrot.lane.b32.xlu0 %v12440_v6, %s10440_s22 }
0x12d4   : > { %v5709_v35 = vpop.permute.xlu1 %5708 }
0x12d5   : > { %5792 = vrot.lane.b32.xlu0 %v12445_v22, %s10440_s22  ;;  %v5753_v46 = vmul.f32 %v12543_v53, %v5709_v35 }
0x12d6   : > { %v5707_v30 = vpop.permute.xlu0 %5706 }
0x12d7   : > { %5997 = vrot.lane.b32.xlu1 %v5753_v46, %s10434_s21  ;;  %v5752_v23 = vmul.f32 %v12546_v62, %v5707_v30 }
0x12d9   : > { %5794 = vrot.lane.b32.xlu0 %v12452_v61, %s10440_s22 }
0x12db   : > { %5995 = vrot.lane.b32.xlu1 %v5752_v23, %s10434_s21 }
0x12dd   : > { %5796 = vrot.lane.b32.xlu0 %v12459_v12, %s10440_s22 }
0x12e0   : > { %v5713_v8 = vpop.permute.xlu1 %5712 }
0x12e1   : > { %v5755_v29 = vmul.f32 %v12551_v28, %v5713_v8 }
0x12e2   : > { %v5711_v37 = vpop.permute.xlu0 %5710 }
0x12e3   : > { %6001 = vrot.lane.b32.xlu1 %v5755_v29, %s10434_s21  ;;  %v5754_v43 = vmul.f32 %v12554_v5, %v5711_v37 }
0x12e7   : > { %5999 = vrot.lane.b32.xlu1 %v5754_v43, %s10434_s21 }
0x12e8   : > { %v5717_v6 = vpop.permute.xlu1 %5716 }
0x12e9   : > { %v5757_v22 = vmul.f32 %v12559_v24, %v5717_v6 }
0x12ea   : > { %v5715_v2 = vpop.permute.xlu0 %5714 }
0x12eb   : > { %6005 = vrot.lane.b32.xlu1 %v5757_v22, %s10434_s21  ;;  %v5756_v61 = vmul.f32 %v12562_v27, %v5715_v2 }
0x12ef   : > { %6003 = vrot.lane.b32.xlu1 %v5756_v61, %s10434_s21 }
0x12f1   : > { %v5721_v12 = vpop.permute.xlu1 %5720 }
0x12f2   : > { %v5759_v52 = vmul.f32 %v12567_v44, %v5721_v12 }
0x12f3   : > { %v5719_v53 = vpop.permute.xlu0 %5718 }
0x12f4   : > { %6009 = vrot.lane.b32.xlu1 %v5759_v52, %s10434_s21  ;;  %v5758_v62 = vmul.f32 %v12570_v54, %v5719_v53 }
0x12f8   : > { %6007 = vrot.lane.b32.xlu1 %v5758_v62, %s10434_s21 }
0x12f9   : > { %v5725_v28 = vpop.permute.xlu1 %5724 }
0x12fa   : > { %v5761_v5 = vmul.f32 %v12575_v13, %v5725_v28 }
0x12fb   : > { %v5723_v24 = vpop.permute.xlu0 %5722 }
0x12fc   : > { %6013 = vrot.lane.b32.xlu1 %v5761_v5, %s10434_s21  ;;  %v5760_v27 = vmul.f32 %v12578_v1, %v5723_v24 }
0x1300   : > { %6011 = vrot.lane.b32.xlu1 %v5760_v27, %s10434_s21 }
0x1302   : > { %v5729_v38 = vpop.permute.xlu1 %5728 }
0x1303   : > { %v5763_v44 = vmul.f32 %v12583_v50, %v5729_v38 }
0x1304   : > { %v5727_v14 = vpop.permute.xlu0 %5726 }
0x1305   : > { %6017 = vrot.lane.b32.xlu1 %v5763_v44, %s10434_s21  ;;  %v5762_v54 = vmul.f32 %v12586_v55, %v5727_v14 }
0x1309   : > { %6015 = vrot.lane.b32.xlu1 %v5762_v54, %s10434_s21 }
0x130d   : > { %v5733_v63 = vpop.permute.xlu1 %5732 }
0x130e   : > { %v5765_v1 = vmul.f32 %v12591_v4, %v5733_v63 }
0x130f   : > { %v5731_v59 = vpop.permute.xlu0 %5730 }
0x1310   : > { %v5764_v13 = vmul.f32 %v12594_v58, %v5731_v59 }
0x1312   : > { %6019 = vrot.lane.b32.xlu1 %v5764_v13, %s10434_s21 }
0x1313   : > { %v5767_v21 = vpop.permute.xlu0 %5766 }
0x1314   : > { %9210 = vmatprep.mubr.msk.f32.mxu1 %vm195_vm1, %v5767_v21 }
0x1316   : > { %6021 = vrot.lane.b32.xlu1 %v5765_v1, %s10434_s21 }
0x1317   : > { %v5769_v50 = vpop.permute.xlu0 %5768 }
0x1318   : > { %9211 = vmatmul.mubr.msk.f32.vlgmr.msra.gmra.mxu1 %vm195_vm1, %v5769_v50 }
0x1319   : > { %9267 = vmatpush3.msk.msra.mxu1 %vm244_vm0, %v12738_v47 }
0x131b   : > { %v5771_v55 = vpop.permute.xlu0 %5770 }
0x131c   : > { %9213 = vmatprep.mubr.msk.f32.mxu1 %vm195_vm1, %v5771_v55 }
0x131f   : > { %v5773_v58 = vpop.permute.xlu0 %5772 }
0x1320   : > { %9214 = vmatmul.mubr.msk.f32.gmra.mxu1 %vm195_vm1, %v5773_v58 }
0x1323   : > { %v5775_v0 = vpop.permute.xlu0 %5774 }
0x1324   : > { %9216 = vmatprep.mubr.msk.f32.mxu1 %vm195_vm1, %v5775_v0 }
0x1327   : > { %v5777_v4 = vpop.permute.xlu0 %5776 }
0x1328   : > { %9217 = vmatmul.mubr.msk.f32.gmra.mxu1 %vm195_vm1, %v5777_v4 }
0x132b   : > { %v5779_v45 = vpop.permute.xlu0 %5778 }
0x132c   : > { %9219 = vmatprep.mubr.msk.f32.mxu1 %vm195_vm1, %v5779_v45 }
0x132f   : > { %v5781_v41 = vpop.permute.xlu0 %5780 }
0x1330   : > { %9220 = vmatmul.mubr.msk.f32.gmra.mxu1 %vm195_vm1, %v5781_v41 }
0x1333   : > { %v5783_v7 = vpop.permute.xlu0 %5782 }
0x1334   : > { %9222 = vmatprep.mubr.msk.f32.mxu1 %vm195_vm1, %v5783_v7 }
0x1337   : > { %v5785_v32 = vpop.permute.xlu0 %5784 }
0x1338   : > { %9223 = vmatmul.mubr.msk.f32.gmra.mxu1 %vm195_vm1, %v5785_v32 }
0x133b   : > { %v5787_v26 = vpop.permute.xlu0 %5786 }
0x133c   : > { %9225 = vmatprep.mubr.msk.f32.mxu1 %vm195_vm1, %v5787_v26 }
0x133d   : > { %v5994_v16 = vpop.permute.xlu1 %5993 }
0x133f   : > { %v5789_v18 = vpop.permute.xlu0 %5788 }
0x1340   : > { %9226 = vmatmul.mubr.msk.f32.gmra.mxu1 %vm195_vm1, %v5789_v18 }
0x1341   : > { %v5992_v60 = vpop.permute.xlu1 %5991 }
0x1342   : > { %9242 = vmatprep.mubr.msk.f32.mxu0 %vm954_vm2, %v5992_v60 }
0x1343   : > { %v5791_v39 = vpop.permute.xlu0 %5790  ;;  %9243 = vmatmul.mubr.msk.f32.vlgmr.msra.gmra.mxu0 %vm954_vm2, %v5994_v16 }
0x1344   : > { %9228 = vmatprep.mubr.msk.f32.mxu1 %vm195_vm1, %v5791_v39 }
0x1347   : > { %v5793_v47 = vpop.permute.xlu0 %5792 }
0x1348   : > { %9229 = vmatmul.mubr.msk.f32.gmra.mxu1 %vm195_vm1, %v5793_v47 }
0x1349   : > { %v5998_v51 = vpop.permute.xlu1 %5997 }
0x134b   : > { %v5795_v19 = vpop.permute.xlu0 %5794 }
0x134c   : > { %9231 = vmatprep.mubr.msk.f32.mxu1 %vm195_vm1, %v5795_v19 }
0x134d   : > { %v5996_v56 = vpop.permute.xlu1 %5995 }
0x134e   : > { %9245 = vmatprep.mubr.msk.f32.mxu0 %vm954_vm2, %v5996_v56 }
0x134f   : > { %v5797_v49 = vpop.permute.xlu0 %5796  ;;  %9246 = vmatmul.mubr.msk.f32.gmra.mxu0 %vm954_vm2, %v5998_v51 }
0x1350   : > { %9232 = vmatmul.mubr.msk.f32.gmra.mxu1 %vm195_vm1, %v5797_v49 }
0x1351   : > { %9268 = vmatprep.mubr.msk.f32.mxu1 %vm195_vm1, %v5767_v21 }
0x1354   : > { %9269 = vmatmul.mubr.msk.f32.vlgmr.msra.gmra.mxu1 %vm195_vm1, %v5769_v50 }
0x1355   : > { %9271 = vmatprep.mubr.msk.f32.mxu1 %vm195_vm1, %v5771_v55  ;;  %v6002_v35 = vpop.permute.xlu1 %6001 }
0x1358   : > { %9272 = vmatmul.mubr.msk.f32.gmra.mxu1 %vm195_vm1, %v5773_v58 }
0x1359   : > { %9274 = vmatprep.mubr.msk.f32.mxu1 %vm195_vm1, %v5775_v0  ;;  %v6000_v46 = vpop.permute.xlu1 %5999 }
0x135a   : > { %9248 = vmatprep.mubr.msk.f32.mxu0 %vm954_vm2, %v6000_v46 }
0x135b   : > { %9249 = vmatmul.mubr.msk.f32.gmra.mxu0 %vm954_vm2, %v6002_v35 }
0x135c   : > { %9275 = vmatmul.mubr.msk.f32.gmra.mxu1 %vm195_vm1, %v5777_v4 }
0x135d   : > { %9277 = vmatprep.mubr.msk.f32.mxu1 %vm195_vm1, %v5779_v45  ;;  %v6006_v30 = vpop.permute.xlu1 %6005 }
0x1360   : > { %9278 = vmatmul.mubr.msk.f32.gmra.mxu1 %vm195_vm1, %v5781_v41 }
0x1361   : > { %9280 = vmatprep.mubr.msk.f32.mxu1 %vm195_vm1, %v5783_v7  ;;  %v6004_v23 = vpop.permute.xlu1 %6003 }
0x1362   : > { %9251 = vmatprep.mubr.msk.f32.mxu0 %vm954_vm2, %v6004_v23 }
0x1363   : > { %9252 = vmatmul.mubr.msk.f32.gmra.mxu0 %vm954_vm2, %v6006_v30 }
0x1364   : > { %9281 = vmatmul.mubr.msk.f32.gmra.mxu1 %vm195_vm1, %v5785_v32 }
0x1365   : > { %9283 = vmatprep.mubr.msk.f32.mxu1 %vm195_vm1, %v5787_v26 }
0x1366   : > { %v6010_v8 = vpop.permute.xlu1 %6009 }
0x1368   : > { %9284 = vmatmul.mubr.msk.f32.gmra.mxu1 %vm195_vm1, %v5789_v18 }
0x1369   : > { %9286 = vmatprep.mubr.msk.f32.mxu1 %vm195_vm1, %v5791_v39 }
0x136a   : > { %v6008_v29 = vpop.permute.xlu1 %6007 }
0x136b   : > { %9254 = vmatprep.mubr.msk.f32.mxu0 %vm954_vm2, %v6008_v29 }
0x136c   : > { %9287 = vmatmul.mubr.msk.f32.gmra.mxu1 %vm195_vm1, %v5793_v47  ;;  %9255 = vmatmul.mubr.msk.f32.gmra.mxu0 %vm954_vm2, %v6010_v8 }
0x136d   : > { %9289 = vmatprep.mubr.msk.f32.mxu1 %vm195_vm1, %v5795_v19 }
0x136e   : > { %v6014_v37 = vpop.permute.xlu1 %6013 }
0x1370   : > { %9290 = vmatmul.mubr.msk.f32.gmra.mxu1 %vm195_vm1, %v5797_v49 }
0x1372   : > { %v6012_v43 = vpop.permute.xlu1 %6011 }
0x1373   : > { %9257 = vmatprep.mubr.msk.f32.mxu0 %vm954_vm2, %v6012_v43 }
0x1374   : > { %9258 = vmatmul.mubr.msk.f32.gmra.mxu0 %vm954_vm2, %v6014_v37 }
0x1377   : > { %v6018_v6 = vpop.permute.xlu1 %6017 }
0x137b   : > { %v6016_v22 = vpop.permute.xlu1 %6015 }
0x137c   : > { %9260 = vmatprep.mubr.msk.f32.mxu0 %vm954_vm2, %v6016_v22 }
0x137d   : > { %9261 = vmatmul.mubr.msk.f32.gmra.mxu0 %vm954_vm2, %v6018_v6 }
0x1384   : > { %v6020_v2 = vpop.permute.xlu1 %6019 }
0x1385   : > { %9263 = vmatprep.mubr.msk.f32.mxu0 %vm954_vm2, %v6020_v2 }
0x1388   : > { %v6022_v61 = vpop.permute.xlu1 %6021 }
0x1389   : > { %9264 = vmatmul.mubr.msk.f32.gmra.mxu0 %vm954_vm2, %v6022_v61 }
0x13d8   : > { %v9212_v12 = vpop.f32.mrf.mxu1 }
0x13da   : > { %v5896_v52 = vpop.f32.mrf.mxu1 }
0x13e0   : > { %v9215_v53 = vpop.f32.mrf.mxu1 }
0x13e2   : > { %v5906_v62 = vpop.f32.mrf.mxu1 }
0x13e8   : > { %v9218_v28 = vpop.f32.mrf.mxu1 }
0x13ea   : > { %v5916_v5 = vpop.f32.mrf.mxu1 }
0x13f0   : > { %v9221_v24 = vpop.f32.mrf.mxu1 }
0x13f2   : > { %v5926_v27 = vpop.f32.mrf.mxu1 }
0x13f8   : > { %v12848_v38 = vpop.f32.mrf.mxu1 }
0x13fa   : > { %v12850_v44 = vpop.f32.mrf.mxu1 }
0x1400   : > { %v12852_v54 = vpop.f32.mrf.mxu1 }
0x1402   : > { %v12854_v63 = vpop.f32.mrf.mxu1 }
0x1403   : > { %v9244_v14 = vpop.f32.mrf.mxu0 }
0x1404   : > { %v6127_v50 = vadd.f32 %v9244_v14, %v9212_v12 }
0x1405   : > { %v6121_v59 = vpop.f32.mrf.mxu0 }
0x1406   : > { %v6122_v13 = vadd.f32 %v6121_v59, %v5896_v52  ;;  %v8337_v0 = vmul.f32 -1.442695, %v6127_v50 }
0x1408   : > { %v8336_v21 = vmul.f32 -1.442695, %v6122_v13  ;;  %v12856_v1 = vpop.f32.mrf.mxu1 }
0x140a   : > { %10104 = vpow2.f32 %v8336_v21  ;;  %v12858_v55 = vpop.f32.mrf.mxu1 }
0x140b   : > { %10106 = vpow2.f32 %v8337_v0 }
0x140f   : > { %v9247_v58 = vpop.f32.mrf.mxu0 }
0x1410   : > { %v12860_v4 = vpop.f32.mrf.mxu1  ;;  %v6137_v45 = vadd.f32 %v9247_v58, %v9215_v53 }
0x1411   : > { %v6131_v41 = vpop.f32.mrf.mxu0 }
0x1412   : > { %v12862_v7 = vpop.f32.mrf.mxu1  ;;  %v6132_v32 = vadd.f32 %v6131_v41, %v5906_v62  ;;  %v8339_v26 = vmul.f32 -1.442695, %v6137_v45 }
0x1414   : > { %v8338_v16 = vmul.f32 -1.442695, %v6132_v32  ;;  %v12864_v18 = vpop.f32.mrf.mxu1 }
0x1416   : > { %10108 = vpow2.f32 %v8338_v16  ;;  %v6669_v60 = vpop.f32.mrf.mxu1 }
0x1417   : > { %v10105_v39 = vpop.eup %10104  ;;  %v8385_v47 = vmul.f32 -1.442695, %v6669_v60  ;;  %10110 = vpow2.f32 %v8339_v26 }
0x1418   : > { %v6248_v51 = vadd.f32 1.0, %v10105_v39  ;;  %v10107_v23 = vpop.eup %10106 }
0x1419   : > { %10112 = vpow2.f32 %v8385_v47  ;;  %v6249_v37 = vadd.f32 1.0, %v10107_v23 }
0x141a   : > { %10114 = vrcp.f32 %v6248_v51 }
0x141b   : > { %v9250_v19 = vpop.f32.mrf.mxu0 }
0x141c   : > { %v6147_v56 = vadd.f32 %v9250_v19, %v9218_v28 }
0x141d   : > { %v6141_v49 = vpop.f32.mrf.mxu0 }
0x141e   : > { %v8341_v35 = vmul.f32 -1.442695, %v6147_v56  ;;  %v6142_v46 = vadd.f32 %v6141_v49, %v5916_v5 }
0x1420   : > { %10116 = vpow2.f32 %v8341_v35  ;;  %v8340_v30 = vmul.f32 -1.442695, %v6142_v46 }
0x1422   : > { %10118 = vpow2.f32 %v8340_v30 }
0x1423   : > { %v10109_v8 = vpop.eup %10108  ;;  %v9253_v29 = vpop.f32.mrf.mxu0 }
0x1424   : > { %v6250_v43 = vadd.f32 1.0, %v10109_v8  ;;  %v6157_v6 = vadd.f32 %v9253_v29, %v9221_v24  ;;  %v10111_v22 = vpop.eup %10110 }
0x1425   : > { %v6151_v2 = vpop.f32.mrf.mxu0  ;;  %v6251_v5 = vadd.f32 1.0, %v10111_v22 }
0x1426   : > { %v10113_v61 = vpop.eup %10112  ;;  %10120 = vrcp.f32 %v6250_v43  ;;  %v8343_v12 = vmul.f32 -1.442695, %v6157_v6  ;;  %v6152_v52 = vadd.f32 %v6151_v2, %v5926_v27 }
0x1427   : > { %v12866_v53 = vpop.eup %10114  ;;  %v6796_v62 = vadd.f32 1.0, %v10113_v61  ;;  %10122 = vrcp.f32 %v6249_v37 }
0x1428   : > { %v6296_v28 = vmul.f32 2.0, %v12866_v53  ;;  %v8342_v14 = vmul.f32 -1.442695, %v6152_v52 }
0x1429   : > { %10124 = vrcp.f32 %v6796_v62 }
0x142a   : > { %10126 = vpow2.f32 %v8343_v12  ;;  %v8352_v59 = vadd.f32 -1.0, %v6296_v28 }
0x142b   : > { %10128 = vrcp.f32 %v6251_v5  ;;  %v9273_v5 = vpop.f32.mrf.mxu1 }
0x142c   : > { %6360 = vrot.lane.b32.xlu0 %v8352_v59, %s10431_s18  ;;  %10130 = vpow2.f32 %v8342_v14  ;;  %v9256_v21 = vpop.f32.mrf.mxu0 }
0x142d   : > { %v10117_v24 = vpop.eup %10116  ;;  %v6167_v58 = vadd.f32 %v9256_v21, %v12848_v38  ;;  %v6679_v21 = vpop.f32.mrf.mxu1 }
0x142e   : > { %v6253_v13 = vadd.f32 1.0, %v10117_v24  ;;  %v6161_v0 = vpop.f32.mrf.mxu0 }
0x142f   : > { %v10119_v50 = vpop.eup %10118  ;;  %v8345_v16 = vmul.f32 -1.442695, %v6167_v58  ;;  %v6162_v60 = vadd.f32 %v6161_v0, %v12850_v44  ;;  %v8387_v0 = vmul.f32 -1.442695, %v6679_v21 }
0x1430   : > { %v6252_v27 = vadd.f32 1.0, %v10119_v50  ;;  %10132 = vrcp.f32 %v6253_v13 }
0x1431   : > { %v8344_v35 = vmul.f32 -1.442695, %v6162_v60 }
0x1432   : > { %10134 = vrcp.f32 %v6252_v27 }
0x1433   : > { %v12871_v45 = vpop.eup %10120  ;;  %10136 = vpow2.f32 %v8345_v16 }
0x1434   : > { %v9259_v41 = vpop.f32.mrf.mxu0  ;;  %v6298_v32 = vmul.f32 2.0, %v12871_v45  ;;  %v12874_v26 = vpop.eup %10122 }
0x1435   : > { %v6297_v49 = vmul.f32 2.0, %v12874_v26  ;;  %v6177_v46 = vadd.f32 %v9259_v41, %v12852_v54 }
0x1436   : > { %v12877_v39 = vpop.eup %10124  ;;  %v8354_v47 = vadd.f32 -1.0, %v6298_v32  ;;  %v6171_v19 = vpop.f32.mrf.mxu0 }
0x1437   : > { %v10127_v51 = vpop.eup %10126  ;;  %v6844_v56 = vmul.f32 2.0, %v12877_v39  ;;  %v6172_v44 = vadd.f32 %v6171_v19, %v12854_v63  ;;  %v8347_v37 = vmul.f32 -1.442695, %v6177_v46  ;;  %v8353_v6 = vadd.f32 -1.0, %v6297_v49  ;;  %v9276_v32 = vpop.f32.mrf.mxu1 }
0x1438   : > { %v6255_v38 = vadd.f32 1.0, %v10127_v51  ;;  %6364 = vrot.lane.b32.xlu0 %v8354_v47, %s10431_s18  ;;  %v12883_v23 = vpop.eup %10128  ;;  %v8388_v19 = vmul.f32 -1.442695, %v9273_v5 }
0x1439   : > { %v8401_v30 = vadd.f32 -1.0, %v6844_v56  ;;  %v10131_v8 = vpop.eup %10130  ;;  %v6299_v22 = vmul.f32 2.0, %v12883_v23  ;;  %v8346_v54 = vmul.f32 -1.442695, %v6172_v44 }
0x143a   : > { %10138 = vrcp.f32 %v6255_v38  ;;  %v6254_v29 = vadd.f32 1.0, %v10131_v8 }
0x143b   : > { %6892 = vrot.lane.b32.xlu1 %v8401_v30, %s10431_s18  ;;  %10140 = vpow2.f32 %v8344_v35  ;;  %v8355_v14 = vadd.f32 -1.0, %v6299_v22  ;;  %v6689_v30 = vpop.f32.mrf.mxu1 }
0x143c   : > { %10142 = vrcp.f32 %v6254_v29 }
0x143d   : > { %v9262_v43 = vpop.f32.mrf.mxu0  ;;  %v12888_v2 = vpop.eup %10132  ;;  %10144 = vpow2.f32 %v8347_v37 }
0x143e   : > { %v6187_v61 = vadd.f32 %v9262_v43, %v12856_v1  ;;  %v6301_v59 = vmul.f32 2.0, %v12888_v2  ;;  %10146 = vpow2.f32 %v8346_v54  ;;  %v8386_v1 = vmul.f32 -1.442695, %v12864_v18  ;;  %v9279_v22 = vpop.f32.mrf.mxu1 }
0x143f   : > { %v12891_v12 = vpop.eup %10134  ;;  %v6181_v52 = vpop.f32.mrf.mxu0  ;;  %6362 = vrot.lane.b32.xlu1 %v8353_v6, %s10431_s18 }
0x1440   : > { %v8349_v63 = vmul.f32 -1.442695, %v6187_v61  ;;  %v6182_v62 = vadd.f32 %v6181_v52, %v12858_v55  ;;  %v6300_v28 = vmul.f32 2.0, %v12891_v12  ;;  %v8357_v55 = vadd.f32 -1.0, %v6301_v59  ;;  %v10137_v50 = vpop.eup %10136 }
0x1441   : > { %v6257_v58 = vadd.f32 1.0, %v10137_v50  ;;  %v8389_v61 = vmul.f32 -1.442695, %v6689_v30 }
0x1442   : > { %v8348_v24 = vmul.f32 -1.442695, %v6182_v62  ;;  %v8356_v13 = vadd.f32 -1.0, %v6300_v28  ;;  %10148 = vpow2.f32 %v8349_v63  ;;  %v8390_v62 = vmul.f32 -1.442695, %v9276_v32  ;;  %v6699_v28 = vpop.f32.mrf.mxu1 }
0x1443   : > { %6366 = vrot.lane.b32.xlu1 %v8355_v14, %s10431_s18  ;;  %v8391_v59 = vmul.f32 -1.442695, %v6699_v28  ;;  %v8392_v32 = vmul.f32 -1.442695, %v9279_v22 }
0x1444   : > { %6368 = vrot.lane.b32.xlu0 %v8356_v13, %s10431_s18  ;;  %10150 = vpow2.f32 %v8348_v24 }
0x1445   : > { %10152 = vpow2.f32 %v8386_v1 }
0x1446   : > { %10154 = vrcp.f32 %v6257_v58 }
0x1447   : > { %v12900_v27 = vpop.eup %10138  ;;  %6370 = vrot.lane.b32.xlu1 %v8357_v55, %s10431_s18  ;;  %10156 = vpow2.f32 %v8387_v0  ;;  %v9282_v55 = vpop.f32.mrf.mxu1 }
0x1448   : > { %v6303_v41 = vmul.f32 2.0, %v12900_v27  ;;  %v10141_v60 = vpop.eup %10140 }
0x1449   : > { %v9265_v16 = vpop.f32.mrf.mxu0  ;;  %v12905_v51 = vpop.eup %10142  ;;  %v6256_v56 = vadd.f32 1.0, %v10141_v60 }
0x144a   : > { %v6197_v18 = vadd.f32 %v9265_v16, %v12860_v4  ;;  %v8359_v47 = vadd.f32 -1.0, %v6303_v41  ;;  %v6302_v46 = vmul.f32 2.0, %v12905_v51  ;;  %v10145_v44 = vpop.eup %10144 }
0x144b   : > { %v6191_v38 = vpop.f32.mrf.mxu0  ;;  %10158 = vrcp.f32 %v6256_v56  ;;  %v10147_v4 = vpop.eup %10146  ;;  %v6259_v29 = vadd.f32 1.0, %v10145_v44 }
0x144c   : > { %v8351_v49 = vmul.f32 -1.442695, %v6197_v18  ;;  %v6192_v35 = vadd.f32 %v6191_v38, %v12862_v7  ;;  %6374 = vrot.lane.b32.xlu1 %v8359_v47, %s10431_s18  ;;  %v8358_v8 = vadd.f32 -1.0, %v6302_v46  ;;  %v6258_v43 = vadd.f32 1.0, %v10147_v4  ;;  %v6709_v47 = vpop.f32.mrf.mxu1 }
0x144d   : > { %v8393_v4 = vmul.f32 -1.442695, %v6709_v47 }
0x144e   : > { %10160 = vpow2.f32 %v8351_v49  ;;  %v8350_v6 = vmul.f32 -1.442695, %v6192_v35  ;;  %6372 = vrot.lane.b32.xlu0 %v8358_v8, %s10431_s18 }
0x144f   : > { %v10149_v37 = vpop.eup %10148  ;;  %10162 = vpow2.f32 %v8388_v19 }
0x1450   : > { %10164 = vrcp.f32 %v6259_v29  ;;  %v6261_v7 = vadd.f32 1.0, %v10149_v37  ;;  %v9285_v29 = vpop.f32.mrf.mxu1 }
0x1451   : > { %v10151_v54 = vpop.eup %10150  ;;  %10166 = vrcp.f32 %v6258_v43 }
0x1452   : > { %10168 = vrcp.f32 %v6261_v7  ;;  %v6260_v52 = vadd.f32 1.0, %v10151_v54  ;;  %v10153_v63 = vpop.eup %10152  ;;  %v8394_v54 = vmul.f32 -1.442695, %v9282_v55 }
0x1453   : > { %10170 = vpow2.f32 %v8350_v6  ;;  %v12911_v5 = vpop.eup %10154  ;;  %v6797_v13 = vadd.f32 1.0, %v10153_v63 }
0x1454   : > { %10172 = vrcp.f32 %v6260_v52  ;;  %v6305_v14 = vmul.f32 2.0, %v12911_v5  ;;  %v10157_v24 = vpop.eup %10156 }
0x1455   : > { %10174 = vpow2.f32 %v8389_v61  ;;  %v6798_v18 = vadd.f32 1.0, %v10157_v24 }
0x1456   : > { %10176 = vpow2.f32 %v8390_v62  ;;  %v8361_v1 = vadd.f32 -1.0, %v6305_v14  ;;  %v6719_v62 = vpop.f32.mrf.mxu1 }
0x1457   : > { %10178 = vpow2.f32 %v8391_v59  ;;  %v8395_v24 = vmul.f32 -1.442695, %v6719_v62 }
0x1458   : > { %v12914_v21 = vpop.eup %10158  ;;  %6378 = vrot.lane.b32.xlu1 %v8361_v1, %s10431_s18  ;;  %10180 = vrcp.f32 %v6797_v13  ;;  %v9288_v13 = vpop.f32.mrf.mxu1 }
0x1459   : > { %v6304_v58 = vmul.f32 2.0, %v12914_v21 }
0x145b   : > { %v10161_v50 = vpop.eup %10160  ;;  %v8360_v16 = vadd.f32 -1.0, %v6304_v58 }
0x145c   : > { %v6263_v0 = vadd.f32 1.0, %v10161_v50  ;;  %v10163_v41 = vpop.eup %10162  ;;  %v8396_v50 = vmul.f32 -1.442695, %v9285_v29 }
0x145d   : > { %v12918_v60 = vpop.eup %10164  ;;  %6376 = vrot.lane.b32.xlu0 %v8360_v16, %s10431_s18  ;;  %v6799_v46 = vadd.f32 1.0, %v10163_v41  ;;  %v6729_v41 = vpop.f32.mrf.mxu1 }
0x145e   : > { %10182 = vrcp.f32 %v6263_v0  ;;  %v12920_v19 = vpop.eup %10166  ;;  %v6307_v56 = vmul.f32 2.0, %v12918_v60 }
0x145f   : > { %v12924_v38 = vpop.eup %10168  ;;  %v6306_v49 = vmul.f32 2.0, %v12920_v19  ;;  %10184 = vpow2.f32 %v8392_v32  ;;  %v9291_v29 = vpop.f32.mrf.mxu1 }
0x1460   : > { %v10171_v35 = vpop.eup %10170  ;;  %v8363_v30 = vadd.f32 -1.0, %v6307_v56  ;;  %v6309_v44 = vmul.f32 2.0, %v12924_v38  ;;  %10186 = vrcp.f32 %v6798_v18 }
0x1461   : > { %v12928_v8 = vpop.eup %10172  ;;  %v6262_v37 = vadd.f32 1.0, %v10171_v35  ;;  %v8362_v43 = vadd.f32 -1.0, %v6306_v49  ;;  %v8397_v49 = vmul.f32 -1.442695, %v6729_v41 }
0x1462   : > { %v10175_v6 = vpop.eup %10174  ;;  %6382 = vrot.lane.b32.xlu1 %v8363_v30, %s10431_s18  ;;  %v8365_v22 = vadd.f32 -1.0, %v6309_v44  ;;  %v6308_v7 = vmul.f32 2.0, %v12928_v8 }
0x1463   : > { %10188 = vrcp.f32 %v6262_v37  ;;  %6380 = vrot.lane.b32.xlu0 %v8362_v43, %s10431_s18  ;;  %v10177_v52 = vpop.eup %10176  ;;  %v6800_v63 = vadd.f32 1.0, %v10175_v6  ;;  %v8398_v43 = vmul.f32 -1.442695, %v9288_v13 }
0x1464   : > { %10190 = vrcp.f32 %v6799_v46  ;;  %v8364_v61 = vadd.f32 -1.0, %v6308_v7  ;;  %v10179_v28 = vpop.eup %10178  ;;  %v6801_v14 = vadd.f32 1.0, %v10177_v52  ;;  %v6739_v52 = vpop.f32.mrf.mxu1 }
0x1465   : > { %10192 = vpow2.f32 %v8393_v4  ;;  %v12935_v59 = vpop.eup %10180  ;;  %v6802_v0 = vadd.f32 1.0, %v10179_v28  ;;  %v8399_v28 = vmul.f32 -1.442695, %v6739_v52 }
0x1466   : > { %6386 = vrot.lane.b32.xlu1 %v8365_v22, %s10431_s18  ;;  %10194 = vpow2.f32 %v8394_v54  ;;  %v6845_v16 = vmul.f32 2.0, %v12935_v59 }
0x1467   : > { %6384 = vrot.lane.b32.xlu0 %v8364_v61, %s10431_s18  ;;  %10196 = vrcp.f32 %v6800_v63 }
0x1468   : > { %10198 = vrcp.f32 %v6801_v14  ;;  %v8402_v30 = vadd.f32 -1.0, %v6845_v16 }
0x1469   : > { %10200 = vpow2.f32 %v8395_v24 }
0x146a   : > { %10202 = vpow2.f32 %v8396_v50 }
0x146b   : > { %v12937_v1 = vpop.eup %10182  ;;  %10204 = vrcp.f32 %v6802_v0 }
0x146c   : > { %v6311_v55 = vmul.f32 2.0, %v12937_v1  ;;  %v10185_v58 = vpop.eup %10184 }
0x146d   : > { %v12941_v18 = vpop.eup %10186  ;;  %v6803_v56 = vadd.f32 1.0, %v10185_v58 }
0x146e   : > { %v8367_v32 = vadd.f32 -1.0, %v6311_v55  ;;  %v6846_v44 = vmul.f32 2.0, %v12941_v18  ;;  %v8400_v55 = vmul.f32 -1.442695, %v9291_v29 }
0x146f   : > { %10206 = vrcp.f32 %v6803_v56 }
0x1470   : > { %6390 = vrot.lane.b32.xlu1 %v8367_v32, %s10431_s18  ;;  %v12944_v47 = vpop.eup %10188  ;;  %10208 = vpow2.f32 %v8397_v49  ;;  %v8403_v7 = vadd.f32 -1.0, %v6846_v44 }
0x1471   : > { %v12946_v35 = vpop.eup %10190  ;;  %v6310_v46 = vmul.f32 2.0, %v12944_v47  ;;  %10210 = vpow2.f32 %v8398_v43 }
0x1472   : > { %v10193_v4 = vpop.eup %10192  ;;  %v6847_v54 = vmul.f32 2.0, %v12946_v35 }
0x1473   : > { %v8366_v37 = vadd.f32 -1.0, %v6310_v46  ;;  %v10195_v6 = vpop.eup %10194  ;;  %v6804_v22 = vadd.f32 1.0, %v10193_v4 }
0x1474   : > { %6894 = vrot.lane.b32.xlu1 %v8402_v30, %s10431_s18  ;;  %v12953_v61 = vpop.eup %10196  ;;  %v6805_v63 = vadd.f32 1.0, %v10195_v6  ;;  %v8404_v14 = vadd.f32 -1.0, %v6847_v54 }
0x1475   : > { %6388 = vrot.lane.b32.xlu0 %v8366_v37, %s10431_s18  ;;  %v12956_v62 = vpop.eup %10198  ;;  %10212 = vrcp.f32 %v6804_v22  ;;  %v6848_v24 = vmul.f32 2.0, %v12953_v61 }
0x1476   : > { %v10201_v13 = vpop.eup %10200  ;;  %10214 = vrcp.f32 %v6805_v63  ;;  %v6849_v41 = vmul.f32 2.0, %v12956_v62 }
0x1477   : > { %v10203_v50 = vpop.eup %10202  ;;  %v6806_v58 = vadd.f32 1.0, %v10201_v13  ;;  %10216 = vpow2.f32 %v8399_v28  ;;  %v8405_v0 = vadd.f32 -1.0, %v6848_v24 }
0x1478   : > { %6896 = vrot.lane.b32.xlu1 %v8403_v7, %s10431_s18  ;;  %v12961_v32 = vpop.eup %10204  ;;  %10218 = vpow2.f32 %v8400_v55  ;;  %v6807_v56 = vadd.f32 1.0, %v10203_v50  ;;  %v8406_v49 = vadd.f32 -1.0, %v6849_v41 }
0x1479   : > { %10220 = vrcp.f32 %v6806_v58  ;;  %v6850_v46 = vmul.f32 2.0, %v12961_v32 }
0x147a   : > { %10222 = vrcp.f32 %v6807_v56 }
0x147b   : > { %v8407_v29 = vadd.f32 -1.0, %v6850_v46 }
0x147c   : > { %6898 = vrot.lane.b32.xlu1 %v8404_v14, %s10431_s18  ;;  %v12964_v16 = vpop.eup %10206 }
0x147d   : > { %v10209_v30 = vpop.eup %10208  ;;  %v6851_v37 = vmul.f32 2.0, %v12964_v16 }
0x147e   : > { %v10211_v44 = vpop.eup %10210  ;;  %v6808_v4 = vadd.f32 1.0, %v10209_v30 }
0x147f   : > { %v6809_v22 = vadd.f32 1.0, %v10211_v44  ;;  %v8408_v7 = vadd.f32 -1.0, %v6851_v37 }
0x1480   : > { %6900 = vrot.lane.b32.xlu1 %v8405_v0, %s10431_s18  ;;  %10224 = vrcp.f32 %v6808_v4 }
0x1481   : > { %10226 = vrcp.f32 %v6809_v22 }
0x1482   : > { %v12969_v43 = vpop.eup %10212 }
0x1483   : > { %v12972_v6 = vpop.eup %10214  ;;  %v6852_v54 = vmul.f32 2.0, %v12969_v43 }
0x1484   : > { %6902 = vrot.lane.b32.xlu1 %v8406_v49, %s10431_s18  ;;  %v10217_v52 = vpop.eup %10216  ;;  %v6853_v24 = vmul.f32 2.0, %v12972_v6 }
0x1485   : > { %v10219_v63 = vpop.eup %10218  ;;  %v6810_v28 = vadd.f32 1.0, %v10217_v52  ;;  %v8409_v14 = vadd.f32 -1.0, %v6852_v54 }
0x1486   : > { %v12977_v13 = vpop.eup %10220  ;;  %v6811_v55 = vadd.f32 1.0, %v10219_v63  ;;  %v8410_v50 = vadd.f32 -1.0, %v6853_v24 }
0x1487   : > { %10228 = vrcp.f32 %v6810_v28  ;;  %v6854_v58 = vmul.f32 2.0, %v12977_v13  ;;  %v12981_v0 = vpop.eup %10222 }
0x1488   : > { %6904 = vrot.lane.b32.xlu1 %v8407_v29, %s10431_s18  ;;  %10230 = vrcp.f32 %v6811_v55  ;;  %v6855_v56 = vmul.f32 2.0, %v12981_v0 }
0x1489   : > { %v8411_v41 = vadd.f32 -1.0, %v6854_v58 }
0x148a   : > { %v8412_v46 = vadd.f32 -1.0, %v6855_v56 }
0x148c   : > { %6906 = vrot.lane.b32.xlu1 %v8408_v7, %s10431_s18 }
0x148d   : > { %v12985_v49 = vpop.eup %10224 }
0x148e   : > { %v6856_v30 = vmul.f32 2.0, %v12985_v49  ;;  %v12989_v44 = vpop.eup %10226 }
0x148f   : > { %v6857_v29 = vmul.f32 2.0, %v12989_v44 }
0x1490   : > { %6908 = vrot.lane.b32.xlu1 %v8409_v14, %s10431_s18  ;;  %v8413_v4 = vadd.f32 -1.0, %v6856_v30 }
0x1491   : > { %v8414_v22 = vadd.f32 -1.0, %v6857_v29 }
0x1494   : > { %6910 = vrot.lane.b32.xlu1 %v8410_v50, %s10431_s18  ;;  %v12993_v37 = vpop.eup %10228 }
0x1495   : > { %v6858_v7 = vmul.f32 2.0, %v12993_v37  ;;  %v12997_v54 = vpop.eup %10230 }
0x1496   : > { %v6859_v63 = vmul.f32 2.0, %v12997_v54 }
0x1497   : > { %v8415_v52 = vadd.f32 -1.0, %v6858_v7 }
0x1498   : > { %6912 = vrot.lane.b32.xlu1 %v8411_v41, %s10431_s18  ;;  %v8416_v28 = vadd.f32 -1.0, %v6859_v63 }
0x149c   : > { %6914 = vrot.lane.b32.xlu1 %v8412_v46, %s10431_s18 }
0x149e   : > { %v6361_v58 = vpop.permute.xlu0 %6360 }
0x149f   : > { %v6408_v41 = vmul.f32 %v12866_v53, %v6361_v58 }
0x14a0   : > { %6916 = vrot.lane.b32.xlu1 %v8413_v4, %s10431_s18 }
0x14a4   : > { %6918 = vrot.lane.b32.xlu1 %v8414_v22, %s10431_s18 }
0x14a8   : > { %6920 = vrot.lane.b32.xlu1 %v8415_v52, %s10431_s18 }
0x14aa   : > { %v6365_v30 = vpop.permute.xlu0 %6364 }
0x14ab   : > { %v6410_v29 = vmul.f32 %v12871_v45, %v6365_v30 }
0x14ac   : > { %6922 = vrot.lane.b32.xlu1 %v8416_v28, %s10431_s18 }
0x14ad   : > { %v6893_v14 = vpop.permute.xlu1 %6892 }
0x14ae   : > { %v6940_v24 = vmul.f32 %v12877_v39, %v6893_v14 }
0x14b0   : > { %10232 = vtanh.f32 %v6940_v24 }
0x14b1   : > { %v6363_v55 = vpop.permute.xlu1 %6362 }
0x14b2   : > { %v6409_v50 = vmul.f32 %v12874_v26, %v6363_v55 }
0x14b4   : > { %6442 = vrot.lane.b32.xlu0 %v6409_v50, %s10434_s21 }
0x14b5   : > { %v6367_v56 = vpop.permute.xlu1 %6366 }
0x14b6   : > { %v6411_v46 = vmul.f32 %v12883_v23, %v6367_v56  ;;  %v6369_v52 = vpop.permute.xlu0 %6368 }
0x14b7   : > { %v6412_v63 = vmul.f32 %v12891_v12, %v6369_v52 }
0x14b8   : > { %6440 = vrot.lane.b32.xlu0 %v6408_v41, %s10434_s21 }
0x14b9   : > { %v6371_v22 = vpop.permute.xlu1 %6370 }
0x14ba   : > { %v6413_v7 = vmul.f32 %v12888_v2, %v6371_v22 }
0x14bc   : > { %6446 = vrot.lane.b32.xlu0 %v6411_v46, %s10434_s21 }
0x14bd   : > { %v10233_v4 = vpop.eup %10232 }
0x14be   : > { %6988 = vrot.lane.b32.xlu1 %v10233_v4, %s10432_s19  ;;  %v6375_v28 = vpop.permute.xlu1 %6374 }
0x14bf   : > { %v6415_v14 = vmul.f32 %v12900_v27, %v6375_v28 }
0x14c0   : > { %6444 = vrot.lane.b32.xlu0 %v6410_v29, %s10434_s21  ;;  %v6373_v24 = vpop.permute.xlu0 %6372 }
0x14c1   : > { %v6414_v55 = vmul.f32 %v12905_v51, %v6373_v24 }
0x14c4   : > { %6450 = vrot.lane.b32.xlu0 %v6413_v7, %s10434_s21 }
0x14c8   : > { %6448 = vrot.lane.b32.xlu0 %v6412_v63, %s10434_s21 }
0x14ca   : > { %v6379_v50 = vpop.permute.xlu1 %6378 }
0x14cb   : > { %v6417_v58 = vmul.f32 %v12911_v5, %v6379_v50 }
0x14cc   : > { %6454 = vrot.lane.b32.xlu0 %v6415_v14, %s10434_s21 }
0x14cf   : > { %v6377_v41 = vpop.permute.xlu0 %6376 }
0x14d0   : > { %6452 = vrot.lane.b32.xlu0 %v6414_v55, %s10434_s21  ;;  %v6416_v56 = vmul.f32 %v12914_v21, %v6377_v41 }
0x14d4   : > { %6458 = vrot.lane.b32.xlu0 %v6417_v58, %s10434_s21  ;;  %v6383_v46 = vpop.permute.xlu1 %6382 }
0x14d5   : > { %v6419_v30 = vmul.f32 %v12918_v60, %v6383_v46  ;;  %v6381_v4 = vpop.permute.xlu0 %6380 }
0x14d6   : > { %v6418_v29 = vmul.f32 %v12920_v19, %v6381_v4 }
0x14d8   : > { %6456 = vrot.lane.b32.xlu0 %v6416_v56, %s10434_s21  ;;  %v6387_v22 = vpop.permute.xlu1 %6386 }
0x14d9   : > { %v6421_v7 = vmul.f32 %v12924_v38, %v6387_v22  ;;  %v6385_v63 = vpop.permute.xlu0 %6384 }
0x14da   : > { %v6420_v28 = vmul.f32 %v12928_v8, %v6385_v63 }
0x14dc   : > { %6462 = vrot.lane.b32.xlu0 %v6419_v30, %s10434_s21 }
0x14e0   : > { %6460 = vrot.lane.b32.xlu0 %v6418_v29, %s10434_s21 }
0x14e2   : > { %v6391_v52 = vpop.permute.xlu1 %6390 }
0x14e3   : > { %v6423_v56 = vmul.f32 %v12937_v1, %v6391_v52 }
0x14e4   : > { %6466 = vrot.lane.b32.xlu0 %v6421_v7, %s10434_s21 }
0x14e6   : > { %v6895_v14 = vpop.permute.xlu1 %6894 }
0x14e7   : > { %v6941_v24 = vmul.f32 %v12935_v59, %v6895_v14  ;;  %v6389_v55 = vpop.permute.xlu0 %6388 }
0x14e8   : > { %6464 = vrot.lane.b32.xlu0 %v6420_v28, %s10434_s21  ;;  %v6422_v50 = vmul.f32 %v12944_v47, %v6389_v55 }
0x14e9   : > { %10234 = vtanh.f32 %v6941_v24 }
0x14ea   : > { %v6897_v58 = vpop.permute.xlu1 %6896 }
0x14eb   : > { %v6942_v41 = vmul.f32 %v12941_v18, %v6897_v58 }
0x14ec   : > { %6468 = vrot.lane.b32.xlu0 %v6422_v50, %s10434_s21 }
0x14ed   : > { %10236 = vtanh.f32 %v6942_v41 }
0x14ee   : > { %v6899_v46 = vpop.permute.xlu1 %6898 }
0x14ef   : > { %v6943_v30 = vmul.f32 %v12946_v35, %v6899_v46 }
0x14f0   : > { %6470 = vrot.lane.b32.xlu0 %v6423_v56, %s10434_s21 }
0x14f1   : > { %10238 = vtanh.f32 %v6943_v30 }
0x14f2   : > { %v6901_v4 = vpop.permute.xlu1 %6900 }
0x14f3   : > { %v6944_v29 = vmul.f32 %v12953_v61, %v6901_v4 }
0x14f5   : > { %10240 = vtanh.f32 %v6944_v29 }
0x14f6   : > { %v10235_v22 = vpop.eup %10234  ;;  %v6903_v7 = vpop.permute.xlu1 %6902 }
0x14f7   : > { %v6945_v63 = vmul.f32 %v12956_v62, %v6903_v7  ;;  %6990 = vrot.lane.b32.xlu1 %v10235_v22, %s10432_s19 }
0x14f9   : > { %10242 = vtanh.f32 %v6945_v63 }
0x14fa   : > { %v10237_v28 = vpop.eup %10236  ;;  %v6905_v14 = vpop.permute.xlu1 %6904 }
0x14fb   : > { %v6946_v52 = vmul.f32 %v12961_v32, %v6905_v14  ;;  %6992 = vrot.lane.b32.xlu1 %v10237_v28, %s10432_s19 }
0x14fd   : > { %10244 = vtanh.f32 %v6946_v52 }
0x14fe   : > { %v10239_v24 = vpop.eup %10238  ;;  %v6907_v55 = vpop.permute.xlu1 %6906 }
0x14ff   : > { %v6947_v50 = vmul.f32 %v12964_v16, %v6907_v55  ;;  %6994 = vrot.lane.b32.xlu1 %v10239_v24, %s10432_s19 }
0x1501   : > { %10246 = vtanh.f32 %v6947_v50 }
0x1502   : > { %v10241_v58 = vpop.eup %10240  ;;  %v6909_v41 = vpop.permute.xlu1 %6908 }
0x1503   : > { %v6948_v56 = vmul.f32 %v12969_v43, %v6909_v41  ;;  %6996 = vrot.lane.b32.xlu1 %v10241_v58, %s10432_s19 }
0x1505   : > { %10248 = vtanh.f32 %v6948_v56 }
0x1506   : > { %v10243_v46 = vpop.eup %10242  ;;  %v6911_v30 = vpop.permute.xlu1 %6910 }
0x1507   : > { %v6949_v4 = vmul.f32 %v12972_v6, %v6911_v30  ;;  %6998 = vrot.lane.b32.xlu1 %v10243_v46, %s10432_s19 }
0x1509   : > { %10250 = vtanh.f32 %v6949_v4 }
0x150a   : > { %v10245_v29 = vpop.eup %10244  ;;  %v6913_v22 = vpop.permute.xlu1 %6912 }
0x150b   : > { %v6950_v7 = vmul.f32 %v12977_v13, %v6913_v22  ;;  %7000 = vrot.lane.b32.xlu1 %v10245_v29, %s10432_s19 }
0x150d   : > { %10252 = vtanh.f32 %v6950_v7 }
0x150e   : > { %v10247_v63 = vpop.eup %10246  ;;  %v6915_v28 = vpop.permute.xlu1 %6914 }
0x150f   : > { %v6951_v14 = vmul.f32 %v12981_v0, %v6915_v28  ;;  %7002 = vrot.lane.b32.xlu1 %v10247_v63, %s10432_s19  ;;  %v6329_v63 = vmul.f32 %v12874_v26, %v12633_v15 }
0x1511   : > { %10254 = vtanh.f32 %v6951_v14 }
0x1512   : > { %v10249_v52 = vpop.eup %10248  ;;  %v6917_v24 = vpop.permute.xlu1 %6916 }
0x1513   : > { %v6952_v55 = vmul.f32 %v12985_v49, %v6917_v24  ;;  %7004 = vrot.lane.b32.xlu1 %v10249_v52, %s10432_s19  ;;  %v6328_v24 = vmul.f32 %v12866_v53, %v12638_v57 }
0x1515   : > { %10256 = vtanh.f32 %v6952_v55 }
0x1516   : > { %v10251_v50 = vpop.eup %10250  ;;  %v6919_v58 = vpop.permute.xlu1 %6918 }
0x1517   : > { %v6953_v41 = vmul.f32 %v12989_v44, %v6919_v58  ;;  %7006 = vrot.lane.b32.xlu1 %v10251_v50, %s10432_s19 }
0x1519   : > { %10258 = vtanh.f32 %v6953_v41  ;;  %v6331_v41 = vmul.f32 %v12883_v23, %v12643_v25  ;;  %v6332_v25 = vmul.f32 %v12891_v12, %v12660_v3 }
0x151a   : > { %v10253_v56 = vpop.eup %10252  ;;  %v6921_v46 = vpop.permute.xlu1 %6920 }
0x151b   : > { %v6954_v30 = vmul.f32 %v12993_v37, %v6921_v46  ;;  %7008 = vrot.lane.b32.xlu1 %v10253_v56, %s10432_s19 }
0x151d   : > { %10260 = vtanh.f32 %v6954_v30  ;;  %v6330_v30 = vmul.f32 %v12871_v45, %v12648_v42  ;;  %v6335_v42 = vmul.f32 %v12900_v27, %v12667_v11 }
0x151e   : > { %v10255_v4 = vpop.eup %10254  ;;  %v6923_v29 = vpop.permute.xlu1 %6922 }
0x151f   : > { %v6955_v22 = vmul.f32 %v12997_v54, %v6923_v29  ;;  %7010 = vrot.lane.b32.xlu1 %v10255_v4, %s10432_s19  ;;  %v6333_v29 = vmul.f32 %v12888_v2, %v12655_v31 }
0x1521   : > { %10262 = vtanh.f32 %v6955_v22 }
0x1522   : > { %v10257_v7 = vpop.eup %10256 }
0x1523   : > { %7012 = vrot.lane.b32.xlu1 %v10257_v7, %s10432_s19 }
0x1526   : > { %v10259_v28 = vpop.eup %10258  ;;  %v6443_v14 = vpop.permute.xlu0 %6442 }
0x1527   : > { %v6489_v52 = vadd.f32 %v6443_v14, %v6329_v63  ;;  %7014 = vrot.lane.b32.xlu1 %v10259_v28, %s10432_s19 }
0x1529   : > { %10264 = vtanh.f32 %v6489_v52 }
0x152a   : > { %v10261_v55 = vpop.eup %10260  ;;  %v6441_v50 = vpop.permute.xlu0 %6440 }
0x152b   : > { %v6488_v58 = vadd.f32 %v6441_v50, %v6328_v24  ;;  %7016 = vrot.lane.b32.xlu1 %v10261_v55, %s10432_s19  ;;  %v6334_v50 = vmul.f32 %v12905_v51, %v12672_v9 }
0x152d   : > { %10266 = vtanh.f32 %v6488_v58 }
0x152e   : > { %v10263_v56 = vpop.eup %10262  ;;  %v6447_v15 = vpop.permute.xlu0 %6446 }
0x152f   : > { %v6491_v46 = vadd.f32 %v6447_v15, %v6331_v41  ;;  %7018 = vrot.lane.b32.xlu1 %v10263_v56, %s10432_s19  ;;  %v6337_v56 = vmul.f32 %v12911_v5, %v12678_v33 }
0x1531   : > { %10268 = vtanh.f32 %v6491_v46 }
0x1532   : > { %v6445_v4 = vpop.permute.xlu0 %6444 }
0x1533   : > { %v6490_v57 = vadd.f32 %v6445_v4, %v6330_v30  ;;  %v6336_v30 = vmul.f32 %v12914_v21, %v12684_v10 }
0x1535   : > { %10270 = vtanh.f32 %v6490_v57 }
0x1536   : > { %v10265_v22 = vpop.eup %10264  ;;  %v6451_v7 = vpop.permute.xlu0 %6450 }
0x1537   : > { %v6493_v63 = vadd.f32 %v6451_v7, %v6333_v29  ;;  %6538 = vrot.lane.b32.xlu0 %v10265_v22, %s10431_s18  ;;  %v6339_v29 = vmul.f32 %v12918_v60, %v12690_v36 }
0x1539   : > { %10272 = vtanh.f32 %v6493_v63  ;;  %v6338_v63 = vmul.f32 %v12920_v19, %v12696_v20 }
0x153a   : > { %v10267_v28 = vpop.eup %10266  ;;  %v6449_v14 = vpop.permute.xlu0 %6448 }
0x153b   : > { %v6492_v52 = vadd.f32 %v6449_v14, %v6332_v25  ;;  %6536 = vrot.lane.b32.xlu0 %v10267_v28, %s10431_s18  ;;  %v6341_v14 = vmul.f32 %v12924_v38, %v12702_v48  ;;  %v6343_v48 = vmul.f32 %v12937_v1, %v12715_v17  ;;  %v176_v17 = vld [vmem:[%s13352_s1 + $0x60] sm:$0xff] }
0x153c   : > { %9292 = vmatprep.subr.mxu0 %v176_v17 }
0x153d   : > { %10274 = vtanh.f32 %v6492_v52  ;;  %9293 = vmatpush3.msra.mxu0 %v176_v17 }
0x153e   : > { %v10269_v24 = vpop.eup %10268  ;;  %v6455_v31 = vpop.permute.xlu0 %6454 }
0x153f   : > { %v6495_v55 = vadd.f32 %v6455_v31, %v6335_v42  ;;  %6542 = vrot.lane.b32.xlu0 %v10269_v24, %s10431_s18  ;;  %v6340_v24 = vmul.f32 %v12928_v8, %v12708_v34  ;;  %v6989_v34 = vpop.permute.xlu1 %6988 }
0x1541   : > { %10276 = vtanh.f32 %v6495_v55 }
0x1542   : > { %v10271_v58 = vpop.eup %10270  ;;  %v6453_v3 = vpop.permute.xlu0 %6452 }
0x1543   : > { %v6494_v41 = vadd.f32 %v6453_v3, %v6334_v50  ;;  %6540 = vrot.lane.b32.xlu0 %v10271_v58, %s10431_s18 }
0x1545   : > { %10278 = vtanh.f32 %v6494_v41 }
0x1546   : > { %v10273_v15 = vpop.eup %10272  ;;  %v6459_v11 = vpop.permute.xlu0 %6458 }
0x1547   : > { %v6497_v46 = vadd.f32 %v6459_v11, %v6337_v56  ;;  %6546 = vrot.lane.b32.xlu0 %v10273_v15, %s10431_s18  ;;  %v6342_v56 = vmul.f32 %v12944_v47, %v12720_v40  ;;  %v175_v40 = vld [vmem:[%s13352_s1 + $0x58] sm:$0xff] }
0x1548   : > { %9294 = vmatprep.subr.mxu0 %v175_v40 }
0x1549   : > { %10280 = vtanh.f32 %v6497_v46  ;;  %9295 = vmatpush3.msra.mxu0 %v175_v40 }
0x154a   : > { %v10275_v4 = vpop.eup %10274  ;;  %v6457_v9 = vpop.permute.xlu0 %6456 }
0x154b   : > { %v6496_v57 = vadd.f32 %v6457_v9, %v6336_v30  ;;  %6544 = vrot.lane.b32.xlu0 %v10275_v4, %s10431_s18 }
0x154d   : > { %10282 = vtanh.f32 %v6496_v57  ;;  %v174_v57 = vld [vmem:[%s13352_s1 + $0x50] sm:$0xff] }
0x154e   : > { %v10277_v22 = vpop.eup %10276  ;;  %v6463_v33 = vpop.permute.xlu0 %6462  ;;  %9296 = vmatprep.subr.mxu0 %v174_v57 }
0x154f   : > { %v6499_v7 = vadd.f32 %v6463_v33, %v6339_v29  ;;  %6550 = vrot.lane.b32.xlu0 %v10277_v22, %s10431_s18  ;;  %v173_v29 = vld [vmem:[%s13352_s1 + $0x48] sm:$0xff]  ;;  %9297 = vmatpush3.msra.mxu0 %v174_v57 }
0x1550   : > { %9298 = vmatprep.subr.mxu0 %v173_v29 }
0x1551   : > { %10284 = vtanh.f32 %v6499_v7  ;;  %9299 = vmatpush3.msra.mxu0 %v173_v29 }
0x1552   : > { %v10279_v25 = vpop.eup %10278  ;;  %v6461_v10 = vpop.permute.xlu0 %6460 }
0x1553   : > { %v6498_v28 = vadd.f32 %v6461_v10, %v6338_v63  ;;  %6548 = vrot.lane.b32.xlu0 %v10279_v25, %s10431_s18  ;;  %v7036_v25 = vmul.f32 %v12877_v39, %v6989_v34 }
0x1555   : > { %10286 = vtanh.f32 %v6498_v28 }
0x1556   : > { %v10281_v52 = vpop.eup %10280  ;;  %v6467_v36 = vpop.permute.xlu0 %6466 }
0x1557   : > { %v6501_v42 = vadd.f32 %v6467_v36, %v6341_v14  ;;  %6554 = vrot.lane.b32.xlu0 %v10281_v52, %s10431_s18 }
0x1559   : > { %10288 = vtanh.f32 %v6501_v42 }
0x155a   : > { %v10283_v31 = vpop.eup %10282  ;;  %v6465_v20 = vpop.permute.xlu0 %6464 }
0x155b   : > { %v6500_v55 = vadd.f32 %v6465_v20, %v6340_v24  ;;  %6552 = vrot.lane.b32.xlu0 %v10283_v31, %s10431_s18 }
0x155d   : > { %10290 = vtanh.f32 %v6500_v55 }
0x155e   : > { %v10285_v50 = vpop.eup %10284  ;;  %v6469_v58 = vpop.permute.xlu0 %6468 }
0x155f   : > { %6558 = vrot.lane.b32.xlu0 %v10285_v50, %s10431_s18  ;;  %v6502_v11 = vadd.f32 %v6469_v58, %v6342_v56 }
0x1562   : > { %v10287_v3 = vpop.eup %10286  ;;  %v6471_v41 = vpop.permute.xlu0 %6470 }
0x1563   : > { %v6503_v15 = vadd.f32 %v6471_v41, %v6343_v48  ;;  %6556 = vrot.lane.b32.xlu0 %v10287_v3, %s10431_s18 }
0x1565   : > { %10292 = vtanh.f32 %v6503_v15 }
0x1566   : > { %v10289_v46 = vpop.eup %10288  ;;  %10294 = vtanh.f32 %v6502_v11 }
0x1567   : > { %6562 = vrot.lane.b32.xlu0 %v10289_v46, %s10431_s18 }
0x1569   : > { %v6991_v30 = vpop.permute.xlu1 %6990 }
0x156a   : > { %v10291_v4 = vpop.eup %10290  ;;  %v7037_v28 = vmul.f32 %v12935_v59, %v6991_v30 }
0x156b   : > { %6560 = vrot.lane.b32.xlu0 %v10291_v4, %s10431_s18 }
0x156d   : > { %v6993_v9 = vpop.permute.xlu1 %6992 }
0x156e   : > { %v7038_v52 = vmul.f32 %v12941_v18, %v6993_v9 }
0x1571   : > { %v6995_v22 = vpop.permute.xlu1 %6994 }
0x1572   : > { %v10293_v33 = vpop.eup %10292  ;;  %v7039_v42 = vmul.f32 %v12946_v35, %v6995_v22 }
0x1573   : > { %6566 = vrot.lane.b32.xlu0 %v10293_v33, %s10431_s18  ;;  %v10295_v63 = vpop.eup %10294 }
0x1575   : > { %v6997_v7 = vpop.permute.xlu1 %6996 }
0x1576   : > { %v7040_v39 = vmul.f32 %v12953_v61, %v6997_v7  ;;  %v172_v61 = vld [vmem:[%s13352_s1 + $0x40] sm:$0xff] }
0x1577   : > { %6564 = vrot.lane.b32.xlu0 %v10295_v63, %s10431_s18  ;;  %9324 = vmatprep.subr.mxu1 %v172_v61 }
0x1578   : > { %9325 = vmatpush3.msra.mxu1 %v172_v61 }
0x1579   : > { %v6999_v10 = vpop.permute.xlu1 %6998 }
0x157a   : > { %v7041_v31 = vmul.f32 %v12956_v62, %v6999_v10 }
0x157b   : > { %7068 = vrot.lane.b32.xlu0 %v7036_v25, %s10434_s21 }
0x157d   : > { %v7001_v14 = vpop.permute.xlu1 %7000 }
0x157e   : > { %v7042_v20 = vmul.f32 %v12961_v32, %v7001_v14  ;;  %v171_v32 = vld [vmem:[%s13352_s1 + $0x38] sm:$0xff] }
0x157f   : > { %7070 = vrot.lane.b32.xlu0 %v7037_v28, %s10434_s21  ;;  %9326 = vmatprep.subr.mxu1 %v171_v32 }
0x1580   : > { %9327 = vmatpush3.msra.mxu1 %v171_v32 }
0x1581   : > { %v7003_v36 = vpop.permute.xlu1 %7002 }
0x1582   : > { %v7043_v55 = vmul.f32 %v12964_v16, %v7003_v36  ;;  %v170_v16 = vld [vmem:[%s13352_s1 + $0x30] sm:$0xff] }
0x1583   : > { %7072 = vrot.lane.b32.xlu0 %v7038_v52, %s10434_s21  ;;  %9328 = vmatprep.subr.mxu1 %v170_v16 }
0x1584   : > { %9329 = vmatpush3.msra.mxu1 %v170_v16 }
0x1585   : > { %v7005_v24 = vpop.permute.xlu1 %7004 }
0x1586   : > { %v7044_v35 = vmul.f32 %v12969_v43, %v7005_v24 }
0x1587   : > { %7074 = vrot.lane.b32.xlu0 %v7039_v42, %s10434_s21 }
0x1589   : > { %v7007_v59 = vpop.permute.xlu1 %7006 }
0x158a   : > { %v7045_v62 = vmul.f32 %v12972_v6, %v7007_v59  ;;  %v169_v6 = vld [vmem:[%s13352_s1 + $0x28] sm:$0xff] }
0x158b   : > { %7076 = vrot.lane.b32.xlu0 %v7040_v39, %s10434_s21  ;;  %9330 = vmatprep.subr.mxu1 %v169_v6 }
0x158c   : > { %9331 = vmatpush3.msra.mxu1 %v169_v6 }
0x158d   : > { %v7009_v18 = vpop.permute.xlu1 %7008 }
0x158e   : > { %v7046_v58 = vmul.f32 %v12977_v13, %v7009_v18 }
0x158f   : > { %7078 = vrot.lane.b32.xlu0 %v7041_v31, %s10434_s21 }
0x1591   : > { %v7011_v50 = vpop.permute.xlu1 %7010 }
0x1592   : > { %v7047_v48 = vmul.f32 %v12981_v0, %v7011_v50 }
0x1593   : > { %7080 = vrot.lane.b32.xlu0 %v7042_v20, %s10434_s21 }
0x1595   : > { %v7013_v43 = vpop.permute.xlu1 %7012 }
0x1596   : > { %v7048_v41 = vmul.f32 %v12985_v49, %v7013_v43 }
0x1597   : > { %7082 = vrot.lane.b32.xlu0 %v7043_v55, %s10434_s21 }
0x1599   : > { %v7015_v3 = vpop.permute.xlu1 %7014 }
0x159a   : > { %v7049_v34 = vmul.f32 %v12989_v44, %v7015_v3 }
0x159b   : > { %7084 = vrot.lane.b32.xlu0 %v7044_v35, %s10434_s21 }
0x159d   : > { %v7017_v13 = vpop.permute.xlu1 %7016 }
0x159e   : > { %v7050_v0 = vmul.f32 %v12993_v37, %v7017_v13  ;;  %v192_v13 = vld [vmem:[%s13352_s1 + $0xe0] sm:$0xff] }
0x159f   : > { %7086 = vrot.lane.b32.xlu0 %v7045_v62, %s10434_s21 }
0x15a1   : > { %v7019_v30 = vpop.permute.xlu1 %7018 }
0x15a2   : > { %v7051_v4 = vmul.f32 %v12997_v54, %v7019_v30  ;;  %v188_v30 = vld [vmem:[%s13352_s1 + $0xc0] sm:$0xff] }
0x15a3   : > { %7088 = vrot.lane.b32.xlu0 %v7046_v58, %s10434_s21 }
0x15a7   : > { %7090 = vrot.lane.b32.xlu0 %v7047_v48, %s10434_s21 }
0x15a9   : > { %v6539_v56 = vpop.permute.xlu0 %6538 }
0x15aa   : > { %v6585_v15 = vmul.f32 %v12874_v26, %v6539_v56 }
0x15ab   : > { %7092 = vrot.lane.b32.xlu0 %v7048_v41, %s10434_s21 }
0x15ac   : > { %7295 = vrot.lane.b32.xlu1 %v6585_v15, %s10434_s21  ;;  %v193_v15 = vld [vmem:[%s13352_s1 + $0xe8] sm:$0xff] }
0x15ad   : > { %v6537_v11 = vpop.permute.xlu0 %6536  ;;  %9356 = vmatprep.subr.mxu0 %v193_v15 }
0x15ae   : > { %v6584_v46 = vmul.f32 %v12866_v53, %v6537_v11 }
0x15af   : > { %7094 = vrot.lane.b32.xlu0 %v7049_v34, %s10434_s21 }
0x15b0   : > { %7293 = vrot.lane.b32.xlu1 %v6584_v46, %s10434_s21  ;;  %v191_v46 = vld [vmem:[%s13352_s1 + $0xd8] sm:$0xff] }
0x15b1   : > { %v6543_v49 = vpop.permute.xlu0 %6542 }
0x15b2   : > { %v6587_v26 = vmul.f32 %v12883_v23, %v6543_v49  ;;  %v189_v49 = vld [vmem:[%s13352_s1 + $0xc8] sm:$0xff] }
0x15b3   : > { %7096 = vrot.lane.b32.xlu0 %v7050_v0, %s10434_s21  ;;  %v190_v0 = vld [vmem:[%s13352_s1 + $0xd0] sm:$0xff] }
0x15b4   : > { %7299 = vrot.lane.b32.xlu1 %v6587_v26, %s10434_s21  ;;  %v187_v26 = vld [vmem:[%s13352_s1 + $0xb8] sm:$0xff] }
0x15b5   : > { %v6541_v44 = vpop.permute.xlu0 %6540 }
0x15b6   : > { %v6586_v17 = vmul.f32 %v12871_v45, %v6541_v44  ;;  %v185_v44 = vld [vmem:[%s13352_s1 + $0xa8] sm:$0xff] }
0x15b7   : > { %7098 = vrot.lane.b32.xlu0 %v7051_v4, %s10434_s21  ;;  %v186_v4 = vld [vmem:[%s13352_s1 + $0xb0] sm:$0xff] }
0x15b8   : > { %7297 = vrot.lane.b32.xlu1 %v6586_v17, %s10434_s21 }
0x15b9   : > { %v6547_v53 = vpop.permute.xlu0 %6546 }
0x15ba   : > { %v6589_v37 = vmul.f32 %v12888_v2, %v6547_v53  ;;  %v184_v53 = vld [vmem:[%s13352_s1 + $0xa0] sm:$0xff] }
0x15bc   : > { %7303 = vrot.lane.b32.xlu1 %v6589_v37, %s10434_s21 }
0x15bd   : > { %v6545_v40 = vpop.permute.xlu0 %6544 }
0x15be   : > { %v6588_v23 = vmul.f32 %v12891_v12, %v6545_v40  ;;  %v183_v40 = vld [vmem:[%s13352_s1 + $0x98] sm:$0xff] }
0x15c0   : > { %7301 = vrot.lane.b32.xlu1 %v6588_v23, %s10434_s21  ;;  %v182_v23 = vld [vmem:[%s13352_s1 + $0x90] sm:$0xff] }
0x15c1   : > { %v6551_v9 = vpop.permute.xlu0 %6550 }
0x15c2   : > { %v6591_v54 = vmul.f32 %v12900_v27, %v6551_v9  ;;  %v181_v9 = vld [vmem:[%s13352_s1 + $0x88] sm:$0xff] }
0x15c4   : > { %7307 = vrot.lane.b32.xlu1 %v6591_v54, %s10434_s21  ;;  %v180_v54 = vld [vmem:[%s13352_s1 + $0x80] sm:$0xff] }
0x15c5   : > { %v6549_v45 = vpop.permute.xlu0 %6548 }
0x15c6   : > { %v6590_v57 = vmul.f32 %v12905_v51, %v6549_v45  ;;  %v179_v45 = vld [vmem:[%s13352_s1 + $0x78] sm:$0xff] }
0x15c8   : > { %7305 = vrot.lane.b32.xlu1 %v6590_v57, %s10434_s21  ;;  %v178_v57 = vld [vmem:[%s13352_s1 + $0x70] sm:$0xff] }
0x15c9   : > { %v6555_v29 = vpop.permute.xlu0 %6554 }
0x15ca   : > { %v6593_v2 = vmul.f32 %v12911_v5, %v6555_v29 }
0x15cc   : > { %7311 = vrot.lane.b32.xlu1 %v6593_v2, %s10434_s21 }
0x15cd   : > { %v6553_v22 = vpop.permute.xlu0 %6552 }
0x15ce   : > { %v6592_v12 = vmul.f32 %v12914_v21, %v6553_v22  ;;  %v13286_v22 = vld [vmem:[%s13352_s1 + $0x68] ss:$0 sm:$0xff] }
0x15d0   : > { %7309 = vrot.lane.b32.xlu1 %v6592_v12, %s10434_s21 }
0x15d1   : > { %v6559_v33 = vpop.permute.xlu0 %6558 }
0x15d2   : > { %v6595_v27 = vmul.f32 %v12918_v60, %v6559_v33 }
0x15d4   : > { %7315 = vrot.lane.b32.xlu1 %v6595_v27, %s10434_s21 }
0x15d5   : > { %v6557_v7 = vpop.permute.xlu0 %6556 }
0x15d6   : > { %v6594_v51 = vmul.f32 %v12920_v19, %v6557_v7 }
0x15d8   : > { %7313 = vrot.lane.b32.xlu1 %v6594_v51, %s10434_s21 }
0x15d9   : > { %v6563_v63 = vpop.permute.xlu0 %6562 }
0x15da   : > { %v6597_v5 = vmul.f32 %v12924_v38, %v6563_v63 }
0x15dc   : > { %7319 = vrot.lane.b32.xlu1 %v6597_v5, %s10434_s21 }
0x15dd   : > { %v6561_v25 = vpop.permute.xlu0 %6560 }
0x15de   : > { %v6596_v21 = vmul.f32 %v12928_v8, %v6561_v25 }
0x15e0   : > { %7317 = vrot.lane.b32.xlu1 %v6596_v21, %s10434_s21 }
0x15e5   : > { %v6567_v10 = vpop.permute.xlu0 %6566 }
0x15e6   : > { %v6599_v19 = vmul.f32 %v12937_v1, %v6567_v10 }
0x15e9   : > { %v6565_v28 = vpop.permute.xlu0 %6564 }
0x15ea   : > { %v6598_v60 = vmul.f32 %v12944_v47, %v6565_v28 }
0x15ec   : > { %7321 = vrot.lane.b32.xlu1 %v6598_v60, %s10434_s21 }
0x15ed   : > { %v7069_v14 = vpop.permute.xlu0 %7068 }
0x15ee   : > { %9300 = vmatprep.mubr.msk.f32.mxu0 %vm954_vm2, %v7069_v14 }
0x15f0   : > { %7323 = vrot.lane.b32.xlu1 %v6599_v19, %s10434_s21 }
0x15f1   : > { %v7071_v38 = vpop.permute.xlu0 %7070 }
0x15f2   : > { %9301 = vmatmul.mubr.msk.f32.vlgmr.msra.gmra.mxu0 %vm954_vm2, %v7071_v38 }
0x15f3   : > { %9357 = vmatpush3.msra.mxu0 %v193_v15 }
0x15f4   : > { %9358 = vmatprep.subr.mxu0 %v192_v13 }
0x15f5   : > { %v7073_v52 = vpop.permute.xlu0 %7072  ;;  %9359 = vmatpush3.msra.mxu0 %v192_v13 }
0x15f6   : > { %9303 = vmatprep.mubr.msk.f32.mxu0 %vm954_vm2, %v7073_v52  ;;  %9360 = vmatprep.subr.mxu0 %v191_v46 }
0x15f7   : > { %9361 = vmatpush3.msra.mxu0 %v191_v46 }
0x15f8   : > { %9362 = vmatprep.subr.mxu0 %v190_v0 }
0x15f9   : > { %v7075_v8 = vpop.permute.xlu0 %7074  ;;  %9363 = vmatpush3.msra.mxu0 %v190_v0 }
0x15fa   : > { %9304 = vmatmul.mubr.msk.f32.gmra.mxu0 %vm954_vm2, %v7075_v8  ;;  %9364 = vmatprep.subr.mxu0 %v189_v49 }
0x15fb   : > { %9365 = vmatpush3.msra.mxu0 %v189_v49 }
0x15fc   : > { %9366 = vmatprep.subr.mxu0 %v188_v30 }
0x15fd   : > { %v7077_v36 = vpop.permute.xlu0 %7076  ;;  %9367 = vmatpush3.msra.mxu0 %v188_v30 }
0x15fe   : > { %9306 = vmatprep.mubr.msk.f32.mxu0 %vm954_vm2, %v7077_v36  ;;  %9368 = vmatprep.subr.mxu0 %v187_v26 }
0x15ff   : > { %9369 = vmatpush3.msra.mxu0 %v187_v26 }
0x1600   : > { %9370 = vmatprep.subr.mxu0 %v186_v4 }
0x1601   : > { %v7079_v47 = vpop.permute.xlu0 %7078  ;;  %9371 = vmatpush3.msra.mxu0 %v186_v4 }
0x1602   : > { %9307 = vmatmul.mubr.msk.f32.gmra.mxu0 %vm954_vm2, %v7079_v47  ;;  %9372 = vmatprep.subr.mxu0 %v185_v44 }
0x1603   : > { %9373 = vmatpush3.msra.mxu0 %v185_v44 }
0x1604   : > { %9374 = vmatprep.subr.mxu0 %v184_v53 }
0x1605   : > { %v7081_v1 = vpop.permute.xlu0 %7080  ;;  %9375 = vmatpush3.msra.mxu0 %v184_v53 }
0x1606   : > { %9309 = vmatprep.mubr.msk.f32.mxu0 %vm954_vm2, %v7081_v1  ;;  %9376 = vmatprep.subr.mxu0 %v183_v40 }
0x1607   : > { %9377 = vmatpush3.msra.mxu0 %v183_v40 }
0x1608   : > { %9378 = vmatprep.subr.mxu0 %v182_v23 }
0x1609   : > { %v7083_v42 = vpop.permute.xlu0 %7082  ;;  %9379 = vmatpush3.msra.mxu0 %v182_v23 }
0x160a   : > { %9310 = vmatmul.mubr.msk.f32.gmra.mxu0 %vm954_vm2, %v7083_v42  ;;  %9380 = vmatprep.subr.mxu0 %v181_v9 }
0x160b   : > { %9381 = vmatpush3.msra.mxu0 %v181_v9 }
0x160c   : > { %9382 = vmatprep.subr.mxu0 %v180_v54 }
0x160d   : > { %v7085_v24 = vpop.permute.xlu0 %7084  ;;  %9383 = vmatpush3.msra.mxu0 %v180_v54 }
0x160e   : > { %9312 = vmatprep.mubr.msk.f32.mxu0 %vm954_vm2, %v7085_v24  ;;  %9384 = vmatprep.subr.mxu0 %v179_v45 }
0x160f   : > { %9385 = vmatpush3.msra.mxu0 %v179_v45 }
0x1610   : > { %9386 = vmatprep.subr.mxu0 %v178_v57 }
0x1611   : > { %v7087_v39 = vpop.permute.xlu0 %7086  ;;  %9387 = vmatpush3.msra.mxu0 %v178_v57 }
0x1612   : > { %9313 = vmatmul.mubr.msk.f32.gmra.mxu0 %vm954_vm2, %v7087_v39 }
0x1615   : > { %v7089_v31 = vpop.permute.xlu0 %7088 }
0x1616   : > { %9315 = vmatprep.mubr.msk.f32.mxu0 %vm954_vm2, %v7089_v31 }
0x1619   : > { %v7091_v59 = vpop.permute.xlu0 %7090 }
0x161a   : > { %9316 = vmatmul.mubr.msk.f32.gmra.mxu0 %vm954_vm2, %v7091_v59 }
0x161d   : > { %v7093_v20 = vpop.permute.xlu0 %7092 }
0x161e   : > { %v7296_v18 = vpop.permute.xlu1 %7295  ;;  %9318 = vmatprep.mubr.msk.f32.mxu0 %vm954_vm2, %v7093_v20 }
0x1621   : > { %v7095_v55 = vpop.permute.xlu0 %7094 }
0x1622   : > { %v7294_v35 = vpop.permute.xlu1 %7293  ;;  %9319 = vmatmul.mubr.msk.f32.gmra.mxu0 %vm954_vm2, %v7095_v55 }
0x1623   : > { %9332 = vmatprep.mubr.msk.f32.mxu1 %vm954_vm2, %v7294_v35 }
0x1624   : > { %9333 = vmatmul.mubr.msk.f32.vlgmr.msra.gmra.mxu1 %vm954_vm2, %v7296_v18 }
0x1625   : > { %v7097_v50 = vpop.permute.xlu0 %7096 }
0x1626   : > { %v7300_v61 = vpop.permute.xlu1 %7299  ;;  %9321 = vmatprep.mubr.msk.f32.mxu0 %vm954_vm2, %v7097_v50 }
0x1629   : > { %v7099_v62 = vpop.permute.xlu0 %7098 }
0x162a   : > { %v7298_v32 = vpop.permute.xlu1 %7297  ;;  %9322 = vmatmul.mubr.msk.f32.gmra.mxu0 %vm954_vm2, %v7099_v62 }
0x162b   : > { %9335 = vmatprep.mubr.msk.f32.mxu1 %vm954_vm2, %v7298_v32 }
0x162c   : > { %9336 = vmatmul.mubr.msk.f32.gmra.mxu1 %vm954_vm2, %v7300_v61 }
0x162e   : > { %v7304_v16 = vpop.permute.xlu1 %7303 }
0x1632   : > { %v7302_v43 = vpop.permute.xlu1 %7301 }
0x1633   : > { %9338 = vmatprep.mubr.msk.f32.mxu1 %vm954_vm2, %v7302_v43 }
0x1634   : > { %9339 = vmatmul.mubr.msk.f32.gmra.mxu1 %vm954_vm2, %v7304_v16 }
0x1636   : > { %v7308_v58 = vpop.permute.xlu1 %7307 }
0x163a   : > { %v7306_v6 = vpop.permute.xlu1 %7305 }
0x163b   : > { %9341 = vmatprep.mubr.msk.f32.mxu1 %vm954_vm2, %v7306_v6 }
0x163c   : > { %9342 = vmatmul.mubr.msk.f32.gmra.mxu1 %vm954_vm2, %v7308_v58 }
0x163e   : > { %v7312_v48 = vpop.permute.xlu1 %7311 }
0x1642   : > { %v7310_v3 = vpop.permute.xlu1 %7309 }
0x1643   : > { %9344 = vmatprep.mubr.msk.f32.mxu1 %vm954_vm2, %v7310_v3 }
0x1644   : > { %9345 = vmatmul.mubr.msk.f32.gmra.mxu1 %vm954_vm2, %v7312_v48 }
0x1646   : > { %v7316_v41 = vpop.permute.xlu1 %7315 }
0x164a   : > { %v7314_v56 = vpop.permute.xlu1 %7313 }
0x164b   : > { %9347 = vmatprep.mubr.msk.f32.mxu1 %vm954_vm2, %v7314_v56 }
0x164c   : > { %9348 = vmatmul.mubr.msk.f32.gmra.mxu1 %vm954_vm2, %v7316_v41 }
0x164e   : > { %v7320_v34 = vpop.permute.xlu1 %7319 }
0x1652   : > { %v7318_v11 = vpop.permute.xlu1 %7317 }
0x1653   : > { %9350 = vmatprep.mubr.msk.f32.mxu1 %vm954_vm2, %v7318_v11 }
0x1654   : > { %9351 = vmatmul.mubr.msk.f32.gmra.mxu1 %vm954_vm2, %v7320_v34 }
0x165e   : > { %v7322_v17 = vpop.permute.xlu1 %7321 }
0x165f   : > { %9353 = vmatprep.mubr.msk.f32.mxu1 %vm954_vm2, %v7322_v17 }
0x1662   : > { %v7324_v37 = vpop.permute.xlu1 %7323 }
0x1663   : > { %9354 = vmatmul.mubr.msk.f32.gmra.mxu1 %vm954_vm2, %v7324_v37 }
0x16b2   : > { %v9302_v29 = vpop.f32.mrf.mxu0 }
0x16b4   : > { %v7198_v33 = vpop.f32.mrf.mxu0 }
0x16ba   : > { %v9305_v5 = vpop.f32.mrf.mxu0 }
0x16bc   : > { %v7208_v60 = vpop.f32.mrf.mxu0 }
0x16c2   : > { %v9308_v8 = vpop.f32.mrf.mxu0 }
0x16c4   : > { %v7218_v24 = vpop.f32.mrf.mxu0 }
0x16ca   : > { %v9311_v18 = vpop.f32.mrf.mxu0 }
0x16cc   : > { %v7228_v62 = vpop.f32.mrf.mxu0 }
0x16d2   : > { %v9314_v6 = vpop.f32.mrf.mxu0 }
0x16d4   : > { %v7238_v15 = vpop.f32.mrf.mxu0 }
0x16da   : > { %v9317_v0 = vpop.f32.mrf.mxu0 }
0x16dc   : > { %v7248_v44 = vpop.f32.mrf.mxu0 }
0x16e2   : > { %v9320_v23 = vpop.f32.mrf.mxu0 }
0x16e4   : > { %v9334_v2 = vpop.f32.mrf.mxu1 }
0x16e5   : > { %v7429_v12 = vadd.f32 %v9334_v2, %v9302_v29  ;;  %v7258_v29 = vpop.f32.mrf.mxu0 }
0x16e6   : > { %v7423_v27 = vpop.f32.mrf.mxu1 }
0x16e7   : > { %v7424_v7 = vadd.f32 %v7423_v27, %v7198_v33  ;;  %v7507_v51 = vadd.f32 %v13286_v22, %v7429_v12 }
0x16e9   : > { %v7506_v63 = vadd.f32 %v13286_v22, %v7424_v7  ;;  %v7523_v21 = vmax.f32 %v7507_v51, 0.0 }
0x16eb   : > { %v7522_v25 = vmax.f32 %v7506_v63, 0.0  ;;  %v9323_v63 = vpop.f32.mrf.mxu0 }
0x16ec   : > { %v9337_v10 = vpop.f32.mrf.mxu1 }
0x16ed   : > { %v7439_v28 = vadd.f32 %v9337_v10, %v9305_v5  ;;  %9388 = vmatprep.mubr.f32.mxu0 %v7522_v25 }
0x16ee   : > { %v7433_v14 = vpop.f32.mrf.mxu1  ;;  %9389 = vmatmul.mubr.f32.vlgmr.msra.gmra.mxu0 %v7523_v21  ;;  %v7268_v21 = vpop.f32.mrf.mxu0 }
0x16ef   : > { %v7434_v19 = vadd.f32 %v7433_v14, %v7208_v60  ;;  %v7509_v38 = vadd.f32 %v13286_v22, %v7439_v28 }
0x16f1   : > { %v7508_v52 = vadd.f32 %v13286_v22, %v7434_v19  ;;  %v7525_v47 = vmax.f32 %v7509_v38, 0.0 }
0x16f3   : > { %v7524_v36 = vmax.f32 %v7508_v52, 0.0  ;;  %v13307_v52 = vld [vmem:[%s13352_s1 + $0xf0] ss:$0 sm:$0xff] }
0x16f4   : > { %v9340_v1 = vpop.f32.mrf.mxu1 }
0x16f5   : > { %v7449_v42 = vadd.f32 %v9340_v1, %v9308_v8  ;;  %9391 = vmatprep.mubr.f32.mxu0 %v7524_v36 }
0x16f6   : > { %v7443_v39 = vpop.f32.mrf.mxu1  ;;  %9392 = vmatmul.mubr.f32.gmra.mxu0 %v7525_v47 }
0x16f7   : > { %v7444_v31 = vadd.f32 %v7443_v39, %v7218_v24  ;;  %v7511_v59 = vadd.f32 %v13286_v22, %v7449_v42 }
0x16f9   : > { %v7510_v20 = vadd.f32 %v13286_v22, %v7444_v31  ;;  %v7527_v35 = vmax.f32 %v7511_v59, 0.0 }
0x16fb   : > { %v7526_v55 = vmax.f32 %v7510_v20, 0.0 }
0x16fc   : > { %v9343_v50 = vpop.f32.mrf.mxu1 }
0x16fd   : > { %v7459_v61 = vadd.f32 %v9343_v50, %v9311_v18  ;;  %9394 = vmatprep.mubr.f32.mxu0 %v7526_v55 }
0x16fe   : > { %v7453_v32 = vpop.f32.mrf.mxu1  ;;  %9395 = vmatmul.mubr.f32.gmra.mxu0 %v7527_v35 }
0x16ff   : > { %v7454_v16 = vadd.f32 %v7453_v32, %v7228_v62  ;;  %v7513_v43 = vadd.f32 %v13286_v22, %v7459_v61 }
0x1701   : > { %v7512_v58 = vadd.f32 %v13286_v22, %v7454_v16  ;;  %v7529_v3 = vmax.f32 %v7513_v43, 0.0 }
0x1703   : > { %v7528_v48 = vmax.f32 %v7512_v58, 0.0 }
0x1704   : > { %v9346_v41 = vpop.f32.mrf.mxu1 }
0x1705   : > { %v7469_v56 = vadd.f32 %v9346_v41, %v9314_v6  ;;  %9397 = vmatprep.mubr.f32.mxu0 %v7528_v48 }
0x1706   : > { %v7463_v13 = vpop.f32.mrf.mxu1  ;;  %9398 = vmatmul.mubr.f32.gmra.mxu0 %v7529_v3 }
0x1707   : > { %v7464_v34 = vadd.f32 %v7463_v13, %v7238_v15  ;;  %v7515_v11 = vadd.f32 %v13286_v22, %v7469_v56 }
0x1709   : > { %v7514_v46 = vadd.f32 %v13286_v22, %v7464_v34  ;;  %v7531_v30 = vmax.f32 %v7515_v11, 0.0 }
0x170b   : > { %v7530_v49 = vmax.f32 %v7514_v46, 0.0 }
0x170c   : > { %v9349_v26 = vpop.f32.mrf.mxu1 }
0x170d   : > { %v7479_v4 = vadd.f32 %v9349_v26, %v9317_v0  ;;  %9400 = vmatprep.mubr.f32.mxu0 %v7530_v49 }
0x170e   : > { %v7473_v17 = vpop.f32.mrf.mxu1  ;;  %9401 = vmatmul.mubr.f32.gmra.mxu0 %v7531_v30 }
0x170f   : > { %v7474_v53 = vadd.f32 %v7473_v17, %v7248_v44  ;;  %v7517_v37 = vadd.f32 %v13286_v22, %v7479_v4 }
0x1711   : > { %v7516_v40 = vadd.f32 %v13286_v22, %v7474_v53  ;;  %v7533_v54 = vmax.f32 %v7517_v37, 0.0 }
0x1713   : > { %v7532_v9 = vmax.f32 %v7516_v40, 0.0 }
0x1714   : > { %v9352_v45 = vpop.f32.mrf.mxu1 }
0x1715   : > { %v7489_v57 = vadd.f32 %v9352_v45, %v9320_v23  ;;  %9403 = vmatprep.mubr.f32.mxu0 %v7532_v9 }
0x1716   : > { %v7483_v2 = vpop.f32.mrf.mxu1  ;;  %9404 = vmatmul.mubr.f32.gmra.mxu0 %v7533_v54 }
0x1717   : > { %v7484_v12 = vadd.f32 %v7483_v2, %v7258_v29  ;;  %v7519_v33 = vadd.f32 %v13286_v22, %v7489_v57 }
0x1719   : > { %v7518_v27 = vadd.f32 %v13286_v22, %v7484_v12  ;;  %v7535_v51 = vmax.f32 %v7519_v33, 0.0 }
0x171b   : > { %v7534_v7 = vmax.f32 %v7518_v27, 0.0 }
0x171d   : > { %9406 = vmatprep.mubr.f32.mxu0 %v7534_v7 }
0x171e   : > { %9407 = vmatmul.mubr.f32.gmra.mxu0 %v7535_v51 }
0x1723   : > { %v9355_v5 = vpop.f32.mrf.mxu1 }
0x1724   : > { %v7499_v25 = vadd.f32 %v9355_v5, %v9323_v63 }
0x1725   : > { %v7493_v10 = vpop.f32.mrf.mxu1 }
0x1726   : > { %v7494_v28 = vadd.f32 %v7493_v10, %v7268_v21  ;;  %v7521_v60 = vadd.f32 %v13286_v22, %v7499_v25 }
0x1728   : > { %v7520_v14 = vadd.f32 %v13286_v22, %v7494_v28  ;;  %v7537_v38 = vmax.f32 %v7521_v60, 0.0 }
0x172a   : > { %v7536_v19 = vmax.f32 %v7520_v14, 0.0 }
0x172c   : > { %9409 = vmatprep.mubr.f32.mxu0 %v7536_v19 }
0x172d   : > { %9410 = vmatmul.mubr.f32.gmra.mxu0 %v7537_v38 }
0x17ae   : > { %v9390_v8 = vpop.f32.mrf.mxu0 }
0x17af   : > { %v7614_v36 = vadd.f32 %v9390_v8, %v13307_v52 }
0x17b0   : > { %v7608_v47 = vpop.f32.mrf.mxu0 }
0x17b1   : > { %v8452_v1 = vmul.f32 -1.442695, %v7614_v36  ;;  %v7609_v42 = vadd.f32 %v13307_v52, %v7608_v47 }
0x17b3   : > { %10296 = vpow2.f32 %v8452_v1  ;;  %v8451_v24 = vmul.f32 -1.442695, %v7609_v42 }
0x17b5   : > { %10298 = vpow2.f32 %v8451_v24 }
0x17b6   : > { %v9393_v22 = vpop.f32.mrf.mxu0 }
0x17b7   : > { %v7624_v39 = vadd.f32 %v9393_v22, %v13307_v52 }
0x17b8   : > { %v7618_v31 = vpop.f32.mrf.mxu0 }
0x17b9   : > { %v8454_v59 = vmul.f32 -1.442695, %v7624_v39  ;;  %v7619_v20 = vadd.f32 %v13307_v52, %v7618_v31 }
0x17bb   : > { %10300 = vpow2.f32 %v8454_v59  ;;  %v8453_v18 = vmul.f32 -1.442695, %v7619_v20 }
0x17bd   : > { %10302 = vpow2.f32 %v8453_v18 }
0x17be   : > { %v9396_v55 = vpop.f32.mrf.mxu0 }
0x17bf   : > { %v7634_v35 = vadd.f32 %v9396_v55, %v13307_v52 }
0x17c0   : > { %v10297_v50 = vpop.eup %10296  ;;  %v7628_v61 = vpop.f32.mrf.mxu0 }
0x17c1   : > { %v7736_v62 = vadd.f32 1.0, %v10297_v50  ;;  %v8456_v32 = vmul.f32 -1.442695, %v7634_v35  ;;  %v7629_v16 = vadd.f32 %v13307_v52, %v7628_v61 }
0x17c2   : > { %v10299_v43 = vpop.eup %10298 }
0x17c3   : > { %10304 = vrcp.f32 %v7736_v62  ;;  %v7735_v58 = vadd.f32 1.0, %v10299_v43  ;;  %v8455_v6 = vmul.f32 -1.442695, %v7629_v16 }
0x17c4   : > { %10306 = vpow2.f32 %v8456_v32 }
0x17c5   : > { %10308 = vrcp.f32 %v7735_v58 }
0x17c6   : > { %10310 = vpow2.f32 %v8455_v6  ;;  %v9399_v48 = vpop.f32.mrf.mxu0 }
0x17c7   : > { %v7644_v3 = vadd.f32 %v9399_v48, %v13307_v52 }
0x17c8   : > { %v10301_v41 = vpop.eup %10300  ;;  %v7638_v56 = vpop.f32.mrf.mxu0 }
0x17c9   : > { %v7738_v15 = vadd.f32 1.0, %v10301_v41  ;;  %v8458_v13 = vmul.f32 -1.442695, %v7644_v3  ;;  %v7639_v34 = vadd.f32 %v13307_v52, %v7638_v56 }
0x17ca   : > { %v10303_v11 = vpop.eup %10302 }
0x17cb   : > { %10312 = vrcp.f32 %v7738_v15  ;;  %v7737_v46 = vadd.f32 1.0, %v10303_v11  ;;  %v8457_v0 = vmul.f32 -1.442695, %v7639_v34 }
0x17cc   : > { %10314 = vpow2.f32 %v8458_v13 }
0x17cd   : > { %10316 = vrcp.f32 %v7737_v46 }
0x17ce   : > { %10318 = vpow2.f32 %v8457_v0  ;;  %v9402_v49 = vpop.f32.mrf.mxu0 }
0x17cf   : > { %v7654_v30 = vadd.f32 %v9402_v49, %v13307_v52 }
0x17d0   : > { %v10305_v26 = vpop.eup %10304  ;;  %v7648_v4 = vpop.f32.mrf.mxu0 }
0x17d1   : > { %v10307_v44 = vpop.eup %10306  ;;  %7784 = vst [vmem:[%s13322_s28 + $0x8] sm:$0xff] %v10305_v26  ;;  %v8460_v17 = vmul.f32 -1.442695, %v7654_v30  ;;  %v7649_v53 = vadd.f32 %v13307_v52, %v7648_v4 }
0x17d2   : > { %v10309_v37 = vpop.eup %10308  ;;  %v7740_v40 = vadd.f32 1.0, %v10307_v44 }
0x17d3   : > { %v10311_v23 = vpop.eup %10310  ;;  %7783 = vst [vmem:[%s13322_s28] sm:$0xff] %v10309_v37  ;;  %10320 = vpow2.f32 %v8460_v17  ;;  %v8459_v9 = vmul.f32 -1.442695, %v7649_v53 }
0x17d4   : > { %10322 = vrcp.f32 %v7740_v40  ;;  %v7739_v54 = vadd.f32 1.0, %v10311_v23 }
0x17d5   : > { %10324 = vpow2.f32 %v8459_v9 }
0x17d6   : > { %10326 = vrcp.f32 %v7739_v54  ;;  %v9405_v45 = vpop.f32.mrf.mxu0 }
0x17d7   : > { %v7664_v57 = vadd.f32 %v9405_v45, %v13307_v52 }
0x17d8   : > { %v10313_v29 = vpop.eup %10312  ;;  %v7658_v2 = vpop.f32.mrf.mxu0 }
0x17d9   : > { %v10315_v12 = vpop.eup %10314  ;;  %7786 = vst [vmem:[%s13322_s28 + $0x18] sm:$0xff] %v10313_v29  ;;  %v8462_v33 = vmul.f32 -1.442695, %v7664_v57  ;;  %v7659_v27 = vadd.f32 %v13307_v52, %v7658_v2 }
0x17da   : > { %v10317_v7 = vpop.eup %10316  ;;  %v7742_v51 = vadd.f32 1.0, %v10315_v12 }
0x17db   : > { %v10319_v63 = vpop.eup %10318  ;;  %7785 = vst [vmem:[%s13322_s28 + $0x10] sm:$0xff] %v10317_v7  ;;  %10328 = vpow2.f32 %v8462_v33  ;;  %v8461_v5 = vmul.f32 -1.442695, %v7659_v27 }
0x17dc   : > { %10330 = vrcp.f32 %v7742_v51  ;;  %v7741_v25 = vadd.f32 1.0, %v10319_v63 }
0x17dd   : > { %10332 = vpow2.f32 %v8461_v5 }
0x17de   : > { %10334 = vrcp.f32 %v7741_v25  ;;  %v9408_v21 = vpop.f32.mrf.mxu0 }
0x17df   : > { %v7674_v10 = vadd.f32 %v9408_v21, %v13307_v52 }
0x17e0   : > { %v10321_v28 = vpop.eup %10320  ;;  %v7668_v60 = vpop.f32.mrf.mxu0 }
0x17e1   : > { %v10323_v14 = vpop.eup %10322  ;;  %v7744_v19 = vadd.f32 1.0, %v10321_v28  ;;  %v8464_v38 = vmul.f32 -1.442695, %v7674_v10  ;;  %v7669_v8 = vadd.f32 %v13307_v52, %v7668_v60 }
0x17e2   : > { %v10325_v36 = vpop.eup %10324  ;;  %7788 = vst [vmem:[%s13322_s28 + $0x28] sm:$0xff] %v10323_v14 }
0x17e3   : > { %v10327_v47 = vpop.eup %10326  ;;  %10336 = vrcp.f32 %v7744_v19  ;;  %v7743_v1 = vadd.f32 1.0, %v10325_v36  ;;  %v8463_v42 = vmul.f32 -1.442695, %v7669_v8 }
0x17e4   : > { %7787 = vst [vmem:[%s13322_s28 + $0x20] sm:$0xff] %v10327_v47  ;;  %10338 = vpow2.f32 %v8464_v38 }
0x17e5   : > { %10340 = vrcp.f32 %v7743_v1 }
0x17e6   : > { %10342 = vpow2.f32 %v8463_v42 }
0x17e8   : > { %v10329_v24 = vpop.eup %10328 }
0x17e9   : > { %v10331_v22 = vpop.eup %10330  ;;  %v7746_v39 = vadd.f32 1.0, %v10329_v24 }
0x17ea   : > { %v10333_v31 = vpop.eup %10332  ;;  %7790 = vst [vmem:[%s13322_s28 + $0x38] sm:$0xff] %v10331_v22 }
0x17eb   : > { %v10335_v59 = vpop.eup %10334  ;;  %10344 = vrcp.f32 %v7746_v39  ;;  %v7745_v20 = vadd.f32 1.0, %v10333_v31 }
0x17ec   : > { %7789 = vst [vmem:[%s13322_s28 + $0x30] sm:$0xff] %v10335_v59 }
0x17ed   : > { %10346 = vrcp.f32 %v7745_v20  ;;  %v9411_v18 = vpop.f32.mrf.mxu0 }
0x17ee   : > { %v7684_v55 = vadd.f32 %v9411_v18, %v13307_v52 }
0x17ef   : > { %v7678_v35 = vpop.f32.mrf.mxu0 }
0x17f0   : > { %v10337_v50 = vpop.eup %10336  ;;  %v8466_v61 = vmul.f32 -1.442695, %v7684_v55  ;;  %v7679_v62 = vadd.f32 %v13307_v52, %v7678_v35 }
0x17f1   : > { %v10339_v32 = vpop.eup %10338  ;;  %7792 = vst [vmem:[%s13322_s28 + $0x48] sm:$0xff] %v10337_v50 }
0x17f2   : > { %v10341_v16 = vpop.eup %10340  ;;  %v7748_v43 = vadd.f32 1.0, %v10339_v32  ;;  %10348 = vpow2.f32 %v8466_v61  ;;  %v8465_v58 = vmul.f32 -1.442695, %v7679_v62 }
0x17f3   : > { %v10343_v6 = vpop.eup %10342  ;;  %7791 = vst [vmem:[%s13322_s28 + $0x40] sm:$0xff] %v10341_v16 }
0x17f4   : > { %10350 = vrcp.f32 %v7748_v43  ;;  %v7747_v48 = vadd.f32 1.0, %v10343_v6 }
0x17f5   : > { %10352 = vpow2.f32 %v8465_v58 }
0x17f6   : > { %10354 = vrcp.f32 %v7747_v48 }
0x17f8   : > { %v10345_v3 = vpop.eup %10344 }
0x17f9   : > { %7794 = vst [vmem:[%s13322_s28 + $0x58] sm:$0xff] %v10345_v3 }
0x17fa   : > { %v10347_v52 = vpop.eup %10346 }
0x17fb   : > { %7793 = vst [vmem:[%s13322_s28 + $0x50] sm:$0xff] %v10347_v52 }
0x17ff   : > { %v10349_v41 = vpop.eup %10348 }
0x1800   : > { %v7750_v56 = vadd.f32 1.0, %v10349_v41 }
0x1801   : > { %v10351_v15 = vpop.eup %10350 }
0x1802   : > { %v10353_v13 = vpop.eup %10352  ;;  %7796 = vst [vmem:[%s13322_s28 + $0x68] sm:$0xff] %v10351_v15  ;;  %10356 = vrcp.f32 %v7750_v56 }
0x1803   : > { %v10355_v34 = vpop.eup %10354  ;;  %v7749_v11 = vadd.f32 1.0, %v10353_v13 }
0x1804   : > { %7795 = vst [vmem:[%s13322_s28 + $0x60] sm:$0xff] %v10355_v34 }
0x1805   : > { %10358 = vrcp.f32 %v7749_v11 }
0x180f   : > { %v10357_v46 = vpop.eup %10356 }
0x1810   : > { %7798 = vst [vmem:[%s13322_s28 + $0x78] sm:$0xff] %v10357_v46 }
0x1812   : > { %v10359_v0 = vpop.eup %10358 }
0x1813   : > { %7797 = vst [vmem:[%s13322_s28 + $0x70] sm:$0xff] %v10359_v0 }
0x1814 PF: > { %s12_s9 = sadd.s32 1, %s10429_s9  }
0x1815   : > { %p9_p4 = scmp.ge.s32.totalorder %s12_s9, 4  }
0x1817   :  { %11 = sbr.rel (!%p9_p4) target bundleno = 1 (0x1), region = 58 }

</bundles_post_ra>
